<compile_context>
chip_gen: v6e
topology: v6e:2x2x1
jax: 0.10.0
libtpu: 0.0.40
codegen_flags: <defaults>
</compile_context>

<pallas_src>
import jax
import jax.numpy as jnp
from jax import lax
from jax.experimental import pallas as pl
from jax.experimental.pallas import tpu as pltpu


_SUBLANE = 8  # sublane tile extent (second-minor axis)

# Fixed operand ordering for the fused kernel (matches the kernel signature).
_OPERAND_KEYS = (
    "w1", "b1",
    "w_b7_2", "b_b7_2", "w_b7_3", "b_b7_3",
    "w_d2", "b_d2", "w_d3", "b_d3", "w_d4", "b_d4", "w_d5", "b_d5",
    "w_pool", "b_pool",
)


def _round_up(x, m):
    return ((x + m - 1) // m) * m


def _stage1_segments(c7):
    """Column offsets of the three fused 1x1 convs inside the stage-1 weight
    (each segment starts on a 128-lane boundary)."""
    o_b1x1 = 0
    o_b7 = _round_up(192, 128)
    o_b7d = o_b7 + _round_up(c7, 128)
    total = o_b7d + _round_up(c7, 128)
    return {"b1x1": o_b1x1, "b7": o_b7, "b7d": o_b7d, "total": total}


# ----------------------------------------------------------------------------
# Parameter construction (deterministic, synthetic weights).  BN (eval) is
# folded into the conv weights (scale) and a bias; params contain only arrays.
# ----------------------------------------------------------------------------
def make_basic_conv_params(key, cin, cout, kh, kw, eps=0.001):
    kw_, kg, kb, km, kv = jax.random.split(key, 5)
    w = jax.random.normal(kw_, (kh, kw, cin, cout), jnp.float32) * 0.1
    gamma = 1.0 + 0.1 * jax.random.normal(kg, (cout,), jnp.float32)
    beta = 0.1 * jax.random.normal(kb, (cout,), jnp.float32)
    r_mean = 0.1 * jax.random.normal(km, (cout,), jnp.float32)
    r_var = 1.0 + 0.1 * jax.random.uniform(kv, (cout,), jnp.float32)
    scale = gamma / jnp.sqrt(r_var + eps)
    bias = beta - r_mean * scale
    # Conv is linear -> fold the BN scale directly into the weights.
    return {"w": w * scale, "bias": bias}


def make_inception_c_params(key, in_channels, channels_7x7):
    c7 = channels_7x7
    specs = {
        "branch1x1":      (in_channels, 192, 1, 1),
        "branch7x7_1":    (in_channels, c7, 1, 1),
        "branch7x7_2":    (c7, c7, 1, 7),
        "branch7x7_3":    (c7, 192, 7, 1),
        "branch7x7dbl_1": (in_channels, c7, 1, 1),
        "branch7x7dbl_2": (c7, c7, 7, 1),
        "branch7x7dbl_3": (c7, c7, 1, 7),
        "branch7x7dbl_4": (c7, c7, 7, 1),
        "branch7x7dbl_5": (c7, 192, 1, 7),
        "branch_pool":    (in_channels, 192, 1, 1),
    }
    params = {}
    keys = jax.random.split(key, len(specs))
    for k, (name, (cin, cout, kh, kwd)) in zip(keys, specs.items()):
        params[name] = make_basic_conv_params(k, cin, cout, kh, kwd)
    return params


def prepare_inception_c_operands(params):
    """Pack the folded per-branch params into the operands the fused kernel
    consumes (bf16 weights, packed stage-1 matrix).  Call once, outside jit."""
    w11 = params["branch1x1"]["w"]                       # (1,1,Cin,192)
    cin = w11.shape[2]
    c7 = params["branch7x7_1"]["w"].shape[3]
    seg = _stage1_segments(c7)

    w1 = jnp.zeros((cin, seg["total"]), jnp.float32)
    b1 = jnp.zeros((1, seg["total"]), jnp.float32)
    w1 = w1.at[:, seg["b1x1"]:seg["b1x1"] + 192].set(w11.reshape(cin, 192))
    b1 = b1.at[0, seg["b1x1"]:seg["b1x1"] + 192].set(params["branch1x1"]["bias"])
    w1 = w1.at[:, seg["b7"]:seg["b7"] + c7].set(
        params["branch7x7_1"]["w"].reshape(cin, c7))
    b1 = b1.at[0, seg["b7"]:seg["b7"] + c7].set(params["branch7x7_1"]["bias"])
    w1 = w1.at[:, seg["b7d"]:seg["b7d"] + c7].set(
        params["branch7x7dbl_1"]["w"].reshape(cin, c7))
    b1 = b1.at[0, seg["b7d"]:seg["b7d"] + c7].set(
        params["branch7x7dbl_1"]["bias"])

    def taps(name):
        w = params[name]["w"]                            # (7,1,ci,co) or (1,7,ci,co)
        ci, co = w.shape[2], w.shape[3]
        return (w.reshape(7, ci, co).astype(jnp.bfloat16),
                params[name]["bias"].reshape(1, co).astype(jnp.float32))

    ops = {"w1": w1.astype(jnp.bfloat16), "b1": b1}
    ops["w_b7_2"], ops["b_b7_2"] = taps("branch7x7_2")
    ops["w_b7_3"], ops["b_b7_3"] = taps("branch7x7_3")
    ops["w_d2"], ops["b_d2"] = taps("branch7x7dbl_2")
    ops["w_d3"], ops["b_d3"] = taps("branch7x7dbl_3")
    ops["w_d4"], ops["b_d4"] = taps("branch7x7dbl_4")
    ops["w_d5"], ops["b_d5"] = taps("branch7x7dbl_5")
    ops["w_pool"] = params["branch_pool"]["w"].reshape(cin, 192).astype(jnp.bfloat16)
    ops["b_pool"] = params["branch_pool"]["bias"].reshape(1, 192).astype(jnp.float32)
    return ops


# ----------------------------------------------------------------------------
# Fused InceptionC forward (one Pallas kernel)
# ----------------------------------------------------------------------------
@jax.jit
def inception_c_forward(x_nchw, ops):
    """x: (N, Cin, H, W) f32 (NCHW, like PyTorch). Returns (N, 768, H, W) f32."""
    N, Cin, H, W = x_nchw.shape
    assert W % _SUBLANE == 0, "W must be a multiple of 8 (see TODO at top)"
    HW = H * W
    c7 = ops["w_b7_2"].shape[1]
    seg = _stage1_segments(c7)

    # Images per grid step (fold batch into matmul M) while keeping >= 2..4
    # grid steps so v7x's two TensorCores / the BlockSpec pipeline have work.
    nb = max(1, N // 4)
    while N % nb:
        nb -= 1
    M = nb * HW

    def kernel(x_ref, w1_ref, b1_ref,
               w72_ref, b72_ref, w73_ref, b73_ref,
               wd2_ref, bd2_ref, wd3_ref, bd3_ref,
               wd4_ref, bd4_ref, wd5_ref, bd5_ref,
               wp_ref, bp_ref, o_ref, wpad7_ref, wpadp_ref):
        # Zero the W-padding staging scratches once per step (pad lanes stay 0).
        wpad7_ref[...] = jnp.zeros(wpad7_ref.shape, wpad7_ref.dtype)
        wpadp_ref[...] = jnp.zeros(wpadp_ref.shape, wpadp_ref.dtype)

        # ---- load + NCHW -> NHWC (batched minor-dim transpose, XLU) -------
        x = x_ref[...]                                   # (nb, Cin, HW) f32
        xT = jnp.swapaxes(x, 1, 2)                       # (nb, HW, Cin)
        xm = xT.reshape(M, Cin).astype(jnp.bfloat16)     # fused matmul LHS

        def store_branch(y_flat, k):
            # (M, 192) f32 -> (nb, 192, HW), written at its channel offset of
            # the concatenated NCHW-flat output (fold concat + final transpose).
            y = jnp.swapaxes(y_flat.reshape(nb, HW, 192), 1, 2)
            o_ref[:, 192 * k:192 * (k + 1), :] = y

        def conv7(v, w_ref, b_ref, axis):
            """7-tap stride-1 'same' conv along axis (1=H, 2=W) + bias + ReLU.
            v: (nb, H, W, ci) f32; w_ref: (7, ci, co) bf16 (BN folded)."""
            K, ci, co = w_ref.shape
            pad = (K - 1) // 2
            if axis == 1:
                z = jnp.zeros((nb, pad, W, ci), jnp.bfloat16)
                vp = jnp.concatenate([z, v.astype(jnp.bfloat16), z], axis=1)
                off, ext = 0, H
            else:
                # Tile-aligned staging: payload at sublane offset 8; the
                # zeroed borders act as the +/-3 'same' padding.
                wpad7_ref[:, :, _SUBLANE:_SUBLANE + W, :] = v.astype(jnp.bfloat16)
                vp = wpad7_ref[...]
                off, ext = _SUBLANE - pad, W
            acc = jnp.zeros((M, co), jnp.float32)
            for d in range(K):
                if axis == 1:
                    tap = vp[:, off + d:off + d + ext, :, :]
                else:
                    tap = vp[:, :, off + d:off + d + ext, :]
                acc = acc + jnp.dot(tap.reshape(M, ci), w_ref[d],
                                    preferred_element_type=jnp.float32)
            y = jnp.maximum(acc + b_ref[...], 0.0)
            return y.reshape(nb, H, W, co)

        # ---- stage 1: the three 1x1 convs fused into one MXU matmul -------
        y0 = jnp.dot(xm, w1_ref[...], preferred_element_type=jnp.float32)
        y0 = jnp.maximum(y0 + b1_ref[...], 0.0)
        store_branch(y0[:, seg["b1x1"]:seg["b1x1"] + 192], 0)      # branch1x1
        t7 = y0[:, seg["b7"]:seg["b7"] + c7].reshape(nb, H, W, c7)
        t7d = y0[:, seg["b7d"]:seg["b7d"] + c7].reshape(nb, H, W, c7)

        # ---- branch7x7: 1x1 -> 1x7 -> 7x1 ----------------------------------
        b7 = conv7(t7, w72_ref, b72_ref, axis=2)          # 1x7 (slide W)
        b7 = conv7(b7, w73_ref, b73_ref, axis=1)          # 7x1 (slide H)
        store_branch(b7.reshape(M, 192), 1)

        # ---- branch7x7dbl: 1x1 -> 7x1 -> 1x7 -> 7x1 -> 1x7 -----------------
        b7d = conv7(t7d, wd2_ref, bd2_ref, axis=1)
        b7d = conv7(b7d, wd3_ref, bd3_ref, axis=2)
        b7d = conv7(b7d, wd4_ref, bd4_ref, axis=1)
        b7d = conv7(b7d, wd5_ref, bd5_ref, axis=2)
        store_branch(b7d.reshape(M, 192), 2)

        # ---- branch_pool: 3x3 avg pool (count_include_pad) + 1x1 conv ------
        xs = xT.reshape(nb, H, W, Cin)                    # f32 spatial view
        zh = jnp.zeros((nb, 1, W, Cin), jnp.float32)
        xh = jnp.concatenate([zh, xs, zh], axis=1)        # pad H by 1
        sh = xh[:, 0:H] + xh[:, 1:H + 1] + xh[:, 2:H + 2]
        wpadp_ref[:, :, _SUBLANE:_SUBLANE + W, :] = sh    # pad W (aligned)
        sp = wpadp_ref[...]
        ow = _SUBLANE - 1
        pooled = (sp[:, :, ow:ow + W] + sp[:, :, ow + 1:ow + 1 + W]
                  + sp[:, :, ow + 2:ow + 2 + W]) * (1.0 / 9.0)
        yp = jnp.dot(pooled.reshape(M, Cin).astype(jnp.bfloat16), wp_ref[...],
                     preferred_element_type=jnp.float32)
        store_branch(jnp.maximum(yp + bp_ref[...], 0.0), 3)

    operands = [ops[k] for k in _OPERAND_KEYS]

    def _const_spec(a):
        nd = a.ndim
        return pl.BlockSpec(a.shape, lambda i, _nd=nd: (0,) * _nd)

    in_specs = ([pl.BlockSpec((nb, Cin, HW), lambda i: (i, 0, 0))]
                + [_const_spec(a) for a in operands])

    flops = N * (2 * HW * Cin * (192 + 2 * c7)
                 + 2 * HW * 7 * c7 * (4 * c7 + 2 * 192)
                 + 2 * HW * Cin * 192 + 9 * HW * Cin)
    bytes_accessed = (int(x_nchw.size) * 4
                      + sum(int(a.size) * a.dtype.itemsize for a in operands)
                      + N * 768 * HW * 4)
    cost = pl.CostEstimate(flops=int(flops), transcendentals=0,
                           bytes_accessed=int(bytes_accessed))

    out = pl.pallas_call(
        kernel,
        out_shape=jax.ShapeDtypeStruct((N, 4 * 192, HW), jnp.float32),
        grid=(N // nb,),
        in_specs=in_specs,
        out_specs=pl.BlockSpec((nb, 4 * 192, HW), lambda i: (i, 0, 0)),
        scratch_shapes=[
            pltpu.VMEM((nb, H, W + 2 * _SUBLANE, c7), jnp.bfloat16),
            pltpu.VMEM((nb, H, W + 2 * _SUBLANE, Cin), jnp.float32),
        ],
        compiler_params=pltpu.CompilerParams(
            dimension_semantics=("parallel",),
            internal_scratch_in_bytes=4 * 1024 * 1024),
        cost_estimate=cost,
    )(x_nchw.reshape(N, Cin, HW), *operands)

    return out.reshape(N, 4 * 192, H, W)


# ----------------------------------------------------------------------------
# Pure-JAX reference (same bf16 quantization points, for a tight check)
# ----------------------------------------------------------------------------
def ref_basic_conv(x_nhwc, p):
    w = p["w"]
    KH, KW, _, Cout = w.shape
    ph, pw = (KH - 1) // 2, (KW - 1) // 2
    y = lax.conv_general_dilated(
        x_nhwc.astype(jnp.bfloat16), w.astype(jnp.bfloat16),
        window_strides=(1, 1), padding=((ph, ph), (pw, pw)),
        dimension_numbers=("NHWC", "HWIO", "NHWC"),
        preferred_element_type=jnp.float32)
    return jnp.maximum(y + p["bias"], 0.0)


def ref_forward(x_nchw, params):
    x = jnp.transpose(x_nchw, (0, 2, 3, 1))
    b1 = ref_basic_conv(x, params["branch1x1"])
    b7 = ref_basic_conv(x, params["branch7x7_1"])
    b7 = ref_basic_conv(b7, params["branch7x7_2"])
    b7 = ref_basic_conv(b7, params["branch7x7_3"])
    b7d = ref_basic_conv(x, params["branch7x7dbl_1"])
    b7d = ref_basic_conv(b7d, params["branch7x7dbl_2"])
    b7d = ref_basic_conv(b7d, params["branch7x7dbl_3"])
    b7d = ref_basic_conv(b7d, params["branch7x7dbl_4"])
    b7d = ref_basic_conv(b7d, params["branch7x7dbl_5"])
    bp = lax.reduce_window(x, 0.0, lax.add, (1, 3, 3, 1), (1, 1, 1, 1),
                           ((0, 0), (1, 1), (1, 1), (0, 0))) * (1.0 / 9.0)
    bp = ref_basic_conv(bp, params["branch_pool"])
    out = jnp.concatenate([b1, b7, b7d, bp], axis=-1)
    return jnp.transpose(out, (0, 3, 1, 2))


# ----------------------------------------------------------------------------
if __name__ == "__main__":
    key = jax.random.PRNGKey(0)
    k_param, k_x = jax.random.split(key)

    N, Cin, H, W = 2, 16, 8, 8            # small shapes; N even (v7x 2-TC)
    channels_7x7 = 16

    params = make_inception_c_params(k_param, Cin, channels_7x7)
    kernel_ops = prepare_inception_c_operands(params)
    x = jax.random.normal(k_x, (N, Cin, H, W), jnp.float32)   # NCHW like torch

    out = jax.block_until_ready(inception_c_forward(x, kernel_ops))
    assert out.shape == (N, 192 * 4, H, W), out.shape

    ref = jax.block_until_ready(ref_forward(x, params))
    max_err = float(jnp.max(jnp.abs(out - ref)))
    assert jnp.allclose(out, ref, rtol=5e-3, atol=5e-3), max_err

    print("KERNEL_OK")
</pallas_src>

<mosaic_0001>
module attributes {stable_mosaic.version = 11 : i64} {
  func.func @kernel(%arg0: i32, %arg1: memref<1x16x64xf32, #tpu.memory_space<vmem>>, %arg2: memref<16x512xbf16, #tpu.memory_space<vmem>>, %arg3: memref<1x512xf32, #tpu.memory_space<vmem>>, %arg4: memref<7x16x16xbf16, #tpu.memory_space<vmem>>, %arg5: memref<1x16xf32, #tpu.memory_space<vmem>>, %arg6: memref<7x16x192xbf16, #tpu.memory_space<vmem>>, %arg7: memref<1x192xf32, #tpu.memory_space<vmem>>, %arg8: memref<7x16x16xbf16, #tpu.memory_space<vmem>>, %arg9: memref<1x16xf32, #tpu.memory_space<vmem>>, %arg10: memref<7x16x16xbf16, #tpu.memory_space<vmem>>, %arg11: memref<1x16xf32, #tpu.memory_space<vmem>>, %arg12: memref<7x16x16xbf16, #tpu.memory_space<vmem>>, %arg13: memref<1x16xf32, #tpu.memory_space<vmem>>, %arg14: memref<7x16x192xbf16, #tpu.memory_space<vmem>>, %arg15: memref<1x192xf32, #tpu.memory_space<vmem>>, %arg16: memref<16x192xbf16, #tpu.memory_space<vmem>>, %arg17: memref<1x192xf32, #tpu.memory_space<vmem>>, %arg18: memref<1x768x64xf32, #tpu.memory_space<vmem>>, %arg19: memref<1x8x24x16xbf16, #tpu.memory_space<vmem>>, %arg20: memref<1x8x24x16xf32, #tpu.memory_space<vmem>>) attributes {dimension_semantics = [#tpu.dimension_semantics<parallel>], iteration_bounds = array<i64: 2>, scalar_prefetch = 0 : i64, scratch_operands = 2 : i64, tpu.core_type = #tpu.core_type<tc>, window_params = [{transform_indices = @transform_0, window_bounds = array<i64: 1, 16, 64>}, {pipeline_mode = #tpu.pipeline_mode<synchronous>, transform_indices = @transform_1, window_bounds = array<i64: 16, 512>}, {pipeline_mode = #tpu.pipeline_mode<synchronous>, transform_indices = @transform_2, window_bounds = array<i64: 1, 512>}, {pipeline_mode = #tpu.pipeline_mode<synchronous>, transform_indices = @transform_3, window_bounds = array<i64: 7, 16, 16>}, {pipeline_mode = #tpu.pipeline_mode<synchronous>, transform_indices = @transform_4, window_bounds = array<i64: 1, 16>}, {pipeline_mode = #tpu.pipeline_mode<synchronous>, transform_indices = @transform_5, window_bounds = array<i64: 7, 16, 192>}, {pipeline_mode = #tpu.pipeline_mode<synchronous>, transform_indices = @transform_6, window_bounds = array<i64: 1, 192>}, {pipeline_mode = #tpu.pipeline_mode<synchronous>, transform_indices = @transform_7, window_bounds = array<i64: 7, 16, 16>}, {pipeline_mode = #tpu.pipeline_mode<synchronous>, transform_indices = @transform_8, window_bounds = array<i64: 1, 16>}, {pipeline_mode = #tpu.pipeline_mode<synchronous>, transform_indices = @transform_9, window_bounds = array<i64: 7, 16, 16>}, {pipeline_mode = #tpu.pipeline_mode<synchronous>, transform_indices = @transform_10, window_bounds = array<i64: 1, 16>}, {pipeline_mode = #tpu.pipeline_mode<synchronous>, transform_indices = @transform_11, window_bounds = array<i64: 7, 16, 16>}, {pipeline_mode = #tpu.pipeline_mode<synchronous>, transform_indices = @transform_12, window_bounds = array<i64: 1, 16>}, {pipeline_mode = #tpu.pipeline_mode<synchronous>, transform_indices = @transform_13, window_bounds = array<i64: 7, 16, 192>}, {pipeline_mode = #tpu.pipeline_mode<synchronous>, transform_indices = @transform_14, window_bounds = array<i64: 1, 192>}, {pipeline_mode = #tpu.pipeline_mode<synchronous>, transform_indices = @transform_15, window_bounds = array<i64: 16, 192>}, {pipeline_mode = #tpu.pipeline_mode<synchronous>, transform_indices = @transform_16, window_bounds = array<i64: 1, 192>}, {transform_indices = @transform_17, window_bounds = array<i64: 1, 768, 64>}]} {
    %cst = arith.constant 0.000000e+00 : bf16
    %0 = vector.broadcast %cst : bf16 to vector<1x8x24x16xbf16>
    %c0 = arith.constant 0 : index
    %c0_0 = arith.constant 0 : index
    %c0_1 = arith.constant 0 : index
    %c0_2 = arith.constant 0 : index
    %1 = vector.load %arg19[%c0, %c0_0, %c0_1, %c0_2] : memref<1x8x24x16xbf16, #tpu.memory_space<vmem>>, vector<1x8x24x16xbf16>
    tpu.vector_store %arg19[%c0, %c0_0, %c0_1, %c0_2], %0 {strides = array<i32>} : memref<1x8x24x16xbf16, #tpu.memory_space<vmem>>, vector<1x8x24x16xbf16>,
    %cst_3 = arith.constant 0.000000e+00 : f32
    %2 = vector.broadcast %cst_3 : f32 to vector<1x8x24x16xf32>
    %c0_4 = arith.constant 0 : index
    %c0_5 = arith.constant 0 : index
    %c0_6 = arith.constant 0 : index
    %c0_7 = arith.constant 0 : index
    %3 = vector.load %arg20[%c0_4, %c0_5, %c0_6, %c0_7] : memref<1x8x24x16xf32, #tpu.memory_space<vmem>>, vector<1x8x24x16xf32>
    tpu.vector_store %arg20[%c0_4, %c0_5, %c0_6, %c0_7], %2 {strides = array<i32>} : memref<1x8x24x16xf32, #tpu.memory_space<vmem>>, vector<1x8x24x16xf32>,
    %c0_8 = arith.constant 0 : index
    %c0_9 = arith.constant 0 : index
    %c0_10 = arith.constant 0 : index
    %4 = vector.load %arg1[%c0_8, %c0_9, %c0_10] : memref<1x16x64xf32, #tpu.memory_space<vmem>>, vector<1x16x64xf32>
    %5 = tpu.transpose %4, [0, 2, 1] : vector<1x16x64xf32> -> vector<1x64x16xf32>
    %6 = vector.shape_cast %5 : vector<1x64x16xf32> to vector<64x16xf32>
    %7 = arith.truncf %6 : vector<64x16xf32> to vector<64x16xbf16>
    %c0_11 = arith.constant 0 : index
    %c0_12 = arith.constant 0 : index
    %8 = vector.load %arg2[%c0_11, %c0_12] : memref<16x512xbf16, #tpu.memory_space<vmem>>, vector<16x512xbf16>
    %cst_13 = arith.constant dense<0.000000e+00> : vector<64x512xf32>
    %9 = tpu.matmul %7, %8, %cst_13 {dimension_numbers = #tpu.dot_dimension_numbers<[1], [0], [0], [1], [0, 0, 1, 1], [], []>} : vector<64x16xbf16>, vector<16x512xbf16>, vector<64x512xf32> -> vector<64x512xf32>
    %c0_14 = arith.constant 0 : index
    %c0_15 = arith.constant 0 : index
    %10 = vector.load %arg3[%c0_14, %c0_15] : memref<1x512xf32, #tpu.memory_space<vmem>>, vector<1x512xf32>
    %11 = vector.broadcast %10 : vector<1x512xf32> to vector<64x512xf32>
    %12 = arith.addf %9, %11 : vector<64x512xf32>
    %cst_16 = arith.constant 0.000000e+00 : f32
    %13 = vector.broadcast %cst_16 : f32 to vector<64x512xf32>
    %14 = arith.maximumf %12, %13 : vector<64x512xf32>
    %15 = vector.extract_strided_slice %14 {offsets = [0, 0], sizes = [64, 192], strides = [1, 1]} : vector<64x512xf32> to vector<64x192xf32>
    %16 = vector.shape_cast %15 : vector<64x192xf32> to vector<1x64x192xf32>
    %17 = tpu.transpose %16, [0, 2, 1] : vector<1x64x192xf32> -> vector<1x192x64xf32>
    %c0_17 = arith.constant 0 : index
    %c0_18 = arith.constant 0 : index
    %c0_19 = arith.constant 0 : index
    %18 = vector.load %arg18[%c0_17, %c0_18, %c0_19] : memref<1x768x64xf32, #tpu.memory_space<vmem>>, vector<1x192x64xf32>
    tpu.vector_store %arg18[%c0_17, %c0_18, %c0_19], %17 {strides = array<i32>} : memref<1x768x64xf32, #tpu.memory_space<vmem>>, vector<1x192x64xf32>,
    %19 = vector.extract_strided_slice %14 {offsets = [0, 256], sizes = [64, 16], strides = [1, 1]} : vector<64x512xf32> to vector<64x16xf32>
    %20 = vector.shape_cast %19 : vector<64x16xf32> to vector<1x8x8x16xf32>
    %21 = vector.extract_strided_slice %14 {offsets = [0, 384], sizes = [64, 16], strides = [1, 1]} : vector<64x512xf32> to vector<64x16xf32>
    %22 = vector.shape_cast %21 : vector<64x16xf32> to vector<1x8x8x16xf32>
    %23 = arith.truncf %20 : vector<1x8x8x16xf32> to vector<1x8x8x16xbf16>
    %c0_20 = arith.constant 0 : index
    %c0_21 = arith.constant 0 : index
    %c8 = arith.constant 8 : index
    %c0_22 = arith.constant 0 : index
    %24 = vector.load %arg19[%c0_20, %c0_21, %c8, %c0_22] : memref<1x8x24x16xbf16, #tpu.memory_space<vmem>>, vector<1x8x8x16xbf16>
    tpu.vector_store %arg19[%c0_20, %c0_21, %c8, %c0_22], %23 {strides = array<i32>} : memref<1x8x24x16xbf16, #tpu.memory_space<vmem>>, vector<1x8x8x16xbf16>,
    %c0_23 = arith.constant 0 : index
    %c0_24 = arith.constant 0 : index
    %c0_25 = arith.constant 0 : index
    %c0_26 = arith.constant 0 : index
    %25 = vector.load %arg19[%c0_23, %c0_24, %c0_25, %c0_26] : memref<1x8x24x16xbf16, #tpu.memory_space<vmem>>, vector<1x8x24x16xbf16>
    %cst_27 = arith.constant 0.000000e+00 : f32
    %26 = vector.broadcast %cst_27 : f32 to vector<64x16xf32>
    %27 = vector.extract_strided_slice %25 {offsets = [0, 0, 5, 0], sizes = [1, 8, 8, 16], strides = [1, 1, 1, 1]} : vector<1x8x24x16xbf16> to vector<1x8x8x16xbf16>
    %28 = vector.shape_cast %27 : vector<1x8x8x16xbf16> to vector<64x16xbf16>
    %c0_28 = arith.constant 0 : index
    %c0_29 = arith.constant 0 : index
    %c0_30 = arith.constant 0 : index
    %29 = vector.load %arg4[%c0_28, %c0_29, %c0_30] : memref<7x16x16xbf16, #tpu.memory_space<vmem>>, vector<1x16x16xbf16>
    %30 = vector.shape_cast %29 : vector<1x16x16xbf16> to vector<16x16xbf16>
    %cst_31 = arith.constant dense<0.000000e+00> : vector<64x16xf32>
    %31 = tpu.matmul %28, %30, %cst_31 {dimension_numbers = #tpu.dot_dimension_numbers<[1], [0], [0], [1], [0, 0, 1, 1], [], []>} : vector<64x16xbf16>, vector<16x16xbf16>, vector<64x16xf32> -> vector<64x16xf32>
    %32 = arith.addf %26, %31 : vector<64x16xf32>
    %33 = vector.extract_strided_slice %25 {offsets = [0, 0, 6, 0], sizes = [1, 8, 8, 16], strides = [1, 1, 1, 1]} : vector<1x8x24x16xbf16> to vector<1x8x8x16xbf16>
    %34 = vector.shape_cast %33 : vector<1x8x8x16xbf16> to vector<64x16xbf16>
    %c1 = arith.constant 1 : index
    %c0_32 = arith.constant 0 : index
    %c0_33 = arith.constant 0 : index
    %35 = vector.load %arg4[%c1, %c0_32, %c0_33] : memref<7x16x16xbf16, #tpu.memory_space<vmem>>, vector<1x16x16xbf16>
    %36 = vector.shape_cast %35 : vector<1x16x16xbf16> to vector<16x16xbf16>
    %cst_34 = arith.constant dense<0.000000e+00> : vector<64x16xf32>
    %37 = tpu.matmul %34, %36, %cst_34 {dimension_numbers = #tpu.dot_dimension_numbers<[1], [0], [0], [1], [0, 0, 1, 1], [], []>} : vector<64x16xbf16>, vector<16x16xbf16>, vector<64x16xf32> -> vector<64x16xf32>
    %38 = arith.addf %32, %37 : vector<64x16xf32>
    %39 = vector.extract_strided_slice %25 {offsets = [0, 0, 7, 0], sizes = [1, 8, 8, 16], strides = [1, 1, 1, 1]} : vector<1x8x24x16xbf16> to vector<1x8x8x16xbf16>
    %40 = vector.shape_cast %39 : vector<1x8x8x16xbf16> to vector<64x16xbf16>
    %c2 = arith.constant 2 : index
    %c0_35 = arith.constant 0 : index
    %c0_36 = arith.constant 0 : index
    %41 = vector.load %arg4[%c2, %c0_35, %c0_36] : memref<7x16x16xbf16, #tpu.memory_space<vmem>>, vector<1x16x16xbf16>
    %42 = vector.shape_cast %41 : vector<1x16x16xbf16> to vector<16x16xbf16>
    %cst_37 = arith.constant dense<0.000000e+00> : vector<64x16xf32>
    %43 = tpu.matmul %40, %42, %cst_37 {dimension_numbers = #tpu.dot_dimension_numbers<[1], [0], [0], [1], [0, 0, 1, 1], [], []>} : vector<64x16xbf16>, vector<16x16xbf16>, vector<64x16xf32> -> vector<64x16xf32>
    %44 = arith.addf %38, %43 : vector<64x16xf32>
    %45 = vector.extract_strided_slice %25 {offsets = [0, 0, 8, 0], sizes = [1, 8, 8, 16], strides = [1, 1, 1, 1]} : vector<1x8x24x16xbf16> to vector<1x8x8x16xbf16>
    %46 = vector.shape_cast %45 : vector<1x8x8x16xbf16> to vector<64x16xbf16>
    %c3 = arith.constant 3 : index
    %c0_38 = arith.constant 0 : index
    %c0_39 = arith.constant 0 : index
    %47 = vector.load %arg4[%c3, %c0_38, %c0_39] : memref<7x16x16xbf16, #tpu.memory_space<vmem>>, vector<1x16x16xbf16>
    %48 = vector.shape_cast %47 : vector<1x16x16xbf16> to vector<16x16xbf16>
    %cst_40 = arith.constant dense<0.000000e+00> : vector<64x16xf32>
    %49 = tpu.matmul %46, %48, %cst_40 {dimension_numbers = #tpu.dot_dimension_numbers<[1], [0], [0], [1], [0, 0, 1, 1], [], []>} : vector<64x16xbf16>, vector<16x16xbf16>, vector<64x16xf32> -> vector<64x16xf32>
    %50 = arith.addf %44, %49 : vector<64x16xf32>
    %51 = vector.extract_strided_slice %25 {offsets = [0, 0, 9, 0], sizes = [1, 8, 8, 16], strides = [1, 1, 1, 1]} : vector<1x8x24x16xbf16> to vector<1x8x8x16xbf16>
    %52 = vector.shape_cast %51 : vector<1x8x8x16xbf16> to vector<64x16xbf16>
    %c4 = arith.constant 4 : index
    %c0_41 = arith.constant 0 : index
    %c0_42 = arith.constant 0 : index
    %53 = vector.load %arg4[%c4, %c0_41, %c0_42] : memref<7x16x16xbf16, #tpu.memory_space<vmem>>, vector<1x16x16xbf16>
    %54 = vector.shape_cast %53 : vector<1x16x16xbf16> to vector<16x16xbf16>
    %cst_43 = arith.constant dense<0.000000e+00> : vector<64x16xf32>
    %55 = tpu.matmul %52, %54, %cst_43 {dimension_numbers = #tpu.dot_dimension_numbers<[1], [0], [0], [1], [0, 0, 1, 1], [], []>} : vector<64x16xbf16>, vector<16x16xbf16>, vector<64x16xf32> -> vector<64x16xf32>
    %56 = arith.addf %50, %55 : vector<64x16xf32>
    %57 = vector.extract_strided_slice %25 {offsets = [0, 0, 10, 0], sizes = [1, 8, 8, 16], strides = [1, 1, 1, 1]} : vector<1x8x24x16xbf16> to vector<1x8x8x16xbf16>
    %58 = vector.shape_cast %57 : vector<1x8x8x16xbf16> to vector<64x16xbf16>
    %c5 = arith.constant 5 : index
    %c0_44 = arith.constant 0 : index
    %c0_45 = arith.constant 0 : index
    %59 = vector.load %arg4[%c5, %c0_44, %c0_45] : memref<7x16x16xbf16, #tpu.memory_space<vmem>>, vector<1x16x16xbf16>
    %60 = vector.shape_cast %59 : vector<1x16x16xbf16> to vector<16x16xbf16>
    %cst_46 = arith.constant dense<0.000000e+00> : vector<64x16xf32>
    %61 = tpu.matmul %58, %60, %cst_46 {dimension_numbers = #tpu.dot_dimension_numbers<[1], [0], [0], [1], [0, 0, 1, 1], [], []>} : vector<64x16xbf16>, vector<16x16xbf16>, vector<64x16xf32> -> vector<64x16xf32>
    %62 = arith.addf %56, %61 : vector<64x16xf32>
    %63 = vector.extract_strided_slice %25 {offsets = [0, 0, 11, 0], sizes = [1, 8, 8, 16], strides = [1, 1, 1, 1]} : vector<1x8x24x16xbf16> to vector<1x8x8x16xbf16>
    %64 = vector.shape_cast %63 : vector<1x8x8x16xbf16> to vector<64x16xbf16>
    %c6 = arith.constant 6 : index
    %c0_47 = arith.constant 0 : index
    %c0_48 = arith.constant 0 : index
    %65 = vector.load %arg4[%c6, %c0_47, %c0_48] : memref<7x16x16xbf16, #tpu.memory_space<vmem>>, vector<1x16x16xbf16>
    %66 = vector.shape_cast %65 : vector<1x16x16xbf16> to vector<16x16xbf16>
    %cst_49 = arith.constant dense<0.000000e+00> : vector<64x16xf32>
    %67 = tpu.matmul %64, %66, %cst_49 {dimension_numbers = #tpu.dot_dimension_numbers<[1], [0], [0], [1], [0, 0, 1, 1], [], []>} : vector<64x16xbf16>, vector<16x16xbf16>, vector<64x16xf32> -> vector<64x16xf32>
    %68 = arith.addf %62, %67 : vector<64x16xf32>
    %c0_50 = arith.constant 0 : index
    %c0_51 = arith.constant 0 : index
    %69 = vector.load %arg5[%c0_50, %c0_51] : memref<1x16xf32, #tpu.memory_space<vmem>>, vector<1x16xf32>
    %70 = vector.broadcast %69 : vector<1x16xf32> to vector<64x16xf32>
    %71 = arith.addf %68, %70 : vector<64x16xf32>
    %cst_52 = arith.constant 0.000000e+00 : f32
    %72 = vector.broadcast %cst_52 : f32 to vector<64x16xf32>
    %73 = arith.maximumf %71, %72 : vector<64x16xf32>
    %74 = vector.shape_cast %73 : vector<64x16xf32> to vector<1x8x8x16xf32>
    %cst_53 = arith.constant 0.000000e+00 : bf16
    %75 = vector.broadcast %cst_53 : bf16 to vector<1x3x8x16xbf16>
    %76 = arith.truncf %74 : vector<1x8x8x16xf32> to vector<1x8x8x16xbf16>
    %77 = tpu.concatenate %75, %76, %75 in 1 : vector<1x3x8x16xbf16>, vector<1x8x8x16xbf16>, vector<1x3x8x16xbf16> -> vector<1x14x8x16xbf16>
    %cst_54 = arith.constant 0.000000e+00 : f32
    %78 = vector.broadcast %cst_54 : f32 to vector<64x192xf32>
    %79 = vector.extract_strided_slice %77 {offsets = [0, 0, 0, 0], sizes = [1, 8, 8, 16], strides = [1, 1, 1, 1]} : vector<1x14x8x16xbf16> to vector<1x8x8x16xbf16>
    %80 = vector.shape_cast %79 : vector<1x8x8x16xbf16> to vector<64x16xbf16>
    %c0_55 = arith.constant 0 : index
    %c0_56 = arith.constant 0 : index
    %c0_57 = arith.constant 0 : index
    %81 = vector.load %arg6[%c0_55, %c0_56, %c0_57] : memref<7x16x192xbf16, #tpu.memory_space<vmem>>, vector<1x16x192xbf16>
    %82 = vector.shape_cast %81 : vector<1x16x192xbf16> to vector<16x192xbf16>
    %cst_58 = arith.constant dense<0.000000e+00> : vector<64x192xf32>
    %83 = tpu.matmul %80, %82, %cst_58 {dimension_numbers = #tpu.dot_dimension_numbers<[1], [0], [0], [1], [0, 0, 1, 1], [], []>} : vector<64x16xbf16>, vector<16x192xbf16>, vector<64x192xf32> -> vector<64x192xf32>
    %84 = arith.addf %78, %83 : vector<64x192xf32>
    %85 = vector.extract_strided_slice %77 {offsets = [0, 1, 0, 0], sizes = [1, 8, 8, 16], strides = [1, 1, 1, 1]} : vector<1x14x8x16xbf16> to vector<1x8x8x16xbf16>
    %86 = vector.shape_cast %85 : vector<1x8x8x16xbf16> to vector<64x16xbf16>
    %c1_59 = arith.constant 1 : index
    %c0_60 = arith.constant 0 : index
    %c0_61 = arith.constant 0 : index
    %87 = vector.load %arg6[%c1_59, %c0_60, %c0_61] : memref<7x16x192xbf16, #tpu.memory_space<vmem>>, vector<1x16x192xbf16>
    %88 = vector.shape_cast %87 : vector<1x16x192xbf16> to vector<16x192xbf16>
    %cst_62 = arith.constant dense<0.000000e+00> : vector<64x192xf32>
    %89 = tpu.matmul %86, %88, %cst_62 {dimension_numbers = #tpu.dot_dimension_numbers<[1], [0], [0], [1], [0, 0, 1, 1], [], []>} : vector<64x16xbf16>, vector<16x192xbf16>, vector<64x192xf32> -> vector<64x192xf32>
    %90 = arith.addf %84, %89 : vector<64x192xf32>
    %91 = vector.extract_strided_slice %77 {offsets = [0, 2, 0, 0], sizes = [1, 8, 8, 16], strides = [1, 1, 1, 1]} : vector<1x14x8x16xbf16> to vector<1x8x8x16xbf16>
    %92 = vector.shape_cast %91 : vector<1x8x8x16xbf16> to vector<64x16xbf16>
    %c2_63 = arith.constant 2 : index
    %c0_64 = arith.constant 0 : index
    %c0_65 = arith.constant 0 : index
    %93 = vector.load %arg6[%c2_63, %c0_64, %c0_65] : memref<7x16x192xbf16, #tpu.memory_space<vmem>>, vector<1x16x192xbf16>
    %94 = vector.shape_cast %93 : vector<1x16x192xbf16> to vector<16x192xbf16>
    %cst_66 = arith.constant dense<0.000000e+00> : vector<64x192xf32>
    %95 = tpu.matmul %92, %94, %cst_66 {dimension_numbers = #tpu.dot_dimension_numbers<[1], [0], [0], [1], [0, 0, 1, 1], [], []>} : vector<64x16xbf16>, vector<16x192xbf16>, vector<64x192xf32> -> vector<64x192xf32>
    %96 = arith.addf %90, %95 : vector<64x192xf32>
    %97 = vector.extract_strided_slice %77 {offsets = [0, 3, 0, 0], sizes = [1, 8, 8, 16], strides = [1, 1, 1, 1]} : vector<1x14x8x16xbf16> to vector<1x8x8x16xbf16>
    %98 = vector.shape_cast %97 : vector<1x8x8x16xbf16> to vector<64x16xbf16>
    %c3_67 = arith.constant 3 : index
    %c0_68 = arith.constant 0 : index
    %c0_69 = arith.constant 0 : index
    %99 = vector.load %arg6[%c3_67, %c0_68, %c0_69] : memref<7x16x192xbf16, #tpu.memory_space<vmem>>, vector<1x16x192xbf16>
    %100 = vector.shape_cast %99 : vector<1x16x192xbf16> to vector<16x192xbf16>
    %cst_70 = arith.constant dense<0.000000e+00> : vector<64x192xf32>
    %101 = tpu.matmul %98, %100, %cst_70 {dimension_numbers = #tpu.dot_dimension_numbers<[1], [0], [0], [1], [0, 0, 1, 1], [], []>} : vector<64x16xbf16>, vector<16x192xbf16>, vector<64x192xf32> -> vector<64x192xf32>
    %102 = arith.addf %96, %101 : vector<64x192xf32>
    %103 = vector.extract_strided_slice %77 {offsets = [0, 4, 0, 0], sizes = [1, 8, 8, 16], strides = [1, 1, 1, 1]} : vector<1x14x8x16xbf16> to vector<1x8x8x16xbf16>
    %104 = vector.shape_cast %103 : vector<1x8x8x16xbf16> to vector<64x16xbf16>
    %c4_71 = arith.constant 4 : index
    %c0_72 = arith.constant 0 : index
    %c0_73 = arith.constant 0 : index
    %105 = vector.load %arg6[%c4_71, %c0_72, %c0_73] : memref<7x16x192xbf16, #tpu.memory_space<vmem>>, vector<1x16x192xbf16>
    %106 = vector.shape_cast %105 : vector<1x16x192xbf16> to vector<16x192xbf16>
    %cst_74 = arith.constant dense<0.000000e+00> : vector<64x192xf32>
    %107 = tpu.matmul %104, %106, %cst_74 {dimension_numbers = #tpu.dot_dimension_numbers<[1], [0], [0], [1], [0, 0, 1, 1], [], []>} : vector<64x16xbf16>, vector<16x192xbf16>, vector<64x192xf32> -> vector<64x192xf32>
    %108 = arith.addf %102, %107 : vector<64x192xf32>
    %109 = vector.extract_strided_slice %77 {offsets = [0, 5, 0, 0], sizes = [1, 8, 8, 16], strides = [1, 1, 1, 1]} : vector<1x14x8x16xbf16> to vector<1x8x8x16xbf16>
    %110 = vector.shape_cast %109 : vector<1x8x8x16xbf16> to vector<64x16xbf16>
    %c5_75 = arith.constant 5 : index
    %c0_76 = arith.constant 0 : index
    %c0_77 = arith.constant 0 : index
    %111 = vector.load %arg6[%c5_75, %c0_76, %c0_77] : memref<7x16x192xbf16, #tpu.memory_space<vmem>>, vector<1x16x192xbf16>
    %112 = vector.shape_cast %111 : vector<1x16x192xbf16> to vector<16x192xbf16>
    %cst_78 = arith.constant dense<0.000000e+00> : vector<64x192xf32>
    %113 = tpu.matmul %110, %112, %cst_78 {dimension_numbers = #tpu.dot_dimension_numbers<[1], [0], [0], [1], [0, 0, 1, 1], [], []>} : vector<64x16xbf16>, vector<16x192xbf16>, vector<64x192xf32> -> vector<64x192xf32>
    %114 = arith.addf %108, %113 : vector<64x192xf32>
    %115 = vector.extract_strided_slice %77 {offsets = [0, 6, 0, 0], sizes = [1, 8, 8, 16], strides = [1, 1, 1, 1]} : vector<1x14x8x16xbf16> to vector<1x8x8x16xbf16>
    %116 = vector.shape_cast %115 : vector<1x8x8x16xbf16> to vector<64x16xbf16>
    %c6_79 = arith.constant 6 : index
    %c0_80 = arith.constant 0 : index
    %c0_81 = arith.constant 0 : index
    %117 = vector.load %arg6[%c6_79, %c0_80, %c0_81] : memref<7x16x192xbf16, #tpu.memory_space<vmem>>, vector<1x16x192xbf16>
    %118 = vector.shape_cast %117 : vector<1x16x192xbf16> to vector<16x192xbf16>
    %cst_82 = arith.constant dense<0.000000e+00> : vector<64x192xf32>
    %119 = tpu.matmul %116, %118, %cst_82 {dimension_numbers = #tpu.dot_dimension_numbers<[1], [0], [0], [1], [0, 0, 1, 1], [], []>} : vector<64x16xbf16>, vector<16x192xbf16>, vector<64x192xf32> -> vector<64x192xf32>
    %120 = arith.addf %114, %119 : vector<64x192xf32>
    %c0_83 = arith.constant 0 : index
    %c0_84 = arith.constant 0 : index
    %121 = vector.load %arg7[%c0_83, %c0_84] : memref<1x192xf32, #tpu.memory_space<vmem>>, vector<1x192xf32>
    %122 = vector.broadcast %121 : vector<1x192xf32> to vector<64x192xf32>
    %123 = arith.addf %120, %122 : vector<64x192xf32>
    %cst_85 = arith.constant 0.000000e+00 : f32
    %124 = vector.broadcast %cst_85 : f32 to vector<64x192xf32>
    %125 = arith.maximumf %123, %124 : vector<64x192xf32>
    %126 = vector.shape_cast %125 : vector<64x192xf32> to vector<1x8x8x192xf32>
    %127 = vector.shape_cast %126 : vector<1x8x8x192xf32> to vector<64x192xf32>
    %128 = vector.shape_cast %127 : vector<64x192xf32> to vector<1x64x192xf32>
    %129 = tpu.transpose %128, [0, 2, 1] : vector<1x64x192xf32> -> vector<1x192x64xf32>
    %c0_86 = arith.constant 0 : index
    %c192 = arith.constant 192 : index
    %c0_87 = arith.constant 0 : index
    %130 = vector.load %arg18[%c0_86, %c192, %c0_87] : memref<1x768x64xf32, #tpu.memory_space<vmem>>, vector<1x192x64xf32>
    tpu.vector_store %arg18[%c0_86, %c192, %c0_87], %129 {strides = array<i32>} : memref<1x768x64xf32, #tpu.memory_space<vmem>>, vector<1x192x64xf32>,
    %cst_88 = arith.constant 0.000000e+00 : bf16
    %131 = vector.broadcast %cst_88 : bf16 to vector<1x3x8x16xbf16>
    %132 = arith.truncf %22 : vector<1x8x8x16xf32> to vector<1x8x8x16xbf16>
    %133 = tpu.concatenate %131, %132, %131 in 1 : vector<1x3x8x16xbf16>, vector<1x8x8x16xbf16>, vector<1x3x8x16xbf16> -> vector<1x14x8x16xbf16>
    %cst_89 = arith.constant 0.000000e+00 : f32
    %134 = vector.broadcast %cst_89 : f32 to vector<64x16xf32>
    %135 = vector.extract_strided_slice %133 {offsets = [0, 0, 0, 0], sizes = [1, 8, 8, 16], strides = [1, 1, 1, 1]} : vector<1x14x8x16xbf16> to vector<1x8x8x16xbf16>
    %136 = vector.shape_cast %135 : vector<1x8x8x16xbf16> to vector<64x16xbf16>
    %c0_90 = arith.constant 0 : index
    %c0_91 = arith.constant 0 : index
    %c0_92 = arith.constant 0 : index
    %137 = vector.load %arg8[%c0_90, %c0_91, %c0_92] : memref<7x16x16xbf16, #tpu.memory_space<vmem>>, vector<1x16x16xbf16>
    %138 = vector.shape_cast %137 : vector<1x16x16xbf16> to vector<16x16xbf16>
    %cst_93 = arith.constant dense<0.000000e+00> : vector<64x16xf32>
    %139 = tpu.matmul %136, %138, %cst_93 {dimension_numbers = #tpu.dot_dimension_numbers<[1], [0], [0], [1], [0, 0, 1, 1], [], []>} : vector<64x16xbf16>, vector<16x16xbf16>, vector<64x16xf32> -> vector<64x16xf32>
    %140 = arith.addf %134, %139 : vector<64x16xf32>
    %141 = vector.extract_strided_slice %133 {offsets = [0, 1, 0, 0], sizes = [1, 8, 8, 16], strides = [1, 1, 1, 1]} : vector<1x14x8x16xbf16> to vector<1x8x8x16xbf16>
    %142 = vector.shape_cast %141 : vector<1x8x8x16xbf16> to vector<64x16xbf16>
    %c1_94 = arith.constant 1 : index
    %c0_95 = arith.constant 0 : index
    %c0_96 = arith.constant 0 : index
    %143 = vector.load %arg8[%c1_94, %c0_95, %c0_96] : memref<7x16x16xbf16, #tpu.memory_space<vmem>>, vector<1x16x16xbf16>
    %144 = vector.shape_cast %143 : vector<1x16x16xbf16> to vector<16x16xbf16>
    %cst_97 = arith.constant dense<0.000000e+00> : vector<64x16xf32>
    %145 = tpu.matmul %142, %144, %cst_97 {dimension_numbers = #tpu.dot_dimension_numbers<[1], [0], [0], [1], [0, 0, 1, 1], [], []>} : vector<64x16xbf16>, vector<16x16xbf16>, vector<64x16xf32> -> vector<64x16xf32>
    %146 = arith.addf %140, %145 : vector<64x16xf32>
    %147 = vector.extract_strided_slice %133 {offsets = [0, 2, 0, 0], sizes = [1, 8, 8, 16], strides = [1, 1, 1, 1]} : vector<1x14x8x16xbf16> to vector<1x8x8x16xbf16>
    %148 = vector.shape_cast %147 : vector<1x8x8x16xbf16> to vector<64x16xbf16>
    %c2_98 = arith.constant 2 : index
    %c0_99 = arith.constant 0 : index
    %c0_100 = arith.constant 0 : index
    %149 = vector.load %arg8[%c2_98, %c0_99, %c0_100] : memref<7x16x16xbf16, #tpu.memory_space<vmem>>, vector<1x16x16xbf16>
    %150 = vector.shape_cast %149 : vector<1x16x16xbf16> to vector<16x16xbf16>
    %cst_101 = arith.constant dense<0.000000e+00> : vector<64x16xf32>
    %151 = tpu.matmul %148, %150, %cst_101 {dimension_numbers = #tpu.dot_dimension_numbers<[1], [0], [0], [1], [0, 0, 1, 1], [], []>} : vector<64x16xbf16>, vector<16x16xbf16>, vector<64x16xf32> -> vector<64x16xf32>
    %152 = arith.addf %146, %151 : vector<64x16xf32>
    %153 = vector.extract_strided_slice %133 {offsets = [0, 3, 0, 0], sizes = [1, 8, 8, 16], strides = [1, 1, 1, 1]} : vector<1x14x8x16xbf16> to vector<1x8x8x16xbf16>
    %154 = vector.shape_cast %153 : vector<1x8x8x16xbf16> to vector<64x16xbf16>
    %c3_102 = arith.constant 3 : index
    %c0_103 = arith.constant 0 : index
    %c0_104 = arith.constant 0 : index
    %155 = vector.load %arg8[%c3_102, %c0_103, %c0_104] : memref<7x16x16xbf16, #tpu.memory_space<vmem>>, vector<1x16x16xbf16>
    %156 = vector.shape_cast %155 : vector<1x16x16xbf16> to vector<16x16xbf16>
    %cst_105 = arith.constant dense<0.000000e+00> : vector<64x16xf32>
    %157 = tpu.matmul %154, %156, %cst_105 {dimension_numbers = #tpu.dot_dimension_numbers<[1], [0], [0], [1], [0, 0, 1, 1], [], []>} : vector<64x16xbf16>, vector<16x16xbf16>, vector<64x16xf32> -> vector<64x16xf32>
    %158 = arith.addf %152, %157 : vector<64x16xf32>
    %159 = vector.extract_strided_slice %133 {offsets = [0, 4, 0, 0], sizes = [1, 8, 8, 16], strides = [1, 1, 1, 1]} : vector<1x14x8x16xbf16> to vector<1x8x8x16xbf16>
    %160 = vector.shape_cast %159 : vector<1x8x8x16xbf16> to vector<64x16xbf16>
    %c4_106 = arith.constant 4 : index
    %c0_107 = arith.constant 0 : index
    %c0_108 = arith.constant 0 : index
    %161 = vector.load %arg8[%c4_106, %c0_107, %c0_108] : memref<7x16x16xbf16, #tpu.memory_space<vmem>>, vector<1x16x16xbf16>
    %162 = vector.shape_cast %161 : vector<1x16x16xbf16> to vector<16x16xbf16>
    %cst_109 = arith.constant dense<0.000000e+00> : vector<64x16xf32>
    %163 = tpu.matmul %160, %162, %cst_109 {dimension_numbers = #tpu.dot_dimension_numbers<[1], [0], [0], [1], [0, 0, 1, 1], [], []>} : vector<64x16xbf16>, vector<16x16xbf16>, vector<64x16xf32> -> vector<64x16xf32>
    %164 = arith.addf %158, %163 : vector<64x16xf32>
    %165 = vector.extract_strided_slice %133 {offsets = [0, 5, 0, 0], sizes = [1, 8, 8, 16], strides = [1, 1, 1, 1]} : vector<1x14x8x16xbf16> to vector<1x8x8x16xbf16>
    %166 = vector.shape_cast %165 : vector<1x8x8x16xbf16> to vector<64x16xbf16>
    %c5_110 = arith.constant 5 : index
    %c0_111 = arith.constant 0 : index
    %c0_112 = arith.constant 0 : index
    %167 = vector.load %arg8[%c5_110, %c0_111, %c0_112] : memref<7x16x16xbf16, #tpu.memory_space<vmem>>, vector<1x16x16xbf16>
    %168 = vector.shape_cast %167 : vector<1x16x16xbf16> to vector<16x16xbf16>
    %cst_113 = arith.constant dense<0.000000e+00> : vector<64x16xf32>
    %169 = tpu.matmul %166, %168, %cst_113 {dimension_numbers = #tpu.dot_dimension_numbers<[1], [0], [0], [1], [0, 0, 1, 1], [], []>} : vector<64x16xbf16>, vector<16x16xbf16>, vector<64x16xf32> -> vector<64x16xf32>
    %170 = arith.addf %164, %169 : vector<64x16xf32>
    %171 = vector.extract_strided_slice %133 {offsets = [0, 6, 0, 0], sizes = [1, 8, 8, 16], strides = [1, 1, 1, 1]} : vector<1x14x8x16xbf16> to vector<1x8x8x16xbf16>
    %172 = vector.shape_cast %171 : vector<1x8x8x16xbf16> to vector<64x16xbf16>
    %c6_114 = arith.constant 6 : index
    %c0_115 = arith.constant 0 : index
    %c0_116 = arith.constant 0 : index
    %173 = vector.load %arg8[%c6_114, %c0_115, %c0_116] : memref<7x16x16xbf16, #tpu.memory_space<vmem>>, vector<1x16x16xbf16>
    %174 = vector.shape_cast %173 : vector<1x16x16xbf16> to vector<16x16xbf16>
    %cst_117 = arith.constant dense<0.000000e+00> : vector<64x16xf32>
    %175 = tpu.matmul %172, %174, %cst_117 {dimension_numbers = #tpu.dot_dimension_numbers<[1], [0], [0], [1], [0, 0, 1, 1], [], []>} : vector<64x16xbf16>, vector<16x16xbf16>, vector<64x16xf32> -> vector<64x16xf32>
    %176 = arith.addf %170, %175 : vector<64x16xf32>
    %c0_118 = arith.constant 0 : index
    %c0_119 = arith.constant 0 : index
    %177 = vector.load %arg9[%c0_118, %c0_119] : memref<1x16xf32, #tpu.memory_space<vmem>>, vector<1x16xf32>
    %178 = vector.broadcast %177 : vector<1x16xf32> to vector<64x16xf32>
    %179 = arith.addf %176, %178 : vector<64x16xf32>
    %cst_120 = arith.constant 0.000000e+00 : f32
    %180 = vector.broadcast %cst_120 : f32 to vector<64x16xf32>
    %181 = arith.maximumf %179, %180 : vector<64x16xf32>
    %182 = vector.shape_cast %181 : vector<64x16xf32> to vector<1x8x8x16xf32>
    %183 = arith.truncf %182 : vector<1x8x8x16xf32> to vector<1x8x8x16xbf16>
    %c0_121 = arith.constant 0 : index
    %c0_122 = arith.constant 0 : index
    %c8_123 = arith.constant 8 : index
    %c0_124 = arith.constant 0 : index
    %184 = vector.load %arg19[%c0_121, %c0_122, %c8_123, %c0_124] : memref<1x8x24x16xbf16, #tpu.memory_space<vmem>>, vector<1x8x8x16xbf16>
    tpu.vector_store %arg19[%c0_121, %c0_122, %c8_123, %c0_124], %183 {strides = array<i32>} : memref<1x8x24x16xbf16, #tpu.memory_space<vmem>>, vector<1x8x8x16xbf16>,
    %c0_125 = arith.constant 0 : index
    %c0_126 = arith.constant 0 : index
    %c0_127 = arith.constant 0 : index
    %c0_128 = arith.constant 0 : index
    %185 = vector.load %arg19[%c0_125, %c0_126, %c0_127, %c0_128] : memref<1x8x24x16xbf16, #tpu.memory_space<vmem>>, vector<1x8x24x16xbf16>
    %cst_129 = arith.constant 0.000000e+00 : f32
    %186 = vector.broadcast %cst_129 : f32 to vector<64x16xf32>
    %187 = vector.extract_strided_slice %185 {offsets = [0, 0, 5, 0], sizes = [1, 8, 8, 16], strides = [1, 1, 1, 1]} : vector<1x8x24x16xbf16> to vector<1x8x8x16xbf16>
    %188 = vector.shape_cast %187 : vector<1x8x8x16xbf16> to vector<64x16xbf16>
    %c0_130 = arith.constant 0 : index
    %c0_131 = arith.constant 0 : index
    %c0_132 = arith.constant 0 : index
    %189 = vector.load %arg10[%c0_130, %c0_131, %c0_132] : memref<7x16x16xbf16, #tpu.memory_space<vmem>>, vector<1x16x16xbf16>
    %190 = vector.shape_cast %189 : vector<1x16x16xbf16> to vector<16x16xbf16>
    %cst_133 = arith.constant dense<0.000000e+00> : vector<64x16xf32>
    %191 = tpu.matmul %188, %190, %cst_133 {dimension_numbers = #tpu.dot_dimension_numbers<[1], [0], [0], [1], [0, 0, 1, 1], [], []>} : vector<64x16xbf16>, vector<16x16xbf16>, vector<64x16xf32> -> vector<64x16xf32>
    %192 = arith.addf %186, %191 : vector<64x16xf32>
    %193 = vector.extract_strided_slice %185 {offsets = [0, 0, 6, 0], sizes = [1, 8, 8, 16], strides = [1, 1, 1, 1]} : vector<1x8x24x16xbf16> to vector<1x8x8x16xbf16>
    %194 = vector.shape_cast %193 : vector<1x8x8x16xbf16> to vector<64x16xbf16>
    %c1_134 = arith.constant 1 : index
    %c0_135 = arith.constant 0 : index
    %c0_136 = arith.constant 0 : index
    %195 = vector.load %arg10[%c1_134, %c0_135, %c0_136] : memref<7x16x16xbf16, #tpu.memory_space<vmem>>, vector<1x16x16xbf16>
    %196 = vector.shape_cast %195 : vector<1x16x16xbf16> to vector<16x16xbf16>
    %cst_137 = arith.constant dense<0.000000e+00> : vector<64x16xf32>
    %197 = tpu.matmul %194, %196, %cst_137 {dimension_numbers = #tpu.dot_dimension_numbers<[1], [0], [0], [1], [0, 0, 1, 1], [], []>} : vector<64x16xbf16>, vector<16x16xbf16>, vector<64x16xf32> -> vector<64x16xf32>
    %198 = arith.addf %192, %197 : vector<64x16xf32>
    %199 = vector.extract_strided_slice %185 {offsets = [0, 0, 7, 0], sizes = [1, 8, 8, 16], strides = [1, 1, 1, 1]} : vector<1x8x24x16xbf16> to vector<1x8x8x16xbf16>
    %200 = vector.shape_cast %199 : vector<1x8x8x16xbf16> to vector<64x16xbf16>
    %c2_138 = arith.constant 2 : index
    %c0_139 = arith.constant 0 : index
    %c0_140 = arith.constant 0 : index
    %201 = vector.load %arg10[%c2_138, %c0_139, %c0_140] : memref<7x16x16xbf16, #tpu.memory_space<vmem>>, vector<1x16x16xbf16>
    %202 = vector.shape_cast %201 : vector<1x16x16xbf16> to vector<16x16xbf16>
    %cst_141 = arith.constant dense<0.000000e+00> : vector<64x16xf32>
    %203 = tpu.matmul %200, %202, %cst_141 {dimension_numbers = #tpu.dot_dimension_numbers<[1], [0], [0], [1], [0, 0, 1, 1], [], []>} : vector<64x16xbf16>, vector<16x16xbf16>, vector<64x16xf32> -> vector<64x16xf32>
    %204 = arith.addf %198, %203 : vector<64x16xf32>
    %205 = vector.extract_strided_slice %185 {offsets = [0, 0, 8, 0], sizes = [1, 8, 8, 16], strides = [1, 1, 1, 1]} : vector<1x8x24x16xbf16> to vector<1x8x8x16xbf16>
    %206 = vector.shape_cast %205 : vector<1x8x8x16xbf16> to vector<64x16xbf16>
    %c3_142 = arith.constant 3 : index
    %c0_143 = arith.constant 0 : index
    %c0_144 = arith.constant 0 : index
    %207 = vector.load %arg10[%c3_142, %c0_143, %c0_144] : memref<7x16x16xbf16, #tpu.memory_space<vmem>>, vector<1x16x16xbf16>
    %208 = vector.shape_cast %207 : vector<1x16x16xbf16> to vector<16x16xbf16>
    %cst_145 = arith.constant dense<0.000000e+00> : vector<64x16xf32>
    %209 = tpu.matmul %206, %208, %cst_145 {dimension_numbers = #tpu.dot_dimension_numbers<[1], [0], [0], [1], [0, 0, 1, 1], [], []>} : vector<64x16xbf16>, vector<16x16xbf16>, vector<64x16xf32> -> vector<64x16xf32>
    %210 = arith.addf %204, %209 : vector<64x16xf32>
    %211 = vector.extract_strided_slice %185 {offsets = [0, 0, 9, 0], sizes = [1, 8, 8, 16], strides = [1, 1, 1, 1]} : vector<1x8x24x16xbf16> to vector<1x8x8x16xbf16>
    %212 = vector.shape_cast %211 : vector<1x8x8x16xbf16> to vector<64x16xbf16>
    %c4_146 = arith.constant 4 : index
    %c0_147 = arith.constant 0 : index
    %c0_148 = arith.constant 0 : index
    %213 = vector.load %arg10[%c4_146, %c0_147, %c0_148] : memref<7x16x16xbf16, #tpu.memory_space<vmem>>, vector<1x16x16xbf16>
    %214 = vector.shape_cast %213 : vector<1x16x16xbf16> to vector<16x16xbf16>
    %cst_149 = arith.constant dense<0.000000e+00> : vector<64x16xf32>
    %215 = tpu.matmul %212, %214, %cst_149 {dimension_numbers = #tpu.dot_dimension_numbers<[1], [0], [0], [1], [0, 0, 1, 1], [], []>} : vector<64x16xbf16>, vector<16x16xbf16>, vector<64x16xf32> -> vector<64x16xf32>
    %216 = arith.addf %210, %215 : vector<64x16xf32>
    %217 = vector.extract_strided_slice %185 {offsets = [0, 0, 10, 0], sizes = [1, 8, 8, 16], strides = [1, 1, 1, 1]} : vector<1x8x24x16xbf16> to vector<1x8x8x16xbf16>
    %218 = vector.shape_cast %217 : vector<1x8x8x16xbf16> to vector<64x16xbf16>
    %c5_150 = arith.constant 5 : index
    %c0_151 = arith.constant 0 : index
    %c0_152 = arith.constant 0 : index
    %219 = vector.load %arg10[%c5_150, %c0_151, %c0_152] : memref<7x16x16xbf16, #tpu.memory_space<vmem>>, vector<1x16x16xbf16>
    %220 = vector.shape_cast %219 : vector<1x16x16xbf16> to vector<16x16xbf16>
    %cst_153 = arith.constant dense<0.000000e+00> : vector<64x16xf32>
    %221 = tpu.matmul %218, %220, %cst_153 {dimension_numbers = #tpu.dot_dimension_numbers<[1], [0], [0], [1], [0, 0, 1, 1], [], []>} : vector<64x16xbf16>, vector<16x16xbf16>, vector<64x16xf32> -> vector<64x16xf32>
    %222 = arith.addf %216, %221 : vector<64x16xf32>
    %223 = vector.extract_strided_slice %185 {offsets = [0, 0, 11, 0], sizes = [1, 8, 8, 16], strides = [1, 1, 1, 1]} : vector<1x8x24x16xbf16> to vector<1x8x8x16xbf16>
    %224 = vector.shape_cast %223 : vector<1x8x8x16xbf16> to vector<64x16xbf16>
    %c6_154 = arith.constant 6 : index
    %c0_155 = arith.constant 0 : index
    %c0_156 = arith.constant 0 : index
    %225 = vector.load %arg10[%c6_154, %c0_155, %c0_156] : memref<7x16x16xbf16, #tpu.memory_space<vmem>>, vector<1x16x16xbf16>
    %226 = vector.shape_cast %225 : vector<1x16x16xbf16> to vector<16x16xbf16>
    %cst_157 = arith.constant dense<0.000000e+00> : vector<64x16xf32>
    %227 = tpu.matmul %224, %226, %cst_157 {dimension_numbers = #tpu.dot_dimension_numbers<[1], [0], [0], [1], [0, 0, 1, 1], [], []>} : vector<64x16xbf16>, vector<16x16xbf16>, vector<64x16xf32> -> vector<64x16xf32>
    %228 = arith.addf %222, %227 : vector<64x16xf32>
    %c0_158 = arith.constant 0 : index
    %c0_159 = arith.constant 0 : index
    %229 = vector.load %arg11[%c0_158, %c0_159] : memref<1x16xf32, #tpu.memory_space<vmem>>, vector<1x16xf32>
    %230 = vector.broadcast %229 : vector<1x16xf32> to vector<64x16xf32>
    %231 = arith.addf %228, %230 : vector<64x16xf32>
    %cst_160 = arith.constant 0.000000e+00 : f32
    %232 = vector.broadcast %cst_160 : f32 to vector<64x16xf32>
    %233 = arith.maximumf %231, %232 : vector<64x16xf32>
    %234 = vector.shape_cast %233 : vector<64x16xf32> to vector<1x8x8x16xf32>
    %cst_161 = arith.constant 0.000000e+00 : bf16
    %235 = vector.broadcast %cst_161 : bf16 to vector<1x3x8x16xbf16>
    %236 = arith.truncf %234 : vector<1x8x8x16xf32> to vector<1x8x8x16xbf16>
    %237 = tpu.concatenate %235, %236, %235 in 1 : vector<1x3x8x16xbf16>, vector<1x8x8x16xbf16>, vector<1x3x8x16xbf16> -> vector<1x14x8x16xbf16>
    %cst_162 = arith.constant 0.000000e+00 : f32
    %238 = vector.broadcast %cst_162 : f32 to vector<64x16xf32>
    %239 = vector.extract_strided_slice %237 {offsets = [0, 0, 0, 0], sizes = [1, 8, 8, 16], strides = [1, 1, 1, 1]} : vector<1x14x8x16xbf16> to vector<1x8x8x16xbf16>
    %240 = vector.shape_cast %239 : vector<1x8x8x16xbf16> to vector<64x16xbf16>
    %c0_163 = arith.constant 0 : index
    %c0_164 = arith.constant 0 : index
    %c0_165 = arith.constant 0 : index
    %241 = vector.load %arg12[%c0_163, %c0_164, %c0_165] : memref<7x16x16xbf16, #tpu.memory_space<vmem>>, vector<1x16x16xbf16>
    %242 = vector.shape_cast %241 : vector<1x16x16xbf16> to vector<16x16xbf16>
    %cst_166 = arith.constant dense<0.000000e+00> : vector<64x16xf32>
    %243 = tpu.matmul %240, %242, %cst_166 {dimension_numbers = #tpu.dot_dimension_numbers<[1], [0], [0], [1], [0, 0, 1, 1], [], []>} : vector<64x16xbf16>, vector<16x16xbf16>, vector<64x16xf32> -> vector<64x16xf32>
    %244 = arith.addf %238, %243 : vector<64x16xf32>
    %245 = vector.extract_strided_slice %237 {offsets = [0, 1, 0, 0], sizes = [1, 8, 8, 16], strides = [1, 1, 1, 1]} : vector<1x14x8x16xbf16> to vector<1x8x8x16xbf16>
    %246 = vector.shape_cast %245 : vector<1x8x8x16xbf16> to vector<64x16xbf16>
    %c1_167 = arith.constant 1 : index
    %c0_168 = arith.constant 0 : index
    %c0_169 = arith.constant 0 : index
    %247 = vector.load %arg12[%c1_167, %c0_168, %c0_169] : memref<7x16x16xbf16, #tpu.memory_space<vmem>>, vector<1x16x16xbf16>
    %248 = vector.shape_cast %247 : vector<1x16x16xbf16> to vector<16x16xbf16>
    %cst_170 = arith.constant dense<0.000000e+00> : vector<64x16xf32>
    %249 = tpu.matmul %246, %248, %cst_170 {dimension_numbers = #tpu.dot_dimension_numbers<[1], [0], [0], [1], [0, 0, 1, 1], [], []>} : vector<64x16xbf16>, vector<16x16xbf16>, vector<64x16xf32> -> vector<64x16xf32>
    %250 = arith.addf %244, %249 : vector<64x16xf32>
    %251 = vector.extract_strided_slice %237 {offsets = [0, 2, 0, 0], sizes = [1, 8, 8, 16], strides = [1, 1, 1, 1]} : vector<1x14x8x16xbf16> to vector<1x8x8x16xbf16>
    %252 = vector.shape_cast %251 : vector<1x8x8x16xbf16> to vector<64x16xbf16>
    %c2_171 = arith.constant 2 : index
    %c0_172 = arith.constant 0 : index
    %c0_173 = arith.constant 0 : index
    %253 = vector.load %arg12[%c2_171, %c0_172, %c0_173] : memref<7x16x16xbf16, #tpu.memory_space<vmem>>, vector<1x16x16xbf16>
    %254 = vector.shape_cast %253 : vector<1x16x16xbf16> to vector<16x16xbf16>
    %cst_174 = arith.constant dense<0.000000e+00> : vector<64x16xf32>
    %255 = tpu.matmul %252, %254, %cst_174 {dimension_numbers = #tpu.dot_dimension_numbers<[1], [0], [0], [1], [0, 0, 1, 1], [], []>} : vector<64x16xbf16>, vector<16x16xbf16>, vector<64x16xf32> -> vector<64x16xf32>
    %256 = arith.addf %250, %255 : vector<64x16xf32>
    %257 = vector.extract_strided_slice %237 {offsets = [0, 3, 0, 0], sizes = [1, 8, 8, 16], strides = [1, 1, 1, 1]} : vector<1x14x8x16xbf16> to vector<1x8x8x16xbf16>
    %258 = vector.shape_cast %257 : vector<1x8x8x16xbf16> to vector<64x16xbf16>
    %c3_175 = arith.constant 3 : index
    %c0_176 = arith.constant 0 : index
    %c0_177 = arith.constant 0 : index
    %259 = vector.load %arg12[%c3_175, %c0_176, %c0_177] : memref<7x16x16xbf16, #tpu.memory_space<vmem>>, vector<1x16x16xbf16>
    %260 = vector.shape_cast %259 : vector<1x16x16xbf16> to vector<16x16xbf16>
    %cst_178 = arith.constant dense<0.000000e+00> : vector<64x16xf32>
    %261 = tpu.matmul %258, %260, %cst_178 {dimension_numbers = #tpu.dot_dimension_numbers<[1], [0], [0], [1], [0, 0, 1, 1], [], []>} : vector<64x16xbf16>, vector<16x16xbf16>, vector<64x16xf32> -> vector<64x16xf32>
    %262 = arith.addf %256, %261 : vector<64x16xf32>
    %263 = vector.extract_strided_slice %237 {offsets = [0, 4, 0, 0], sizes = [1, 8, 8, 16], strides = [1, 1, 1, 1]} : vector<1x14x8x16xbf16> to vector<1x8x8x16xbf16>
    %264 = vector.shape_cast %263 : vector<1x8x8x16xbf16> to vector<64x16xbf16>
    %c4_179 = arith.constant 4 : index
    %c0_180 = arith.constant 0 : index
    %c0_181 = arith.constant 0 : index
    %265 = vector.load %arg12[%c4_179, %c0_180, %c0_181] : memref<7x16x16xbf16, #tpu.memory_space<vmem>>, vector<1x16x16xbf16>
    %266 = vector.shape_cast %265 : vector<1x16x16xbf16> to vector<16x16xbf16>
    %cst_182 = arith.constant dense<0.000000e+00> : vector<64x16xf32>
    %267 = tpu.matmul %264, %266, %cst_182 {dimension_numbers = #tpu.dot_dimension_numbers<[1], [0], [0], [1], [0, 0, 1, 1], [], []>} : vector<64x16xbf16>, vector<16x16xbf16>, vector<64x16xf32> -> vector<64x16xf32>
    %268 = arith.addf %262, %267 : vector<64x16xf32>
    %269 = vector.extract_strided_slice %237 {offsets = [0, 5, 0, 0], sizes = [1, 8, 8, 16], strides = [1, 1, 1, 1]} : vector<1x14x8x16xbf16> to vector<1x8x8x16xbf16>
    %270 = vector.shape_cast %269 : vector<1x8x8x16xbf16> to vector<64x16xbf16>
    %c5_183 = arith.constant 5 : index
    %c0_184 = arith.constant 0 : index
    %c0_185 = arith.constant 0 : index
    %271 = vector.load %arg12[%c5_183, %c0_184, %c0_185] : memref<7x16x16xbf16, #tpu.memory_space<vmem>>, vector<1x16x16xbf16>
    %272 = vector.shape_cast %271 : vector<1x16x16xbf16> to vector<16x16xbf16>
    %cst_186 = arith.constant dense<0.000000e+00> : vector<64x16xf32>
    %273 = tpu.matmul %270, %272, %cst_186 {dimension_numbers = #tpu.dot_dimension_numbers<[1], [0], [0], [1], [0, 0, 1, 1], [], []>} : vector<64x16xbf16>, vector<16x16xbf16>, vector<64x16xf32> -> vector<64x16xf32>
    %274 = arith.addf %268, %273 : vector<64x16xf32>
    %275 = vector.extract_strided_slice %237 {offsets = [0, 6, 0, 0], sizes = [1, 8, 8, 16], strides = [1, 1, 1, 1]} : vector<1x14x8x16xbf16> to vector<1x8x8x16xbf16>
    %276 = vector.shape_cast %275 : vector<1x8x8x16xbf16> to vector<64x16xbf16>
    %c6_187 = arith.constant 6 : index
    %c0_188 = arith.constant 0 : index
    %c0_189 = arith.constant 0 : index
    %277 = vector.load %arg12[%c6_187, %c0_188, %c0_189] : memref<7x16x16xbf16, #tpu.memory_space<vmem>>, vector<1x16x16xbf16>
    %278 = vector.shape_cast %277 : vector<1x16x16xbf16> to vector<16x16xbf16>
    %cst_190 = arith.constant dense<0.000000e+00> : vector<64x16xf32>
    %279 = tpu.matmul %276, %278, %cst_190 {dimension_numbers = #tpu.dot_dimension_numbers<[1], [0], [0], [1], [0, 0, 1, 1], [], []>} : vector<64x16xbf16>, vector<16x16xbf16>, vector<64x16xf32> -> vector<64x16xf32>
    %280 = arith.addf %274, %279 : vector<64x16xf32>
    %c0_191 = arith.constant 0 : index
    %c0_192 = arith.constant 0 : index
    %281 = vector.load %arg13[%c0_191, %c0_192] : memref<1x16xf32, #tpu.memory_space<vmem>>, vector<1x16xf32>
    %282 = vector.broadcast %281 : vector<1x16xf32> to vector<64x16xf32>
    %283 = arith.addf %280, %282 : vector<64x16xf32>
    %cst_193 = arith.constant 0.000000e+00 : f32
    %284 = vector.broadcast %cst_193 : f32 to vector<64x16xf32>
    %285 = arith.maximumf %283, %284 : vector<64x16xf32>
    %286 = vector.shape_cast %285 : vector<64x16xf32> to vector<1x8x8x16xf32>
    %287 = arith.truncf %286 : vector<1x8x8x16xf32> to vector<1x8x8x16xbf16>
    %c0_194 = arith.constant 0 : index
    %c0_195 = arith.constant 0 : index
    %c8_196 = arith.constant 8 : index
    %c0_197 = arith.constant 0 : index
    %288 = vector.load %arg19[%c0_194, %c0_195, %c8_196, %c0_197] : memref<1x8x24x16xbf16, #tpu.memory_space<vmem>>, vector<1x8x8x16xbf16>
    tpu.vector_store %arg19[%c0_194, %c0_195, %c8_196, %c0_197], %287 {strides = array<i32>} : memref<1x8x24x16xbf16, #tpu.memory_space<vmem>>, vector<1x8x8x16xbf16>,
    %c0_198 = arith.constant 0 : index
    %c0_199 = arith.constant 0 : index
    %c0_200 = arith.constant 0 : index
    %c0_201 = arith.constant 0 : index
    %289 = vector.load %arg19[%c0_198, %c0_199, %c0_200, %c0_201] : memref<1x8x24x16xbf16, #tpu.memory_space<vmem>>, vector<1x8x24x16xbf16>
    %cst_202 = arith.constant 0.000000e+00 : f32
    %290 = vector.broadcast %cst_202 : f32 to vector<64x192xf32>
    %291 = vector.extract_strided_slice %289 {offsets = [0, 0, 5, 0], sizes = [1, 8, 8, 16], strides = [1, 1, 1, 1]} : vector<1x8x24x16xbf16> to vector<1x8x8x16xbf16>
    %292 = vector.shape_cast %291 : vector<1x8x8x16xbf16> to vector<64x16xbf16>
    %c0_203 = arith.constant 0 : index
    %c0_204 = arith.constant 0 : index
    %c0_205 = arith.constant 0 : index
    %293 = vector.load %arg14[%c0_203, %c0_204, %c0_205] : memref<7x16x192xbf16, #tpu.memory_space<vmem>>, vector<1x16x192xbf16>
    %294 = vector.shape_cast %293 : vector<1x16x192xbf16> to vector<16x192xbf16>
    %cst_206 = arith.constant dense<0.000000e+00> : vector<64x192xf32>
    %295 = tpu.matmul %292, %294, %cst_206 {dimension_numbers = #tpu.dot_dimension_numbers<[1], [0], [0], [1], [0, 0, 1, 1], [], []>} : vector<64x16xbf16>, vector<16x192xbf16>, vector<64x192xf32> -> vector<64x192xf32>
    %296 = arith.addf %290, %295 : vector<64x192xf32>
    %297 = vector.extract_strided_slice %289 {offsets = [0, 0, 6, 0], sizes = [1, 8, 8, 16], strides = [1, 1, 1, 1]} : vector<1x8x24x16xbf16> to vector<1x8x8x16xbf16>
    %298 = vector.shape_cast %297 : vector<1x8x8x16xbf16> to vector<64x16xbf16>
    %c1_207 = arith.constant 1 : index
    %c0_208 = arith.constant 0 : index
    %c0_209 = arith.constant 0 : index
    %299 = vector.load %arg14[%c1_207, %c0_208, %c0_209] : memref<7x16x192xbf16, #tpu.memory_space<vmem>>, vector<1x16x192xbf16>
    %300 = vector.shape_cast %299 : vector<1x16x192xbf16> to vector<16x192xbf16>
    %cst_210 = arith.constant dense<0.000000e+00> : vector<64x192xf32>
    %301 = tpu.matmul %298, %300, %cst_210 {dimension_numbers = #tpu.dot_dimension_numbers<[1], [0], [0], [1], [0, 0, 1, 1], [], []>} : vector<64x16xbf16>, vector<16x192xbf16>, vector<64x192xf32> -> vector<64x192xf32>
    %302 = arith.addf %296, %301 : vector<64x192xf32>
    %303 = vector.extract_strided_slice %289 {offsets = [0, 0, 7, 0], sizes = [1, 8, 8, 16], strides = [1, 1, 1, 1]} : vector<1x8x24x16xbf16> to vector<1x8x8x16xbf16>
    %304 = vector.shape_cast %303 : vector<1x8x8x16xbf16> to vector<64x16xbf16>
    %c2_211 = arith.constant 2 : index
    %c0_212 = arith.constant 0 : index
    %c0_213 = arith.constant 0 : index
    %305 = vector.load %arg14[%c2_211, %c0_212, %c0_213] : memref<7x16x192xbf16, #tpu.memory_space<vmem>>, vector<1x16x192xbf16>
    %306 = vector.shape_cast %305 : vector<1x16x192xbf16> to vector<16x192xbf16>
    %cst_214 = arith.constant dense<0.000000e+00> : vector<64x192xf32>
    %307 = tpu.matmul %304, %306, %cst_214 {dimension_numbers = #tpu.dot_dimension_numbers<[1], [0], [0], [1], [0, 0, 1, 1], [], []>} : vector<64x16xbf16>, vector<16x192xbf16>, vector<64x192xf32> -> vector<64x192xf32>
    %308 = arith.addf %302, %307 : vector<64x192xf32>
    %309 = vector.extract_strided_slice %289 {offsets = [0, 0, 8, 0], sizes = [1, 8, 8, 16], strides = [1, 1, 1, 1]} : vector<1x8x24x16xbf16> to vector<1x8x8x16xbf16>
    %310 = vector.shape_cast %309 : vector<1x8x8x16xbf16> to vector<64x16xbf16>
    %c3_215 = arith.constant 3 : index
    %c0_216 = arith.constant 0 : index
    %c0_217 = arith.constant 0 : index
    %311 = vector.load %arg14[%c3_215, %c0_216, %c0_217] : memref<7x16x192xbf16, #tpu.memory_space<vmem>>, vector<1x16x192xbf16>
    %312 = vector.shape_cast %311 : vector<1x16x192xbf16> to vector<16x192xbf16>
    %cst_218 = arith.constant dense<0.000000e+00> : vector<64x192xf32>
    %313 = tpu.matmul %310, %312, %cst_218 {dimension_numbers = #tpu.dot_dimension_numbers<[1], [0], [0], [1], [0, 0, 1, 1], [], []>} : vector<64x16xbf16>, vector<16x192xbf16>, vector<64x192xf32> -> vector<64x192xf32>
    %314 = arith.addf %308, %313 : vector<64x192xf32>
    %315 = vector.extract_strided_slice %289 {offsets = [0, 0, 9, 0], sizes = [1, 8, 8, 16], strides = [1, 1, 1, 1]} : vector<1x8x24x16xbf16> to vector<1x8x8x16xbf16>
    %316 = vector.shape_cast %315 : vector<1x8x8x16xbf16> to vector<64x16xbf16>
    %c4_219 = arith.constant 4 : index
    %c0_220 = arith.constant 0 : index
    %c0_221 = arith.constant 0 : index
    %317 = vector.load %arg14[%c4_219, %c0_220, %c0_221] : memref<7x16x192xbf16, #tpu.memory_space<vmem>>, vector<1x16x192xbf16>
    %318 = vector.shape_cast %317 : vector<1x16x192xbf16> to vector<16x192xbf16>
    %cst_222 = arith.constant dense<0.000000e+00> : vector<64x192xf32>
    %319 = tpu.matmul %316, %318, %cst_222 {dimension_numbers = #tpu.dot_dimension_numbers<[1], [0], [0], [1], [0, 0, 1, 1], [], []>} : vector<64x16xbf16>, vector<16x192xbf16>, vector<64x192xf32> -> vector<64x192xf32>
    %320 = arith.addf %314, %319 : vector<64x192xf32>
    %321 = vector.extract_strided_slice %289 {offsets = [0, 0, 10, 0], sizes = [1, 8, 8, 16], strides = [1, 1, 1, 1]} : vector<1x8x24x16xbf16> to vector<1x8x8x16xbf16>
    %322 = vector.shape_cast %321 : vector<1x8x8x16xbf16> to vector<64x16xbf16>
    %c5_223 = arith.constant 5 : index
    %c0_224 = arith.constant 0 : index
    %c0_225 = arith.constant 0 : index
    %323 = vector.load %arg14[%c5_223, %c0_224, %c0_225] : memref<7x16x192xbf16, #tpu.memory_space<vmem>>, vector<1x16x192xbf16>
    %324 = vector.shape_cast %323 : vector<1x16x192xbf16> to vector<16x192xbf16>
    %cst_226 = arith.constant dense<0.000000e+00> : vector<64x192xf32>
    %325 = tpu.matmul %322, %324, %cst_226 {dimension_numbers = #tpu.dot_dimension_numbers<[1], [0], [0], [1], [0, 0, 1, 1], [], []>} : vector<64x16xbf16>, vector<16x192xbf16>, vector<64x192xf32> -> vector<64x192xf32>
    %326 = arith.addf %320, %325 : vector<64x192xf32>
    %327 = vector.extract_strided_slice %289 {offsets = [0, 0, 11, 0], sizes = [1, 8, 8, 16], strides = [1, 1, 1, 1]} : vector<1x8x24x16xbf16> to vector<1x8x8x16xbf16>
    %328 = vector.shape_cast %327 : vector<1x8x8x16xbf16> to vector<64x16xbf16>
    %c6_227 = arith.constant 6 : index
    %c0_228 = arith.constant 0 : index
    %c0_229 = arith.constant 0 : index
    %329 = vector.load %arg14[%c6_227, %c0_228, %c0_229] : memref<7x16x192xbf16, #tpu.memory_space<vmem>>, vector<1x16x192xbf16>
    %330 = vector.shape_cast %329 : vector<1x16x192xbf16> to vector<16x192xbf16>
    %cst_230 = arith.constant dense<0.000000e+00> : vector<64x192xf32>
    %331 = tpu.matmul %328, %330, %cst_230 {dimension_numbers = #tpu.dot_dimension_numbers<[1], [0], [0], [1], [0, 0, 1, 1], [], []>} : vector<64x16xbf16>, vector<16x192xbf16>, vector<64x192xf32> -> vector<64x192xf32>
    %332 = arith.addf %326, %331 : vector<64x192xf32>
    %c0_231 = arith.constant 0 : index
    %c0_232 = arith.constant 0 : index
    %333 = vector.load %arg15[%c0_231, %c0_232] : memref<1x192xf32, #tpu.memory_space<vmem>>, vector<1x192xf32>
    %334 = vector.broadcast %333 : vector<1x192xf32> to vector<64x192xf32>
    %335 = arith.addf %332, %334 : vector<64x192xf32>
    %cst_233 = arith.constant 0.000000e+00 : f32
    %336 = vector.broadcast %cst_233 : f32 to vector<64x192xf32>
    %337 = arith.maximumf %335, %336 : vector<64x192xf32>
    %338 = vector.shape_cast %337 : vector<64x192xf32> to vector<1x8x8x192xf32>
    %339 = vector.shape_cast %338 : vector<1x8x8x192xf32> to vector<64x192xf32>
    %340 = vector.shape_cast %339 : vector<64x192xf32> to vector<1x64x192xf32>
    %341 = tpu.transpose %340, [0, 2, 1] : vector<1x64x192xf32> -> vector<1x192x64xf32>
    %c0_234 = arith.constant 0 : index
    %c384 = arith.constant 384 : index
    %c0_235 = arith.constant 0 : index
    %342 = vector.load %arg18[%c0_234, %c384, %c0_235] : memref<1x768x64xf32, #tpu.memory_space<vmem>>, vector<1x192x64xf32>
    tpu.vector_store %arg18[%c0_234, %c384, %c0_235], %341 {strides = array<i32>} : memref<1x768x64xf32, #tpu.memory_space<vmem>>, vector<1x192x64xf32>,
    %343 = vector.shape_cast %5 : vector<1x64x16xf32> to vector<1x8x8x16xf32>
    %cst_236 = arith.constant 0.000000e+00 : f32
    %344 = vector.broadcast %cst_236 : f32 to vector<1x1x8x16xf32>
    %345 = tpu.concatenate %344, %343, %344 in 1 : vector<1x1x8x16xf32>, vector<1x8x8x16xf32>, vector<1x1x8x16xf32> -> vector<1x10x8x16xf32>
    %346 = vector.extract_strided_slice %345 {offsets = [0, 0, 0, 0], sizes = [1, 8, 8, 16], strides = [1, 1, 1, 1]} : vector<1x10x8x16xf32> to vector<1x8x8x16xf32>
    %347 = vector.extract_strided_slice %345 {offsets = [0, 1, 0, 0], sizes = [1, 8, 8, 16], strides = [1, 1, 1, 1]} : vector<1x10x8x16xf32> to vector<1x8x8x16xf32>
    %348 = arith.addf %346, %347 : vector<1x8x8x16xf32>
    %349 = vector.extract_strided_slice %345 {offsets = [0, 2, 0, 0], sizes = [1, 8, 8, 16], strides = [1, 1, 1, 1]} : vector<1x10x8x16xf32> to vector<1x8x8x16xf32>
    %350 = arith.addf %348, %349 : vector<1x8x8x16xf32>
    %c0_237 = arith.constant 0 : index
    %c0_238 = arith.constant 0 : index
    %c8_239 = arith.constant 8 : index
    %c0_240 = arith.constant 0 : index
    %351 = vector.load %arg20[%c0_237, %c0_238, %c8_239, %c0_240] : memref<1x8x24x16xf32, #tpu.memory_space<vmem>>, vector<1x8x8x16xf32>
    tpu.vector_store %arg20[%c0_237, %c0_238, %c8_239, %c0_240], %350 {strides = array<i32>} : memref<1x8x24x16xf32, #tpu.memory_space<vmem>>, vector<1x8x8x16xf32>,
    %c0_241 = arith.constant 0 : index
    %c0_242 = arith.constant 0 : index
    %c0_243 = arith.constant 0 : index
    %c0_244 = arith.constant 0 : index
    %352 = vector.load %arg20[%c0_241, %c0_242, %c0_243, %c0_244] : memref<1x8x24x16xf32, #tpu.memory_space<vmem>>, vector<1x8x24x16xf32>
    %353 = vector.extract_strided_slice %352 {offsets = [0, 0, 7, 0], sizes = [1, 8, 8, 16], strides = [1, 1, 1, 1]} : vector<1x8x24x16xf32> to vector<1x8x8x16xf32>
    %354 = vector.extract_strided_slice %352 {offsets = [0, 0, 8, 0], sizes = [1, 8, 8, 16], strides = [1, 1, 1, 1]} : vector<1x8x24x16xf32> to vector<1x8x8x16xf32>
    %355 = arith.addf %353, %354 : vector<1x8x8x16xf32>
    %356 = vector.extract_strided_slice %352 {offsets = [0, 0, 9, 0], sizes = [1, 8, 8, 16], strides = [1, 1, 1, 1]} : vector<1x8x24x16xf32> to vector<1x8x8x16xf32>
    %357 = arith.addf %355, %356 : vector<1x8x8x16xf32>
    %cst_245 = arith.constant 0.111111112 : f32
    %358 = vector.broadcast %cst_245 : f32 to vector<1x8x8x16xf32>
    %359 = arith.mulf %357, %358 : vector<1x8x8x16xf32>
    %360 = vector.shape_cast %359 : vector<1x8x8x16xf32> to vector<64x16xf32>
    %361 = arith.truncf %360 : vector<64x16xf32> to vector<64x16xbf16>
    %c0_246 = arith.constant 0 : index
    %c0_247 = arith.constant 0 : index
    %362 = vector.load %arg16[%c0_246, %c0_247] : memref<16x192xbf16, #tpu.memory_space<vmem>>, vector<16x192xbf16>
    %cst_248 = arith.constant dense<0.000000e+00> : vector<64x192xf32>
    %363 = tpu.matmul %361, %362, %cst_248 {dimension_numbers = #tpu.dot_dimension_numbers<[1], [0], [0], [1], [0, 0, 1, 1], [], []>} : vector<64x16xbf16>, vector<16x192xbf16>, vector<64x192xf32> -> vector<64x192xf32>
    %c0_249 = arith.constant 0 : index
    %c0_250 = arith.constant 0 : index
    %364 = vector.load %arg17[%c0_249, %c0_250] : memref<1x192xf32, #tpu.memory_space<vmem>>, vector<1x192xf32>
    %365 = vector.broadcast %364 : vector<1x192xf32> to vector<64x192xf32>
    %366 = arith.addf %363, %365 : vector<64x192xf32>
    %cst_251 = arith.constant 0.000000e+00 : f32
    %367 = vector.broadcast %cst_251 : f32 to vector<64x192xf32>
    %368 = arith.maximumf %366, %367 : vector<64x192xf32>
    %369 = vector.shape_cast %368 : vector<64x192xf32> to vector<1x64x192xf32>
    %370 = tpu.transpose %369, [0, 2, 1] : vector<1x64x192xf32> -> vector<1x192x64xf32>
    %c0_252 = arith.constant 0 : index
    %c576 = arith.constant 576 : index
    %c0_253 = arith.constant 0 : index
    %371 = vector.load %arg18[%c0_252, %c576, %c0_253] : memref<1x768x64xf32, #tpu.memory_space<vmem>>, vector<1x192x64xf32>
    tpu.vector_store %arg18[%c0_252, %c576, %c0_253], %370 {strides = array<i32>} : memref<1x768x64xf32, #tpu.memory_space<vmem>>, vector<1x192x64xf32>,
    return
  }
  func.func @transform_0(%arg0: i32) -> (i32, i32, i32) {
    %c0_i32 = arith.constant 0 : i32
    %c0_i32_0 = arith.constant 0 : i32
    %c0_i32_1 = arith.constant 0 : i32
    return %arg0, %c0_i32, %c0_i32_0 : i32, i32, i32
  }
  func.func @transform_1(%arg0: i32) -> (i32, i32) {
    %c0_i32 = arith.constant 0 : i32
    %c0_i32_0 = arith.constant 0 : i32
    %c0_i32_1 = arith.constant 0 : i32
    return %c0_i32, %c0_i32_0 : i32, i32
  }
  func.func @transform_2(%arg0: i32) -> (i32, i32) {
    %c0_i32 = arith.constant 0 : i32
    %c0_i32_0 = arith.constant 0 : i32
    %c0_i32_1 = arith.constant 0 : i32
    return %c0_i32, %c0_i32_0 : i32, i32
  }
  func.func @transform_3(%arg0: i32) -> (i32, i32, i32) {
    %c0_i32 = arith.constant 0 : i32
    %c0_i32_0 = arith.constant 0 : i32
    %c0_i32_1 = arith.constant 0 : i32
    %c0_i32_2 = arith.constant 0 : i32
    return %c0_i32, %c0_i32_0, %c0_i32_1 : i32, i32, i32
  }
  func.func @transform_4(%arg0: i32) -> (i32, i32) {
    %c0_i32 = arith.constant 0 : i32
    %c0_i32_0 = arith.constant 0 : i32
    %c0_i32_1 = arith.constant 0 : i32
    return %c0_i32, %c0_i32_0 : i32, i32
  }
  func.func @transform_5(%arg0: i32) -> (i32, i32, i32) {
    %c0_i32 = arith.constant 0 : i32
    %c0_i32_0 = arith.constant 0 : i32
    %c0_i32_1 = arith.constant 0 : i32
    %c0_i32_2 = arith.constant 0 : i32
    return %c0_i32, %c0_i32_0, %c0_i32_1 : i32, i32, i32
  }
  func.func @transform_6(%arg0: i32) -> (i32, i32) {
    %c0_i32 = arith.constant 0 : i32
    %c0_i32_0 = arith.constant 0 : i32
    %c0_i32_1 = arith.constant 0 : i32
    return %c0_i32, %c0_i32_0 : i32, i32
  }
  func.func @transform_7(%arg0: i32) -> (i32, i32, i32) {
    %c0_i32 = arith.constant 0 : i32
    %c0_i32_0 = arith.constant 0 : i32
    %c0_i32_1 = arith.constant 0 : i32
    %c0_i32_2 = arith.constant 0 : i32
    return %c0_i32, %c0_i32_0, %c0_i32_1 : i32, i32, i32
  }
  func.func @transform_8(%arg0: i32) -> (i32, i32) {
    %c0_i32 = arith.constant 0 : i32
    %c0_i32_0 = arith.constant 0 : i32
    %c0_i32_1 = arith.constant 0 : i32
    return %c0_i32, %c0_i32_0 : i32, i32
  }
  func.func @transform_9(%arg0: i32) -> (i32, i32, i32) {
    %c0_i32 = arith.constant 0 : i32
    %c0_i32_0 = arith.constant 0 : i32
    %c0_i32_1 = arith.constant 0 : i32
    %c0_i32_2 = arith.constant 0 : i32
    return %c0_i32, %c0_i32_0, %c0_i32_1 : i32, i32, i32
  }
  func.func @transform_10(%arg0: i32) -> (i32, i32) {
    %c0_i32 = arith.constant 0 : i32
    %c0_i32_0 = arith.constant 0 : i32
    %c0_i32_1 = arith.constant 0 : i32
    return %c0_i32, %c0_i32_0 : i32, i32
  }
  func.func @transform_11(%arg0: i32) -> (i32, i32, i32) {
    %c0_i32 = arith.constant 0 : i32
    %c0_i32_0 = arith.constant 0 : i32
    %c0_i32_1 = arith.constant 0 : i32
    %c0_i32_2 = arith.constant 0 : i32
    return %c0_i32, %c0_i32_0, %c0_i32_1 : i32, i32, i32
  }
  func.func @transform_12(%arg0: i32) -> (i32, i32) {
    %c0_i32 = arith.constant 0 : i32
    %c0_i32_0 = arith.constant 0 : i32
    %c0_i32_1 = arith.constant 0 : i32
    return %c0_i32, %c0_i32_0 : i32, i32
  }
  func.func @transform_13(%arg0: i32) -> (i32, i32, i32) {
    %c0_i32 = arith.constant 0 : i32
    %c0_i32_0 = arith.constant 0 : i32
    %c0_i32_1 = arith.constant 0 : i32
    %c0_i32_2 = arith.constant 0 : i32
    return %c0_i32, %c0_i32_0, %c0_i32_1 : i32, i32, i32
  }
  func.func @transform_14(%arg0: i32) -> (i32, i32) {
    %c0_i32 = arith.constant 0 : i32
    %c0_i32_0 = arith.constant 0 : i32
    %c0_i32_1 = arith.constant 0 : i32
    return %c0_i32, %c0_i32_0 : i32, i32
  }
  func.func @transform_15(%arg0: i32) -> (i32, i32) {
    %c0_i32 = arith.constant 0 : i32
    %c0_i32_0 = arith.constant 0 : i32
    %c0_i32_1 = arith.constant 0 : i32
    return %c0_i32, %c0_i32_0 : i32, i32
  }
  func.func @transform_16(%arg0: i32) -> (i32, i32) {
    %c0_i32 = arith.constant 0 : i32
    %c0_i32_0 = arith.constant 0 : i32
    %c0_i32_1 = arith.constant 0 : i32
    return %c0_i32, %c0_i32_0 : i32, i32
  }
  func.func @transform_17(%arg0: i32) -> (i32, i32, i32) {
    %c0_i32 = arith.constant 0 : i32
    %c0_i32_0 = arith.constant 0 : i32
    %c0_i32_1 = arith.constant 0 : i32
    return %arg0, %c0_i32, %c0_i32_0 : i32, i32, i32
  }
}

</mosaic_0001>

<bundles_post_ra>
// kernel: inception_c_forward.1
= control target key start
LH: loop header
LB: loop body
LE: loop exit
PB: predicated region body
PF: predicated region fallthrough
CT: control target
= control target key end

     0   :  { %s12931_s0 = inlined_call_operand.vmem [shape: f32[2,16,64], index: 0, kind: input, shape index: {}]   ;;  %s12932_s1 = inlined_call_operand.hbm [shape: bf16[16,512], index: 1, kind: input, shape index: {}]   ;;  %s12933_s2 = inlined_call_operand.hbm [shape: f32[1,512], index: 2, kind: input, shape index: {}]   ;;  %s12934_s3 = inlined_call_operand.vmem [shape: bf16[7,16,16], index: 3, kind: input, shape index: {}]   ;;  %s12935_s4 = inlined_call_operand.vmem [shape: f32[1,16], index: 4, kind: input, shape index: {}]   ;;  %s12936_s5 = inlined_call_operand.vmem [shape: bf16[7,16,192], index: 5, kind: input, shape index: {}]   ;;  %s12937_s6 = inlined_call_operand.hbm [shape: f32[1,192], index: 6, kind: input, shape index: {}]   ;;  %s12938_s7 = inlined_call_operand.hbm [shape: bf16[7,16,16], index: 7, kind: input, shape index: {}]   ;;  %s12939_s8 = inlined_call_operand.hbm [shape: f32[1,16], index: 8, kind: input, shape index: {}]   ;;  %s12940_s9 = inlined_call_operand.hbm [shape: bf16[7,16,16], index: 9, kind: input, shape index: {}]   ;;  %s12941_s10 = inlined_call_operand.hbm [shape: f32[1,16], index: 10, kind: input, shape index: {}]   ;;  %s12942_s11 = inlined_call_operand.hbm [shape: bf16[7,16,16], index: 11, kind: input, shape index: {}]   ;;  %s12943_s12 = inlined_call_operand.hbm [shape: f32[1,16], index: 12, kind: input, shape index: {}]   ;;  %s12944_s13 = inlined_call_operand.hbm [shape: bf16[7,16,192], index: 13, kind: input, shape index: {}]   ;;  %s12945_s14 = inlined_call_operand.hbm [shape: f32[1,192], index: 14, kind: input, shape index: {}]   ;;  %s12946_s15 = inlined_call_operand.vmem [shape: bf16[16,192], index: 15, kind: input, shape index: {}]   ;;  %s12947_s16 = inlined_call_operand.hbm [shape: f32[1,192], index: 16, kind: input, shape index: {}]   ;;  %s12948_s17 = inlined_call_operand.vmem [shape: f32[2,768,64], index: 17, kind: output, shape index: {}]  }
   0x1   :  { %13049 = sst [smem:[#allocation67_spill]] %s12931_s0 }
   0x2   :  { %13050 = sst [smem:[#allocation68_spill]] %s12932_s1 }
   0x3   :  { %13051 = sst [smem:[#allocation69_spill]] %s12933_s2 }
   0x4   :  { %13052 = sst [smem:[#allocation70_spill]] %s12938_s7 }
   0x5   :  { %22 = vsyncpa [#allocation5], 0 }
   0x6   :  { %23 = vsyncpa [#allocation7], 0 }
   0x7   :  { %24 = vsyncpa [#allocation10], 0 }
   0x8   :  { %25 = vsyncpa [#allocation13], 0 }
   0x9   :  { %26 = vsyncpa [#allocation16], 0 }
   0xa   :  { %27 = vsyncpa [#allocation19], 0 }
   0xb   :  { %28 = vsyncpa [#allocation22], 0  ;;  %s9393_s24 = smov 0  }
   0xc LB: > { %s9283_s25 = smov [#allocation6]   ;;  %s9399_s27 = sadd.s32 4294967295, %s9281_s24   ;;  %s9281_s24 = sphi %s9393_s24, %s34_s24  }
   0xd   : > { %s453_s26 = sshll.u32 %s9283_s25, 4  ;;  %p7779_p0 = scmp.ge.s32.totalorder %s9281_s24, 1  ;;  %s454_s26 = int_to_ptr.vmem [resolvable:$true] %s453_s26 }
   0xe   : > { %p427_p1 = scmp.lt.s32.totalorder %s9281_s24, 3  ;;  %p12949_p2 = scmp.eq.s32.totalorder %s9399_s27, 0 }
   0xf   : > { %s9284_s29 = smov [#allocation9]   ;;  %s9285_s18 = smov [#allocation12]  }
  0x10   : > { %p9404_p3 = pnand %p7779_p0, %p427_p1  ;;  %s483_s0 = sshll.u32 %s9284_s29, 4  ;;  %s9410_s0 = int_to_ptr.vmem [resolvable:$true] %s483_s0 }
  0x11   : > { %s507_s19 = sshll.u32 %s9285_s18, 4  ;;  %s9286_s1 = smov [#allocation15]   ;;  %s9418_s19 = int_to_ptr.vmem [resolvable:$true] %s507_s19 }
  0x12   : > { %s13053_s28 = scalar_select %p9404_p3, 1, 0 }
  0x13   : > { %p8756_p4 = pneg %p9404_p3  ;;  %s9420_s20 = sshll.u32 %s9286_s1, 4  ;;  %s532_s20 = int_to_ptr.vmem [resolvable:$true] %s9420_s20 }
  0x14   : > { %s8946_s22 = scalar_lea.vmem %s454_s26, 64  ;;  %p8954_p10 = scmp.lt.s32.totalorder %s454_s26, %s454_s26 }
  0x15   : > { %p9414_p5 = pnand %p12949_p2, %p8756_p4  ;;  %p8947_p7 = scmp.ne.s32.totalorder %s454_s26, %s8946_s22 }
  0x16   : > { %p8955_p11 = scmp.lt.s32.totalorder %s8946_s22, %s8946_s22 }
  0x17   : > { %p9424_p6 = pneg %p9414_p5 }
  0x18   : > { %p8956_p12 = por %p8955_p11, %p8954_p10 }
  0x19   : > { %p8949_p8 = pnand %p8947_p7, %p9424_p6 }
  0x1b   : > { %p8950_p9 = pneg %p8949_p8 }
  0x1d   : > { %p8957_p13 = pnand %p8956_p12, %p8950_p9 }
  0x1f   : > { %8960 = shalt.err (!%p8957_p13)
}
  0x20   : > { %s13056_s2 = sld [smem:[#allocation69_spill]]  ;;  %s8972_s29 = scalar_lea.vmem %s9410_s0, 896 }
  0x21   : > { %p8973_p0 = scmp.ne.s32.totalorder %s9410_s0, %s8972_s29  ;;  %p8980_p7 = scmp.lt.s32.totalorder %s9410_s0, %s9410_s0 }
  0x22   : > { %p8981_p8 = scmp.lt.s32.totalorder %s8972_s29, %s8972_s29 }
  0x23   : > { %p8975_p1 = pnand %p8973_p0, %p9424_p6 }
  0x24   : > { %p8982_p9 = por %p8981_p8, %p8980_p7 }
  0x25   : > { %p8976_p4 = pneg %p8975_p1 }
  0x26   : > { %8762 = dma.hbm_to_vmem [thread:$0]  (!%p9414_p5), %s13056_s2, 64, %s454_s26, [#allocation7]  }
  0x27   : > { %p8983_p10 = pnand %p8982_p9, %p8976_p4 }
  0x29   : > { %8986 = shalt.err (!%p8983_p10)
}
  0x2a   : > { %s9287_s18 = smov 64   ;;  %s9288_s1 = smov 4  }
  0x2b   : > { %s13057_s7 = sld [smem:[#allocation70_spill]]  ;;  %s8998_s23 = scalar_lea.vmem %s9418_s19, 896 }
  0x2c   : > { %p8999_p11 = scmp.ne.s32.totalorder %s9418_s19, %s8998_s23  ;;  %p9006_p0 = scmp.lt.s32.totalorder %s9418_s19, %s9418_s19 }
  0x2d   : > { %p9007_p1 = scmp.lt.s32.totalorder %s8998_s23, %s8998_s23 }
  0x2e   : > { %p9001_p12 = pnand %p8999_p11, %p9424_p6 }
  0x2f   : > { %p9008_p4 = por %p9007_p1, %p9006_p0 }
  0x30   : > { %p9002_p13 = pneg %p9001_p12 }
  0x31   : > { %8768 = dma.hbm_to_vmem [thread:$0]  (!%p9414_p5), %s13057_s7, 896, %s9410_s0, [#allocation10], %s9287_s18, %s9287_s18, %s9288_s1  }
  0x32   : > { %p9009_p7 = pnand %p9008_p4, %p9002_p13 }
  0x34   : > { %9012 = shalt.err (!%p9009_p7)
}
  0x35   : > { %8774 = dma.hbm_to_vmem [thread:$0]  (!%p9414_p5), %s12940_s9, 896, %s9418_s19, [#allocation13], %s9287_s18, %s9287_s18, %s9288_s1  }
  0x36   : > { %s9024_s0 = scalar_lea.vmem %s532_s20, 896  ;;  %p9032_p11 = scmp.lt.s32.totalorder %s532_s20, %s532_s20 }
  0x37   : > { %p9025_p8 = scmp.ne.s32.totalorder %s532_s20, %s9024_s0  ;;  %p9033_p12 = scmp.lt.s32.totalorder %s9024_s0, %s9024_s0 }
  0x39   : > { %p9027_p9 = pnand %p9025_p8, %p9424_p6  ;;  %p9034_p0 = por %p9033_p12, %p9032_p11 }
  0x3b   : > { %p9028_p10 = pneg %p9027_p9 }
  0x3d   : > { %p9035_p13 = pnand %p9034_p0, %p9028_p10 }
  0x3f   : > { %9038 = shalt.err (!%p9035_p13)
}
  0x40   : > { %8780 = dma.hbm_to_vmem [thread:$0]  (!%p9414_p5), %s12942_s11, 896, %s532_s20, [#allocation16], %s9287_s18, %s9287_s18, %s9288_s1  }
  0x41   : > { %s9289_s23 = smov [#allocation18]  }
  0x42   : > { %s555_s19 = sshll.u32 %s9289_s23, 4  ;;  %s556_s19 = int_to_ptr.vmem [resolvable:$true] %s555_s19 }
  0x43   : > { %s9050_s25 = scalar_lea.vmem %s556_s19, 1792  ;;  %p9058_p8 = scmp.lt.s32.totalorder %s556_s19, %s556_s19 }
  0x44   : > { %p9051_p1 = scmp.ne.s32.totalorder %s556_s19, %s9050_s25  ;;  %p9059_p9 = scmp.lt.s32.totalorder %s9050_s25, %s9050_s25 }
  0x46   : > { %p9053_p4 = pnand %p9051_p1, %p9424_p6  ;;  %p9060_p11 = por %p9059_p9, %p9058_p8 }
  0x48   : > { %p9054_p7 = pneg %p9053_p4 }
  0x4a   : > { %p9061_p10 = pnand %p9060_p11, %p9054_p7 }
  0x4c   : > { %9064 = shalt.err (!%p9061_p10)
}
  0x4d   : > { %s9290_s29 = smov 128   ;;  %s9291_s0 = smov 8  }
  0x4e   : > { %8786 = dma.hbm_to_vmem [thread:$0]  (!%p9414_p5), %s12944_s13, 1792, %s556_s19, [#allocation19], %s9290_s29, %s9290_s29, %s9291_s0  }
  0x4f   : > { %s9292_s18 = smov [#allocation4]  }
  0x50   : > { %s439_s1 = sshll.u32 %s9292_s18, 4  ;;  %s440_s1 = int_to_ptr.vmem [resolvable:$true] %s439_s1 }
  0x51   : > { %s9076_s22 = scalar_lea.vmem %s440_s1, 512  ;;  %p9084_p1 = scmp.lt.s32.totalorder %s440_s1, %s440_s1 }
  0x52   : > { %p9077_p12 = scmp.ne.s32.totalorder %s440_s1, %s9076_s22  ;;  %p9085_p4 = scmp.lt.s32.totalorder %s9076_s22, %s9076_s22 }
  0x54   : > { %p9079_p0 = pnand %p9077_p12, %p9424_p6  ;;  %p9086_p7 = por %p9085_p4, %p9084_p1 }
  0x56   : > { %p9080_p13 = pneg %p9079_p0 }
  0x58   : > { %p9087_p8 = pnand %p9086_p7, %p9080_p13 }
  0x5a   : > { %9090 = shalt.err (!%p9087_p8)
}
  0x5b   : > { %s9293_s23 = smov 256   ;;  %s9294_s25 = smov 16  }
  0x5c   : > { %s13058_s29 = sld [smem:[#allocation68_spill]]  ;;  %s9295_s0 = smov [#allocation8]  }
  0x5d   : > { %s473_s20 = sshll.u32 %s9295_s0, 4  ;;  %s9296_s18 = smov [#allocation11]   ;;  %s474_s20 = int_to_ptr.vmem [resolvable:$true] %s473_s20 }
  0x5e   : > { %s497_s2 = sshll.u32 %s9296_s18, 4  ;;  %s9102_s7 = scalar_lea.vmem %s474_s20, 32  ;;  %s498_s2 = int_to_ptr.vmem [resolvable:$true] %s497_s2 }
  0x5f   : > { %p9103_p9 = scmp.ne.s32.totalorder %s474_s20, %s9102_s7  ;;  %p9110_p12 = scmp.lt.s32.totalorder %s474_s20, %s474_s20 }
  0x60   : > { %p9111_p0 = scmp.lt.s32.totalorder %s9102_s7, %s9102_s7 }
  0x61   : > { %p9105_p11 = pnand %p9103_p9, %p9424_p6 }
  0x62   : > { %8759 = dma.hbm_to_vmem [thread:$0]  (!%p9414_p5), %s13058_s29, 512, %s440_s1, [#allocation5], %s9293_s23, %s9293_s23, %s9294_s25  }
  0x63   : > { %p9106_p10 = pneg %p9105_p11  ;;  %p9112_p13 = por %p9111_p0, %p9110_p12 }
  0x65   : > { %p9113_p1 = pnand %p9112_p13, %p9106_p10 }
  0x67   : > { %9116 = shalt.err (!%p9113_p1)
}
  0x68   : > { %8765 = dma.hbm_to_vmem [thread:$0]  (!%p9414_p5), %s12937_s6, 32, %s474_s20, [#allocation7]  }
  0x69   : > { %s9128_s1 = scalar_lea.vmem %s498_s2, 16  ;;  %s9135_s23 = scalar_lea.vmem %s498_s2, 32 }
  0x6a   : > { %p9129_p4 = scmp.ne.s32.totalorder %s498_s2, %s9128_s1  ;;  %p9136_p9 = scmp.lt.s32.totalorder %s498_s2, %s498_s2 }
  0x6b   : > { %p9137_p11 = scmp.lt.s32.totalorder %s9135_s23, %s9128_s1 }
  0x6c   : > { %p9131_p7 = pnand %p9129_p4, %p9424_p6 }
  0x6d   : > { %p9138_p2 = por %p9137_p11, %p9136_p9 }
  0x6e   : > { %p9132_p8 = pneg %p9131_p7 }
  0x70   : > { %p9139_p12 = pnand %p9138_p2, %p9132_p8 }
  0x72   : > { %9142 = shalt.err (!%p9139_p12)
}
  0x73   : > { %8771 = dma.hbm_to_vmem [thread:$0]  (!%p9414_p5), %s12939_s8, 16, %s498_s2, [#allocation10]  }
  0x74   : > { %s9297_s19 = smov [#allocation14]   ;;  %s9298_s0 = smov [#allocation17]  }
  0x75   : > { %s521_s29 = sshll.u32 %s9297_s19, 4  ;;  %s545_s20 = sshll.u32 %s9298_s0, 4  ;;  %s522_s29 = int_to_ptr.vmem [resolvable:$true] %s521_s29  ;;  %s546_s20 = int_to_ptr.vmem [resolvable:$true] %s545_s20 }
  0x76   : > { %s9154_s18 = scalar_lea.vmem %s522_s29, 16  ;;  %s9161_s22 = scalar_lea.vmem %s522_s29, 32 }
  0x77   : > { %p9155_p10 = scmp.ne.s32.totalorder %s522_s29, %s9154_s18  ;;  %p9162_p2 = scmp.lt.s32.totalorder %s522_s29, %s522_s29 }
  0x78   : > { %p9163_p1 = scmp.lt.s32.totalorder %s9161_s22, %s9154_s18 }
  0x79   : > { %p9157_p0 = pnand %p9155_p10, %p9424_p6 }
  0x7a   : > { %p9164_p4 = por %p9163_p1, %p9162_p2 }
  0x7b   : > { %p9158_p13 = pneg %p9157_p0 }
  0x7d   : > { %p9165_p7 = pnand %p9164_p4, %p9158_p13 }
  0x7f   : > { %9168 = shalt.err (!%p9165_p7)
}
  0x80   : > { %8777 = dma.hbm_to_vmem [thread:$0]  (!%p9414_p5), %s12941_s10, 16, %s522_s29, [#allocation13]  }
  0x81   : > { %s9180_s1 = scalar_lea.vmem %s546_s20, 16  ;;  %s9187_s23 = scalar_lea.vmem %s546_s20, 32 }
  0x82   : > { %p9181_p8 = scmp.ne.s32.totalorder %s546_s20, %s9180_s1  ;;  %p9188_p12 = scmp.lt.s32.totalorder %s546_s20, %s546_s20 }
  0x83   : > { %p9189_p10 = scmp.lt.s32.totalorder %s9187_s23, %s9180_s1 }
  0x84   : > { %p9183_p9 = pnand %p9181_p8, %p9424_p6 }
  0x85   : > { %p9190_p0 = por %p9189_p10, %p9188_p12 }
  0x86   : > { %p9184_p11 = pneg %p9183_p9 }
  0x88   : > { %p9191_p2 = pnand %p9190_p0, %p9184_p11 }
  0x8a   : > { %9194 = shalt.err (!%p9191_p2)
}
  0x8b   : > { %8783 = dma.hbm_to_vmem [thread:$0]  (!%p9414_p5), %s12943_s12, 16, %s546_s20, [#allocation16]  }
  0x8c   : > { %s9299_s19 = smov [#allocation20]   ;;  %s9300_s0 = smov [#allocation21]  }
  0x8d   : > { %s569_s29 = sshll.u32 %s9299_s19, 4  ;;  %s583_s18 = sshll.u32 %s9300_s0, 4  ;;  %s570_s29 = int_to_ptr.vmem [resolvable:$true] %s569_s29  ;;  %s584_s18 = int_to_ptr.vmem [resolvable:$true] %s583_s18 }
  0x8e   : > { %s9206_s22 = scalar_lea.vmem %s570_s29, 32  ;;  %p9214_p7 = scmp.lt.s32.totalorder %s570_s29, %s570_s29 }
  0x8f   : > { %p9207_p13 = scmp.ne.s32.totalorder %s570_s29, %s9206_s22  ;;  %p9215_p8 = scmp.lt.s32.totalorder %s9206_s22, %s9206_s22 }
  0x91   : > { %p9209_p1 = pnand %p9207_p13, %p9424_p6  ;;  %p9216_p9 = por %p9215_p8, %p9214_p7 }
  0x93   : > { %p9210_p4 = pneg %p9209_p1 }
  0x95   : > { %p9217_p11 = pnand %p9216_p9, %p9210_p4 }
  0x97   : > { %9220 = shalt.err (!%p9217_p11)
}
  0x98   : > { %8789 = dma.hbm_to_vmem [thread:$0]  (!%p9414_p5), %s12945_s14, 32, %s570_s29, [#allocation19]  }
  0x99   : > { %s9232_s20 = scalar_lea.vmem %s584_s18, 32  ;;  %p9240_p2 = scmp.lt.s32.totalorder %s584_s18, %s584_s18 }
  0x9a   : > { %p9233_p12 = scmp.ne.s32.totalorder %s584_s18, %s9232_s20  ;;  %p9241_p13 = scmp.lt.s32.totalorder %s9232_s20, %s9232_s20 }
  0x9c   : > { %p9235_p10 = pnand %p9233_p12, %p9424_p6  ;;  %p9242_p1 = por %p9241_p13, %p9240_p2 }
  0x9e   : > { %p9236_p0 = pneg %p9235_p10 }
  0xa0   : > { %p9243_p3 = pnand %p9242_p1, %p9236_p0 }
  0xa2   : > { %9246 = shalt.err (!%p9243_p3)
}
  0xa3   : > { %8792 = dma.hbm_to_vmem [thread:$0]  (!%p9414_p5), %s12947_s16, 32, %s584_s18, [#allocation22]  }
  0xa4   : > { %p13059_p4 = scmp.ne.s32.totalorder %s13053_s28, 0 }
  0xa6   : > { %604 = sbr.rel (%p13059_p4) target bundleno = 2270 (0x8de), region = 88 }
  0xab   : > { %p13060_p7 = scmp.eq.s32.totalorder %s9399_s27, 0 }
  0xad   : > { %9252 = dma.done.wait (%p13060_p7), [#allocation5], 512   ;;  %p13061_p6 = pmov %p13060_p7 }
  0xaf   : > { %9254 = vsyncadd (%p13061_p6), [#allocation5], 4294966784  ;;  %p13062_p8 = pmov %p13061_p6 }
  0xb0   : > { %p13063_p3 = pmov %p13061_p6 }
  0xb1   : > { %9256 = dma.done.wait (%p13062_p8), [#allocation7], 96  }
  0xb2   : > { %9258 = vsyncadd (%p13063_p3), [#allocation7], 4294967200  ;;  %p13064_p9 = pmov %p13063_p3 }
  0xb3   : > { %p13065_p5 = pmov %p13063_p3 }
  0xb4   : > { %9260 = dma.done.wait (%p13064_p9), [#allocation10], 912  }
  0xb5   : > { %9262 = vsyncadd (%p13065_p5), [#allocation10], 4294966384  ;;  %p13066_p11 = pmov %p13063_p3 }
  0xb6   : > { %p13067_p12 = pmov %p13063_p3 }
  0xb7   : > { %9264 = dma.done.wait (%p13066_p11), [#allocation13], 912  }
  0xb8   : > { %9266 = vsyncadd (%p13067_p12), [#allocation13], 4294966384  ;;  %p13068_p10 = pmov %p13063_p3 }
  0xb9   : > { %p13069_p0 = pmov %p13063_p3 }
  0xba   : > { %9268 = dma.done.wait (%p13068_p10), [#allocation16], 912  }
  0xbb   : > { %9270 = vsyncadd (%p13069_p0), [#allocation16], 4294966384  ;;  %p13070_p2 = pmov %p13069_p0 }
  0xbc   : > { %p13071_p13 = pmov %p13069_p0 }
  0xbd   : > { %9272 = dma.done.wait (%p13070_p2), [#allocation19], 1824  }
  0xbe   : > { %9274 = vsyncadd (%p13071_p13), [#allocation19], 4294965472  ;;  %p13072_p1 = pmov %p13069_p0 }
  0xbf   : > { %p13073_p4 = pmov %p13069_p0 }
  0xc0   : > { %9276 = dma.done.wait (%p13072_p1), [#allocation22], 32  }
  0xc1   : > { %9278 = vsyncadd (%p13073_p4), [#allocation22], 4294967264  ;;  %p700_p7 = scmp.lt.s32.totalorder %s9399_s27, 1  ;;  %vm736_vm0 = vcmask 130048   ;;  %s13074_s7 = sld [smem:[#allocation67_spill]]  ;;  %v9301_v0 = vmov 0.0   ;;  %v805_v33 = vlaneseq }
  0xc2   : > { %738 = vst.msk [vmem:[#allocation3 + $0x8] sm:$0xff] %vm736_vm0, %v9301_v0  ;;  %737 = vst.msk [vmem:[#allocation3] sm:$0xff] %vm736_vm0, %v9301_v0  ;;  %v8845_v3 = vld [vmem:[#allocation4 + $0x4] ss:$16 sps:$4 sm:$0xff]   ;;  %v8847_v4 = vld [vmem:[#allocation4 + $0xc] ss:$16 sps:$4 sm:$0xff]  }
  0xc3   : > { %s13489_s27 = smov (!%p700_p7, %s9399_s27), 1  ;;  %739 = vst.msk [vmem:[#allocation3 + $0x10] sm:$0xff] %vm736_vm0, %v9301_v0  ;;  %740 = vst.msk [vmem:[#allocation3 + $0x18] sm:$0xff] %vm736_vm0, %v9301_v0  ;;  %v8849_v5 = vld [vmem:[#allocation4] ss:$16 sps:$4 sm:$0xff]   ;;  %871 = vmatprep.subr.bf16.mxu0 %v8845_v3  ;;  %v12951_v7 = vmov 0   ;;  %944 = vmatprep.subr.bf16.mxu1 %v8847_v4 }
  0xc4   : > { %s8265_s28 = sshll.u32 %s13489_s27, 4  ;;  %741 = vst.msk [vmem:[#allocation3 + $0x20] sm:$0xff] %vm736_vm0, %v9301_v0  ;;  %742 = vst.msk [vmem:[#allocation3 + $0x28] sm:$0xff] %vm736_vm0, %v9301_v0  ;;  %v8850_v6 = vld [vmem:[#allocation4 + $0x8] ss:$16 sps:$4 sm:$0xff]   ;;  %889 = vmatprep.mubr.bf16.mxu0 %v12951_v7  ;;  %872 = vmatpush1.bf16.msra.mxu0 %v8849_v5  ;;  %v9609_v34 = vshrl.u32 %v805_v33, 7 }
  0xc5   : > { %743 = vst.msk [vmem:[#allocation3 + $0x30] sm:$0xff] %vm736_vm0, %v9301_v0  ;;  %744 = vst.msk [vmem:[#allocation3 + $0x38] sm:$0xff] %vm736_vm0, %v9301_v0  ;;  %945 = vmatpush1.bf16.msra.mxu1 %v8850_v6  ;;  %962 = vmatprep.mubr.bf16.mxu1 %v12951_v7  ;;  %vm711_vm1 = vcmask 125952   ;;  %v9612_v36 = vld [vmem:[#allocation6] sm:$0xf]  ;;  %v8851_v38 = vld [vmem:[%s12934_s3 + $0x8] sm:$0xff]  }
  0xc6   : > { %745 = vst.msk [vmem:[#allocation3 + $0x40] sm:$0xff] %vm736_vm0, %v9301_v0  ;;  %746 = vst.msk [vmem:[#allocation3 + $0x48] sm:$0xff] %vm736_vm0, %v9301_v0  ;;  %v819_v35 = vsub.s32 3, %v9609_v34  ;;  %8427 = vmatprep.subr.bf16.mxu0 %v8851_v38  ;;  %v8852_v39 = vld [vmem:[%s12934_s3] sm:$0xff]   ;;  %v9674_v40 = vld [vmem:[%s12934_s3 + $0x10] sm:$0xff]   ;;  %v815_v54 = vsub.s32 2, %v9609_v34 }
  0xc7   : > { %s704_s25 = scalar_lea.vmem %s13074_s7, %s8265_s28  ;;  %747 = vst.msk [vmem:[#allocation3 + $0x50] sm:$0xff] %vm736_vm0, %v9301_v0  ;;  %748 = vst.msk [vmem:[#allocation3 + $0x58] sm:$0xff] %vm736_vm0, %v9301_v0  ;;  %8437 = vmatprep.subr.bf16.mxu1 %v8852_v39  ;;  %v9680_v41 = vld [vmem:[%s12934_s3 + $0x18] sm:$0xff]   ;;  %v9703_v55 = vsub.s32 0, %v9609_v34  ;;  %vm1330_vm2 = vcmask 1044484   ;;  %vm1329_vm3 = vcmask 1040384  }
  0xc8   : > { %749 = vst.msk [vmem:[#allocation3 + $0x60] sm:$0xff] %vm736_vm0, %v9301_v0  ;;  %750 = vst.msk [vmem:[#allocation3 + $0x68] sm:$0xff] %vm736_vm0, %v9301_v0  ;;  %v761_v1 = vld [vmem:[%s704_s25] sm:$0xff]  ;;  %v762_v2 = vld [vmem:[%s704_s25 + $0x8] sm:$0xff]  ;;  %v9663_v37 = vrot.slane %v9612_v36, %v819_v35  ;;  %vm1164_vm4 = vsmask.f32 1280 }
  0xc9   : > { %751 = vst.msk [vmem:[#allocation3 + $0x70] sm:$0xff] %vm736_vm0, %v9301_v0  ;;  %752 = vst.msk [vmem:[#allocation3 + $0x78] sm:$0xff] %vm736_vm0, %v9301_v0  ;;  %763 = vxpose.xlu0.b32.start [1/2] (short) (narrow) %v761_v1, 64  ;;  %vm1165_vm5 = vsmask.f32 5392  ;;  %vm2001_vm13 = vcmask 1042432  }
  0xca   : > { %753 = vst.msk [vmem:[#allocation3 + $0x80] sm:$0xff] %vm736_vm0, %v9301_v0  ;;  %754 = vst.msk [vmem:[#allocation3 + $0x88] sm:$0xff] %vm736_vm0, %v9301_v0  ;;  %vm1557_vm8 = vsmask.f32 256  ;;  %vm1558_vm9 = vsmask.f32 4368 }
  0xcb   : > { %755 = vst.msk [vmem:[#allocation3 + $0x90] sm:$0xff] %vm736_vm0, %v9301_v0  ;;  %756 = vst.msk [vmem:[#allocation3 + $0x98] sm:$0xff] %vm736_vm0, %v9301_v0  ;;  %vm1812_vm11 = vsmask.f32 3328  ;;  %vm1813_vm12 = vsmask.f32 7440 }
  0xcc   : > { %757 = vst.msk [vmem:[#allocation3 + $0xa0] sm:$0xff] %vm736_vm0, %v9301_v0  ;;  %758 = vst.msk [vmem:[#allocation3 + $0xa8] sm:$0xff] %vm736_vm0, %v9301_v0  ;;  %vm2002_vm14 = vcmask 1046532   ;;  %s8707_s18 = smul.u32 768, %s13489_s27 }
  0xcd   : > { %759 = vst.msk [vmem:[#allocation3 + $0xb0] sm:$0xff] %vm736_vm0, %v9301_v0  ;;  %760 = vst.msk [vmem:[#allocation3 + $0xb8] sm:$0xff] %vm736_vm0, %v9301_v0  ;;  %764 = vxpose.xlu0.b32.end [2/2] (short) (narrow) %v762_v2, 64 }
  0xce   : > { %713 = vst.msk [vmem:[#allocation2 + $0x4] sm:$0xf] %vm711_vm1, %v12951_v7  ;;  %712 = vst.msk [vmem:[#allocation2] sm:$0xf] %vm711_vm1, %v12951_v7  ;;  %s12462_s2 = scalar_lea.vmem %s12948_s17, %s8707_s18 }
  0xcf   : > { %714 = vst.msk [vmem:[#allocation2 + $0x8] sm:$0xf] %vm711_vm1, %v12951_v7  ;;  %715 = vst.msk [vmem:[#allocation2 + $0xc] sm:$0xf] %vm711_vm1, %v12951_v7 }
  0xd0   : > { %716 = vst.msk [vmem:[#allocation2 + $0x10] sm:$0xf] %vm711_vm1, %v12951_v7  ;;  %717 = vst.msk [vmem:[#allocation2 + $0x14] sm:$0xf] %vm711_vm1, %v12951_v7 }
  0xd1   : > { %718 = vst.msk [vmem:[#allocation2 + $0x18] sm:$0xf] %vm711_vm1, %v12951_v7  ;;  %719 = vst.msk [vmem:[#allocation2 + $0x1c] sm:$0xf] %vm711_vm1, %v12951_v7 }
  0xd2   : > { %720 = vst.msk [vmem:[#allocation2 + $0x20] sm:$0xf] %vm711_vm1, %v12951_v7  ;;  %721 = vst.msk [vmem:[#allocation2 + $0x24] sm:$0xf] %vm711_vm1, %v12951_v7 }
  0xd3   : > { %722 = vst.msk [vmem:[#allocation2 + $0x28] sm:$0xf] %vm711_vm1, %v12951_v7  ;;  %723 = vst.msk [vmem:[#allocation2 + $0x2c] sm:$0xf] %vm711_vm1, %v12951_v7 }
  0xd4   : > { %724 = vst.msk [vmem:[#allocation2 + $0x30] sm:$0xf] %vm711_vm1, %v12951_v7  ;;  %725 = vst.msk [vmem:[#allocation2 + $0x34] sm:$0xf] %vm711_vm1, %v12951_v7 }
  0xd5   : > { %726 = vst.msk [vmem:[#allocation2 + $0x38] sm:$0xf] %vm711_vm1, %v12951_v7  ;;  %727 = vst.msk [vmem:[#allocation2 + $0x3c] sm:$0xf] %vm711_vm1, %v12951_v7  ;;  %v9683_v42 = vld [vmem:[#allocation2] sm:$0xf] }
  0xd6   : > { %728 = vst.msk [vmem:[#allocation2 + $0x40] sm:$0xf] %vm711_vm1, %v12951_v7  ;;  %729 = vst.msk [vmem:[#allocation2 + $0x44] sm:$0xf] %vm711_vm1, %v12951_v7  ;;  %v9685_v43 = vld [vmem:[#allocation2 + $0xc] sm:$0xf] }
  0xd7   : > { %730 = vst.msk [vmem:[#allocation2 + $0x48] sm:$0xf] %vm711_vm1, %v12951_v7  ;;  %731 = vst.msk [vmem:[#allocation2 + $0x4c] sm:$0xf] %vm711_vm1, %v12951_v7  ;;  %v1168_v46 = vshrl.u32 %v9683_v42, 16  ;;  %v1171_v47 = vshll.u32 %v9683_v42, 16 }
  0xd8   : > { %732 = vst.msk [vmem:[#allocation2 + $0x50] sm:$0xf] %vm711_vm1, %v12951_v7  ;;  %733 = vst.msk [vmem:[#allocation2 + $0x54] sm:$0xf] %vm711_vm1, %v12951_v7  ;;  %v9687_v44 = vld [vmem:[#allocation2 + $0x18] sm:$0xf] }
  0xd9   : > { %734 = vst.msk [vmem:[#allocation2 + $0x58] sm:$0xf] %vm711_vm1, %v12951_v7  ;;  %735 = vst.msk [vmem:[#allocation2 + $0x5c] sm:$0xf] %vm711_vm1, %v12951_v7  ;;  %v9689_v45 = vld [vmem:[#allocation2 + $0x24] sm:$0xf] }
  0xda   : > { %v1186_v49 = vshrl.u32 %v9685_v43, 16  ;;  %v1189_v50 = vshll.u32 %v9685_v43, 16  ;;  %v1204_v51 = vshrl.u32 %v9687_v44, 16  ;;  %v1207_v52 = vshll.u32 %v9687_v44, 16  ;;  %13075 = vst [vmem:[#allocation30_spill] sm:$0xff] %v9703_v55  ;;  %vm9870_vm6 = vmor %vm1329_vm3, %vm1330_vm2 }
  0xdb   : > { %v9693_v48 = vld [vmem:[#allocation2 + $0x30] sm:$0xf]  ;;  %v1222_v56 = vshrl.u32 %v9689_v45, 16  ;;  %v1225_v57 = vshll.u32 %v9689_v45, 16  ;;  %v1170_v62 = vrot.slane %v1168_v46, 6  ;;  %v1173_v63 = vrot.slane %v1171_v47, 7  ;;  %vm9898_vm7 = vmor %vm1164_vm4, %vm1165_vm5 }
  0xdc   : > { %v9699_v53 = vld [vmem:[#allocation2 + $0x3c] sm:$0xf]  ;;  %v1240_v58 = vshrl.u32 %v9693_v48, 16  ;;  %v1243_v59 = vshll.u32 %v9693_v48, 16  ;;  %v1188_v2 = vrot.slane %v1186_v49, 6  ;;  %v1191_v3 = vrot.slane %v1189_v50, 7  ;;  %vm10072_vm10 = vmor %vm1557_vm8, %vm1558_vm9 }
  0xdd   : > { %v1258_v0 = vshrl.u32 %v9699_v53, 16  ;;  %v1261_v1 = vshll.u32 %v9699_v53, 16  ;;  %v1206_v4 = vrot.slane %v1204_v51, 6  ;;  %v1209_v5 = vrot.slane %v1207_v52, 7  ;;  %v9749_v52 = vld [vmem:[#allocation2 + $0x8] sm:$0xf]  ;;  %vm10188_vm15 = vmor %vm1812_vm11, %vm1813_vm12 }
  0xde   : > { %v9709_v60 = vld [vmem:[#allocation2 + $0x48] sm:$0xf]  ;;  %13077 = vst [vmem:[#allocation32_spill] sm:$0xff] %v9749_v52  ;;  %vm10201_vm2 = vmor %vm2001_vm13, %vm2002_vm14  ;;  %vm2142_vm4 = vsmask.f32 2304 }
  0xdf   : > { %v9711_v61 = vld [vmem:[#allocation2 + $0x54] sm:$0xf]  ;;  %v1276_v6 = vshrl.u32 %v9709_v60, 16  ;;  %vm2143_vm5 = vsmask.f32 6416 }
  0xe0   : > { %vm10297_vm8 = vmor %vm2142_vm4, %vm2143_vm5 }
 0x145   : > { %v779_v8 = vpop.trf.xlu0 }
 0x149   : > { %v780_v9 = vpop.trf.xlu0 }
 0x14a   : > { %v795_v10 = vpack.c.bf16 %v780_v9, %v779_v8  ;;  %v7171_v11 = vadd.f32 %v780_v9, %v779_v8  ;;  %v1279_v8 = vshll.u32 %v9709_v60, 16 }
 0x14c   : > { %7186 = vst.msk [vmem:[#allocation3 + $0x8] sm:$0xff] %vm736_vm0, %v7171_v11  ;;  %7813 = vmatmul.mubr.msk.bf16.vlgmr.msra.gmra.mxu0 %vm736_vm0, %v795_v10  ;;  %7817 = vmatmul.mubr.msk.bf16.vlgmr.msra.gmra.mxu1 %vm736_vm0, %v795_v10  ;;  %v1297_v10 = vshll.u32 %v9711_v61, 16 }
 0x14d   : > { %v781_v12 = vpop.trf.xlu0  ;;  %899 = vmatprep.mubr.bf16.mxu0 %v12951_v7  ;;  %972 = vmatprep.mubr.bf16.mxu1 %v12951_v7 }
 0x14e   : > { %v7179_v13 = vadd.f32 %v7171_v11, %v781_v12  ;;  %v7172_v14 = vadd.f32 %v781_v12, %v780_v9  ;;  %8428 = vmatpush3.bf16.msra.mxu0 %v8851_v38  ;;  %8438 = vmatpush3.bf16.msra.mxu1 %v8852_v39  ;;  %v1294_v9 = vshrl.u32 %v9711_v61, 16  ;;  %v1224_v11 = vrot.slane %v1222_v56, 6 }
 0x14f   : > { %8447 = vmatprep.subr.bf16.mxu0 %v9674_v40  ;;  %8457 = vmatprep.subr.bf16.mxu1 %v9680_v41  ;;  %v9744_v38 = vrot.slane %v1168_v46, 11 }
 0x150   : > { %7187 = vst.msk [vmem:[#allocation3 + $0x20] sm:$0xff] %vm736_vm0, %v7179_v13  ;;  %v1242_v13 = vrot.slane %v1240_v58, 6 }
 0x151   : > { %v782_v15 = vpop.trf.xlu0 }
 0x152   : > { %v796_v16 = vpack.c.bf16 %v782_v15, %v781_v12  ;;  %v7180_v17 = vadd.f32 %v7172_v14, %v782_v15  ;;  %v7173_v18 = vadd.f32 %v782_v15, %v781_v12  ;;  %v1227_v12 = vrot.slane %v1225_v57, 7 }
 0x153   : > { %v1245_v14 = vrot.slane %v1243_v59, 7 }
 0x154   : > { %7188 = vst.msk [vmem:[#allocation3 + $0x38] sm:$0xff] %vm736_vm0, %v7180_v17  ;;  %7814 = vmatmul.mubr.msk.bf16.gmra.mxu0 %vm736_vm0, %v796_v16  ;;  %7818 = vmatmul.mubr.msk.bf16.gmra.mxu1 %vm736_vm0, %v796_v16  ;;  %v1260_v16 = vrot.slane %v1258_v0, 6  ;;  %v1263_v17 = vrot.slane %v1261_v1, 7 }
 0x155   : > { %v783_v19 = vpop.trf.xlu0  ;;  %909 = vmatprep.mubr.bf16.mxu0 %v12951_v7  ;;  %982 = vmatprep.mubr.bf16.mxu1 %v12951_v7 }
 0x156   : > { %v7181_v20 = vadd.f32 %v7173_v18, %v783_v19  ;;  %v7174_v21 = vadd.f32 %v783_v19, %v782_v15  ;;  %v9722_v15 = vsub.s32 1, %v9609_v34  ;;  %v1174_v18 = vor.u32 %v1173_v63, %v1170_v62 }
 0x158   : > { %7189 = vst.msk [vmem:[#allocation3 + $0x50] sm:$0xff] %vm736_vm0, %v7181_v20  ;;  %13076 = vst [vmem:[#allocation31_spill] sm:$0xff] %v9722_v15  ;;  %v1210_v20 = vor.u32 %v1209_v5, %v1206_v4  ;;  %v9739_v33 = vrot.slane %v1174_v18, 4  ;;  %v9765_v4 = vrot.slane %v1222_v56, 11  ;;  %v9767_v5 = vld [vmem:[#allocation2 + $0x14] sm:$0xf] }
 0x159   : > { %v784_v22 = vpop.trf.xlu0  ;;  %13078 = vst [vmem:[#allocation33_spill] sm:$0xff] %v9767_v5  ;;  %v9783_v18 = vrot.slane %v1258_v0, 11 }
 0x15a   : > { %v797_v23 = vpack.c.bf16 %v784_v22, %v783_v19  ;;  %v7182_v24 = vadd.f32 %v7174_v21, %v784_v22  ;;  %v7175_v25 = vadd.f32 %v784_v22, %v783_v19  ;;  %v1192_v19 = vor.u32 %v1191_v3, %v1188_v2 }
 0x15b   : > { %v1278_v21 = vrot.slane %v1276_v6, 6  ;;  %v9747_v47 = vrot.slane %v1210_v20, 4  ;;  %v9761_v2 = vrot.slane %v1186_v49, 11  ;;  %v9763_v3 = vrot.slane %v1204_v51, 11 }
 0x15c   : > { %7190 = vst.msk [vmem:[#allocation3 + $0x68] sm:$0xff] %vm736_vm0, %v7182_v24  ;;  %7815 = vmatmul.mubr.msk.bf16.gmra.mxu0 %vm736_vm0, %v797_v23  ;;  %7819 = vmatmul.mubr.msk.bf16.gmra.mxu1 %vm736_vm0, %v797_v23  ;;  %v1296_v23 = vrot.slane %v1294_v9, 6  ;;  %v1299_v24 = vrot.slane %v1297_v10, 7  ;;  %v9741_v34 = vrot.slane %v1192_v19, 4  ;;  %v2149_v49 = vshrl.u32 %v9749_v52, 16 }
 0x15d   : > { %v785_v26 = vpop.trf.xlu0  ;;  %919 = vmatprep.mubr.bf16.mxu0 %v12951_v7  ;;  %992 = vmatprep.mubr.bf16.mxu1 %v12951_v7  ;;  %v9785_v19 = vld [vmem:[#allocation2 + $0x20] sm:$0xf] }
 0x15e   : > { %v7183_v27 = vadd.f32 %v7175_v25, %v785_v26  ;;  %v7176_v28 = vadd.f32 %v785_v26, %v784_v22  ;;  %v1281_v22 = vrot.slane %v1279_v8, 7  ;;  %v9727_v25 = vrot.slane %v9612_v36, %v815_v54 }
 0x15f   : > { %v1820_v8 = vshll.u32 %v9749_v52, 16  ;;  %v9805_v7 = vrot.slane %v2149_v49, 5 }
 0x160   : > { %7191 = vst.msk [vmem:[#allocation3 + $0x80] sm:$0xff] %vm736_vm0, %v7183_v27  ;;  %v1228_v27 = vor.u32 %v1227_v12, %v1224_v11  ;;  %v1282_v50 = vor.u32 %v1281_v22, %v1278_v21  ;;  %v9787_v22 = vrot.slane %v1276_v6, 11  ;;  %v9802_v6 = vrot.slane %v1294_v9, 11 }
 0x161   : > { %v786_v29 = vpop.trf.xlu0  ;;  %13083 = vst [vmem:[#allocation38_spill] sm:$0xff] %v9805_v7  ;;  %v9807_v10 = vrot.slane %v1820_v8, 6 }
 0x162   : > { %v798_v30 = vpack.c.bf16 %v786_v29, %v785_v26  ;;  %v7177_v31 = vadd.f32 %v786_v29, %v785_v26  ;;  %v7184_v32 = vadd.f32 %v7176_v28, %v786_v29  ;;  %v9731_v26 = vrot.slane %v9612_v36, %v9703_v55  ;;  %13079 = vst [vmem:[#allocation34_spill] sm:$0xff] %v9787_v22 }
 0x163   : > { %v1246_v28 = vor.u32 %v1245_v14, %v1242_v13  ;;  %v9735_v29 = vrot.slane %v9612_v36, %v9722_v15  ;;  %v1300_v36 = vor.u32 %v1299_v24, %v1296_v23  ;;  %v9751_v54 = vrot.slane %v1228_v27, 4  ;;  %13082 = vst [vmem:[#allocation37_spill] sm:$0xff] %v9802_v6  ;;  %13084 = vst [vmem:[#allocation39_spill] sm:$0xff] %v9807_v10  ;;  %v9811_v27 = vld [vmem:[#allocation2 + $0x38] sm:$0xf] }
 0x164   : > { %7192 = vst.msk [vmem:[#allocation3 + $0x98] sm:$0xff] %vm736_vm0, %v7184_v32  ;;  %7193 = vst.msk [vmem:[#allocation3 + $0xb0] sm:$0xff] %vm736_vm0, %v7177_v31  ;;  %7816 = vmatmul.mubr.msk.bf16.gmra.mxu0 %vm736_vm0, %v798_v30  ;;  %7820 = vmatmul.mubr.msk.bf16.gmra.mxu1 %vm736_vm0, %v798_v30  ;;  %v1264_v32 = vor.u32 %v1263_v17, %v1260_v16  ;;  %v9771_v13 = vrot.slane %v1282_v50, 4  ;;  %v1829_v16 = vshll.u32 %v9767_v5, 16  ;;  %v9781_v17 = vrot.slane %v1240_v58, 11 }
 0x165   : > { %v9755_v62 = vrot.slane %v1246_v28, 4  ;;  %v9773_v14 = vrot.slane %v1300_v36, 4  ;;  %v9789_v23 = vrot.slane %v1820_v8, 5  ;;  %v9798_v50 = vld [vmem:[#allocation2 + $0x2c] sm:$0xf]  ;;  %v2159_v8 = vshrl.u32 %v9767_v5, 16 }
 0x166   : > { %v9757_v63 = vrot.slane %v1264_v32, 4  ;;  %v9793_v24 = vrot.slane %v1829_v16, 5  ;;  %v13096_v10 = vrot.slane %v9683_v42, 11  ;;  %v13097_v42 = vmov 0 }
 0x167   : > { %13080 = vst [vmem:[#allocation35_spill] sm:$0xff] %v9789_v23  ;;  %v9836_v30 = vrot.slane %v2159_v8, 5  ;;  %v13098_v42 = vsel %vm9898_vm7, 4294967295, %v13097_v42 }
 0x168   : > { %13081 = vst [vmem:[#allocation36_spill] sm:$0xff] %v9793_v24  ;;  %13099 = vst [vmem:[#allocation49_spill] sm:$0xff] %v13098_v42  ;;  %v13133_v42 = vld [vmem:[#allocation33_spill] sm:$0xff] }
 0x20c   : > { %v891_v11 = vpop.f32.mrf.mxu0  ;;  %v964_v12 = vpop.f32.mrf.mxu1 }
 0x20d   : > { %v965_v51 = vadd.f32 %v964_v12, %v9727_v25  ;;  %v892_v56 = vadd.f32 %v891_v11, %v9731_v26  ;;  %v12954_v12 = vshll.u32 %v9798_v50, 16 }
 0x20e   : > { %v893_v20 = vpop.f32.mrf.mxu0  ;;  %v966_v21 = vpop.f32.mrf.mxu1 }
 0x20f   : > { %v1005_v28 = vmax.f32 %v965_v51, 0.0  ;;  %v894_v58 = vadd.f32 %v893_v20, %v9735_v29  ;;  %v967_v0 = vadd.f32 %v966_v21, %v9663_v37  ;;  %v1003_v32 = vmax.f32 %v892_v56, 0.0 }
 0x210   : > { %v895_v36 = vpop.f32.mrf.mxu0  ;;  %v968_v11 = vpop.f32.mrf.mxu1  ;;  %v12953_v56 = vshll.u32 %v9785_v19, 16  ;;  %v9826_v49 = vrot.slane %v12954_v12, 5  ;;  %v12960_v12 = vshll.u32 %v9811_v27, 16 }
 0x211   : > { %v1124_v51 = vpack.c.bf16 %v1005_v28, %v1005_v28  ;;  %v1004_v20 = vmax.f32 %v894_v58, 0.0  ;;  %v896_v21 = vadd.f32 %v895_v36, %v9731_v26  ;;  %1035 = vxpose.xlu1.b32.start [1/8] (short) %v1003_v32, 128  ;;  %v969_v1 = vadd.f32 %v968_v11, %v9727_v25 }
 0x212   : > { %v897_v46 = vpop.f32.mrf.mxu0  ;;  %v970_v9 = vpop.f32.mrf.mxu1  ;;  %v9822_v36 = vrot.slane %v12953_v56, 5  ;;  %13086 = vst [vmem:[#allocation41_spill] sm:$0xff] %v9826_v49  ;;  %v9848_v8 = vrot.slane %v12960_v12, 5 }
 0x213   : > { %1132 = vst.msk [vmem:[#allocation2 + $0x4] sm:$0xf] %vm711_vm1, %v1124_v51  ;;  %v1007_v28 = vmax.f32 %v896_v21, 0.0  ;;  %v898_v58 = vadd.f32 %v897_v46, %v9735_v29  ;;  %v971_v32 = vadd.f32 %v970_v9, %v9663_v37  ;;  %1067 = vxpose.xlu0.b32.start [1/8] (short) (narrow) %v1004_v20, 64  ;;  %v1009_v11 = vmax.f32 %v969_v1, 0.0 }
 0x214   : > { %13085 = vst [vmem:[#allocation40_spill] sm:$0xff] %v9822_v36  ;;  %v901_v59 = vpop.f32.mrf.mxu0  ;;  %v974_v57 = vpop.f32.mrf.mxu1  ;;  %v9831_v21 = vmax.f32 %v967_v0, 0.0  ;;  %13090 = vst [vmem:[#allocation45_spill] sm:$0xff] %v9848_v8 }
 0x215   : > { %v1008_v20 = vmax.f32 %v898_v58, 0.0  ;;  %v1010_v9 = vmax.f32 %v971_v32, 0.0  ;;  %v902_v56 = vadd.f32 %v901_v59, %v9731_v26  ;;  %1036 = vxpose.xlu1.b32.cont [2/8] (short) %v1007_v28, 128  ;;  %v1125_v1 = vpack.c.bf16 %v1009_v11, %v1009_v11  ;;  %v9843_v59 = vld [vmem:[#allocation2 + $0x44] sm:$0xf] }
 0x216   : > { %13087 = vst [vmem:[#allocation42_spill] sm:$0xff] %v9831_v21  ;;  %v975_v39 = vadd.f32 %v974_v57, %v9727_v25  ;;  %v903_v35 = vpop.f32.mrf.mxu0  ;;  %v976_v31 = vpop.f32.mrf.mxu1  ;;  %13089 = vst [vmem:[#allocation44_spill] sm:$0xff] %v9843_v59  ;;  %v12962_v11 = vshll.u32 %v9843_v59, 16 }
 0x217   : > { %v9839_v51 = vpack.c.bf16 %v1010_v9, %v9831_v21  ;;  %v1011_v46 = vmax.f32 %v902_v56, 0.0  ;;  %v904_v0 = vadd.f32 %v903_v35, %v9735_v29  ;;  %v977_v58 = vadd.f32 %v976_v31, %v9663_v37  ;;  %1068 = vxpose.xlu0.b32.cont [2/8] (short) (narrow) %v1008_v20, 64  ;;  %1133 = vst.msk [vmem:[#allocation2 + $0x10] sm:$0xf] %vm711_vm1, %v1125_v1 }
 0x218   : > { %v1013_v57 = vmax.f32 %v975_v39, 0.0  ;;  %v905_v28 = vpop.f32.mrf.mxu0  ;;  %v978_v32 = vpop.f32.mrf.mxu1  ;;  %v9853_v56 = vrot.slane %v1829_v16, 6  ;;  %v9861_v12 = vrot.slane %v12962_v11, 5 }
 0x219   : > { %13088 = vst [vmem:[#allocation43_spill] sm:$0xff] %v9839_v51  ;;  %v1012_v35 = vmax.f32 %v904_v0, 0.0  ;;  %v1014_v31 = vmax.f32 %v977_v58, 0.0  ;;  %v906_v20 = vadd.f32 %v905_v28, %v9731_v26  ;;  %v979_v15 = vadd.f32 %v978_v32, %v9727_v25  ;;  %1037 = vxpose.xlu1.b32.cont [3/8] (short) %v1011_v46, 128 }
 0x21a   : > { %v1126_v39 = vpack.c.bf16 %v1013_v57, %v1013_v57  ;;  %v907_v1 = vpop.f32.mrf.mxu0  ;;  %v980_v55 = vpop.f32.mrf.mxu1  ;;  %v9857_v21 = vld [vmem:[#allocation2 + $0x4] sm:$0xf]  ;;  %13091 = vst [vmem:[#allocation46_spill] sm:$0xff] %v9861_v12  ;;  %v13093_v46 = vmov 0 }
 0x21b   : > { %v9865_v0 = vpack.c.bf16 %v1014_v31, %v1010_v9  ;;  %v1015_v58 = vmax.f32 %v906_v20, 0.0  ;;  %v1017_v28 = vmax.f32 %v979_v15, 0.0  ;;  %v908_v32 = vadd.f32 %v907_v1, %v9735_v29  ;;  %1069 = vxpose.xlu0.b32.cont [3/8] (short) (narrow) %v1012_v35, 64 }
 0x21c   : > { %v13094_v46 = vsel %vm9870_vm6, 4294967295, %v13093_v46  ;;  %1134 = vst.msk [vmem:[#allocation2 + $0x1c] sm:$0xf] %vm711_vm1, %v1126_v39  ;;  %v981_v57 = vadd.f32 %v980_v55, %v9663_v37  ;;  %v911_v51 = vpop.f32.mrf.mxu0  ;;  %v984_v11 = vpop.f32.mrf.mxu1  ;;  %v1334_v9 = vrot.slane %v9857_v21, 7  ;;  %v9878_v20 = vshrl.u32 %v9857_v21, 16 }
 0x21d   : > { %13092 = vst [vmem:[#allocation47_spill] sm:$0xff] %v9865_v0  ;;  %13095 = vst [vmem:[#allocation48_spill] sm:$0xff] %v13094_v46  ;;  %v9881_v15 = vshll.u32 %v9857_v21, 16  ;;  %v1127_v35 = vpack.c.bf16 %v1017_v28, %v1017_v28  ;;  %v1016_v1 = vmax.f32 %v908_v32, 0.0  ;;  %v912_v16 = vadd.f32 %v911_v51, %v9731_v26  ;;  %1038 = vxpose.xlu1.b32.cont [4/8] (short) %v1015_v58, 128 }
 0x21e   : > { %v985_v0 = vadd.f32 %v984_v11, %v9727_v25  ;;  %v1018_v39 = vmax.f32 %v981_v57, 0.0  ;;  %v913_v7 = vpop.f32.mrf.mxu0  ;;  %v986_v55 = vpop.f32.mrf.mxu1  ;;  %v1335_v8 = vsel %vm9870_vm6, %v13096_v10, %v1334_v9  ;;  %v1179_v36 = vrot.slane %v9878_v20, 6  ;;  %v9894_v58 = vld [vmem:[#allocation2 + $0x10] sm:$0xf] }
 0x21f   : > { %v1182_v12 = vrot.slane %v9881_v15, 7  ;;  %1135 = vst.msk [vmem:[#allocation2 + $0x28] sm:$0xf] %vm711_vm1, %v1127_v35  ;;  %v1019_v28 = vmax.f32 %v912_v16, 0.0  ;;  %v914_v51 = vadd.f32 %v913_v7, %v9735_v29  ;;  %v987_v11 = vadd.f32 %v986_v55, %v9663_v37  ;;  %1070 = vxpose.xlu0.b32.cont [4/8] (short) (narrow) %v1016_v1, 64 }
 0x220   : > { %v1021_v32 = vmax.f32 %v985_v0, 0.0  ;;  %v9902_v10 = vpack.c.bf16 %v1018_v39, %v1014_v31  ;;  %v915_v57 = vpop.f32.mrf.mxu0  ;;  %v988_v9 = vpop.f32.mrf.mxu1  ;;  %v1338_v16 = vrot.slane %v9894_v58, 7  ;;  %v9908_v7 = vshrl.u32 %v9894_v58, 16 }
 0x221   : > { %v9905_v0 = vor.u32 %v1182_v12, %v1179_v36  ;;  %v1020_v1 = vmax.f32 %v914_v51, 0.0  ;;  %v1022_v55 = vmax.f32 %v987_v11, 0.0  ;;  %v916_v49 = vadd.f32 %v915_v57, %v9731_v26  ;;  %1039 = vxpose.xlu1.b32.cont [5/8] (short) %v1019_v28, 128 }
 0x222   : > { %13100 = vst [vmem:[#allocation50_spill] sm:$0xff] %v9902_v10  ;;  %v1128_v35 = vpack.c.bf16 %v1021_v32, %v1021_v32  ;;  %v989_v59 = vadd.f32 %v988_v9, %v9727_v25  ;;  %v917_v52 = vpop.f32.mrf.mxu0  ;;  %v990_v31 = vpop.f32.mrf.mxu1  ;;  %v13101_v10 = vrot.slane %v9685_v43, 11  ;;  %v1197_v36 = vrot.slane %v9908_v7, 6 }
 0x223   : > { %v1184_v12 = vsel %vm9898_vm7, %v9739_v33, %v9905_v0  ;;  %v9922_v32 = vpack.c.bf16 %v1022_v55, %v1018_v39  ;;  %v1023_v28 = vmax.f32 %v916_v49, 0.0  ;;  %v918_v51 = vadd.f32 %v917_v52, %v9735_v29  ;;  %1071 = vxpose.xlu0.b32.cont [5/8] (short) (narrow) %v1020_v1, 64  ;;  %v9926_v43 = vld [vmem:[#allocation2 + $0x1c] sm:$0xf] }
 0x224   : > { %v1339_v23 = vsel %vm9870_vm6, %v13101_v10, %v1338_v16  ;;  %1136 = vst.msk [vmem:[#allocation2 + $0x34] sm:$0xf] %vm711_vm1, %v1128_v35  ;;  %v991_v11 = vadd.f32 %v990_v31, %v9663_v37  ;;  %v1025_v10 = vmax.f32 %v989_v59, 0.0  ;;  %v921_v57 = vpop.f32.mrf.mxu0  ;;  %v994_v9 = vpop.f32.mrf.mxu1  ;;  %v9929_v33 = vshll.u32 %v9894_v58, 16 }
 0x225   : > { %13102 = vst [vmem:[#allocation51_spill] sm:$0xff] %v9922_v32  ;;  %v7831_v16 = vcombine.low %v1335_v8, %v1339_v23  ;;  %v1342_v0 = vrot.slane %v9926_v43, 7  ;;  %v1024_v35 = vmax.f32 %v918_v51, 0.0  ;;  %v922_v49 = vadd.f32 %v921_v57, %v9731_v26  ;;  %1040 = vxpose.xlu1.b32.cont [6/8] (short) %v1023_v28, 128 }
 0x226   : > { %v1026_v39 = vmax.f32 %v991_v11, 0.0  ;;  %v995_v52 = vadd.f32 %v994_v9, %v9727_v25  ;;  %v1129_v31 = vpack.c.bf16 %v1025_v10, %v1025_v10  ;;  %v923_v1 = vpop.f32.mrf.mxu0  ;;  %v996_v59 = vpop.f32.mrf.mxu1  ;;  %v1200_v32 = vrot.slane %v9929_v33, 7  ;;  %v9936_v23 = vld [vmem:[#allocation2 + $0x28] sm:$0xf] }
 0x227   : > { %8429 = vmatprep.mubr.msk.bf16.mxu0 %vm736_vm0, %v7831_v16  ;;  %v13103_v8 = vrot.slane %v9687_v44, 11  ;;  %v9943_v11 = vshrl.u32 %v9926_v43, 16  ;;  %v1027_v28 = vmax.f32 %v922_v49, 0.0  ;;  %v924_v9 = vadd.f32 %v923_v1, %v9735_v29  ;;  %1072 = vxpose.xlu0.b32.cont [6/8] (short) (narrow) %v1024_v35, 64 }
 0x228   : > { %v9945_v57 = vpack.c.bf16 %v1026_v39, %v1022_v55  ;;  %v1029_v10 = vmax.f32 %v995_v52, 0.0  ;;  %1137 = vst.msk [vmem:[#allocation2 + $0x40] sm:$0xf] %vm711_vm1, %v1129_v31  ;;  %v997_v16 = vadd.f32 %v996_v59, %v9663_v37  ;;  %v925_v5 = vpop.f32.mrf.mxu0  ;;  %v998_v22 = vpop.f32.mrf.mxu1  ;;  %v1201_v44 = vor.u32 %v1200_v32, %v1197_v36 }
 0x229   : > { %v1343_v51 = vsel %vm9870_vm6, %v13103_v8, %v1342_v0  ;;  %v1346_v24 = vrot.slane %v9936_v23, 7  ;;  %v1215_v0 = vrot.slane %v9943_v11, 6  ;;  %v1028_v6 = vmax.f32 %v924_v9, 0.0  ;;  %1041 = vxpose.xlu1.b32.cont [7/8] (short) %v1027_v28, 128  ;;  %v9975_v9 = vld [vmem:[%s12934_s3 + $0x20] sm:$0xff]  }
 0x22a   : > { %13104 = vst [vmem:[#allocation52_spill] sm:$0xff] %v9945_v57  ;;  %v1130_v8 = vpack.c.bf16 %v1029_v10, %v1029_v10  ;;  %v926_v55 = vadd.f32 %v925_v5, %v9731_v26  ;;  %v999_v49 = vadd.f32 %v998_v22, %v9727_v25  ;;  %v1030_v52 = vmax.f32 %v997_v16, 0.0  ;;  %v927_v31 = vpop.f32.mrf.mxu0  ;;  %v1000_v1 = vpop.f32.mrf.mxu1 }
 0x22b   : > { %v1202_v35 = vsel %vm9898_vm7, %v9741_v34, %v1201_v44  ;;  %v13105_v36 = vrot.slane %v9689_v45, 11  ;;  %v9962_v59 = vshll.u32 %v9926_v43, 16  ;;  %v928_v22 = vadd.f32 %v927_v31, %v9735_v29  ;;  %1073 = vxpose.xlu0.b32.cont [7/8] (short) (narrow) %v1028_v6, 64  ;;  %v9966_v28 = vld [vmem:[#allocation2 + $0x34] sm:$0xf] }
 0x22c   : > { %1138 = vst.msk [vmem:[#allocation2 + $0x4c] sm:$0xf] %vm711_vm1, %v1130_v8  ;;  %v1031_v26 = vmax.f32 %v926_v55, 0.0  ;;  %v1033_v25 = vmax.f32 %v999_v49, 0.0  ;;  %v7840_v5 = vcombine.low %v1184_v12, %v1202_v35  ;;  %v9968_v34 = vpack.c.bf16 %v1030_v52, %v1026_v39  ;;  %v9991_v8 = vld [vmem:[#allocation2 + $0x50] sm:$0xf] }
 0x22d   : > { %v1347_v32 = vsel %vm9870_vm6, %v13105_v36, %v1346_v24  ;;  %v1001_v45 = vadd.f32 %v1000_v1, %v9663_v37  ;;  %v1218_v24 = vrot.slane %v9962_v59, 7  ;;  %v1032_v29 = vmax.f32 %v928_v22, 0.0  ;;  %13108 = vst [vmem:[#allocation55_spill] sm:$0xff] %v9991_v8 }
 0x22e   : > { %13106 = vst [vmem:[#allocation53_spill] sm:$0xff] %v9968_v34  ;;  %v7832_v10 = vcombine.low %v1343_v51, %v1347_v32  ;;  %v1131_v12 = vpack.c.bf16 %v1033_v25, %v1033_v25  ;;  %8439 = vmatprep.mubr.msk.bf16.mxu1 %vm736_vm0, %v7840_v5  ;;  %1042 = vxpose.xlu1.b32.end [8/8] (short) %v1031_v26, 128  ;;  %v9979_v6 = vshrl.u32 %v9936_v23, 16  ;;  %v9982_v37 = vshll.u32 %v9936_v23, 16 }
 0x22f   : > { %v9984_v39 = vmax.f32 %v1001_v45, 0.0  ;;  %v1219_v51 = vor.u32 %v1218_v24, %v1215_v0  ;;  %v1350_v16 = vrot.slane %v9966_v28, 7  ;;  %v9989_v44 = vshrl.u32 %v9966_v28, 16  ;;  %1074 = vxpose.xlu0.b32.end [8/8] (short) (narrow) %v1032_v29, 64  ;;  %v9996_v35 = vld [vmem:[#allocation2 + $0x40] sm:$0xf] }
 0x230   : > { %8430 = vmatmul.mubr.msk.bf16.vlgmr.msra.gmra.mxu0 %vm736_vm0, %v7832_v10  ;;  %1139 = vst.msk [vmem:[#allocation2 + $0x58] sm:$0xf] %vm711_vm1, %v1131_v12  ;;  %v1233_v55 = vrot.slane %v9979_v6, 6  ;;  %v1236_v49 = vrot.slane %v9982_v37, 7  ;;  %v10000_v0 = vshll.u32 %v9966_v28, 16  ;;  %v13110_v26 = vshrl.u32 %v9785_v19, 16 }
 0x231   : > { %13107 = vst [vmem:[#allocation54_spill] sm:$0xff] %v9984_v39  ;;  %8448 = vmatpush3.bf16.msra.mxu0 %v9674_v40  ;;  %v10005_v1 = vpack.c.bf16 %v9984_v39, %v1030_v52  ;;  %v1220_v36 = vsel %vm9898_vm7, %v9747_v47, %v1219_v51  ;;  %v1354_v5 = vrot.slane %v9996_v35, 7  ;;  %v1251_v22 = vrot.slane %v9989_v44, 6  ;;  %v10045_v39 = vld [vmem:[%s12934_s3 + $0x28] sm:$0xff]  }
 0x232   : > { %8467 = vmatprep.subr.bf16.mxu0 %v9975_v9  ;;  %v10014_v40 = vrot.slane %v13110_v26, 5  ;;  %v1237_v25 = vor.u32 %v1236_v49, %v1233_v55  ;;  %v1254_v52 = vrot.slane %v10000_v0, 7  ;;  %v13111_v45 = vrot.slane %v9693_v48, 11 }
 0x233   : > { %13109 = vst [vmem:[#allocation56_spill] sm:$0xff] %v10005_v1  ;;  %v10024_v10 = vshrl.u32 %v9996_v35, 16  ;;  %v10027_v24 = vshll.u32 %v9996_v35, 16  ;;  %v10029_v12 = vld [vmem:[#allocation2 + $0x4c] sm:$0xf]  ;;  %v1562_v29 = vrot.slane %v9878_v20, 7 }
 0x234   : > { %v1351_v47 = vsel %vm9870_vm6, %v13111_v45, %v1350_v16  ;;  %v1238_v51 = vsel %vm9898_vm7, %v9751_v54, %v1237_v25  ;;  %v13112_v55 = vrot.slane %v9699_v53, 11  ;;  %v1255_v16 = vor.u32 %v1254_v52, %v1251_v22  ;;  %v10047_v54 = vld [vmem:[#allocation2 + $0x5c] sm:$0xf] }
 0x235   : > { %v1358_v49 = vrot.slane %v10029_v12, 7  ;;  %v7841_v26 = vcombine.low %v1220_v36, %v1238_v51  ;;  %v1269_v31 = vrot.slane %v10024_v10, 6  ;;  %v1272_v32 = vrot.slane %v10027_v24, 7 }
 0x236   : > { %v1355_v48 = vsel %vm9870_vm6, %v13112_v55, %v1354_v5  ;;  %v1256_v53 = vsel %vm9898_vm7, %v9755_v62, %v1255_v16  ;;  %v13113_v25 = vrot.slane %v9709_v60, 11  ;;  %v1567_v5 = vrot.slane %v9908_v7, 7 }
 0x237   : > { %v7833_v45 = vcombine.low %v1351_v47, %v1355_v48  ;;  %8440 = vmatmul.mubr.msk.bf16.vlgmr.msra.gmra.mxu1 %vm736_vm0, %v7841_v26  ;;  %v1273_v52 = vor.u32 %v1272_v32, %v1269_v31  ;;  %v10060_v47 = vld [vmem:[#allocation2 + $0x58] sm:$0xf]  ;;  %v1563_v51 = vor.u32 %v1562_v29, %v9881_v15  ;;  %v10064_v62 = vshrl.u32 %v10029_v12, 16 }
 0x238   : > { %v1359_v36 = vsel %vm9870_vm6, %v13113_v25, %v1358_v49  ;;  %v10067_v60 = vshll.u32 %v10029_v12, 16  ;;  %v1362_v55 = vrot.slane %v10060_v47, 7  ;;  %v13114_v48 = vmov 0  ;;  %8458 = vmatpush3.bf16.msra.mxu1 %v9680_v41 }
 0x239   : > { %8433 = vmatprep.mubr.msk.bf16.mxu0 %vm736_vm0, %v7833_v45  ;;  %v13115_v48 = vsel %vm10072_vm10, 4294967295, %v13114_v48  ;;  %v1568_v31 = vor.u32 %v1567_v5, %v9929_v33  ;;  %v10078_v32 = vshrl.u32 %v10060_v47, 16  ;;  %v1572_v29 = vrot.slane %v9943_v11, 7  ;;  %8477 = vmatprep.subr.bf16.mxu1 %v10045_v39 }
 0x23a   : > { %13116 = vst [vmem:[#allocation57_spill] sm:$0xff] %v13115_v48  ;;  %v1274_v16 = vsel %vm9898_vm7, %v9757_v63, %v1273_v52  ;;  %v1287_v49 = vrot.slane %v10064_v62, 6  ;;  %v1290_v26 = vrot.slane %v10067_v60, 7  ;;  %v10088_v45 = vshll.u32 %v10060_v47, 16 }
 0x23b   : > { %v7842_v25 = vcombine.low %v1256_v53, %v1274_v16  ;;  %v13117_v5 = vrot.slane %v9711_v61, 11  ;;  %v1569_v22 = vsel %vm10072_vm10, %v9761_v2, %v1568_v31  ;;  %v1305_v63 = vrot.slane %v10078_v32, 6 }
 0x23c   : > { %v1564_v34 = vsel %vm10072_vm10, %v9744_v38, %v1563_v51  ;;  %v1291_v1 = vor.u32 %v1290_v26, %v1287_v49  ;;  %v1308_v57 = vrot.slane %v10088_v45, 7  ;;  %v1577_v53 = vrot.slane %v9979_v6, 7 }
 0x23d   : > { %v1363_v41 = vsel %vm9870_vm6, %v13117_v5, %v1362_v55  ;;  %8443 = vmatprep.mubr.msk.bf16.mxu1 %vm736_vm0, %v7842_v25  ;;  %v7859_v61 = vcombine.low %v1564_v34, %v1569_v22  ;;  %v1582_v55 = vrot.slane %v9989_v44, 7  ;;  %v1587_v16 = vrot.slane %v10024_v10, 7 }
 0x23e   : > { %v7834_v52 = vcombine.low %v1359_v36, %v1363_v41  ;;  %v1309_v2 = vor.u32 %v1308_v57, %v1305_v63  ;;  %v13118_v36 = vshll.u32 %v9991_v8, 16  ;;  %v13119_v51 = vshll.u32 %v9785_v19, 16 }
 0x23f   : > { %v2179_v34 = vshrl.u32 %v9798_v50, 16  ;;  %v1573_v22 = vor.u32 %v1572_v29, %v9962_v59  ;;  %v1578_v49 = vor.u32 %v1577_v53, %v9982_v37  ;;  %v1588_v57 = vor.u32 %v1587_v16, %v10027_v24 }
 0x240   : > { %8434 = vmatmul.mubr.msk.bf16.gmra.mxu0 %vm736_vm0, %v7834_v52  ;;  %v10110_v38 = vrot.slane %v13118_v36, 5  ;;  %v10114_v31 = vrot.slane %v13119_v51, 6  ;;  %v13121_v26 = vshll.u32 %v10047_v54, 16  ;;  %v1292_v5 = vsel %vm9898_vm7, %v9771_v13, %v1291_v1 }
 0x241   : > { %8449 = vmatprep.mubr.msk.bf16.mxu0 %vm736_vm0, %v7859_v61  ;;  %v1310_v41 = vsel %vm9898_vm7, %v9773_v14, %v1309_v2  ;;  %v1583_v29 = vor.u32 %v1582_v55, %v10000_v0  ;;  %v1579_v61 = vsel %vm10072_vm10, %v9765_v4, %v1578_v49  ;;  %v1597_v53 = vrot.slane %v10078_v32, 7 }
 0x242   : > { %13120 = vst [vmem:[#allocation58_spill] sm:$0xff] %v10114_v31  ;;  %v10123_v25 = vrot.slane %v13121_v26, 5  ;;  %v7843_v52 = vcombine.low %v1292_v5, %v1310_v41  ;;  %v1815_v16 = vrot.slane %v9878_v20, 4  ;;  %v7870_v13 = vcombine.low %v9857_v21, %v9894_v58 }
 0x243   : > { %v1589_v14 = vsel %vm10072_vm10, %v9783_v18, %v1588_v57  ;;  %v1592_v1 = vrot.slane %v10064_v62, 7  ;;  %v10144_v55 = vrot.slane %v2179_v34, 5  ;;  %v1574_v4 = vsel %vm10072_vm10, %v9763_v3, %v1573_v22  ;;  %v10160_v34 = vld [vmem:[%s12934_s3 + $0x30] sm:$0xff]  }
 0x244   : > { %8444 = vmatmul.mubr.msk.bf16.gmra.mxu1 %vm736_vm0, %v7843_v52  ;;  %v1816_v2 = vrot.slane %v9881_v15, 5  ;;  %v1824_v36 = vrot.slane %v9908_v7, 4  ;;  %v1825_v51 = vrot.slane %v9929_v33, 5  ;;  %v7860_v49 = vcombine.low %v1574_v4, %v1579_v61 }
 0x245   : > { %13122 = vst [vmem:[#allocation59_spill] sm:$0xff] %v10144_v55  ;;  %8459 = vmatprep.mubr.msk.bf16.mxu1 %vm736_vm0, %v7870_v13  ;;  %v1584_v18 = vsel %vm10072_vm10, %v9781_v17, %v1583_v29  ;;  %v13123_v3 = vshll.u32 %v9798_v50, 16  ;;  %v2189_v57 = vshrl.u32 %v9811_v27, 16  ;;  %v1598_v5 = vor.u32 %v1597_v53, %v10088_v45 }
 0x246   : > { %v7861_v26 = vcombine.low %v1584_v18, %v1589_v14  ;;  %v1817_v41 = vor.u32 %v1816_v2, %v1815_v16  ;;  %v1826_v52 = vor.u32 %v1825_v51, %v1824_v36  ;;  %v7871_v17 = vcombine.low %v9926_v43, %v9936_v23  ;;  %v13124_v51 = vld [vmem:[#allocation37_spill] sm:$0xff] }
 0x247   : > { %v10164_v22 = vrot.slane %v13123_v3, 6  ;;  %v1593_v29 = vor.u32 %v1592_v1, %v10067_v60  ;;  %v7891_v61 = vrot.slane %v9894_v58, 9  ;;  %v1842_v13 = vrot.slane %v9979_v6, 4 }
 0x248   : > { %8450 = vmatmul.mubr.msk.bf16.vlgmr.msra.gmra.mxu0 %vm736_vm0, %v7860_v49  ;;  %v1827_v14 = vrot.slane %v1826_v52, 4  ;;  %v1833_v53 = vrot.slane %v9943_v11, 4  ;;  %v1834_v16 = vrot.slane %v9962_v59, 5  ;;  %v1843_v4 = vrot.slane %v9982_v37, 5  ;;  %v13128_v52 = vld [vmem:[#allocation36_spill] sm:$0xff] }
 0x249   : > { %8468 = vmatpush3.bf16.msra.mxu0 %v9975_v9  ;;  %8453 = vmatprep.mubr.msk.bf16.mxu0 %vm736_vm0, %v7861_v26  ;;  %v1818_v2 = vrot.slane %v1817_v41, 4  ;;  %v1851_v1 = vrot.slane %v9989_v44, 4  ;;  %v1852_v58 = vrot.slane %v10000_v0, 5  ;;  %v1860_v36 = vrot.slane %v10024_v10, 4 }
 0x24a   : > { %8487 = vmatprep.subr.bf16.mxu0 %v10160_v34  ;;  %v1599_v9 = vsel %vm10072_vm10, %v13124_v51, %v1598_v5  ;;  %v13125_v49 = vmov 0  ;;  %v7890_v18 = vrot.slane %v9857_v21, 9  ;;  %v1844_v3 = vor.u32 %v1843_v4, %v1842_v13  ;;  %v13132_v13 = vld [vmem:[#allocation34_spill] sm:$0xff]  ;;  %v13135_v51 = vld [vmem:[#allocation35_spill] sm:$0xff] }
 0x24b   : > { %v13126_v49 = vsel %vm10188_vm15, 4294967295, %v13125_v49  ;;  %v1861_v26 = vrot.slane %v10027_v24, 5  ;;  %v7872_v41 = vcombine.low %v9966_v28, %v9996_v35  ;;  %v1832_v63 = vsel %vm10188_vm15, %v1827_v14, %v13128_v52 }
 0x24c   : > { %13127 = vst [vmem:[#allocation37_spill] sm:$0xff] %v13126_v49  ;;  %v13129_v5 = vmov 0  ;;  %8460 = vmatmul.mubr.msk.bf16.vlgmr.msra.gmra.mxu1 %vm736_vm0, %v7871_v17  ;;  %v1594_v4 = vsel %vm10072_vm10, %v13132_v13, %v1593_v29  ;;  %v13134_v46 = vrot.slane %v13133_v42, 5  ;;  %v1835_v52 = vor.u32 %v1834_v16, %v1833_v53  ;;  %v13136_v13 = vld [vmem:[#allocation32_spill] sm:$0xff] }
 0x24d   : > { %v13130_v5 = vsel %vm10201_vm2, 4294967295, %v13129_v5  ;;  %v1862_v8 = vor.u32 %v1861_v26, %v1860_v36  ;;  %8463 = vmatprep.mubr.msk.bf16.mxu1 %vm736_vm0, %v7872_v41  ;;  %v7862_v31 = vcombine.low %v1594_v4, %v1599_v9  ;;  %v1823_v21 = vsel %vm10188_vm15, %v1818_v2, %v13135_v51  ;;  %8478 = vmatpush3.bf16.msra.mxu1 %v10045_v39  ;;  %v13140_v41 = vld [vmem:[#allocation41_spill] sm:$0xff] }
 0x24e   : > { %13131 = vst [vmem:[#allocation36_spill] sm:$0xff] %v13130_v5  ;;  %v2011_v14 = vsel %vm10201_vm2, %v7891_v61, %v13134_v46  ;;  %v1853_v17 = vor.u32 %v1852_v58, %v1851_v1  ;;  %v10221_v55 = vrot.slane %v2189_v57, 5  ;;  %v7881_v29 = vcombine.low %v1823_v21, %v1832_v63  ;;  %v13139_v63 = vld [vmem:[#allocation44_spill] sm:$0xff] }
 0x24f   : > { %v13137_v42 = vrot.slane %v13136_v13, 5  ;;  %v1845_v61 = vrot.slane %v1844_v3, 4  ;;  %v13138_v53 = vshll.u32 %v9811_v27, 16  ;;  %v7873_v2 = vcombine.low %v10029_v12, %v10060_v47 }
 0x250   : > { %8454 = vmatmul.mubr.msk.bf16.gmra.mxu0 %vm736_vm0, %v7862_v31  ;;  %v1863_v1 = vrot.slane %v1862_v8, 4  ;;  %v2199_v57 = vshrl.u32 %v13139_v63, 16  ;;  %v1836_v58 = vrot.slane %v1835_v52, 4  ;;  %v7892_v36 = vrot.slane %v9926_v43, 9 }
 0x251   : > { %v2007_v46 = vsel %vm10201_vm2, %v7890_v18, %v13137_v42  ;;  %v10229_v16 = vrot.slane %v13138_v53, 6  ;;  %8469 = vmatprep.mubr.msk.bf16.mxu0 %vm736_vm0, %v7881_v29  ;;  %v1869_v9 = vrot.slane %v10064_v62, 4  ;;  %v1870_v18 = vrot.slane %v10067_v60, 5 }
 0x252   : > { %v7900_v39 = vcombine.low %v2007_v46, %v2011_v14  ;;  %v1854_v3 = vrot.slane %v1853_v17, 4  ;;  %v1878_v31 = vrot.slane %v10078_v32, 4  ;;  %v1879_v26 = vrot.slane %v10088_v45, 5  ;;  %v13141_v14 = vld [vmem:[#allocation46_spill] sm:$0xff] }
 0x253   : > { %v2145_v8 = vrot.slane %v9878_v20, 5  ;;  %v1850_v51 = vsel %vm10188_vm15, %v1845_v61, %v13140_v41  ;;  %v2146_v21 = vrot.slane %v9881_v15, 6  ;;  %v2155_v4 = vrot.slane %v9908_v7, 5  ;;  %v13142_v20 = vld [vmem:[#allocation40_spill] sm:$0xff]  ;;  %v13143_v61 = vld [vmem:[#allocation45_spill] sm:$0xff] }
 0x254   : > { %v2156_v43 = vrot.slane %v9929_v33, 6  ;;  %v1868_v52 = vsel %vm10188_vm15, %v1863_v1, %v13141_v14  ;;  %v7893_v17 = vrot.slane %v9936_v23, 9  ;;  %v7894_v29 = vrot.slane %v9966_v28, 9  ;;  %8464 = vmatmul.mubr.msk.bf16.gmra.mxu1 %vm736_vm0, %v7873_v2 }
 0x255   : > { %v1880_v13 = vor.u32 %v1879_v26, %v1878_v31  ;;  %v1841_v42 = vsel %vm10188_vm15, %v1836_v58, %v13142_v20  ;;  %v7895_v15 = vrot.slane %v9996_v35, 9  ;;  %v1871_v7 = vor.u32 %v1870_v18, %v1869_v9  ;;  %8479 = vmatprep.mubr.msk.bf16.mxu1 %vm736_vm0, %v7900_v39 }
 0x256   : > { %v2157_v46 = vor.u32 %v2156_v43, %v2155_v4  ;;  %v7882_v33 = vcombine.low %v1841_v42, %v1850_v51  ;;  %v1859_v23 = vsel %vm10188_vm15, %v1854_v3, %v13143_v61  ;;  %v2147_v53 = vor.u32 %v2146_v21, %v2145_v8 }
 0x257   : > { %v13144_v28 = vshll.u32 %v13139_v63, 16  ;;  %v7883_v2 = vcombine.low %v1859_v23, %v1868_v52  ;;  %v13145_v31 = vrot.slane %v9785_v19, 5  ;;  %v1881_v58 = vrot.slane %v1880_v13, 4  ;;  %v13157_v23 = vld [vmem:[#allocation58_spill] sm:$0xff] }
 0x258   : > { %v2175_v9 = vrot.slane %v9979_v6, 5  ;;  %8470 = vmatmul.mubr.msk.bf16.vlgmr.msra.gmra.mxu0 %vm736_vm0, %v7882_v33  ;;  %v13146_v39 = vrot.slane %v9798_v50, 5  ;;  %v13147_v3 = vrot.slane %v9811_v27, 5  ;;  %v2158_v8 = vrot.slane %v2157_v46, 4 }
 0x259   : > { %v10264_v1 = vrot.slane %v13144_v28, 6  ;;  %v2015_v35 = vsel %vm10201_vm2, %v7892_v36, %v13145_v31  ;;  %v2176_v19 = vrot.slane %v9982_v37, 6  ;;  %8488 = vmatpush3.bf16.msra.mxu0 %v10160_v34  ;;  %8473 = vmatprep.mubr.msk.bf16.mxu0 %vm736_vm0, %v7883_v2  ;;  %v13148_v6 = vrot.slane %v13139_v63, 5  ;;  %v13158_v31 = vld [vmem:[#allocation55_spill] sm:$0xff] }
 0x25a   : > { %v2019_v18 = vsel %vm10201_vm2, %v7893_v17, %v13146_v39  ;;  %v2023_v26 = vsel %vm10201_vm2, %v7894_v29, %v13147_v3  ;;  %v1872_v36 = vrot.slane %v1871_v7, 4  ;;  %v2165_v41 = vrot.slane %v9943_v11, 5 }
 0x25b   : > { %v2027_v50 = vsel %vm10201_vm2, %v7895_v15, %v13148_v6  ;;  %v2166_v27 = vrot.slane %v9962_v59, 6  ;;  %v2148_v51 = vrot.slane %v2147_v53, 4  ;;  %v2185_v21 = vrot.slane %v9989_v44, 5 }
 0x25c   : > { %v2186_v4 = vrot.slane %v10000_v0, 6  ;;  %v2195_v37 = vrot.slane %v10024_v10, 5  ;;  %v7901_v34 = vcombine.low %v2015_v35, %v2019_v18  ;;  %v1886_v63 = vsel %vm10188_vm15, %v1881_v58, %v10123_v25 }
 0x25d   : > { %v13149_v43 = vmov 0  ;;  %v2177_v11 = vor.u32 %v2176_v19, %v2175_v9  ;;  %v2196_v59 = vrot.slane %v10027_v24, 6  ;;  %v7902_v14 = vcombine.low %v2023_v26, %v2027_v50  ;;  %v13161_v26 = vld [vmem:[#allocation59_spill] sm:$0xff] }
 0x25e   : > { %v13150_v43 = vsel %vm10297_vm8, 4294967295, %v13149_v43  ;;  %v13152_v44 = vor.u32 %v9853_v56, %v9836_v30  ;;  %v7897_v10 = vrot.slane %v10060_v47, 9  ;;  %v2201_v52 = vrot.slane %v2199_v57, 5  ;;  %8480 = vmatmul.mubr.msk.bf16.vlgmr.msra.gmra.mxu1 %vm736_vm0, %v7901_v34  ;;  %v13153_v30 = vld [vmem:[#allocation39_spill] sm:$0xff]  ;;  %v13154_v56 = vld [vmem:[#allocation38_spill] sm:$0xff] }
 0x25f   : > { %13151 = vst [vmem:[#allocation34_spill] sm:$0xff] %v13150_v43  ;;  %v1877_v25 = vsel %vm10188_vm15, %v1872_v36, %v10110_v38  ;;  %v2167_v17 = vor.u32 %v2166_v27, %v2165_v41  ;;  %v2197_v29 = vor.u32 %v2196_v59, %v2195_v37  ;;  %v2219_v24 = vshrl.u32 %v10047_v54, 16  ;;  %8483 = vmatprep.mubr.msk.bf16.mxu1 %vm736_vm0, %v7902_v14  ;;  %v8861_v14 = vld [vmem:[%s12936_s5 + $0x10] ss:$8 sps:$4 sm:$0xff]  }
 0x260   : > { %v2164_v0 = vsel %vm10297_vm8, %v2158_v8, %v13152_v44  ;;  %v7884_v13 = vcombine.low %v1877_v25, %v1886_v63  ;;  %v13155_v20 = vor.u32 %v13153_v30, %v13154_v56  ;;  %v7896_v57 = vrot.slane %v10029_v12, 9  ;;  %v8863_v44 = vld [vmem:[%s12936_s5 + $0x14] ss:$8 sps:$4 sm:$0xff]   ;;  %v8867_v25 = vld [vmem:[%s12936_s5 + $0x20] ss:$8 sps:$4 sm:$0xff]  }
 0x261   : > { %v2187_v42 = vor.u32 %v2186_v4, %v2185_v21  ;;  %v2178_v7 = vrot.slane %v2177_v11, 4  ;;  %v2215_v38 = vrot.slane %v10078_v32, 5  ;;  %v2216_v46 = vrot.slane %v10088_v45, 6  ;;  %2421 = vmatprep.subr.bf16.mxu1 %v8863_v44  ;;  %v8878_v30 = vld [vmem:[%s12936_s5 + $0x54] ss:$8 sps:$4 sm:$0xff]  }
 0x262   : > { %v2154_v47 = vsel %vm10297_vm8, %v2148_v51, %v13155_v20  ;;  %8474 = vmatmul.mubr.msk.bf16.gmra.mxu0 %vm736_vm0, %v7884_v13  ;;  %v13156_v33 = vrot.slane %v10047_v54, 5  ;;  %v2173_v53 = vor.u32 %v13157_v23, %v10014_v40  ;;  %v2198_v28 = vrot.slane %v2197_v29, 4  ;;  %2422 = vmatpush1.bf16.msra.mxu1 %v8861_v14  ;;  %v8870_v29 = vld [vmem:[%s12936_s5 + $0x30] ss:$8 sps:$4 sm:$0xff]   ;;  %v8875_v13 = vld [vmem:[%s12936_s5 + $0x44] ss:$8 sps:$4 sm:$0xff]  }
 0x263   : > { %v7911_v15 = vcombine.low %v2154_v47, %v2164_v0  ;;  %v2203_v12 = vor.u32 %v10264_v1, %v2201_v52  ;;  %v2168_v2 = vrot.slane %v2167_v17, 4  ;;  %v2205_v32 = vrot.slane %v10064_v62, 5  ;;  %v8864_v0 = vld [vmem:[%s12936_s5] ss:$8 sps:$4 sm:$0xff]   ;;  %v8869_v17 = vld [vmem:[%s12936_s5 + $0x24] ss:$8 sps:$4 sm:$0xff]  }
 0x264   : > { %v2035_v61 = vsel %vm10201_vm2, %v7897_v10, %v13156_v33  ;;  %v2206_v45 = vrot.slane %v10067_v60, 6  ;;  %v2209_v35 = vshrl.u32 %v13158_v31, 16  ;;  %v13159_v58 = vrot.slane %v13158_v31, 5  ;;  %v8866_v10 = vld [vmem:[%s12936_s5 + $0x4] ss:$8 sps:$4 sm:$0xff]   ;;  %2608 = vmatprep.subr.bf16.mxu1 %v8869_v17 }
 0x265   : > { %8489 = vmatprep.mubr.msk.bf16.mxu0 %vm736_vm0, %v7911_v15  ;;  %v2188_v39 = vrot.slane %v2187_v42, 4  ;;  %v2193_v40 = vor.u32 %v10229_v16, %v10221_v55  ;;  %v13160_v1 = vshll.u32 %v10047_v54, 16  ;;  %v13162_v62 = vor.u32 %v10164_v22, %v13161_v26  ;;  %2516 = vmatprep.subr.bf16.mxu0 %v8866_v10 }
 0x266   : > { %v2031_v9 = vsel %vm10201_vm2, %v7896_v57, %v13159_v58  ;;  %v2217_v8 = vor.u32 %v2216_v46, %v2215_v38  ;;  %v2221_v19 = vrot.slane %v2219_v24, 5  ;;  %v2204_v6 = vsel %vm10297_vm8, %v2198_v28, %v2203_v12  ;;  %v8872_v24 = vld [vmem:[%s12936_s5 + $0x34] ss:$8 sps:$4 sm:$0xff]  }
 0x267   : > { %v2222_v18 = vrot.slane %v13160_v1, 6  ;;  %v7903_v3 = vcombine.low %v2031_v9, %v2035_v61  ;;  %v2184_v60 = vsel %vm10297_vm8, %v2178_v7, %v13162_v62  ;;  %v2174_v55 = vsel %vm10297_vm8, %v2168_v2, %v2173_v53 }
 0x268   : > { %v2207_v16 = vor.u32 %v2206_v45, %v2205_v32  ;;  %v2211_v54 = vrot.slane %v2209_v35, 5  ;;  %v13163_v50 = vshll.u32 %v13158_v31, 16  ;;  %v7912_v41 = vcombine.low %v2174_v55, %v2184_v60 }
 0x269   : > { %8484 = vmatmul.mubr.msk.bf16.gmra.mxu1 %vm736_vm0, %v7903_v3  ;;  %v2194_v22 = vsel %vm10297_vm8, %v2188_v39, %v2193_v40  ;;  %v13164_v27 = vmov 0   ;;  %v2218_v21 = vrot.slane %v2217_v8, 4  ;;  %v2223_v4 = vor.u32 %v2222_v18, %v2221_v19 }
 0x26a   : > { %v2212_v36 = vrot.slane %v13163_v50, 6  ;;  %2439 = vmatprep.mubr.bf16.mxu1 %v13164_v27  ;;  %v7913_v51 = vcombine.low %v2194_v22, %v2204_v6  ;;  %8490 = vmatmul.mubr.msk.bf16.vlgmr.msra.gmra.mxu0 %vm736_vm0, %v7912_v41  ;;  %v2208_v37 = vrot.slane %v2207_v16, 4  ;;  %v10379_v52 = vcombine.low %v13164_v27, %v13164_v27 }
 0x26b   : > { %v2224_v63 = vsel %vm10297_vm8, %v2218_v21, %v2223_v4  ;;  %2517 = vmatpush1.bf16.msra.mxu0 %v8864_v0 }
 0x26c   : > { %8493 = vmatprep.mubr.msk.bf16.mxu0 %vm736_vm0, %v7913_v51  ;;  %v2213_v34 = vor.u32 %v2212_v36, %v2211_v54  ;;  %13165 = vst [vmem:[#allocation33_spill] sm:$0xff] %v10379_v52  ;;  %2716 = vmatprep.subr.bf16.mxu0 %v8872_v24 }
 0x26e   : > { %v2214_v11 = vsel %vm10297_vm8, %v2208_v37, %v2213_v34 }
 0x26f   : > { %v7914_v59 = vcombine.low %v2214_v11, %v2224_v63 }
 0x271   : > { %7929 = vmatmul.mubr.msk.bf16.vlgmr.msra.gmra.mxu1 %vm736_vm0, %v10379_v52 }
 0x272   : > { %8494 = vmatmul.mubr.msk.bf16.gmra.mxu0 %vm736_vm0, %v7914_v59  ;;  %2449 = vmatprep.mubr.bf16.mxu1 %v13164_v27 }
 0x273   : > { %2534 = vmatprep.mubr.bf16.mxu0 %v13164_v27  ;;  %2609 = vmatpush1.bf16.msra.mxu1 %v8867_v25 }
 0x274   : > { %2822 = vmatprep.subr.bf16.mxu1 %v8875_v13 }
 0x27a   : > { %7938 = vmatmul.mubr.msk.bf16.vlgmr.msra.gmra.mxu0 %vm736_vm0, %v10379_v52 }
 0x27b   : > { %2544 = vmatprep.mubr.bf16.mxu0 %v13164_v27  ;;  %2717 = vmatpush1.bf16.msra.mxu0 %v8870_v29 }
 0x27c   : > { %2924 = vmatprep.subr.bf16.mxu0 %v8878_v30 }
 0x2f0   : > { %v8431_v56 = vpop.f32.mrf.mxu0 }
 0x2f2   : > { %v1431_v20 = vpop.f32.mrf.mxu0 }
 0x2f4   : > { %v8432_v47 = vpop.f32.mrf.mxu0 }
 0x2f6   : > { %v1434_v15 = vpop.f32.mrf.mxu0 }
 0x2f7   : > { %v8441_v57 = vpop.f32.mrf.mxu1 }
 0x2f8   : > { %v1535_v10 = vadd.f32 %v8441_v57, %v8431_v56  ;;  %v7920_v56 = vld [vmem:[%s12935_s4] ss:$0 sm:$0xff] }
 0x2f9   : > { %v1526_v42 = vpop.f32.mrf.mxu1 }
 0x2fa   : > { %v1527_v37 = vadd.f32 %v1526_v42, %v1431_v20 }
 0x2fb   : > { %v8442_v7 = vpop.f32.mrf.mxu1 }
 0x2fc   : > { %v1538_v17 = vadd.f32 %v8442_v7, %v8432_v47 }
 0x2fd   : > { %v1529_v33 = vpop.f32.mrf.mxu1 }
 0x2fe   : > { %v1530_v44 = vadd.f32 %v1529_v33, %v1434_v15 }
 0x300   : > { %v8435_v38 = vpop.f32.mrf.mxu0 }
 0x302   : > { %v1447_v46 = vpop.f32.mrf.mxu0 }
 0x304   : > { %v8436_v61 = vpop.f32.mrf.mxu0  ;;  %v8445_v23 = vpop.f32.mrf.mxu1 }
 0x305   : > { %v1551_v53 = vadd.f32 %v8445_v23, %v8435_v38 }
 0x306   : > { %v10405_v28 = vpop.f32.mrf.mxu0  ;;  %v1542_v12 = vpop.f32.mrf.mxu1 }
 0x308   : > { %v8451_v2 = vpop.f32.mrf.mxu0  ;;  %v8446_v32 = vpop.f32.mrf.mxu1 }
 0x309   : > { %v1554_v45 = vadd.f32 %v8446_v32, %v8436_v61  ;;  %v1700_v13 = vadd.f32 %v8451_v2, %v1535_v10 }
 0x30a   : > { %v1667_v31 = vpop.f32.mrf.mxu0  ;;  %v1545_v35 = vpop.f32.mrf.mxu1 }
 0x30b   : > { %v1698_v11 = vadd.f32 %v1667_v31, %v1527_v37 }
 0x30c   : > { %v8452_v58 = vpop.f32.mrf.mxu0  ;;  %v8461_v9 = vpop.f32.mrf.mxu1 }
 0x30d   : > { %v1701_v61 = vadd.f32 %v8452_v58, %v1538_v17  ;;  %v1806_v32 = vadd.f32 %v8461_v9, %v1700_v13 }
 0x30e   : > { %v1670_v39 = vpop.f32.mrf.mxu0  ;;  %v1773_v40 = vpop.f32.mrf.mxu1 }
 0x30f   : > { %v1804_v0 = vadd.f32 %v1773_v40, %v1698_v11  ;;  %v1699_v29 = vadd.f32 %v1670_v39, %v1530_v44  ;;  %v1546_v39 = vadd.f32 %v1545_v35, %v10405_v28 }
 0x310   : > { %v8455_v1 = vpop.f32.mrf.mxu0  ;;  %v8462_v3 = vpop.f32.mrf.mxu1 }
 0x311   : > { %v1704_v18 = vadd.f32 %v8455_v1, %v1551_v53  ;;  %v1807_v42 = vadd.f32 %v8462_v3, %v1701_v61 }
 0x312   : > { %v1683_v26 = vpop.f32.mrf.mxu0  ;;  %v1776_v62 = vpop.f32.mrf.mxu1 }
 0x313   : > { %v1805_v23 = vadd.f32 %v1776_v62, %v1699_v29 }
 0x314   : > { %v8456_v60 = vpop.f32.mrf.mxu0  ;;  %v8465_v19 = vpop.f32.mrf.mxu1 }
 0x315   : > { %v1705_v8 = vadd.f32 %v8456_v60, %v1554_v45  ;;  %v1810_v45 = vadd.f32 %v8465_v19, %v1704_v18  ;;  %v1543_v60 = vadd.f32 %v1542_v12, %v1447_v46 }
 0x316   : > { %v1686_v6 = vpop.f32.mrf.mxu0  ;;  %v1789_v55 = vpop.f32.mrf.mxu1 }
 0x317   : > { %v1702_v9 = vadd.f32 %v1683_v26, %v1543_v60 }
 0x318   : > { %v8471_v16 = vpop.f32.mrf.mxu0  ;;  %v8466_v54 = vpop.f32.mrf.mxu1 }
 0x319   : > { %v1987_v15 = vadd.f32 %v8471_v16, %v1806_v32  ;;  %v1811_v40 = vadd.f32 %v8466_v54, %v1705_v8  ;;  %v1703_v16 = vadd.f32 %v1686_v6, %v1546_v39  ;;  %v8879_v39 = vld [vmem:[%s12936_s5 + $0x60] ss:$8 sps:$4 sm:$0xff]  }
 0x31a   : > { %v1954_v50 = vpop.f32.mrf.mxu0  ;;  %v1792_v36 = vpop.f32.mrf.mxu1 }
 0x31b   : > { %v1985_v24 = vadd.f32 %v1954_v50, %v1804_v0  ;;  %v1808_v50 = vadd.f32 %v1789_v55, %v1702_v9  ;;  %v1809_v0 = vadd.f32 %v1792_v36, %v1703_v16  ;;  %v8883_v9 = vld [vmem:[#allocation9 + $0x10] sm:$0xff]  }
 0x31c   : > { %v8472_v41 = vpop.f32.mrf.mxu0 }
 0x31d   : > { %v1988_v57 = vadd.f32 %v8472_v41, %v1807_v42 }
 0x31e   : > { %v8481_v22 = vpop.f32.mrf.mxu1  ;;  %v1957_v51 = vpop.f32.mrf.mxu0 }
 0x31f   : > { %v1986_v31 = vadd.f32 %v1957_v51, %v1805_v23  ;;  %v2136_v3 = vadd.f32 %v8481_v22, %v1987_v15 }
 0x320   : > { %v2103_v21 = vpop.f32.mrf.mxu1 }
 0x321   : > { %v2134_v53 = vadd.f32 %v2103_v21, %v1985_v24 }
 0x322   : > { %v8475_v4 = vpop.f32.mrf.mxu0  ;;  %v8482_v34 = vpop.f32.mrf.mxu1 }
 0x323   : > { %v1991_v7 = vadd.f32 %v8475_v4, %v1810_v45  ;;  %v2137_v62 = vadd.f32 %v8482_v34, %v1988_v57  ;;  %v8873_v57 = vld [vmem:[%s12936_s5 + $0x40] ss:$8 sps:$4 sm:$0xff]  }
 0x324   : > { %v1970_v63 = vpop.f32.mrf.mxu0  ;;  %v2106_v59 = vpop.f32.mrf.mxu1 }
 0x325   : > { %v2135_v2 = vadd.f32 %v2106_v59, %v1986_v31  ;;  %v1989_v28 = vadd.f32 %v1970_v63, %v1808_v50 }
 0x326   : > { %v8476_v14 = vpop.f32.mrf.mxu0 }
 0x327   : > { %v1992_v51 = vadd.f32 %v8476_v14, %v1811_v40 }
 0x328   : > { %v1973_v25 = vpop.f32.mrf.mxu0 }
 0x329   : > { %v8485_v30 = vpop.f32.mrf.mxu1  ;;  %v1990_v22 = vadd.f32 %v1973_v25, %v1809_v0 }
 0x32a   : > { %v8491_v38 = vpop.f32.mrf.mxu0  ;;  %v2140_v19 = vadd.f32 %v8485_v30, %v1991_v7  ;;  %v8881_v7 = vld [vmem:[%s12936_s5 + $0x64] ss:$8 sps:$4 sm:$0xff]  }
 0x32b   : > { %v2119_v33 = vpop.f32.mrf.mxu1  ;;  %v2325_v37 = vadd.f32 %v8491_v38, %v2136_v3 }
 0x32c   : > { %v2292_v20 = vpop.f32.mrf.mxu0  ;;  %v2138_v34 = vadd.f32 %v2119_v33, %v1989_v28 }
 0x32d   : > { %v2323_v1 = vadd.f32 %v2292_v20, %v2134_v53  ;;  %v8486_v21 = vpop.f32.mrf.mxu1  ;;  %v2340_v10 = vadd.f32 %v7920_v56, %v2325_v37  ;;  %v8885_v37 = vld [vmem:[#allocation9 + $0x18] sm:$0xff]  }
 0x32e   : > { %v8492_v47 = vpop.f32.mrf.mxu0  ;;  %v2141_v26 = vadd.f32 %v8486_v21, %v1992_v51 }
 0x32f   : > { %v2338_v58 = vadd.f32 %v7920_v56, %v2323_v1  ;;  %v2326_v4 = vadd.f32 %v8492_v47, %v2137_v62  ;;  %v2122_v6 = vpop.f32.mrf.mxu1  ;;  %v2348_v38 = vmax.f32 %v2340_v10, 0.0  ;;  %v8882_v47 = vld [vmem:[#allocation9 + $0x8] sm:$0xff]  }
 0x330   : > { %v2295_v18 = vpop.f32.mrf.mxu0  ;;  %v2139_v36 = vadd.f32 %v2122_v6, %v1990_v22  ;;  %v13172_v22 = vld [vmem:[#allocation56_spill] sm:$0xff]  ;;  %v13174_v10 = vld [vmem:[#allocation54_spill] sm:$0xff] }
 0x331   : > { %v2346_v46 = vmax.f32 %v2338_v58, 0.0  ;;  %v2324_v12 = vadd.f32 %v2295_v18, %v2135_v2  ;;  %v2341_v14 = vadd.f32 %v7920_v56, %v2326_v4  ;;  %v8884_v58 = vld [vmem:[#allocation9] sm:$0xff]   ;;  %v2441_v40 = vpop.f32.mrf.mxu1  ;;  %v3240_v6 = vpack.c.bf16 %v13174_v10, %v13174_v10 }
 0x332   : > { %v8495_v11 = vpop.f32.mrf.mxu0  ;;  %v13167_v4 = vld [vmem:[#allocation50_spill] sm:$0xff] }
 0x333   : > { %v2354_v41 = vpack.c.bf16 %v2346_v46, %v2346_v46  ;;  %v2339_v59 = vadd.f32 %v7920_v56, %v2324_v12  ;;  %v2329_v44 = vadd.f32 %v8495_v11, %v2140_v19  ;;  %v2349_v25 = vmax.f32 %v2341_v14, 0.0  ;;  %v2443_v62 = vpop.f32.mrf.mxu1  ;;  %v13166_v11 = vld [vmem:[#allocation43_spill] sm:$0xff] }
 0x334   : > { %v2308_v35 = vpop.f32.mrf.mxu0 }
 0x335   : > { %v7933_v8 = vcombine.low %v13164_v27, %v2354_v41  ;;  %v2347_v54 = vmax.f32 %v2339_v59, 0.0  ;;  %v2344_v29 = vadd.f32 %v7920_v56, %v2329_v44  ;;  %v2327_v63 = vadd.f32 %v2308_v35, %v2138_v34  ;;  %v2445_v12 = vpop.f32.mrf.mxu1  ;;  %v8886_v41 = vld [vmem:[#allocation9 + $0x20] sm:$0xff]   ;;  %v13168_v59 = vld [vmem:[#allocation52_spill] sm:$0xff]  ;;  %v8887_v35 = vld [vmem:[#allocation9 + $0x28] sm:$0xff]  }
 0x336   : > { %v8496_v55 = vpop.f32.mrf.mxu0  ;;  %v8267_v45 = vpack.c.bf16 %v2349_v25, %v2348_v38  ;;  %v13169_v44 = vld [vmem:[#allocation42_spill] sm:$0xff]  ;;  %v13173_v34 = vld [vmem:[#allocation53_spill] sm:$0xff] }
 0x337   : > { %v8266_v17 = vpack.c.bf16 %v2347_v54, %v2346_v46  ;;  %v2330_v24 = vadd.f32 %v8496_v55, %v2141_v26  ;;  %7939 = vmatmul.mubr.msk.bf16.gmra.mxu0 %vm736_vm0, %v7933_v8  ;;  %v2352_v61 = vmax.f32 %v2344_v29, 0.0  ;;  %v8269_v32 = vpack.c.bf16 %v2348_v38, %v2347_v54  ;;  %v13170_v26 = vld [vmem:[#allocation47_spill] sm:$0xff] }
 0x338   : > { %v2311_v13 = vpop.f32.mrf.mxu0  ;;  %2554 = vmatprep.mubr.bf16.mxu0 %v13164_v27  ;;  %v2342_v20 = vadd.f32 %v7920_v56, %v2327_v63  ;;  %v3233_v0 = vpack.c.bf16 %v13169_v44, %v13169_v44  ;;  %v8888_v54 = vld [vmem:[#allocation9 + $0x30] sm:$0xff]   ;;  %v8013_v55 = vcombine.low %v3240_v6, %v13164_v27 }
 0x339   : > { %v2345_v30 = vadd.f32 %v7920_v56, %v2330_v24  ;;  %7930 = vmatmul.mubr.msk.bf16.gmra.mxu1 %vm736_vm0, %v8266_v17  ;;  %v2328_v53 = vadd.f32 %v2311_v13, %v2139_v36 }
 0x33a   : > { %2459 = vmatprep.mubr.bf16.mxu1 %v13164_v27  ;;  %v2350_v1 = vmax.f32 %v2342_v20, 0.0  ;;  %v2536_v3 = vpop.f32.mrf.mxu0  ;;  %v7993_v28 = vcombine.low %v13164_v27, %v3233_v0 }
 0x33b   : > { %v10416_v23 = vmax.f32 %v2345_v30, 0.0  ;;  %v2343_v31 = vadd.f32 %v7920_v56, %v2328_v53  ;;  %v8876_v56 = vld [vmem:[%s12936_s5 + $0x50] ss:$8 sps:$4 sm:$0xff]   ;;  %v10466_v18 = vadd.f32 %v2536_v3, %v2441_v40 }
 0x33c   : > { %v10425_v15 = vpack.c.bf16 %v2350_v1, %v2349_v25  ;;  %v2538_v19 = vpop.f32.mrf.mxu0 }
 0x33d   : > { %v10419_v42 = vpack.c.bf16 %v10416_v23, %v2352_v61  ;;  %v2351_v60 = vmax.f32 %v2343_v31, 0.0  ;;  %v10468_v46 = vadd.f32 %v2538_v19, %v2443_v62  ;;  %v2361_v51 = vpack.c.bf16 %v10416_v23, %v10416_v23 }
 0x33e   : > { %v2540_v16 = vpop.f32.mrf.mxu0 }
 0x33f   : > { %7940 = vmatmul.mubr.msk.bf16.gmra.mxu0 %vm736_vm0, %v8269_v32  ;;  %v8268_v33 = vpack.c.bf16 %v2351_v60, %v2350_v1  ;;  %v8271_v2 = vpack.c.bf16 %v2352_v61, %v2351_v60  ;;  %v10470_v50 = vadd.f32 %v2540_v16, %v2445_v12  ;;  %v7962_v21 = vcombine.low %v2361_v51, %v13164_v27 }
 0x340   : > { %2564 = vmatprep.mubr.bf16.mxu0 %v13164_v27  ;;  %v10556_v14 = vpop.f32.mrf.mxu0 }
 0x341   : > { %7931 = vmatmul.mubr.msk.bf16.gmra.mxu1 %vm736_vm0, %v8267_v45 }
 0x342   : > { %2469 = vmatprep.mubr.bf16.mxu1 %v13164_v27 }
 0x347   : > { %7941 = vmatmul.mubr.msk.bf16.gmra.mxu0 %vm736_vm0, %v10425_v15 }
 0x348   : > { %2734 = vmatprep.mubr.bf16.mxu0 %v13164_v27 }
 0x349   : > { %7932 = vmatmul.mubr.msk.bf16.gmra.mxu1 %vm736_vm0, %v8268_v33 }
 0x34a   : > { %2626 = vmatprep.mubr.bf16.mxu1 %v13164_v27 }
 0x34f   : > { %7956 = vmatmul.mubr.msk.bf16.vlgmr.msra.gmra.mxu0 %vm736_vm0, %v8266_v17  ;;  %v10558_v17 = vpop.f32.mrf.mxu1 }
 0x350   : > { %2744 = vmatprep.mubr.bf16.mxu0 %v13164_v27  ;;  %2925 = vmatpush1.bf16.msra.mxu0 %v8876_v56 }
 0x351   : > { %7947 = vmatmul.mubr.msk.bf16.vlgmr.msra.gmra.mxu1 %vm736_vm0, %v7933_v8  ;;  %8497 = vmatprep.subr.bf16.mxu0 %v8882_v47  ;;  %v13171_v8 = vld [vmem:[#allocation51_spill] sm:$0xff] }
 0x352   : > { %2823 = vmatpush1.bf16.msra.mxu1 %v8873_v57  ;;  %2636 = vmatprep.mubr.bf16.mxu1 %v13164_v27 }
 0x353   : > { %3026 = vmatprep.subr.bf16.mxu1 %v8881_v7 }
 0x357   : > { %7957 = vmatmul.mubr.msk.bf16.gmra.mxu0 %vm736_vm0, %v8267_v45 }
 0x358   : > { %2754 = vmatprep.mubr.bf16.mxu0 %v13164_v27 }
 0x359   : > { %7948 = vmatmul.mubr.msk.bf16.gmra.mxu1 %vm736_vm0, %v8269_v32 }
 0x35a   : > { %2646 = vmatprep.mubr.bf16.mxu1 %v13164_v27 }
 0x35f   : > { %7958 = vmatmul.mubr.msk.bf16.gmra.mxu0 %vm736_vm0, %v8268_v33 }
 0x360   : > { %2764 = vmatprep.mubr.bf16.mxu0 %v13164_v27 }
 0x361   : > { %7949 = vmatmul.mubr.msk.bf16.gmra.mxu1 %vm736_vm0, %v10425_v15 }
 0x362   : > { %2656 = vmatprep.mubr.bf16.mxu1 %v13164_v27 }
 0x367   : > { %7959 = vmatmul.mubr.msk.bf16.gmra.mxu0 %vm736_vm0, %v10419_v42 }
 0x368   : > { %2942 = vmatprep.mubr.bf16.mxu0 %v13164_v27 }
 0x369   : > { %7950 = vmatmul.mubr.msk.bf16.gmra.mxu1 %vm736_vm0, %v8271_v2 }
 0x36a   : > { %2840 = vmatprep.mubr.bf16.mxu1 %v13164_v27 }
 0x36f   : > { %7973 = vmatmul.mubr.msk.bf16.vlgmr.msra.gmra.mxu0 %vm736_vm0, %v8267_v45 }
 0x370   : > { %2952 = vmatprep.mubr.bf16.mxu0 %v13164_v27  ;;  %8498 = vmatpush3.bf16.msra.mxu0 %v8882_v47 }
 0x371   : > { %7965 = vmatmul.mubr.msk.bf16.vlgmr.msra.gmra.mxu1 %vm736_vm0, %v8269_v32  ;;  %8507 = vmatprep.subr.bf16.mxu0 %v8884_v58 }
 0x372   : > { %3027 = vmatpush1.bf16.msra.mxu1 %v8879_v39  ;;  %2850 = vmatprep.mubr.bf16.mxu1 %v13164_v27 }
 0x373   : > { %8517 = vmatprep.subr.bf16.mxu1 %v8883_v9 }
 0x377   : > { %7974 = vmatmul.mubr.msk.bf16.gmra.mxu0 %vm736_vm0, %v8268_v33 }
 0x378   : > { %2962 = vmatprep.mubr.bf16.mxu0 %v13164_v27 }
 0x379   : > { %7966 = vmatmul.mubr.msk.bf16.gmra.mxu1 %vm736_vm0, %v10425_v15 }
 0x37a   : > { %2860 = vmatprep.mubr.bf16.mxu1 %v13164_v27 }
 0x37f   : > { %7975 = vmatmul.mubr.msk.bf16.gmra.mxu0 %vm736_vm0, %v10419_v42 }
 0x380   : > { %2972 = vmatprep.mubr.bf16.mxu0 %v13164_v27 }
 0x381   : > { %7967 = vmatmul.mubr.msk.bf16.gmra.mxu1 %vm736_vm0, %v8271_v2 }
 0x382   : > { %2870 = vmatprep.mubr.bf16.mxu1 %v13164_v27 }
 0x387   : > { %7976 = vmatmul.mubr.msk.bf16.gmra.mxu0 %vm736_vm0, %v10379_v52 }
 0x388   : > { %8499 = vmatprep.mubr.msk.bf16.mxu0 %vm736_vm0, %v10379_v52 }
 0x389   : > { %7968 = vmatmul.mubr.msk.bf16.gmra.mxu1 %vm736_vm0, %v7962_v21 }
 0x38a   : > { %3044 = vmatprep.mubr.bf16.mxu1 %v13164_v27 }
 0x38f   : > { %8500 = vmatmul.mubr.msk.bf16.vlgmr.msra.gmra.mxu0 %vm736_vm0, %v13166_v11 }
 0x390   : > { %8503 = vmatprep.mubr.msk.bf16.mxu0 %vm736_vm0, %v13167_v4  ;;  %8508 = vmatpush3.bf16.msra.mxu0 %v8884_v58 }
 0x391   : > { %7981 = vmatmul.mubr.msk.bf16.vlgmr.msra.gmra.mxu1 %vm736_vm0, %v10425_v15  ;;  %8527 = vmatprep.subr.bf16.mxu0 %v8885_v37 }
 0x392   : > { %8518 = vmatpush3.bf16.msra.mxu1 %v8883_v9  ;;  %3054 = vmatprep.mubr.bf16.mxu1 %v13164_v27 }
 0x393   : > { %8537 = vmatprep.subr.bf16.mxu1 %v8886_v41 }
 0x397   : > { %8504 = vmatmul.mubr.msk.bf16.gmra.mxu0 %vm736_vm0, %v13168_v59 }
 0x398   : > { %8509 = vmatprep.mubr.msk.bf16.mxu0 %vm736_vm0, %v10379_v52 }
 0x399   : > { %7982 = vmatmul.mubr.msk.bf16.gmra.mxu1 %vm736_vm0, %v8271_v2 }
 0x39a   : > { %3064 = vmatprep.mubr.bf16.mxu1 %v13164_v27 }
 0x39f   : > { %8510 = vmatmul.mubr.msk.bf16.vlgmr.msra.gmra.mxu0 %vm736_vm0, %v7993_v28 }
 0x3a0   : > { %8513 = vmatprep.mubr.msk.bf16.mxu0 %vm736_vm0, %v13170_v26  ;;  %8528 = vmatpush3.bf16.msra.mxu0 %v8885_v37 }
 0x3a1   : > { %7983 = vmatmul.mubr.msk.bf16.gmra.mxu1 %vm736_vm0, %v7962_v21  ;;  %8547 = vmatprep.subr.bf16.mxu0 %v8887_v35 }
 0x3a2   : > { %3074 = vmatprep.mubr.bf16.mxu1 %v13164_v27 }
 0x3a7   : > { %8514 = vmatmul.mubr.msk.bf16.gmra.mxu0 %vm736_vm0, %v13171_v8 }
 0x3a8   : > { %8529 = vmatprep.mubr.msk.bf16.mxu0 %vm736_vm0, %v13166_v11 }
 0x3a9   : > { %7984 = vmatmul.mubr.msk.bf16.gmra.mxu1 %vm736_vm0, %v10379_v52 }
 0x3aa   : > { %8519 = vmatprep.mubr.msk.bf16.mxu1 %vm736_vm0, %v7993_v28 }
 0x3af   : > { %8530 = vmatmul.mubr.msk.bf16.vlgmr.msra.gmra.mxu0 %vm736_vm0, %v13167_v4 }
 0x3b0   : > { %8533 = vmatprep.mubr.msk.bf16.mxu0 %vm736_vm0, %v13168_v59  ;;  %8548 = vmatpush3.bf16.msra.mxu0 %v8887_v35 }
 0x3b1   : > { %8520 = vmatmul.mubr.msk.bf16.vlgmr.msra.gmra.mxu1 %vm736_vm0, %v13170_v26 }
 0x3b2   : > { %8538 = vmatpush3.bf16.msra.mxu1 %v8886_v41  ;;  %8523 = vmatprep.mubr.msk.bf16.mxu1 %vm736_vm0, %v13171_v8 }
 0x3b3   : > { %8557 = vmatprep.subr.bf16.mxu1 %v8888_v54 }
 0x3b7   : > { %8534 = vmatmul.mubr.msk.bf16.gmra.mxu0 %vm736_vm0, %v13172_v22 }
 0x3b8   : > { %8549 = vmatprep.mubr.msk.bf16.mxu0 %vm736_vm0, %v13167_v4 }
 0x3b9   : > { %8524 = vmatmul.mubr.msk.bf16.gmra.mxu1 %vm736_vm0, %v13173_v34 }
 0x3ba   : > { %8539 = vmatprep.mubr.msk.bf16.mxu1 %vm736_vm0, %v13170_v26 }
 0x3bf   : > { %8550 = vmatmul.mubr.msk.bf16.vlgmr.msra.gmra.mxu0 %vm736_vm0, %v13168_v59 }
 0x3c0   : > { %8553 = vmatprep.mubr.msk.bf16.mxu0 %vm736_vm0, %v13172_v22 }
 0x3c1   : > { %8540 = vmatmul.mubr.msk.bf16.vlgmr.msra.gmra.mxu1 %vm736_vm0, %v13171_v8 }
 0x3c2   : > { %8558 = vmatpush3.bf16.msra.mxu1 %v8888_v54  ;;  %8543 = vmatprep.mubr.msk.bf16.mxu1 %vm736_vm0, %v13173_v34 }
 0x3c7   : > { %8554 = vmatmul.mubr.msk.bf16.gmra.mxu0 %vm736_vm0, %v10379_v52 }
 0x3c9   : > { %8544 = vmatmul.mubr.msk.bf16.gmra.mxu1 %vm736_vm0, %v8013_v55 }
 0x3ca   : > { %8559 = vmatprep.mubr.msk.bf16.mxu1 %vm736_vm0, %v13171_v8 }
 0x3d1   : > { %8560 = vmatmul.mubr.msk.bf16.vlgmr.msra.gmra.mxu1 %vm736_vm0, %v13173_v34 }
 0x3d2   : > { %8563 = vmatprep.mubr.msk.bf16.mxu1 %vm736_vm0, %v8013_v55 }
 0x3d9   : > { %8564 = vmatmul.mubr.msk.bf16.gmra.mxu1 %vm736_vm0, %v10379_v52 }
 0x3f7   : > { %v2546_v29 = vpop.f32.mrf.mxu0 }
 0x3f9   : > { %v2451_v24 = vpop.f32.mrf.mxu1  ;;  %v2548_v13 = vpop.f32.mrf.mxu0 }
 0x3fa   : > { %v10560_v36 = vadd.f32 %v2546_v29, %v2451_v24 }
 0x3fb   : > { %v2453_v63 = vpop.f32.mrf.mxu1  ;;  %v2550_v30 = vpop.f32.mrf.mxu0 }
 0x3fc   : > { %v10562_v38 = vadd.f32 %v2548_v13, %v2453_v63  ;;  %v8889_v63 = vld [vmem:[#allocation12 + $0x8] sm:$0xff]  }
 0x3fd   : > { %v2455_v25 = vpop.f32.mrf.mxu1  ;;  %v10564_v61 = vpop.f32.mrf.mxu0  ;;  %8567 = vmatprep.subr.bf16.mxu0 %v8889_v63 }
 0x3fe   : > { %v10566_v23 = vadd.f32 %v2550_v30, %v2455_v25  ;;  %8568 = vmatpush3.bf16.msra.mxu0 %v8889_v63 }
 0x3ff   : > { %v10568_v53 = vpop.f32.mrf.mxu1  ;;  %v2556_v32 = vpop.f32.mrf.mxu0 }
 0x401   : > { %v2461_v20 = vpop.f32.mrf.mxu1  ;;  %v2558_v42 = vpop.f32.mrf.mxu0 }
 0x402   : > { %v10570_v45 = vadd.f32 %v2556_v32, %v2461_v20  ;;  %v8890_v32 = vld [vmem:[#allocation12] sm:$0xff]  }
 0x403   : > { %v2463_v31 = vpop.f32.mrf.mxu1  ;;  %v2560_v1 = vpop.f32.mrf.mxu0  ;;  %8577 = vmatprep.subr.bf16.mxu1 %v8890_v32 }
 0x404   : > { %v10572_v60 = vadd.f32 %v2558_v42, %v2463_v31  ;;  %8578 = vmatpush3.bf16.msra.mxu1 %v8890_v32 }
 0x405   : > { %v2465_v15 = vpop.f32.mrf.mxu1  ;;  %v10574_v33 = vpop.f32.mrf.mxu0 }
 0x406   : > { %v10576_v56 = vadd.f32 %v2560_v1, %v2465_v15 }
 0x407   : > { %v10578_v47 = vpop.f32.mrf.mxu1  ;;  %v2566_v57 = vpop.f32.mrf.mxu0 }
 0x409   : > { %v2471_v7 = vpop.f32.mrf.mxu1  ;;  %v2568_v2 = vpop.f32.mrf.mxu0 }
 0x40a   : > { %v10580_v58 = vadd.f32 %v2566_v57, %v2471_v7  ;;  %v10652_v7 = vld [vmem:[#allocation12 + $0x10] sm:$0xff]  }
 0x40b   : > { %v2473_v39 = vpop.f32.mrf.mxu1  ;;  %v2570_v9 = vpop.f32.mrf.mxu0  ;;  %13188 = vst [vmem:[#allocation50_spill] sm:$0xff] %v10652_v7  ;;  %8587 = vmatprep.subr.bf16.mxu0 %v10652_v7 }
 0x40c   : > { %v10582_v40 = vadd.f32 %v2568_v2, %v2473_v39 }
 0x40d   : > { %v2475_v3 = vpop.f32.mrf.mxu1  ;;  %v10584_v62 = vpop.f32.mrf.mxu0 }
 0x40e   : > { %13175 = vst [vmem:[#allocation35_spill] sm:$0xff] %v10582_v40  ;;  %13176 = vst [vmem:[#allocation32_spill] sm:$0xff] %v10584_v62  ;;  %v10586_v19 = vadd.f32 %v2570_v9, %v2475_v3 }
 0x40f   : > { %v10588_v12 = vpop.f32.mrf.mxu1  ;;  %v10590_v16 = vpop.f32.mrf.mxu0 }
 0x410   : > { %13177 = vst [vmem:[#allocation44_spill] sm:$0xff] %v10586_v19  ;;  %13178 = vst [vmem:[#allocation41_spill] sm:$0xff] %v10588_v12 }
 0x411   : > { %v10592_v51 = vpop.f32.mrf.mxu1  ;;  %v10594_v21 = vpop.f32.mrf.mxu0 }
 0x413   : > { %v10596_v37 = vpop.f32.mrf.mxu1  ;;  %v10598_v11 = vpop.f32.mrf.mxu0 }
 0x415   : > { %v10600_v41 = vpop.f32.mrf.mxu1  ;;  %v10602_v4 = vpop.f32.mrf.mxu0 }
 0x417   : > { %v10604_v59 = vpop.f32.mrf.mxu1  ;;  %v10606_v44 = vpop.f32.mrf.mxu0 }
 0x419   : > { %v10608_v0 = vpop.f32.mrf.mxu1  ;;  %v10610_v28 = vpop.f32.mrf.mxu0 }
 0x41b   : > { %v10612_v35 = vpop.f32.mrf.mxu1  ;;  %v10614_v26 = vpop.f32.mrf.mxu0 }
 0x41d   : > { %v10616_v8 = vpop.f32.mrf.mxu1  ;;  %v10618_v54 = vpop.f32.mrf.mxu0 }
 0x41f   : > { %v10620_v22 = vpop.f32.mrf.mxu1  ;;  %v10622_v34 = vpop.f32.mrf.mxu0 }
 0x421   : > { %v10624_v10 = vpop.f32.mrf.mxu1  ;;  %v10626_v6 = vpop.f32.mrf.mxu0 }
 0x423   : > { %v10628_v55 = vpop.f32.mrf.mxu1  ;;  %v10630_v29 = vpop.f32.mrf.mxu0 }
 0x424   : > { %13179 = vst [vmem:[#allocation46_spill] sm:$0xff] %v10630_v29 }
 0x425   : > { %v10632_v24 = vpop.f32.mrf.mxu1  ;;  %v10634_v13 = vpop.f32.mrf.mxu0 }
 0x426   : > { %13180 = vst [vmem:[#allocation40_spill] sm:$0xff] %v10634_v13 }
 0x427   : > { %v10636_v30 = vpop.f32.mrf.mxu1  ;;  %v10638_v25 = vpop.f32.mrf.mxu0 }
 0x428   : > { %13181 = vst [vmem:[#allocation45_spill] sm:$0xff] %v10638_v25 }
 0x429   : > { %v10640_v20 = vpop.f32.mrf.mxu1  ;;  %v10642_v42 = vpop.f32.mrf.mxu0 }
 0x42a   : > { %13182 = vst [vmem:[#allocation39_spill] sm:$0xff] %v10640_v20  ;;  %13183 = vst [vmem:[#allocation38_spill] sm:$0xff] %v10642_v42 }
 0x42b   : > { %v10644_v31 = vpop.f32.mrf.mxu1  ;;  %v10646_v1 = vpop.f32.mrf.mxu0 }
 0x42c   : > { %13184 = vst [vmem:[#allocation58_spill] sm:$0xff] %v10644_v31  ;;  %13185 = vst [vmem:[#allocation55_spill] sm:$0xff] %v10646_v1 }
 0x42d   : > { %v10648_v15 = vpop.f32.mrf.mxu1  ;;  %v10650_v57 = vpop.f32.mrf.mxu0 }
 0x42e   : > { %13186 = vst [vmem:[#allocation59_spill] sm:$0xff] %v10648_v15  ;;  %13187 = vst [vmem:[#allocation43_spill] sm:$0xff] %v10650_v57 }
 0x42f   : > { %v10654_v2 = vpop.f32.mrf.mxu1  ;;  %v2944_v39 = vpop.f32.mrf.mxu0 }
 0x430   : > { %13189 = vst [vmem:[#allocation52_spill] sm:$0xff] %v10654_v2  ;;  %v10671_v2 = vld [vmem:[#allocation12 + $0x18] sm:$0xff]  }
 0x431   : > { %v2842_v9 = vpop.f32.mrf.mxu1  ;;  %v2946_v3 = vpop.f32.mrf.mxu0  ;;  %13191 = vst [vmem:[#allocation47_spill] sm:$0xff] %v10671_v2  ;;  %8597 = vmatprep.subr.bf16.mxu1 %v10671_v2  ;;  %v2668_v2 = vadd.f32 %v10596_v37, %v10468_v46  ;;  %v2671_v37 = vadd.f32 %v10608_v0, %v10560_v36  ;;  %v13200_v36 = vld [vmem:[#allocation30_spill] sm:$0xff] }
 0x433   : > { %v2844_v63 = vpop.f32.mrf.mxu1  ;;  %v10657_v27 = vpop.f32.mrf.mxu0  ;;  %v2776_v46 = vadd.f32 %v10594_v21, %v2668_v2  ;;  %v2553_v2 = vadd.f32 %v10564_v61, %v10568_v53 }
 0x435   : > { %v2846_v52 = vpop.f32.mrf.mxu1  ;;  %v10659_v43 = vpop.f32.mrf.mxu0 }
 0x437   : > { %v2848_v32 = vpop.f32.mrf.mxu1  ;;  %v10661_v5 = vpop.f32.mrf.mxu0 }
 0x439   : > { %v2852_v49 = vpop.f32.mrf.mxu1  ;;  %v10663_v48 = vpop.f32.mrf.mxu0 }
 0x43b   : > { %v2854_v57 = vpop.f32.mrf.mxu1  ;;  %v10665_v1 = vpop.f32.mrf.mxu0 }
 0x43d   : > { %v10667_v42 = vpop.f32.mrf.mxu1  ;;  %v10669_v7 = vpop.f32.mrf.mxu0 }
 0x43e   : > { %13190 = vst [vmem:[#allocation42_spill] sm:$0xff] %v10669_v7  ;;  %v2667_v7 = vadd.f32 %v10592_v51, %v10466_v18 }
 0x43f   : > { %v10673_v25 = vpop.f32.mrf.mxu1  ;;  %v10675_v15 = vpop.f32.mrf.mxu0 }
 0x440   : > { %13192 = vst [vmem:[#allocation51_spill] sm:$0xff] %v10675_v15 }
 0x441   : > { %v10678_v19 = vpop.f32.mrf.mxu1  ;;  %v10680_v62 = vpop.f32.mrf.mxu0 }
 0x442   : > { %13193 = vst [vmem:[#allocation56_spill] sm:$0xff] %v10680_v62 }
 0x443   : > { %v10682_v12 = vpop.f32.mrf.mxu1  ;;  %v10684_v13 = vpop.f32.mrf.mxu0 }
 0x444   : > { %13194 = vst [vmem:[#allocation53_spill] sm:$0xff] %v10684_v13  ;;  %v2543_v13 = vadd.f32 %v10556_v14, %v10558_v17  ;;  %v3101_v17 = vld [vmem:[#allocation8] sm:$0x3] }
 0x445   : > { %v10686_v31 = vpop.f32.mrf.mxu1  ;;  %v10688_v40 = vpop.f32.mrf.mxu0  ;;  %v10728_v0 = vrot.slane %v3101_v17, %v13200_v36 }
 0x446   : > { %13195 = vst [vmem:[#allocation54_spill] sm:$0xff] %v10686_v31  ;;  %13196 = vst [vmem:[#allocation60_spill] sm:$0xff] %v10688_v40  ;;  %v2669_v40 = vadd.f32 %v10600_v41, %v10470_v50  ;;  %v2775_v31 = vadd.f32 %v10590_v16, %v2667_v7  ;;  %v2882_v50 = vadd.f32 %v2844_v63, %v2776_v46  ;;  %v13201_v46 = vld [vmem:[#allocation31_spill] sm:$0xff] }
 0x447   : > { %v10692_v29 = vpop.f32.mrf.mxu1  ;;  %v10694_v15 = vpop.f32.mrf.mxu0  ;;  %v2672_v41 = vadd.f32 %v10612_v35, %v10562_v38 }
 0x448   : > { %13197 = vst [vmem:[#allocation61_spill] sm:$0xff] %v10692_v29  ;;  %13198 = vst [vmem:[#allocation62_spill] sm:$0xff] %v10694_v15  ;;  %v2670_v15 = vadd.f32 %v10604_v59, %v2543_v13  ;;  %v2881_v29 = vadd.f32 %v2842_v9, %v2775_v31  ;;  %v2777_v16 = vadd.f32 %v10598_v11, %v2669_v40 }
 0x449   : > { %v10698_v20 = vpop.f32.mrf.mxu1  ;;  %v10700_v62 = vpop.f32.mrf.mxu0  ;;  %v2673_v40 = vadd.f32 %v10616_v8, %v10566_v23  ;;  %v2779_v11 = vadd.f32 %v10606_v44, %v2671_v37 }
 0x44a   : > { %13199 = vst [vmem:[#allocation63_spill] sm:$0xff] %v10700_v62  ;;  %v2883_v13 = vadd.f32 %v2846_v52, %v2777_v16  ;;  %v2778_v21 = vadd.f32 %v10602_v4, %v2670_v15  ;;  %v2983_v31 = vadd.f32 %v2944_v39, %v2881_v29  ;;  %v2984_v52 = vadd.f32 %v2946_v3, %v2882_v50 }
 0x44b   : > { %v10707_v18 = vpop.f32.mrf.mxu1  ;;  %v10709_v51 = vpop.f32.mrf.mxu0  ;;  %v10738_v4 = vrot.slane %v3101_v17, %v13201_v46  ;;  %v2674_v29 = vadd.f32 %v10620_v22, %v2553_v2  ;;  %v2885_v15 = vadd.f32 %v2852_v49, %v2779_v11  ;;  %v2780_v39 = vadd.f32 %v10610_v28, %v2672_v41 }
 0x44c   : > { %v2884_v9 = vadd.f32 %v2848_v32, %v2778_v21  ;;  %v2985_v44 = vadd.f32 %v10657_v27, %v2883_v13  ;;  %v2675_v32 = vadd.f32 %v10624_v10, %v10570_v45  ;;  %v2781_v37 = vadd.f32 %v10614_v26, %v2673_v40 }
 0x44d   : > { %v10715_v62 = vpop.f32.mrf.mxu1  ;;  %v10717_v14 = vpop.f32.mrf.mxu0  ;;  %v2886_v3 = vadd.f32 %v2854_v57, %v2780_v39  ;;  %v2676_v27 = vadd.f32 %v10628_v55, %v10572_v60  ;;  %v2782_v41 = vadd.f32 %v10618_v54, %v2674_v29  ;;  %v2987_v45 = vadd.f32 %v10661_v5, %v2885_v15 }
 0x44e   : > { %v2986_v28 = vadd.f32 %v10659_v43, %v2884_v9  ;;  %v2887_v26 = vadd.f32 %v10667_v42, %v2781_v37  ;;  %v2677_v60 = vadd.f32 %v10632_v24, %v10576_v56  ;;  %v2783_v54 = vadd.f32 %v10622_v34, %v2675_v32 }
 0x44f   : > { %v10722_v7 = vpop.f32.mrf.mxu1  ;;  %v10724_v59 = vpop.f32.mrf.mxu0  ;;  %v2988_v5 = vadd.f32 %v10663_v48, %v2886_v3  ;;  %v2888_v42 = vadd.f32 %v10673_v25, %v2782_v41  ;;  %v2784_v56 = vadd.f32 %v10626_v6, %v2676_v27  ;;  %v13205_v3 = vld [vmem:[#allocation35_spill] sm:$0xff] }
 0x450   : > { %v2989_v48 = vadd.f32 %v10665_v1, %v2887_v26  ;;  %v13206_v1 = vld [vmem:[#allocation58_spill] sm:$0xff]  ;;  %v13210_v26 = vld [vmem:[#allocation41_spill] sm:$0xff] }
 0x451   : > { %v3046_v38 = vpop.f32.mrf.mxu1  ;;  %v10735_v35 = vpop.f32.mrf.mxu0  ;;  %v2890_v15 = vadd.f32 %v10682_v12, %v2784_v56  ;;  %v2680_v37 = vadd.f32 %v13206_v1, %v13205_v3  ;;  %v13208_v12 = vld [vmem:[#allocation51_spill] sm:$0xff] }
 0x452   : > { %v3085_v63 = vadd.f32 %v3046_v38, %v2983_v31  ;;  %v2563_v31 = vadd.f32 %v10574_v33, %v10578_v47  ;;  %v2889_v33 = vadd.f32 %v10678_v19, %v2783_v54  ;;  %v13214_v54 = vld [vmem:[#allocation45_spill] sm:$0xff] }
 0x453   : > { %v3048_v61 = vpop.f32.mrf.mxu1  ;;  %v10742_v53 = vpop.f32.mrf.mxu0 }
 0x454   : > { %v3086_v23 = vadd.f32 %v3048_v61, %v2984_v52  ;;  %v3113_v8 = vadd.f32 %v10728_v0, %v3085_v63  ;;  %v2678_v9 = vadd.f32 %v10636_v30, %v2563_v31  ;;  %v13202_v52 = vld [vmem:[#allocation39_spill] sm:$0xff]  ;;  %v13203_v30 = vld [vmem:[#allocation46_spill] sm:$0xff] }
 0x455   : > { %v3050_v17 = vpop.f32.mrf.mxu1  ;;  %v10749_v50 = vpop.f32.mrf.mxu0  ;;  %v2679_v29 = vadd.f32 %v13202_v52, %v10580_v58  ;;  %v2785_v39 = vadd.f32 %v13203_v30, %v2677_v60  ;;  %v13213_v31 = vld [vmem:[#allocation59_spill] sm:$0xff] }
 0x456   : > { %v3087_v49 = vadd.f32 %v3050_v17, %v2985_v44  ;;  %v3129_v22 = vmax.f32 %v3113_v8, 0.0  ;;  %v3114_v16 = vadd.f32 %v10738_v4, %v3086_v23  ;;  %v13204_v8 = vld [vmem:[#allocation42_spill] sm:$0xff]  ;;  %v13207_v17 = vld [vmem:[#allocation40_spill] sm:$0xff] }
 0x457   : > { %v3052_v13 = vpop.f32.mrf.mxu1  ;;  %v10756_v21 = vpop.f32.mrf.mxu0  ;;  %v2990_v32 = vadd.f32 %v13204_v8, %v2888_v42  ;;  %v13220_v8 = vld [vmem:[#allocation55_spill] sm:$0xff] }
 0x458   : > { %v3115_v10 = vadd.f32 %v10728_v0, %v3087_v49  ;;  %v3088_v57 = vadd.f32 %v3052_v13, %v2986_v28  ;;  %3145 = vxpose.xlu1.b32.start [1/8] (short) %v3129_v22, 128  ;;  %v3130_v43 = vmax.f32 %v3114_v16, 0.0  ;;  %v2786_v49 = vadd.f32 %v13207_v17, %v2678_v9  ;;  %v13209_v16 = vld [vmem:[#allocation54_spill] sm:$0xff] }
 0x459   : > { %v3056_v55 = vpop.f32.mrf.mxu1  ;;  %v10766_v2 = vpop.f32.mrf.mxu0  ;;  %v2991_v22 = vadd.f32 %v13208_v12, %v2889_v33  ;;  %v2891_v27 = vadd.f32 %v13209_v16, %v2785_v39  ;;  %v13222_v12 = vld [vmem:[#allocation43_spill] sm:$0xff] }
 0x45a   : > { %v3131_v40 = vmax.f32 %v3115_v10, 0.0  ;;  %v3116_v11 = vadd.f32 %v10738_v4, %v3088_v57  ;;  %v3089_v38 = vadd.f32 %v3056_v55, %v2987_v45  ;;  %3177 = vxpose.xlu0.b32.start [1/8] (short) (narrow) %v3130_v43, 64  ;;  %v13211_v10 = vld [vmem:[#allocation32_spill] sm:$0xff]  ;;  %v2787_v55 = vadd.f32 %v13214_v54, %v2679_v29 }
 0x45b   : > { %v3058_v47 = vpop.f32.mrf.mxu1  ;;  %v10774_v34 = vpop.f32.mrf.mxu0  ;;  %v2573_v57 = vadd.f32 %v13211_v10, %v13210_v26  ;;  %v13212_v43 = vld [vmem:[#allocation44_spill] sm:$0xff] }
 0x45c   : > { %v3117_v24 = vadd.f32 %v10728_v0, %v3089_v38  ;;  %v3090_v63 = vadd.f32 %v3058_v47, %v2988_v5  ;;  %3146 = vxpose.xlu1.b32.cont [2/8] (short) %v3131_v40, 128  ;;  %v3132_v25 = vmax.f32 %v3116_v11, 0.0  ;;  %v2681_v60 = vadd.f32 %v13213_v31, %v13212_v43  ;;  %v13215_v40 = vld [vmem:[#allocation56_spill] sm:$0xff]  ;;  %v13216_v38 = vld [vmem:[#allocation61_spill] sm:$0xff]  ;;  %v13224_v31 = vld [vmem:[#allocation63_spill] sm:$0xff] }
 0x45d   : > { %v3060_v19 = vpop.f32.mrf.mxu1  ;;  %v10782_v61 = vpop.f32.mrf.mxu0  ;;  %v2992_v11 = vadd.f32 %v13215_v40, %v2890_v15  ;;  %v2892_v9 = vadd.f32 %v13216_v38, %v2786_v49  ;;  %v13219_v15 = vld [vmem:[#allocation53_spill] sm:$0xff]  ;;  %v13221_v49 = vld [vmem:[#allocation60_spill] sm:$0xff] }
 0x45e   : > { %v3133_v6 = vmax.f32 %v3117_v24, 0.0  ;;  %v3118_v23 = vadd.f32 %v10738_v4, %v3090_v63  ;;  %v3091_v44 = vadd.f32 %v3060_v19, %v2989_v48  ;;  %3178 = vxpose.xlu0.b32.cont [2/8] (short) (narrow) %v3132_v25, 64  ;;  %v13217_v24 = vld [vmem:[#allocation52_spill] sm:$0xff]  ;;  %v2893_v48 = vadd.f32 %v10698_v20, %v2787_v55  ;;  %v13218_v25 = vld [vmem:[#allocation38_spill] sm:$0xff] }
 0x45f   : > { %v3062_v58 = vpop.f32.mrf.mxu1  ;;  %v10789_v28 = vpop.f32.mrf.mxu0  ;;  %v2682_v63 = vadd.f32 %v13217_v24, %v2573_v57  ;;  %v2788_v52 = vadd.f32 %v13218_v25, %v2680_v37 }
 0x460   : > { %v3134_v41 = vmax.f32 %v3118_v23, 0.0  ;;  %v3119_v13 = vadd.f32 %v10728_v0, %v3091_v44  ;;  %v3092_v45 = vadd.f32 %v3062_v58, %v2990_v32  ;;  %3147 = vxpose.xlu1.b32.cont [3/8] (short) %v3133_v6, 128  ;;  %v2993_v6 = vadd.f32 %v13219_v15, %v2891_v27  ;;  %v13223_v27 = vld [vmem:[#allocation62_spill] sm:$0xff] }
 0x461   : > { %v3066_v5 = vpop.f32.mrf.mxu1  ;;  %v10799_v42 = vpop.f32.mrf.mxu0  ;;  %v2894_v44 = vadd.f32 %v10707_v18, %v2788_v52  ;;  %v2789_v32 = vadd.f32 %v13220_v8, %v2681_v60  ;;  %v2994_v58 = vadd.f32 %v13221_v49, %v2892_v9  ;;  %v10844_v8 = vld [vmem:[#allocation2] sm:$0xf] }
 0x462   : > { %v3135_v33 = vmax.f32 %v3119_v13, 0.0  ;;  %v3120_v56 = vadd.f32 %v10738_v4, %v3092_v45  ;;  %v3093_v47 = vadd.f32 %v3066_v5, %v2991_v22  ;;  %3179 = vxpose.xlu0.b32.cont [3/8] (short) (narrow) %v3134_v41, 64  ;;  %v2790_v22 = vadd.f32 %v13222_v12, %v2682_v63 }
 0x463   : > { %v3068_v30 = vpop.f32.mrf.mxu1  ;;  %v10807_v29 = vpop.f32.mrf.mxu0  ;;  %v2995_v13 = vadd.f32 %v13223_v27, %v2893_v48  ;;  %v2895_v18 = vadd.f32 %v10715_v62, %v2789_v32  ;;  %v2996_v60 = vadd.f32 %v13224_v31, %v2894_v44  ;;  %v3917_v49 = vshll.u32 %v10844_v8, 16  ;;  %v10866_v27 = vld [vmem:[#allocation2 + $0x24] sm:$0xf] }
 0x464   : > { %v3121_v39 = vadd.f32 %v10728_v0, %v3093_v47  ;;  %v3094_v19 = vadd.f32 %v3068_v30, %v2992_v11  ;;  %3148 = vxpose.xlu1.b32.cont [4/8] (short) %v3135_v33, 128  ;;  %v3136_v23 = vmax.f32 %v3120_v56, 0.0  ;;  %v2896_v54 = vadd.f32 %v10722_v7, %v2790_v22 }
 0x465   : > { %v3070_v3 = vpop.f32.mrf.mxu1  ;;  %v10813_v1 = vpop.f32.mrf.mxu0  ;;  %v2997_v33 = vadd.f32 %v10709_v51, %v2895_v18  ;;  %v10870_v18 = vld [vmem:[#allocation2 + $0x3c] sm:$0xf] }
 0x466   : > { %v3137_v20 = vmax.f32 %v3121_v39, 0.0  ;;  %v3122_v37 = vadd.f32 %v10738_v4, %v3094_v19  ;;  %v3095_v17 = vadd.f32 %v3070_v3, %v2993_v6  ;;  %3180 = vxpose.xlu0.b32.cont [4/8] (short) (narrow) %v3136_v23, 64  ;;  %v2998_v25 = vadd.f32 %v10717_v14, %v2896_v54  ;;  %v10850_v3 = vld [vmem:[#allocation2 + $0xc] sm:$0xf]  ;;  %v10880_v54 = vld [vmem:[#allocation2 + $0x48] sm:$0xf] }
 0x467   : > { %v3072_v16 = vpop.f32.mrf.mxu1  ;;  %v10818_v41 = vpop.f32.mrf.mxu0  ;;  %v3935_v12 = vshll.u32 %v10850_v3, 16  ;;  %v13230_v46 = vshrl.u32 %v10870_v18, 16 }
 0x468   : > { %v3138_v45 = vmax.f32 %v3122_v37, 0.0  ;;  %v3123_v26 = vadd.f32 %v10728_v0, %v3095_v17  ;;  %v3096_v10 = vadd.f32 %v3072_v16, %v2994_v58  ;;  %3149 = vxpose.xlu1.b32.cont [5/8] (short) %v3137_v20, 128  ;;  %v12997_v17 = vshrl.u32 %v10844_v8, 16 }
 0x469   : > { %v3076_v57 = vpop.f32.mrf.mxu1  ;;  %v10823_v43 = vpop.f32.mrf.mxu0  ;;  %v12996_v58 = vshrl.u32 %v10850_v3, 16 }
 0x46a   : > { %v3139_v55 = vmax.f32 %v3123_v26, 0.0  ;;  %v3124_v5 = vadd.f32 %v10738_v4, %v3096_v10  ;;  %v3097_v40 = vadd.f32 %v3076_v57, %v2995_v13  ;;  %3181 = vxpose.xlu0.b32.cont [5/8] (short) (narrow) %v3138_v45, 64  ;;  %v10868_v13 = vld [vmem:[#allocation2 + $0x30] sm:$0xf]  ;;  %v3916_v10 = vrot.slane %v12997_v17, 6 }
 0x46b   : > { %v3078_v11 = vpop.f32.mrf.mxu1  ;;  %v10828_v38 = vpop.f32.mrf.mxu0  ;;  %v3919_v57 = vrot.slane %v3917_v49, 7 }
 0x46c   : > { %v3125_v62 = vadd.f32 %v10728_v0, %v3097_v40  ;;  %v3098_v9 = vadd.f32 %v3078_v11, %v2996_v60  ;;  %3150 = vxpose.xlu1.b32.cont [6/8] (short) %v3139_v55, 128  ;;  %v3140_v56 = vmax.f32 %v3124_v5, 0.0  ;;  %v3934_v55 = vrot.slane %v12996_v58, 6 }
 0x46d   : > { %v3080_v47 = vpop.f32.mrf.mxu1  ;;  %v10832_v24 = vpop.f32.mrf.mxu0  ;;  %v3937_v5 = vrot.slane %v3935_v12, 7  ;;  %v12999_v40 = vshrl.u32 %v10866_v27, 16  ;;  %v3971_v11 = vshll.u32 %v10866_v27, 16 }
 0x46e   : > { %v3141_v63 = vmax.f32 %v3125_v62, 0.0  ;;  %v3126_v7 = vadd.f32 %v10738_v4, %v3098_v9  ;;  %v3099_v48 = vadd.f32 %v3080_v47, %v2997_v33  ;;  %3182 = vxpose.xlu0.b32.cont [6/8] (short) (narrow) %v3140_v56, 64  ;;  %v10886_v62 = vld [vmem:[#allocation2 + $0x54] sm:$0xf]  ;;  %v13000_v56 = vshrl.u32 %v10868_v13, 16 }
 0x46f   : > { %v3082_v52 = vpop.f32.mrf.mxu1  ;;  %v10836_v30 = vpop.f32.mrf.mxu0  ;;  %v3989_v47 = vshll.u32 %v10868_v13, 16  ;;  %v3938_v49 = vor.u32 %v3937_v5, %v3934_v55  ;;  %v3970_v12 = vrot.slane %v12999_v40, 6  ;;  %v3973_v58 = vrot.slane %v3971_v11, 7 }
 0x470   : > { %v3142_v39 = vmax.f32 %v3126_v7, 0.0  ;;  %v3127_v19 = vadd.f32 %v10728_v0, %v3099_v48  ;;  %v3100_v15 = vadd.f32 %v3082_v52, %v2998_v25  ;;  %3151 = vxpose.xlu1.b32.cont [7/8] (short) %v3141_v63, 128  ;;  %v4007_v7 = vshll.u32 %v10870_v18, 16 }
 0x471   : > { %v10839_v51 = vpop.f32.mrf.mxu1  ;;  %v10841_v6 = vpop.f32.mrf.mxu0  ;;  %v4025_v25 = vshll.u32 %v10880_v54, 16  ;;  %v3988_v48 = vrot.slane %v13000_v56, 6  ;;  %v3991_v63 = vrot.slane %v3989_v47, 7  ;;  %v13232_v40 = vshrl.u32 %v10886_v62, 16 }
 0x472   : > { %v3143_v23 = vmax.f32 %v3127_v19, 0.0  ;;  %v3128_v44 = vadd.f32 %v10738_v4, %v3100_v15  ;;  %3183 = vxpose.xlu0.b32.cont [7/8] (short) (narrow) %v3142_v39, 64  ;;  %v10858_v4 = vld [vmem:[#allocation2 + $0x18] sm:$0xf]  ;;  %v13241_v56 = vshrl.u32 %v10886_v62, 16 }
 0x473   : > { %v10846_v32 = vpop.f32.mrf.mxu1  ;;  %v10848_v14 = vpop.f32.mrf.mxu0  ;;  %v12998_v31 = vshrl.u32 %v10858_v4, 16  ;;  %v3953_v60 = vshll.u32 %v10858_v4, 16 }
 0x474   : > { %3152 = vxpose.xlu1.b32.end [8/8] (short) %v3143_v23, 128  ;;  %v3144_v0 = vmax.f32 %v3128_v44, 0.0  ;;  %v4043_v44 = vshll.u32 %v10886_v62, 16  ;;  %v13231_v23 = vshrl.u32 %v10880_v54, 16 }
 0x475   : > { %v10852_v20 = vpop.f32.mrf.mxu1  ;;  %v10854_v37 = vpop.f32.mrf.mxu0  ;;  %v3952_v19 = vrot.slane %v12998_v31, 6  ;;  %v3955_v15 = vrot.slane %v3953_v60, 7  ;;  %v4006_v31 = vrot.slane %v13230_v46, 6  ;;  %v4009_v60 = vrot.slane %v4007_v7, 7 }
 0x476   : > { %3184 = vxpose.xlu0.b32.end [8/8] (short) (narrow) %v3144_v0, 64  ;;  %v3920_v0 = vor.u32 %v3919_v57, %v3916_v10  ;;  %v4024_v10 = vrot.slane %v13231_v23, 6  ;;  %v4027_v57 = vrot.slane %v4025_v25, 7  ;;  %v3974_v7 = vor.u32 %v3973_v58, %v3970_v12 }
 0x477   : > { %v10862_v22 = vpop.f32.mrf.mxu1  ;;  %v10864_v16 = vpop.f32.mrf.mxu0  ;;  %v3956_v11 = vor.u32 %v3955_v15, %v3952_v19  ;;  %v10926_v23 = vrot.slane %v3938_v49, 4  ;;  %v3992_v25 = vor.u32 %v3991_v63, %v3988_v48  ;;  %v3402_v19 = vadd.f32 %v10789_v28, %v10724_v59 }
 0x478   : > { %13225 = vst [vmem:[#allocation39_spill] sm:$0xff] %v10864_v16  ;;  %v4010_v16 = vor.u32 %v4009_v60, %v4006_v31  ;;  %v4028_v47 = vor.u32 %v4027_v57, %v4024_v10  ;;  %v3394_v31 = vadd.f32 %v10799_v42, %v10735_v35  ;;  %v10941_v28 = vrot.slane %v3974_v7, 4 }
 0x479   : > { %v10872_v45 = vpop.f32.mrf.mxu1  ;;  %v10874_v26 = vpop.f32.mrf.mxu0  ;;  %v10934_v46 = vrot.slane %v3956_v11, 4  ;;  %v3506_v59 = vadd.f32 %v10839_v51, %v3402_v19  ;;  %v13233_v63 = vshrl.u32 %v10844_v8, 16  ;;  %v13234_v60 = vshrl.u32 %v10850_v3, 16 }
 0x47a   : > { %13226 = vst [vmem:[#allocation46_spill] sm:$0xff] %v10874_v26  ;;  %v10951_v57 = vrot.slane %v3992_v25, 4  ;;  %v10953_v11 = vrot.slane %v4010_v16, 4  ;;  %v3405_v42 = vadd.f32 %v10807_v29, %v10742_v53  ;;  %v3504_v51 = vadd.f32 %v10846_v32, %v3394_v31  ;;  %v10970_v25 = vld [vmem:[#allocation2 + $0x8] sm:$0xf] }
 0x47b   : > { %v10888_v9 = vpop.f32.mrf.mxu1  ;;  %v10890_v33 = vpop.f32.mrf.mxu0  ;;  %v10945_v48 = vrot.slane %v13233_v63, 11  ;;  %v10949_v10 = vrot.slane %v13234_v60, 11  ;;  %v10964_v7 = vrot.slane %v4028_v47, 4  ;;  %v13236_v19 = vshrl.u32 %v10866_v27, 16  ;;  %v10982_v32 = vld [vmem:[#allocation2 + $0x14] sm:$0xf] }
 0x47c   : > { %13227 = vst [vmem:[#allocation42_spill] sm:$0xff] %v10890_v33  ;;  %v4045_v33 = vrot.slane %v4043_v44, 7  ;;  %v13238_v53 = vshrl.u32 %v10870_v18, 16  ;;  %v3397_v31 = vadd.f32 %v10813_v1, %v10749_v50  ;;  %v10998_v47 = vrot.slane %v13241_v56, 11 }
 0x47d   : > { %v10898_v52 = vpop.f32.mrf.mxu1  ;;  %v10900_v39 = vpop.f32.mrf.mxu0  ;;  %v10968_v63 = vrot.slane %v13236_v19, 11  ;;  %v3507_v19 = vadd.f32 %v10852_v20, %v3405_v42  ;;  %v13242_v50 = vshll.u32 %v10970_v25, 16 }
 0x47e   : > { %13228 = vst [vmem:[#allocation35_spill] sm:$0xff] %v10900_v39  ;;  %v4042_v39 = vrot.slane %v13232_v40, 6  ;;  %v10980_v29 = vrot.slane %v13238_v53, 11  ;;  %v13239_v53 = vshrl.u32 %v10880_v54, 16 }
 0x47f   : > { %v10908_v17 = vpop.f32.mrf.mxu1  ;;  %v10914_v36 = vpop.f32.mrf.mxu0  ;;  %v11002_v1 = vrot.slane %v13242_v50, 5  ;;  %v11041_v50 = vld [vmem:[#allocation11] ss:$0 sm:$0xff] }
 0x480   : > { %13229 = vst [vmem:[#allocation58_spill] sm:$0xff] %v10908_v17  ;;  %v10924_v17 = vrot.slane %v3920_v0, 4  ;;  %v4046_v49 = vor.u32 %v4045_v33, %v4042_v39  ;;  %v13235_v33 = vshrl.u32 %v10858_v4, 16  ;;  %v13001_v0 = vshll.u32 %v10982_v32, 16 }
 0x481   : > { %v8541_v55 = vpop.f32.mrf.mxu1  ;;  %v10930_v15 = vpop.f32.mrf.mxu0  ;;  %v10994_v58 = vrot.slane %v13239_v53, 11  ;;  %13243 = vst [vmem:[#allocation51_spill] sm:$0xff] %v11002_v1  ;;  %v11015_v1 = vld [vmem:[#allocation2 + $0x20] sm:$0xf] }
 0x482   : > { %v10957_v35 = vrot.slane %v13235_v33, 11  ;;  %v10972_v60 = vrot.slane %v4046_v49, 4  ;;  %v13237_v33 = vshrl.u32 %v10868_v13, 16  ;;  %v3594_v49 = vadd.f32 %v10836_v30, %v3506_v59  ;;  %13245 = vst [vmem:[#allocation41_spill] sm:$0xff] %v11015_v1 }
 0x483   : > { %v3647_v26 = vpop.f32.mrf.mxu1  ;;  %v10962_v39 = vpop.f32.mrf.mxu0  ;;  %13240 = vst [vmem:[#allocation40_spill] sm:$0xff] %v10994_v58  ;;  %v3505_v30 = vadd.f32 %v10862_v22, %v3397_v31  ;;  %v3592_v59 = vadd.f32 %v10841_v6, %v3504_v51  ;;  %v11017_v22 = vld [vmem:[#allocation2 + $0x2c] sm:$0xf]  ;;  %v13002_v31 = vshll.u32 %v11015_v1, 16 }
 0x484   : > { %v10976_v44 = vrot.slane %v13237_v33, 11  ;;  %v3418_v33 = vadd.f32 %v10818_v41, %v10756_v21  ;;  %v3680_v20 = vadd.f32 %v8541_v55, %v3594_v49  ;;  %v11008_v21 = vrot.slane %v13001_v0, 5 }
 0x485   : > { %v8542_v5 = vpop.f32.mrf.mxu1  ;;  %v3732_v42 = vpop.f32.mrf.mxu0  ;;  %v3410_v41 = vadd.f32 %v10823_v43, %v10766_v2  ;;  %v3678_v6 = vadd.f32 %v3647_v26, %v3592_v59  ;;  %v3595_v55 = vadd.f32 %v10848_v14, %v3507_v19  ;;  %v11022_v2 = vld [vmem:[#allocation2 + $0x38] sm:$0xf]  ;;  %v11024_v43 = vld [vmem:[#allocation2 + $0x44] sm:$0xf]  ;;  %v3593_v19 = vadd.f32 %v10854_v37, %v3505_v30 }
 0x486   : > { %13244 = vst [vmem:[#allocation54_spill] sm:$0xff] %v11008_v21  ;;  %v3510_v56 = vadd.f32 %v10872_v45, %v3418_v33  ;;  %v3421_v45 = vadd.f32 %v10828_v38, %v10774_v34  ;;  %v3762_v59 = vadd.f32 %v10914_v36, %v3680_v20  ;;  %v11035_v0 = vrot.slane %v13002_v31, 5  ;;  %v13247_v38 = vld [vmem:[#allocation39_spill] sm:$0xff] }
 0x487   : > { %v3650_v12 = vpop.f32.mrf.mxu1  ;;  %v8555_v51 = vpop.f32.mrf.mxu0  ;;  %v3508_v33 = vadd.f32 %v10888_v9, %v3410_v41  ;;  %v3681_v14 = vadd.f32 %v8542_v5, %v3595_v55  ;;  %v3413_v49 = vadd.f32 %v10832_v24, %v10782_v61  ;;  %v13248_v5 = vshll.u32 %v11017_v22, 16  ;;  %v13250_v26 = vld [vmem:[#allocation58_spill] sm:$0xff] }
 0x488   : > { %13246 = vst [vmem:[#allocation32_spill] sm:$0xff] %v11035_v0  ;;  %v3511_v34 = vadd.f32 %v10898_v52, %v3421_v45  ;;  %v3598_v9 = vadd.f32 %v13247_v38, %v3510_v56  ;;  %v3679_v37 = vadd.f32 %v3650_v12, %v3593_v19  ;;  %v3760_v20 = vadd.f32 %v10930_v15, %v3678_v6  ;;  %v13251_v52 = vld [vmem:[#allocation46_spill] sm:$0xff] }
 0x489   : > { %v8545_v16 = vpop.f32.mrf.mxu1  ;;  %v11045_v55 = vrot.slane %v13248_v5, 5  ;;  %v3745_v36 = vpop.f32.mrf.mxu0  ;;  %v3509_v61 = vadd.f32 %v13250_v26, %v3413_v49  ;;  %v3596_v45 = vadd.f32 %v13251_v52, %v3508_v33  ;;  %v3763_v5 = vadd.f32 %v10962_v39, %v3681_v14  ;;  %v13254_v6 = vld [vmem:[#allocation42_spill] sm:$0xff] }
 0x48a   : > { %v3684_v24 = vadd.f32 %v8545_v16, %v3598_v9  ;;  %v13252_v12 = vshll.u32 %v11022_v2, 16  ;;  %v13255_v16 = vshll.u32 %v11024_v43, 16  ;;  %v3761_v39 = vadd.f32 %v3732_v42, %v3679_v37 }
 0x48b   : > { %v3663_v40 = vpop.f32.mrf.mxu1  ;;  %13249 = vst [vmem:[#allocation44_spill] sm:$0xff] %v11045_v55  ;;  %v8556_v26 = vpop.f32.mrf.mxu0 }
 0x48c   : > { %v11056_v19 = vrot.slane %v13252_v12, 5  ;;  %v3682_v15 = vadd.f32 %v3663_v40, %v3596_v45  ;;  %v11061_v49 = vrot.slane %v13255_v16, 5  ;;  %v3766_v14 = vadd.f32 %v8555_v51, %v3684_v24  ;;  %v11072_v24 = vld [vmem:[#allocation2 + $0x50] sm:$0xf] }
 0x48d   : > { %v8546_v53 = vpop.f32.mrf.mxu1  ;;  %v3748_v42 = vpop.f32.mrf.mxu0  ;;  %13258 = vst [vmem:[#allocation56_spill] sm:$0xff] %v11072_v24 }
 0x48e   : > { %13253 = vst [vmem:[#allocation59_spill] sm:$0xff] %v11056_v19  ;;  %13256 = vst [vmem:[#allocation45_spill] sm:$0xff] %v11061_v49  ;;  %v3764_v31 = vadd.f32 %v3745_v36, %v3682_v15  ;;  %v13003_v36 = vshll.u32 %v11072_v24, 16  ;;  %v13260_v15 = vshll.u32 %v10970_v25, 16  ;;  %v13284_v49 = vshrl.u32 %v11017_v22, 16 }
 0x48f   : > { %v3666_v58 = vpop.f32.mrf.mxu1 }
 0x490   : > { %v11302_v55 = vrot.slane %v13284_v49, 5 }
 0x491   : > { %v8561_v41 = vpop.f32.mrf.mxu1 }
 0x492   : > { %v3844_v30 = vadd.f32 %v8561_v41, %v3762_v59  ;;  %v3599_v59 = vadd.f32 %v13254_v6, %v3511_v34  ;;  %v4880_v34 = vshrl.u32 %v10970_v25, 16 }
 0x493   : > { %v3811_v56 = vpop.f32.mrf.mxu1 }
 0x494   : > { %v3859_v0 = vadd.f32 %v11041_v50, %v3844_v30  ;;  %v3842_v21 = vadd.f32 %v3811_v56, %v3760_v20  ;;  %v3685_v52 = vadd.f32 %v8546_v53, %v3599_v59  ;;  %v13257_v56 = vld [vmem:[#allocation35_spill] sm:$0xff] }
 0x495   : > { %v8562_v41 = vpop.f32.mrf.mxu1  ;;  %v3597_v12 = vadd.f32 %v13257_v56, %v3509_v61  ;;  %v13263_v56 = vshll.u32 %v10982_v32, 16 }
 0x496   : > { %v3867_v9 = vmax.f32 %v3859_v0, 0.0  ;;  %v3857_v30 = vadd.f32 %v11041_v50, %v3842_v21  ;;  %v3845_v20 = vadd.f32 %v8562_v41, %v3763_v5  ;;  %v4890_v21 = vshrl.u32 %v10982_v32, 16 }
 0x497   : > { %v3814_v40 = vpop.f32.mrf.mxu1  ;;  %v3683_v33 = vadd.f32 %v3666_v58, %v3597_v12  ;;  %v3767_v5 = vadd.f32 %v8556_v26, %v3685_v52  ;;  %v11075_v58 = vrot.slane %v4880_v34, 5  ;;  %v11079_v41 = vrot.slane %v13260_v15, 6 }
 0x498   : > { %v3875_v45 = vpack.c.bf16 %v3867_v9, %v3867_v9  ;;  %v3865_v6 = vmax.f32 %v3857_v30, 0.0  ;;  %v3860_v16 = vadd.f32 %v11041_v50, %v3845_v20  ;;  %v3843_v38 = vadd.f32 %v3814_v40, %v3761_v39 }
 0x499   : > { %v8565_v19 = vpop.f32.mrf.mxu1  ;;  %13259 = vst [vmem:[#allocation61_spill] sm:$0xff] %v11075_v58  ;;  %13261 = vst [vmem:[#allocation52_spill] sm:$0xff] %v11079_v41  ;;  %v3765_v39 = vadd.f32 %v3748_v42, %v3683_v33  ;;  %v11086_v52 = vrot.slane %v4890_v21, 5  ;;  %v11090_v12 = vrot.slane %v13263_v56, 6  ;;  %v11096_v33 = vrot.slane %v13003_v36, 5 }
 0x49a   : > { %3883 = vst.msk [vmem:[#allocation2 + $0x1c] sm:$0xf] %vm711_vm1, %v3875_v45  ;;  %v3873_v53 = vpack.c.bf16 %v3865_v6, %v3865_v6  ;;  %v3868_v51 = vmax.f32 %v3860_v16, 0.0  ;;  %v3858_v37 = vadd.f32 %v11041_v50, %v3843_v38  ;;  %v3848_v61 = vadd.f32 %v8565_v19, %v3766_v14  ;;  %v11083_v19 = vld [vmem:[#allocation2 + $0x5c] sm:$0xf] }
 0x49b   : > { %v3827_v59 = vpop.f32.mrf.mxu1  ;;  %v13004_v14 = vshll.u32 %v11083_v19, 16  ;;  %13262 = vst [vmem:[#allocation38_spill] sm:$0xff] %v11086_v52  ;;  %13264 = vst [vmem:[#allocation53_spill] sm:$0xff] %v11090_v12  ;;  %v4900_v42 = vshrl.u32 %v11015_v1, 16  ;;  %v11198_v12 = vld [vmem:[#allocation12 + $0x20] sm:$0xff]  }
 0x49c   : > { %3881 = vst.msk [vmem:[#allocation2 + $0x4] sm:$0xf] %vm711_vm1, %v3873_v53  ;;  %v3876_v9 = vpack.c.bf16 %v3868_v51, %v3868_v51  ;;  %v3866_v30 = vmax.f32 %v3858_v37, 0.0  ;;  %v3863_v20 = vadd.f32 %v11041_v50, %v3848_v61  ;;  %v3846_v38 = vadd.f32 %v3827_v59, %v3764_v31  ;;  %13265 = vst [vmem:[#allocation55_spill] sm:$0xff] %v11096_v33 }
 0x49d   : > { %v8566_v26 = vpop.f32.mrf.mxu1  ;;  %v11100_v16 = vrot.slane %v13004_v14, 5 }
 0x49e   : > { %3884 = vst.msk [vmem:[#allocation2 + $0x28] sm:$0xf] %vm711_vm1, %v3876_v9  ;;  %v3874_v40 = vpack.c.bf16 %v3866_v30, %v3866_v30  ;;  %v3871_v34 = vmax.f32 %v3863_v20, 0.0  ;;  %v3861_v45 = vadd.f32 %v11041_v50, %v3846_v38  ;;  %v3849_v6 = vadd.f32 %v8566_v26, %v3767_v5 }
 0x49f   : > { %v3830_v31 = vpop.f32.mrf.mxu1  ;;  %13266 = vst [vmem:[#allocation60_spill] sm:$0xff] %v11100_v16  ;;  %v13267_v30 = vshll.u32 %v11015_v1, 16  ;;  %v13279_v1 = vrot.slane %v10868_v13, 11 }
 0x4a0   : > { %3882 = vst.msk [vmem:[#allocation2 + $0x10] sm:$0xf] %vm711_vm1, %v3874_v40  ;;  %v3879_v53 = vpack.c.bf16 %v3871_v34, %v3871_v34  ;;  %v3869_v51 = vmax.f32 %v3861_v45, 0.0  ;;  %v3864_v37 = vadd.f32 %v11041_v50, %v3849_v6  ;;  %v3847_v61 = vadd.f32 %v3830_v31, %v3765_v39 }
 0x4a1   : > { %v11107_v5 = vld [vmem:[#allocation2 + $0x1c] sm:$0xf]  ;;  %v11115_v20 = vrot.slane %v13267_v30, 6  ;;  %v11128_v6 = vrot.slane %v4900_v42, 5 }
 0x4a2   : > { %3887 = vst.msk [vmem:[#allocation2 + $0x4c] sm:$0xf] %vm711_vm1, %v3879_v53  ;;  %v3877_v38 = vpack.c.bf16 %v3869_v51, %v3869_v51  ;;  %v3872_v26 = vmax.f32 %v3864_v37, 0.0  ;;  %v3862_v56 = vadd.f32 %v11041_v50, %v3847_v61  ;;  %v4085_v39 = vrot.slane %v11107_v5, 7 }
 0x4a3   : > { %13268 = vst [vmem:[#allocation43_spill] sm:$0xff] %v11115_v20  ;;  %v11120_v40 = vld [vmem:[#allocation2 + $0x4] sm:$0xf]  ;;  %v11123_v34 = vshrl.u32 %v11107_v5, 16  ;;  %v11126_v45 = vshll.u32 %v11107_v5, 16  ;;  %13269 = vst [vmem:[#allocation62_spill] sm:$0xff] %v11128_v6 }
 0x4a4   : > { %3885 = vst.msk [vmem:[#allocation2 + $0x34] sm:$0xf] %vm711_vm1, %v3877_v38  ;;  %v3880_v53 = vpack.c.bf16 %v3872_v26, %v3872_v26  ;;  %v3870_v51 = vmax.f32 %v3862_v56, 0.0  ;;  %v4077_v50 = vrot.slane %v11120_v40, 7  ;;  %v13270_v37 = vshll.u32 %v11017_v22, 16 }
 0x4a5   : > { %v11137_v30 = vld [vmem:[#allocation2 + $0x28] sm:$0xf]  ;;  %v11140_v36 = vshrl.u32 %v11120_v40, 16  ;;  %v11143_v42 = vshll.u32 %v11120_v40, 16  ;;  %v3961_v15 = vrot.slane %v11123_v34, 6  ;;  %v3964_v38 = vrot.slane %v11126_v45, 7 }
 0x4a6   : > { %v11135_v61 = vrot.slane %v13270_v37, 6  ;;  %3888 = vst.msk [vmem:[#allocation2 + $0x58] sm:$0xf] %vm711_vm1, %v3880_v53  ;;  %v3878_v26 = vpack.c.bf16 %v3870_v51, %v3870_v51  ;;  %v13271_v56 = vrot.slane %v10858_v4, 11  ;;  %v4089_v9 = vrot.slane %v11137_v30, 7 }
 0x4a7   : > { %v11154_v21 = vshrl.u32 %v11137_v30, 16  ;;  %v11156_v59 = vld [vmem:[#allocation2 + $0x10] sm:$0xf]  ;;  %v3925_v0 = vrot.slane %v11140_v36, 6  ;;  %v3928_v31 = vrot.slane %v11143_v42, 7  ;;  %v3965_v24 = vor.u32 %v3964_v38, %v3961_v15 }
 0x4a8   : > { %v4086_v37 = vsel %vm9870_vm6, %v13271_v56, %v4085_v39  ;;  %v11161_v53 = vshll.u32 %v11137_v30, 16  ;;  %3886 = vst.msk [vmem:[#allocation2 + $0x40] sm:$0xf] %vm711_vm1, %v3878_v26  ;;  %v4081_v4 = vrot.slane %v11156_v59, 7  ;;  %v13273_v39 = vrot.slane %v10866_v27, 11 }
 0x4a9   : > { %v11170_v56 = vshrl.u32 %v11156_v59, 16  ;;  %v11173_v20 = vshll.u32 %v11156_v59, 16  ;;  %v13274_v15 = vrot.slane %v10844_v8, 11  ;;  %v3929_v26 = vor.u32 %v3928_v31, %v3925_v0  ;;  %v11180_v41 = vld [vmem:[#allocation2 + $0x4c] sm:$0xf] }
 0x4aa   : > { %v4090_v51 = vsel %vm9870_vm6, %v13273_v39, %v4089_v9  ;;  %v3979_v58 = vrot.slane %v11154_v21, 6  ;;  %v13275_v27 = vrot.slane %v10850_v3, 11  ;;  %v3982_v8 = vrot.slane %v11161_v53, 7 }
 0x4ab   : > { %v4078_v38 = vsel %vm9870_vm6, %v13274_v15, %v4077_v50  ;;  %v8039_v6 = vcombine.low %v4086_v37, %v4090_v51  ;;  %v3943_v39 = vrot.slane %v11170_v56, 6  ;;  %v3946_v33 = vrot.slane %v11173_v20, 7  ;;  %v11192_v31 = vld [vmem:[#allocation2 + $0x34] sm:$0xf] }
 0x4ac   : > { %v4082_v9 = vsel %vm9870_vm6, %v13275_v27, %v4081_v4  ;;  %v3966_v0 = vsel %vm9898_vm7, %v10934_v46, %v3965_v24  ;;  %v4101_v37 = vrot.slane %v11180_v41, 7  ;;  %v4302_v3 = vrot.slane %v11140_v36, 7 }
 0x4ad   : > { %v8038_v52 = vcombine.low %v4078_v38, %v4082_v9  ;;  %v3947_v51 = vor.u32 %v3946_v33, %v3943_v39  ;;  %v3983_v15 = vor.u32 %v3982_v8, %v3979_v58  ;;  %v4093_v4 = vrot.slane %v11192_v31, 7  ;;  %v11204_v24 = vld [vmem:[#allocation2 + $0x58] sm:$0xf]  ;;  %v13278_v8 = vld [vmem:[#allocation50_spill] sm:$0xff] }
 0x4ae   : > { %v4307_v27 = vrot.slane %v11170_v56, 7  ;;  %v3930_v46 = vsel %vm9898_vm7, %v10924_v17, %v3929_v26  ;;  %v4303_v38 = vor.u32 %v4302_v3, %v11143_v42  ;;  %v11208_v9 = vshrl.u32 %v11192_v31, 16 }
 0x4af   : > { %8569 = vmatprep.mubr.msk.bf16.mxu0 %vm736_vm0, %v8038_v52  ;;  %v11211_v58 = vshll.u32 %v11192_v31, 16  ;;  %v3948_v52 = vsel %vm9898_vm7, %v10926_v23, %v3947_v51  ;;  %v3984_v17 = vsel %vm9898_vm7, %v10941_v28, %v3983_v15  ;;  %v13277_v33 = vrot.slane %v10880_v54, 11 }
 0x4b0   : > { %8570 = vmatmul.mubr.msk.bf16.vlgmr.msra.gmra.mxu0 %vm736_vm0, %v8039_v6  ;;  %v4105_v39 = vrot.slane %v11204_v24, 7  ;;  %v8047_v3 = vcombine.low %v3930_v46, %v3948_v52  ;;  %v8048_v16 = vcombine.low %v3966_v0, %v3984_v17  ;;  %v11226_v6 = vld [vmem:[#allocation2 + $0x40] sm:$0xf]  ;;  %v4094_v23 = vsel %vm9870_vm6, %v13279_v1, %v4093_v4  ;;  %v11241_v46 = vld [vmem:[#allocation12 + $0x28] sm:$0xff]  }
 0x4b1   : > { %v4102_v26 = vsel %vm9870_vm6, %v13277_v33, %v4101_v37  ;;  %8588 = vmatpush3.bf16.msra.mxu0 %v13278_v8  ;;  %v4308_v28 = vor.u32 %v4307_v27, %v11173_v20  ;;  %v4097_v54 = vrot.slane %v11226_v6, 7  ;;  %v13280_v51 = vrot.slane %v10886_v62, 11 }
 0x4b2   : > { %v3997_v15 = vrot.slane %v11208_v9, 6  ;;  %v4000_v0 = vrot.slane %v11211_v58, 7  ;;  %8607 = vmatprep.subr.bf16.mxu0 %v11198_v12  ;;  %8579 = vmatprep.mubr.msk.bf16.mxu1 %vm736_vm0, %v8047_v3  ;;  %v4304_v1 = vsel %vm10072_vm10, %v10945_v48, %v4303_v38  ;;  %v11251_v4 = vshrl.u32 %v11226_v6, 16 }
 0x4b3   : > { %v4106_v37 = vsel %vm9870_vm6, %v13280_v51, %v4105_v39  ;;  %v4309_v62 = vsel %vm10072_vm10, %v10949_v10, %v4308_v28  ;;  %v11254_v27 = vshll.u32 %v11226_v6, 16  ;;  %8580 = vmatmul.mubr.msk.bf16.vlgmr.msra.gmra.mxu1 %vm736_vm0, %v8048_v16  ;;  %v13282_v52 = vrot.slane %v10870_v18, 11  ;;  %v13283_v28 = vld [vmem:[#allocation47_spill] sm:$0xff] }
 0x4b4   : > { %v8041_v33 = vcombine.low %v4102_v26, %v4106_v37  ;;  %v4001_v39 = vor.u32 %v4000_v0, %v3997_v15  ;;  %v11262_v48 = vshrl.u32 %v11180_v41, 16  ;;  %v4015_v10 = vrot.slane %v11251_v4, 6  ;;  %8598 = vmatpush3.bf16.msra.mxu1 %v13283_v28 }
 0x4b5   : > { %v4098_v17 = vsel %vm9870_vm6, %v13282_v52, %v4097_v54  ;;  %v4018_v8 = vrot.slane %v11254_v27, 7  ;;  %v11267_v3 = vshll.u32 %v11180_v41, 16  ;;  %v8064_v16 = vcombine.low %v4304_v1, %v4309_v62  ;;  %8617 = vmatprep.subr.bf16.mxu1 %v11241_v46 }
 0x4b6   : > { %v8040_v38 = vcombine.low %v4094_v23, %v4098_v17  ;;  %v4033_v18 = vrot.slane %v11262_v48, 6  ;;  %v11272_v54 = vshrl.u32 %v11204_v24, 16  ;;  %v11275_v26 = vshll.u32 %v11204_v24, 16 }
 0x4b7   : > { %v4002_v23 = vsel %vm9898_vm7, %v10951_v57, %v4001_v39  ;;  %v4019_v51 = vor.u32 %v4018_v8, %v4015_v10  ;;  %v4036_v37 = vrot.slane %v11267_v3, 7  ;;  %v4312_v15 = vrot.slane %v11123_v34, 7 }
 0x4b8   : > { %8573 = vmatprep.mubr.msk.bf16.mxu0 %vm736_vm0, %v8040_v38  ;;  %v4051_v0 = vrot.slane %v11272_v54, 6  ;;  %v4054_v1 = vrot.slane %v11275_v26, 7  ;;  %v4317_v62 = vrot.slane %v11154_v21, 7  ;;  %v4322_v52 = vrot.slane %v11208_v9, 7 }
 0x4b9   : > { %8574 = vmatmul.mubr.msk.bf16.gmra.mxu0 %vm736_vm0, %v8041_v33  ;;  %v4020_v57 = vsel %vm9898_vm7, %v10953_v11, %v4019_v51  ;;  %v4037_v17 = vor.u32 %v4036_v37, %v4033_v18  ;;  %v4313_v39 = vor.u32 %v4312_v15, %v11126_v45  ;;  %v4327_v38 = vrot.slane %v11251_v4, 7 }
 0x4ba   : > { %8589 = vmatprep.mubr.msk.bf16.mxu0 %vm736_vm0, %v8064_v16  ;;  %v8049_v33 = vcombine.low %v4002_v23, %v4020_v57  ;;  %v4055_v10 = vor.u32 %v4054_v1, %v4051_v0  ;;  %v4318_v8 = vor.u32 %v4317_v62, %v11161_v53  ;;  %v4323_v28 = vor.u32 %v4322_v52, %v11211_v58  ;;  %v11328_v52 = vld [vmem:[#allocation12 + $0x30] sm:$0xff]  }
 0x4bb   : > { %v8073_v14 = vcombine.low %v11120_v40, %v11156_v59  ;;  %v4328_v16 = vor.u32 %v4327_v38, %v11254_v27  ;;  %v4920_v11 = vshrl.u32 %v11022_v2, 16  ;;  %v4038_v18 = vsel %vm9898_vm7, %v10964_v7, %v4037_v17 }
 0x4bc   : > { %8583 = vmatprep.mubr.msk.bf16.mxu1 %vm736_vm0, %v8049_v33  ;;  %v4056_v23 = vsel %vm9898_vm7, %v10972_v60, %v4055_v10  ;;  %v4314_v51 = vsel %vm10072_vm10, %v10957_v35, %v4313_v39  ;;  %v4319_v49 = vsel %vm10072_vm10, %v10968_v63, %v4318_v8  ;;  %v4324_v15 = vsel %vm10072_vm10, %v10976_v44, %v4323_v28 }
 0x4bd   : > { %v8050_v37 = vcombine.low %v4038_v18, %v4056_v23  ;;  %v4329_v7 = vsel %vm10072_vm10, %v10980_v29, %v4328_v16  ;;  %v4332_v0 = vrot.slane %v11262_v48, 7  ;;  %v8065_v60 = vcombine.low %v4314_v51, %v4319_v49 }
 0x4be   : > { %v4337_v1 = vrot.slane %v11272_v54, 7  ;;  %v4552_v35 = vrot.slane %v11140_v36, 4  ;;  %v4553_v62 = vrot.slane %v11143_v42, 5  ;;  %v8066_v63 = vcombine.low %v4324_v15, %v4329_v7 }
 0x4bf   : > { %8584 = vmatmul.mubr.msk.bf16.gmra.mxu1 %vm736_vm0, %v8050_v37  ;;  %v4561_v44 = vrot.slane %v11170_v56, 4  ;;  %v4562_v57 = vrot.slane %v11173_v20, 5  ;;  %v13285_v29 = vshll.u32 %v11022_v2, 16  ;;  %v4333_v39 = vor.u32 %v4332_v0, %v11267_v3  ;;  %v13286_v0 = vld [vmem:[#allocation40_spill] sm:$0xff] }
 0x4c0   : > { %8599 = vmatprep.mubr.msk.bf16.mxu1 %vm736_vm0, %v8073_v14  ;;  %v4338_v38 = vor.u32 %v4337_v1, %v11275_v26  ;;  %v4554_v33 = vor.u32 %v4553_v62, %v4552_v35  ;;  %v4930_v10 = vshrl.u32 %v11024_v43, 16  ;;  %v4570_v28 = vrot.slane %v11123_v34, 4  ;;  %v13287_v62 = vld [vmem:[#allocation54_spill] sm:$0xff] }
 0x4c1   : > { %v11335_v17 = vrot.slane %v13285_v29, 6  ;;  %8590 = vmatmul.mubr.msk.bf16.vlgmr.msra.gmra.mxu0 %vm736_vm0, %v8065_v60  ;;  %v4563_v8 = vor.u32 %v4562_v57, %v4561_v44  ;;  %v4571_v16 = vrot.slane %v11126_v45, 5  ;;  %v8074_v18 = vcombine.low %v11107_v5, %v11137_v30  ;;  %v13289_v29 = vld [vmem:[#allocation51_spill] sm:$0xff] }
 0x4c2   : > { %8608 = vmatpush3.bf16.msra.mxu0 %v11198_v12  ;;  %8593 = vmatprep.mubr.msk.bf16.mxu0 %vm736_vm0, %v8066_v63  ;;  %v8075_v23 = vcombine.low %v11192_v31, %v11226_v6  ;;  %v4555_v51 = vrot.slane %v4554_v33, 4  ;;  %v11353_v12 = vrot.slane %v4920_v11, 5  ;;  %v4339_v49 = vsel %vm10072_vm10, %v10998_v47, %v4338_v38 }
 0x4c3   : > { %8627 = vmatprep.subr.bf16.mxu0 %v11328_v52  ;;  %v4564_v37 = vrot.slane %v4563_v8, 4  ;;  %v8091_v15 = vrot.slane %v11120_v40, 9  ;;  %v8092_v7 = vrot.slane %v11156_v59, 9  ;;  %v4334_v60 = vsel %vm10072_vm10, %v13286_v0, %v4333_v39 }
 0x4c4   : > { %v4579_v1 = vrot.slane %v11154_v21, 4  ;;  %v4580_v35 = vrot.slane %v11161_v53, 5  ;;  %v4588_v11 = vrot.slane %v11208_v9, 4  ;;  %v4572_v47 = vor.u32 %v4571_v16, %v4570_v28 }
 0x4c5   : > { %v4569_v44 = vsel %vm10188_vm15, %v4564_v37, %v13287_v62  ;;  %v4589_v57 = vrot.slane %v11211_v58, 5  ;;  %v4597_v40 = vrot.slane %v11251_v4, 4  ;;  %v8067_v59 = vcombine.low %v4334_v60, %v4339_v49 }
 0x4c6   : > { %v4560_v39 = vsel %vm10188_vm15, %v4555_v51, %v13289_v29  ;;  %v4581_v38 = vor.u32 %v4580_v35, %v4579_v1  ;;  %v4598_v33 = vrot.slane %v11254_v27, 5  ;;  %v11376_v14 = vrot.slane %v4930_v10, 5  ;;  %v13295_v29 = vld [vmem:[#allocation45_spill] sm:$0xff] }
 0x4c7   : > { %8600 = vmatmul.mubr.msk.bf16.vlgmr.msra.gmra.mxu1 %vm736_vm0, %v8074_v18  ;;  %v8082_v8 = vcombine.low %v4560_v39, %v4569_v44  ;;  %v4590_v0 = vor.u32 %v4589_v57, %v4588_v11  ;;  %v13290_v28 = vshll.u32 %v11024_v43, 16  ;;  %v13291_v49 = vrot.slane %v10982_v32, 5 }
 0x4c8   : > { %8603 = vmatprep.mubr.msk.bf16.mxu1 %vm736_vm0, %v8075_v23  ;;  %v4582_v60 = vrot.slane %v4581_v38, 4  ;;  %v4599_v1 = vor.u32 %v4598_v33, %v4597_v40  ;;  %v4950_v18 = vshrl.u32 %v11083_v19, 16  ;;  %8618 = vmatpush3.bf16.msra.mxu1 %v11241_v46  ;;  %v4573_v10 = vrot.slane %v4572_v47, 4  ;;  %v13296_v33 = vld [vmem:[#allocation32_spill] sm:$0xff] }
 0x4c9   : > { %v11380_v16 = vrot.slane %v13290_v28, 6  ;;  %8594 = vmatmul.mubr.msk.bf16.gmra.mxu0 %vm736_vm0, %v8067_v59  ;;  %v4745_v37 = vsel %vm10201_vm2, %v8092_v7, %v13291_v49  ;;  %v8093_v35 = vrot.slane %v11107_v5, 9  ;;  %v4606_v23 = vrot.slane %v11262_v48, 4  ;;  %v13294_v59 = vld [vmem:[#allocation44_spill] sm:$0xff]  ;;  %v13297_v49 = vld [vmem:[#allocation59_spill] sm:$0xff] }
 0x4ca   : > { %8609 = vmatprep.mubr.msk.bf16.mxu0 %vm736_vm0, %v8082_v8  ;;  %v4607_v11 = vrot.slane %v11267_v3, 5  ;;  %v8076_v32 = vcombine.low %v11180_v41, %v11204_v24  ;;  %v13293_v7 = vrot.slane %v10970_v25, 5  ;;  %v4591_v44 = vrot.slane %v4590_v0, 4 }
 0x4cb   : > { %v4600_v57 = vrot.slane %v4599_v1, 4  ;;  %v4587_v46 = vsel %vm10188_vm15, %v4582_v60, %v13294_v59  ;;  %v8094_v5 = vrot.slane %v11137_v30, 9  ;;  %v8096_v47 = vrot.slane %v11226_v6, 9 }
 0x4cc   : > { %v4741_v62 = vsel %vm10201_vm2, %v8091_v15, %v13293_v7  ;;  %v4615_v25 = vrot.slane %v11272_v54, 4  ;;  %v4616_v38 = vrot.slane %v11275_v26, 5  ;;  %v4876_v15 = vrot.slane %v11140_v36, 5  ;;  %v13298_v7 = vld [vmem:[#allocation41_spill] sm:$0xff] }
 0x4cd   : > { %v8099_v40 = vcombine.low %v4741_v62, %v4745_v37  ;;  %v4605_v39 = vsel %vm10188_vm15, %v4600_v57, %v13295_v29  ;;  %v4578_v8 = vsel %vm10188_vm15, %v4573_v10, %v13296_v33  ;;  %v4608_v0 = vor.u32 %v4607_v11, %v4606_v23 }
 0x4ce   : > { %v4877_v28 = vrot.slane %v11143_v42, 6  ;;  %v4886_v30 = vrot.slane %v11170_v56, 5  ;;  %v8083_v6 = vcombine.low %v4578_v8, %v4587_v46  ;;  %v4596_v37 = vsel %vm10188_vm15, %v4591_v44, %v13297_v49  ;;  %v13309_v49 = vld [vmem:[#allocation52_spill] sm:$0xff] }
 0x4cf   : > { %v4617_v60 = vor.u32 %v4616_v38, %v4615_v25  ;;  %v4887_v1 = vrot.slane %v11173_v20, 6  ;;  %8604 = vmatmul.mubr.msk.bf16.gmra.mxu1 %vm736_vm0, %v8076_v32  ;;  %v8084_v36 = vcombine.low %v4596_v37, %v4605_v39  ;;  %v13299_v62 = vrot.slane %v13298_v7, 5  ;;  %v13303_v39 = vld [vmem:[#allocation60_spill] sm:$0xff]  ;;  %v13304_v25 = vld [vmem:[#allocation53_spill] sm:$0xff] }
 0x4d0   : > { %v8095_v42 = vrot.slane %v11192_v31, 9  ;;  %v4878_v23 = vor.u32 %v4877_v28, %v4876_v15  ;;  %8619 = vmatprep.mubr.msk.bf16.mxu1 %vm736_vm0, %v8099_v40  ;;  %v13300_v56 = vrot.slane %v11017_v22, 5  ;;  %v13301_v11 = vrot.slane %v11024_v43, 5  ;;  %v13310_v37 = vld [vmem:[#allocation61_spill] sm:$0xff] }
 0x4d1   : > { %v4749_v10 = vsel %vm10201_vm2, %v8093_v35, %v13299_v62  ;;  %8610 = vmatmul.mubr.msk.bf16.vlgmr.msra.gmra.mxu0 %vm736_vm0, %v8083_v6  ;;  %v4618_v44 = vrot.slane %v4617_v60, 4  ;;  %v4888_v57 = vor.u32 %v4887_v1, %v4886_v30  ;;  %v4609_v31 = vrot.slane %v4608_v0, 4  ;;  %v13308_v0 = vld [vmem:[#allocation55_spill] sm:$0xff] }
 0x4d2   : > { %v4753_v20 = vsel %vm10201_vm2, %v8094_v5, %v13300_v56  ;;  %v4761_v32 = vsel %vm10201_vm2, %v8096_v47, %v13301_v11  ;;  %8628 = vmatpush3.bf16.msra.mxu0 %v11328_v52  ;;  %8613 = vmatprep.mubr.msk.bf16.mxu0 %vm736_vm0, %v8084_v36  ;;  %v4896_v35 = vrot.slane %v11123_v34, 5  ;;  %v4897_v40 = vrot.slane %v11126_v45, 6 }
 0x4d3   : > { %v4906_v22 = vrot.slane %v11154_v21, 5  ;;  %v4879_v59 = vrot.slane %v4878_v23, 4  ;;  %v4889_v46 = vrot.slane %v4888_v57, 4  ;;  %v4907_v43 = vrot.slane %v11161_v53, 6  ;;  %v13305_v21 = vld [vmem:[#allocation38_spill] sm:$0xff]  ;;  %v13313_v23 = vld [vmem:[#allocation43_spill] sm:$0xff] }
 0x4d4   : > { %v4916_v5 = vrot.slane %v11208_v9, 5  ;;  %v8100_v47 = vcombine.low %v4749_v10, %v4753_v20  ;;  %v13302_v29 = vrot.slane %v11022_v2, 5  ;;  %v4623_v34 = vsel %vm10188_vm15, %v4618_v44, %v13303_v39  ;;  %v13314_v44 = vld [vmem:[#allocation56_spill] sm:$0xff] }
 0x4d5   : > { %v4917_v45 = vrot.slane %v11211_v58, 6  ;;  %v13306_v38 = vor.u32 %v13304_v25, %v13305_v21  ;;  %v4908_v33 = vor.u32 %v4907_v43, %v4906_v22  ;;  %v4926_v9 = vrot.slane %v11251_v4, 5 }
 0x4d6   : > { %v4757_v52 = vsel %vm10201_vm2, %v8095_v42, %v13302_v29  ;;  %v4927_v2 = vrot.slane %v11254_v27, 6  ;;  %v4614_v28 = vsel %vm10188_vm15, %v4609_v31, %v13308_v0  ;;  %v8098_v30 = vrot.slane %v11204_v24, 9  ;;  %v13312_v42 = vld [vmem:[#allocation62_spill] sm:$0xff]  ;;  %v11523_v0 = vld [vmem:[#allocation15 + $0x18] sm:$0xff]  }
 0x4d7   : > { %v4895_v53 = vsel %vm10297_vm8, %v4889_v46, %v13306_v38  ;;  %v8101_v8 = vcombine.low %v4757_v52, %v4761_v32  ;;  %v4898_v6 = vor.u32 %v4897_v40, %v4896_v35  ;;  %v8085_v58 = vcombine.low %v4614_v28, %v4623_v34  ;;  %8620 = vmatmul.mubr.msk.bf16.vlgmr.msra.gmra.mxu1 %vm736_vm0, %v8100_v47 }
 0x4d8   : > { %v13311_v60 = vor.u32 %v13309_v49, %v13310_v37  ;;  %v4918_v36 = vor.u32 %v4917_v45, %v4916_v5  ;;  %v4928_v7 = vor.u32 %v4927_v2, %v4926_v9  ;;  %v4909_v27 = vrot.slane %v4908_v33, 4  ;;  %v13320_v45 = vld [vmem:[#allocation33_spill] sm:$0xff] }
 0x4d9   : > { %v4946_v62 = vrot.slane %v11272_v54, 5  ;;  %v4947_v10 = vrot.slane %v11275_v26, 6  ;;  %8623 = vmatprep.mubr.msk.bf16.mxu1 %vm736_vm0, %v8101_v8  ;;  %8614 = vmatmul.mubr.msk.bf16.gmra.mxu0 %vm736_vm0, %v8085_v58  ;;  %v8097_v24 = vrot.slane %v11180_v41, 9  ;;  %v4904_v56 = vor.u32 %v13313_v23, %v13312_v42  ;;  %v8900_v9 = vld [vmem:[#allocation15 + $0x8] sm:$0xff]   ;;  %v8901_v2 = vld [vmem:[#allocation15] sm:$0xff]   ;;  %v11520_v8 = vld [vmem:[#allocation15 + $0x10] sm:$0xff]  }
 0x4da   : > { %v4885_v1 = vsel %vm10297_vm8, %v4879_v59, %v13311_v60  ;;  %v4929_v20 = vrot.slane %v4928_v7, 4  ;;  %v4934_v11 = vor.u32 %v11380_v16, %v11376_v14  ;;  %v4899_v32 = vrot.slane %v4898_v6, 4  ;;  %8637 = vmatprep.subr.bf16.mxu1 %v8900_v9  ;;  %8647 = vmatprep.subr.bf16.mxu0 %v8901_v2 }
 0x4db   : > { %v8108_v4 = vcombine.low %v4885_v1, %v4895_v53  ;;  %v4936_v54 = vrot.slane %v11262_v48, 5  ;;  %v4937_v26 = vrot.slane %v11267_v3, 6  ;;  %v4940_v57 = vshrl.u32 %v13314_v44, 16  ;;  %8638 = vmatpush3.bf16.msra.mxu1 %v8900_v9 }
 0x4dc   : > { %v13315_v31 = vrot.slane %v11083_v19, 5  ;;  %v4919_v35 = vrot.slane %v4918_v36, 4  ;;  %v4924_v40 = vor.u32 %v11335_v17, %v11353_v12  ;;  %v13316_v14 = vor.u32 %v11135_v61, %v11302_v55  ;;  %8657 = vmatprep.subr.bf16.mxu1 %v11520_v8 }
 0x4dd   : > { %8629 = vmatprep.mubr.msk.bf16.mxu0 %vm736_vm0, %v8108_v4  ;;  %v4948_v48 = vor.u32 %v4947_v10, %v4946_v62  ;;  %v4952_v3 = vrot.slane %v4950_v18, 5  ;;  %v13317_v22 = vshll.u32 %v11083_v19, 16  ;;  %v13318_v46 = vrot.slane %v13314_v44, 5 }
 0x4de   : > { %v4769_v41 = vsel %vm10201_vm2, %v8098_v30, %v13315_v31  ;;  %v4915_v16 = vsel %vm10297_vm8, %v4909_v27, %v13316_v14  ;;  %v4935_v17 = vsel %vm10297_vm8, %v4929_v20, %v4934_v11  ;;  %v13319_v55 = vshll.u32 %v13314_v44, 16 }
 0x4df   : > { %v4953_v59 = vrot.slane %v13317_v22, 6  ;;  %v4765_v43 = vsel %vm10201_vm2, %v8097_v24, %v13318_v46  ;;  %v4905_v5 = vsel %vm10297_vm8, %v4899_v32, %v4904_v56  ;;  %v4938_v47 = vor.u32 %v4937_v26, %v4936_v54 }
 0x4e0   : > { %v4943_v61 = vrot.slane %v13319_v55, 6  ;;  %v8102_v12 = vcombine.low %v4765_v43, %v4769_v41  ;;  %v4942_v18 = vrot.slane %v4940_v57, 5  ;;  %v8109_v29 = vcombine.low %v4905_v5, %v4915_v16 }
 0x4e1   : > { %v4925_v19 = vsel %vm10297_vm8, %v4919_v35, %v4924_v40  ;;  %v4949_v39 = vrot.slane %v4948_v48, 4  ;;  %v4954_v34 = vor.u32 %v4953_v59, %v4952_v3  ;;  %v4939_v25 = vrot.slane %v4938_v47, 4 }
 0x4e2   : > { %8624 = vmatmul.mubr.msk.bf16.gmra.mxu1 %vm736_vm0, %v8102_v12  ;;  %v8110_v52 = vcombine.low %v4925_v19, %v4935_v17  ;;  %8630 = vmatmul.mubr.msk.bf16.vlgmr.msra.gmra.mxu0 %vm736_vm0, %v8109_v29  ;;  %v4944_v21 = vor.u32 %v4943_v61, %v4942_v18 }
 0x4e3   : > { %8639 = vmatprep.mubr.msk.bf16.mxu1 %vm736_vm0, %v13320_v45  ;;  %v4955_v38 = vsel %vm10297_vm8, %v4949_v39, %v4954_v34  ;;  %8648 = vmatpush3.bf16.msra.mxu0 %v8901_v2 }
 0x4e4   : > { %8633 = vmatprep.mubr.msk.bf16.mxu0 %vm736_vm0, %v8110_v52  ;;  %v4945_v53 = vsel %vm10297_vm8, %v4939_v25, %v4944_v21  ;;  %8667 = vmatprep.subr.bf16.mxu0 %v11523_v0 }
 0x4e5   : > { %v8111_v33 = vcombine.low %v4945_v53, %v4955_v38 }
 0x4ea   : > { %8634 = vmatmul.mubr.msk.bf16.gmra.mxu0 %vm736_vm0, %v8111_v33 }
 0x4eb   : > { %8649 = vmatprep.mubr.msk.bf16.mxu0 %vm736_vm0, %v13320_v45 }
 0x570   : > { %v8571_v28 = vpop.f32.mrf.mxu0 }
 0x572   : > { %v4174_v30 = vpop.f32.mrf.mxu0 }
 0x573   : > { %v8581_v58 = vpop.f32.mrf.mxu1 }
 0x574   : > { %v8572_v6 = vpop.f32.mrf.mxu0  ;;  %v4278_v55 = vadd.f32 %v8581_v58, %v8571_v28 }
 0x575   : > { %v4269_v37 = vpop.f32.mrf.mxu1 }
 0x576   : > { %v4177_v49 = vpop.f32.mrf.mxu0  ;;  %v4270_v61 = vadd.f32 %v4269_v37, %v4174_v30 }
 0x577   : > { %v8582_v1 = vpop.f32.mrf.mxu1 }
 0x578   : > { %v4281_v47 = vadd.f32 %v8582_v1, %v8572_v6 }
 0x579   : > { %v11526_v60 = vpop.f32.mrf.mxu0  ;;  %v4272_v7 = vpop.f32.mrf.mxu1 }
 0x57a   : > { %v4273_v39 = vadd.f32 %v4272_v7, %v4177_v49 }
 0x57b   : > { %v4190_v36 = vpop.f32.mrf.mxu0 }
 0x57d   : > { %v11528_v4 = vpop.f32.mrf.mxu0 }
 0x57f   : > { %v4193_v27 = vpop.f32.mrf.mxu0  ;;  %v11530_v62 = vpop.f32.mrf.mxu1 }
 0x581   : > { %v8591_v10 = vpop.f32.mrf.mxu0  ;;  %v4285_v24 = vpop.f32.mrf.mxu1 }
 0x582   : > { %v4440_v18 = vadd.f32 %v8591_v10, %v4278_v55  ;;  %v4286_v10 = vadd.f32 %v4285_v24, %v4190_v36 }
 0x583   : > { %v4407_v42 = vpop.f32.mrf.mxu0  ;;  %v11532_v23 = vpop.f32.mrf.mxu1 }
 0x584   : > { %v4438_v29 = vadd.f32 %v4407_v42, %v4270_v61 }
 0x585   : > { %v8592_v56 = vpop.f32.mrf.mxu0  ;;  %v4288_v20 = vpop.f32.mrf.mxu1 }
 0x586   : > { %v4441_v34 = vadd.f32 %v8592_v56, %v4281_v47 }
 0x587   : > { %v4410_v11 = vpop.f32.mrf.mxu0  ;;  %v8601_v32 = vpop.f32.mrf.mxu1 }
 0x588   : > { %v4546_v25 = vadd.f32 %v8601_v32, %v4440_v18  ;;  %v4439_v33 = vadd.f32 %v4410_v11, %v4273_v39  ;;  %v11548_v11 = vld [vmem:[#allocation14] ss:$0 sm:$0xff] }
 0x589   : > { %v11534_v54 = vpop.f32.mrf.mxu0  ;;  %v4513_v26 = vpop.f32.mrf.mxu1 }
 0x58a   : > { %v4544_v21 = vadd.f32 %v4513_v26, %v4438_v29  ;;  %v4289_v26 = vadd.f32 %v4288_v20, %v4193_v27 }
 0x58b   : > { %v4423_v44 = vpop.f32.mrf.mxu0  ;;  %v8602_v57 = vpop.f32.mrf.mxu1 }
 0x58c   : > { %v4547_v9 = vadd.f32 %v8602_v57, %v4441_v34  ;;  %v4442_v61 = vadd.f32 %v4423_v44, %v4286_v10 }
 0x58d   : > { %v11536_v31 = vpop.f32.mrf.mxu0  ;;  %v4516_v41 = vpop.f32.mrf.mxu1 }
 0x58e   : > { %v4545_v58 = vadd.f32 %v4516_v41, %v4439_v33 }
 0x58f   : > { %v4426_v35 = vpop.f32.mrf.mxu0  ;;  %v11538_v40 = vpop.f32.mrf.mxu1 }
 0x590   : > { %v4443_v41 = vadd.f32 %v4426_v35, %v4289_v26 }
 0x591   : > { %v8611_v14 = vpop.f32.mrf.mxu0  ;;  %v4529_v16 = vpop.f32.mrf.mxu1 }
 0x592   : > { %v4724_v2 = vadd.f32 %v8611_v14, %v4546_v25 }
 0x593   : > { %v4691_v48 = vpop.f32.mrf.mxu0  ;;  %v11540_v3 = vpop.f32.mrf.mxu1 }
 0x594   : > { %v4722_v63 = vadd.f32 %v4691_v48, %v4544_v21  ;;  %v13321_v21 = vmov 0  }
 0x595   : > { %v8612_v22 = vpop.f32.mrf.mxu0  ;;  %v4532_v59 = vpop.f32.mrf.mxu1 }
 0x596   : > { %v4725_v6 = vadd.f32 %v8612_v22, %v4547_v9  ;;  %v4548_v22 = vadd.f32 %v4529_v16, %v4442_v61  ;;  %v4549_v20 = vadd.f32 %v4532_v59, %v4443_v41  ;;  %v8907_v41 = vld [vmem:[#allocation18 + $0x10] ss:$8 sps:$4 sm:$0xff]  }
 0x597   : > { %v4694_v46 = vpop.f32.mrf.mxu0  ;;  %v8621_v43 = vpop.f32.mrf.mxu1 }
 0x598   : > { %v4870_v37 = vadd.f32 %v8621_v43, %v4724_v2  ;;  %v4723_v49 = vadd.f32 %v4694_v46, %v4545_v58 }
 0x599   : > { %v11542_v17 = vpop.f32.mrf.mxu0  ;;  %v4837_v12 = vpop.f32.mrf.mxu1 }
 0x59a   : > { %v4868_v1 = vadd.f32 %v4837_v12, %v4722_v63 }
 0x59b   : > { %v4707_v5 = vpop.f32.mrf.mxu0  ;;  %v8622_v19 = vpop.f32.mrf.mxu1 }
 0x59c   : > { %v4871_v7 = vadd.f32 %v8622_v19, %v4725_v6  ;;  %v4726_v18 = vadd.f32 %v4707_v5, %v4548_v22  ;;  %v8904_v6 = vld [vmem:[#allocation15 + $0x20] sm:$0xff]   ;;  %v8909_v22 = vld [vmem:[#allocation18 + $0x14] ss:$8 sps:$4 sm:$0xff]  }
 0x59d   : > { %v11544_v52 = vpop.f32.mrf.mxu0  ;;  %v4840_v38 = vpop.f32.mrf.mxu1 }
 0x59e   : > { %v4869_v14 = vadd.f32 %v4840_v38, %v4723_v49 }
 0x59f   : > { %v4710_v53 = vpop.f32.mrf.mxu0 }
 0x5a0   : > { %v4727_v35 = vadd.f32 %v4710_v53, %v4549_v20 }
 0x5a2   : > { %v11546_v28 = vpop.f32.mrf.mxu1  ;;  %v8631_v30 = vpop.f32.mrf.mxu0 }
 0x5a3   : > { %v5056_v56 = vadd.f32 %v8631_v30, %v4870_v37  ;;  %v4297_v30 = vadd.f32 %v11532_v23, %v11528_v4  ;;  %v8905_v37 = vld [vmem:[#allocation15 + $0x28] sm:$0xff]  }
 0x5a4   : > { %v4853_v42 = vpop.f32.mrf.mxu1  ;;  %v5023_v55 = vpop.f32.mrf.mxu0 }
 0x5a5   : > { %v5054_v32 = vadd.f32 %v5023_v55, %v4868_v1  ;;  %v5071_v36 = vadd.f32 %v11548_v11, %v5056_v56  ;;  %v4872_v19 = vadd.f32 %v4853_v42, %v4726_v18  ;;  %v4294_v42 = vadd.f32 %v11530_v62, %v11526_v60 }
 0x5a6   : > { %v8632_v57 = vpop.f32.mrf.mxu0  ;;  %v8626_v43 = vpop.f32.mrf.mxu1  ;;  %v4445_v55 = vadd.f32 %v11536_v31, %v4297_v30 }
 0x5a7   : > { %v5069_v48 = vadd.f32 %v11548_v11, %v5054_v32  ;;  %v5057_v47 = vadd.f32 %v8632_v57, %v4871_v7  ;;  %v5079_v16 = vmax.f32 %v5071_v36, 0.0  ;;  %v4444_v23 = vadd.f32 %v11534_v54, %v4294_v42  ;;  %v8915_v36 = vld [vmem:[#allocation18 + $0x4] ss:$8 sps:$4 sm:$0xff]  }
 0x5a8   : > { %v5026_v63 = vpop.f32.mrf.mxu0  ;;  %v4856_v39 = vpop.f32.mrf.mxu1  ;;  %v4551_v7 = vadd.f32 %v11540_v3, %v4445_v55 }
 0x5a9   : > { %v5077_v24 = vmax.f32 %v5069_v48, 0.0  ;;  %v5072_v46 = vadd.f32 %v11548_v11, %v5057_v47  ;;  %v5055_v12 = vadd.f32 %v5026_v63, %v4869_v14  ;;  %v4873_v5 = vadd.f32 %v4856_v39, %v4727_v35  ;;  %v8913_v63 = vld [vmem:[#allocation18] ss:$8 sps:$4 sm:$0xff]  }
 0x5aa   : > { %v8635_v27 = vpop.f32.mrf.mxu0  ;;  %v4550_v60 = vadd.f32 %v11538_v40, %v4444_v23  ;;  %v4729_v62 = vadd.f32 %v11544_v52, %v4551_v7  ;;  %v11637_v7 = vld [vmem:[#allocation2 + $0xc] sm:$0xf] }
 0x5ab   : > { %v5085_v44 = vpack.c.bf16 %v5077_v24, %v5077_v24  ;;  %v5070_v29 = vadd.f32 %v11548_v11, %v5055_v12  ;;  %v5080_v34 = vmax.f32 %v5072_v46, 0.0 }
 0x5ac   : > { %v5039_v25 = vpop.f32.mrf.mxu0  ;;  %v4728_v32 = vadd.f32 %v11542_v17, %v4550_v60  ;;  %v4875_v26 = vadd.f32 %v8626_v43, %v4729_v62  ;;  %v8906_v17 = vld [vmem:[#allocation15 + $0x30] sm:$0xff]   ;;  %v8912_v43 = vld [vmem:[#allocation18 + $0x24] ss:$8 sps:$4 sm:$0xff]  }
 0x5ad   : > { %v8126_v38 = vcombine.low %v13321_v21, %v5085_v44  ;;  %v5078_v33 = vmax.f32 %v5070_v29, 0.0  ;;  %v5058_v9 = vadd.f32 %v5039_v25, %v4872_v19  ;;  %v8281_v1 = vpack.c.bf16 %v5080_v34, %v5079_v16 }
 0x5ae   : > { %v8636_v2 = vpop.f32.mrf.mxu0  ;;  %v4874_v54 = vadd.f32 %v11546_v28, %v4728_v32  ;;  %v5787_v32 = vshll.u32 %v11637_v7, 16 }
 0x5af   : > { %v8280_v58 = vpack.c.bf16 %v5078_v33, %v5077_v24  ;;  %v8283_v59 = vpack.c.bf16 %v5079_v16, %v5078_v33  ;;  %8650 = vmatmul.mubr.msk.bf16.vlgmr.msra.gmra.mxu0 %vm736_vm0, %v8126_v38  ;;  %v5073_v10 = vadd.f32 %v11548_v11, %v5058_v9  ;;  %v5061_v3 = vadd.f32 %v8636_v2, %v4875_v26  ;;  %v8918_v24 = vld [vmem:[#allocation18 + $0x34] ss:$8 sps:$4 sm:$0xff]  }
 0x5b0   : > { %v5042_v53 = vpop.f32.mrf.mxu0  ;;  %8668 = vmatpush3.bf16.msra.mxu0 %v11523_v0  ;;  %v5060_v40 = vadd.f32 %v8635_v27, %v4874_v54  ;;  %v11649_v54 = vld [vmem:[#allocation2 + $0x24] sm:$0xf] }
 0x5b1   : > { %v5059_v49 = vadd.f32 %v5042_v53, %v4873_v5  ;;  %8640 = vmatmul.mubr.msk.bf16.vlgmr.msra.gmra.mxu1 %vm736_vm0, %v8280_v58  ;;  %8653 = vmatprep.mubr.msk.bf16.mxu0 %vm736_vm0, %v8283_v59  ;;  %v5081_v4 = vmax.f32 %v5073_v10, 0.0  ;;  %v5076_v52 = vadd.f32 %v11548_v11, %v5061_v3 }
 0x5b2   : > { %8658 = vmatpush3.bf16.msra.mxu1 %v11520_v8  ;;  %8643 = vmatprep.mubr.msk.bf16.mxu1 %vm736_vm0, %v8281_v1  ;;  %v5075_v61 = vadd.f32 %v11548_v11, %v5060_v40 }
 0x5b3   : > { %v5074_v0 = vadd.f32 %v11548_v11, %v5059_v49  ;;  %8677 = vmatprep.subr.bf16.mxu1 %v8904_v6  ;;  %8687 = vmatprep.subr.bf16.mxu0 %v8905_v37  ;;  %v8284_v31 = vpack.c.bf16 %v5081_v4, %v5080_v34  ;;  %v5084_v57 = vmax.f32 %v5076_v52, 0.0  ;;  %v11631_v49 = vld [vmem:[#allocation2] sm:$0xf] }
 0x5b4   : > { %v5083_v28 = vmax.f32 %v5075_v61, 0.0  ;;  %v13015_v60 = vshrl.u32 %v11631_v49, 16  ;;  %v5769_v62 = vshll.u32 %v11631_v49, 16 }
 0x5b5   : > { %v5082_v56 = vmax.f32 %v5074_v0, 0.0  ;;  %v5092_v11 = vpack.c.bf16 %v5084_v57, %v5084_v57 }
 0x5b6   : > { %v8286_v14 = vpack.c.bf16 %v5084_v57, %v5083_v28  ;;  %v5768_v40 = vrot.slane %v13015_v60, 6  ;;  %v5771_v52 = vrot.slane %v5769_v62, 7 }
 0x5b7   : > { %v8282_v8 = vpack.c.bf16 %v5082_v56, %v5081_v4  ;;  %8654 = vmatmul.mubr.msk.bf16.gmra.mxu0 %vm736_vm0, %v8284_v31  ;;  %v8285_v48 = vpack.c.bf16 %v5083_v28, %v5082_v56  ;;  %v8146_v47 = vcombine.low %v5092_v11, %v13321_v21  ;;  %v13014_v56 = vshrl.u32 %v11637_v7, 16 }
 0x5b8   : > { %8669 = vmatprep.mubr.msk.bf16.mxu0 %vm736_vm0, %v8280_v58  ;;  %v5789_v28 = vrot.slane %v5787_v32, 7 }
 0x5b9   : > { %8644 = vmatmul.mubr.msk.bf16.gmra.mxu1 %vm736_vm0, %v8282_v8  ;;  %v5786_v57 = vrot.slane %v13014_v56, 6 }
 0x5ba   : > { %8659 = vmatprep.mubr.msk.bf16.mxu1 %vm736_vm0, %v8126_v38 }
 0x5bb   : > { %v5790_v32 = vor.u32 %v5789_v28, %v5786_v57 }
 0x5bf   : > { %8670 = vmatmul.mubr.msk.bf16.vlgmr.msra.gmra.mxu0 %vm736_vm0, %v8281_v1 }
 0x5c0   : > { %8673 = vmatprep.mubr.msk.bf16.mxu0 %vm736_vm0, %v8282_v8  ;;  %8688 = vmatpush3.bf16.msra.mxu0 %v8905_v37 }
 0x5c1   : > { %8660 = vmatmul.mubr.msk.bf16.vlgmr.msra.gmra.mxu1 %vm736_vm0, %v8283_v59  ;;  %6010 = vmatprep.subr.bf16.mxu0 %v8909_v22 }
 0x5c2   : > { %8678 = vmatpush3.bf16.msra.mxu1 %v8904_v6  ;;  %8663 = vmatprep.mubr.msk.bf16.mxu1 %vm736_vm0, %v8284_v31 }
 0x5c3   : > { %8697 = vmatprep.subr.bf16.mxu1 %v8906_v17 }
 0x5c7   : > { %8674 = vmatmul.mubr.msk.bf16.gmra.mxu0 %vm736_vm0, %v8286_v14 }
 0x5c8   : > { %8689 = vmatprep.mubr.msk.bf16.mxu0 %vm736_vm0, %v8281_v1 }
 0x5c9   : > { %8664 = vmatmul.mubr.msk.bf16.gmra.mxu1 %vm736_vm0, %v8285_v48 }
 0x5ca   : > { %8679 = vmatprep.mubr.msk.bf16.mxu1 %vm736_vm0, %v8283_v59 }
 0x5cf   : > { %8690 = vmatmul.mubr.msk.bf16.vlgmr.msra.gmra.mxu0 %vm736_vm0, %v8282_v8  ;;  %v11647_v8 = vld [vmem:[#allocation2 + $0x18] sm:$0xf] }
 0x5d0   : > { %8693 = vmatprep.mubr.msk.bf16.mxu0 %vm736_vm0, %v8286_v14  ;;  %6011 = vmatpush1.bf16.msra.mxu0 %v8907_v41  ;;  %v5805_v11 = vshll.u32 %v11647_v8, 16 }
 0x5d1   : > { %8680 = vmatmul.mubr.msk.bf16.vlgmr.msra.gmra.mxu1 %vm736_vm0, %v8284_v31  ;;  %6267 = vmatprep.subr.bf16.mxu0 %v8912_v43  ;;  %v5823_v43 = vshll.u32 %v11649_v54, 16 }
 0x5d2   : > { %8698 = vmatpush3.bf16.msra.mxu1 %v8906_v17  ;;  %8683 = vmatprep.mubr.msk.bf16.mxu1 %vm736_vm0, %v8285_v48 }
 0x5d3   : > { %6117 = vmatprep.subr.bf16.mxu1 %v8915_v36  ;;  %v5772_v36 = vor.u32 %v5771_v52, %v5768_v40  ;;  %v11677_v40 = vld [vmem:[#allocation2 + $0x30] sm:$0xf] }
 0x5d5   : > { %v11681_v57 = vrot.slane %v5772_v36, 4 }
 0x5d7   : > { %8694 = vmatmul.mubr.msk.bf16.gmra.mxu0 %vm736_vm0, %v13320_v45 }
 0x5d8   : > { %6028 = vmatprep.mubr.bf16.mxu0 %v13321_v21 }
 0x5d9   : > { %8684 = vmatmul.mubr.msk.bf16.gmra.mxu1 %vm736_vm0, %v8146_v47 }
 0x5da   : > { %8699 = vmatprep.mubr.msk.bf16.mxu1 %vm736_vm0, %v8284_v31 }
 0x5e1   : > { %8700 = vmatmul.mubr.msk.bf16.vlgmr.msra.gmra.mxu1 %vm736_vm0, %v8285_v48  ;;  %v5802_v48 = vshrl.u32 %v11647_v8, 16 }
 0x5e2   : > { %8703 = vmatprep.mubr.msk.bf16.mxu1 %vm736_vm0, %v8146_v47  ;;  %6118 = vmatpush1.bf16.msra.mxu1 %v8913_v63  ;;  %v5820_v47 = vshrl.u32 %v11649_v54, 16 }
 0x5e3   : > { %6393 = vmatprep.subr.bf16.mxu1 %v8918_v24  ;;  %v11667_v15 = vrot.slane %v5802_v48, 6 }
 0x5e9   : > { %8704 = vmatmul.mubr.msk.bf16.gmra.mxu1 %vm736_vm0, %v13320_v45 }
 0x5ea   : > { %6135 = vmatprep.mubr.bf16.mxu1 %v13321_v21 }
 0x66f   : > { %v8651_v46 = vpop.f32.mrf.mxu0 }
 0x671   : > { %v8641_v12 = vpop.f32.mrf.mxu1  ;;  %v5245_v18 = vpop.f32.mrf.mxu0 }
 0x672   : > { %v5254_v61 = vadd.f32 %v8651_v46, %v8641_v12 }
 0x673   : > { %v5162_v27 = vpop.f32.mrf.mxu1  ;;  %v8652_v20 = vpop.f32.mrf.mxu0 }
 0x674   : > { %v5246_v41 = vadd.f32 %v5245_v18, %v5162_v27  ;;  %v11669_v18 = vrot.slane %v5805_v11, 7  ;;  %v11673_v27 = vrot.slane %v5820_v47, 6 }
 0x675   : > { %v8642_v45 = vpop.f32.mrf.mxu1  ;;  %v5248_v44 = vpop.f32.mrf.mxu0 }
 0x676   : > { %v5257_v24 = vadd.f32 %v8652_v20, %v8642_v45 }
 0x677   : > { %v5165_v29 = vpop.f32.mrf.mxu1  ;;  %v11603_v19 = vpop.f32.mrf.mxu0 }
 0x678   : > { %v5249_v20 = vadd.f32 %v5248_v44, %v5165_v29  ;;  %v11685_v29 = vrot.slane %v5790_v32, 4 }
 0x679   : > { %v11605_v39 = vpop.f32.mrf.mxu1  ;;  %v11607_v34 = vpop.f32.mrf.mxu0 }
 0x67a   : > { %v5270_v52 = vadd.f32 %v11603_v19, %v11605_v39  ;;  %v5808_v39 = vor.u32 %v11669_v18, %v11667_v15  ;;  %v11900_v18 = vld [vmem:[#allocation2 + $0x50] sm:$0xf] }
 0x67b   : > { %v11609_v25 = vpop.f32.mrf.mxu1  ;;  %v11611_v35 = vpop.f32.mrf.mxu0  ;;  %13333 = vst [vmem:[#allocation35_spill] sm:$0xff] %v11900_v18 }
 0x67d   : > { %v11613_v16 = vpop.f32.mrf.mxu1  ;;  %v11615_v38 = vpop.f32.mrf.mxu0 }
 0x67f   : > { %v11617_v33 = vpop.f32.mrf.mxu1  ;;  %v8671_v9 = vpop.f32.mrf.mxu0 }
 0x681   : > { %v8661_v2 = vpop.f32.mrf.mxu1  ;;  %v5413_v30 = vpop.f32.mrf.mxu0 }
 0x682   : > { %v5358_v22 = vadd.f32 %v8661_v2, %v5254_v61 }
 0x683   : > { %v5325_v5 = vpop.f32.mrf.mxu1  ;;  %v11619_v58 = vpop.f32.mrf.mxu0 }
 0x684   : > { %v5356_v46 = vadd.f32 %v5325_v5, %v5246_v41  ;;  %v5446_v2 = vadd.f32 %v8671_v9, %v5358_v22  ;;  %v11675_v5 = vrot.slane %v5823_v43, 7  ;;  %v11687_v9 = vld [vmem:[#allocation2 + $0x3c] sm:$0xf]  ;;  %v5838_v43 = vshrl.u32 %v11677_v40, 16 }
 0x685   : > { %v8662_v59 = vpop.f32.mrf.mxu1  ;;  %v11621_v6 = vpop.f32.mrf.mxu0  ;;  %v5856_v32 = vshrl.u32 %v11687_v9, 16 }
 0x686   : > { %v5359_v45 = vadd.f32 %v8662_v59, %v5257_v24  ;;  %v5444_v62 = vadd.f32 %v5413_v30, %v5356_v46  ;;  %v5262_v59 = vadd.f32 %v11607_v34, %v11609_v25  ;;  %v5826_v30 = vor.u32 %v11675_v5, %v11673_v27 }
 0x687   : > { %v5328_v37 = vpop.f32.mrf.mxu1  ;;  %v11623_v1 = vpop.f32.mrf.mxu0  ;;  %v5841_v24 = vshll.u32 %v11677_v40, 16  ;;  %v5273_v46 = vadd.f32 %v11611_v35, %v11613_v16 }
 0x688   : > { %v5357_v41 = vadd.f32 %v5328_v37, %v5249_v20  ;;  %v5447_v37 = vadd.f32 %v11619_v58, %v5359_v45  ;;  %v5265_v45 = vadd.f32 %v11615_v38, %v11617_v33  ;;  %v11721_v38 = vld [vmem:[#allocation2 + $0x54] sm:$0xf] }
 0x689   : > { %v8665_v10 = vpop.f32.mrf.mxu1  ;;  %v11625_v53 = vpop.f32.mrf.mxu0 }
 0x68a   : > { %v5362_v22 = vadd.f32 %v8665_v10, %v5270_v52  ;;  %v11714_v52 = vrot.slane %v5838_v43, 6 }
 0x68b   : > { %v11627_v42 = vpop.f32.mrf.mxu1  ;;  %v11629_v55 = vpop.f32.mrf.mxu0 }
 0x68c   : > { %v5360_v34 = vadd.f32 %v11627_v42, %v5262_v59  ;;  %v5450_v35 = vadd.f32 %v11623_v1, %v5362_v22  ;;  %v11710_v42 = vld [vmem:[#allocation17] ss:$0 sm:$0xff]  ;;  %v11719_v59 = vrot.slane %v5841_v24, 7 }
 0x68d   : > { %v11633_v4 = vpop.f32.mrf.mxu1  ;;  %v11635_v23 = vpop.f32.mrf.mxu0 }
 0x68f   : > { %v11639_v0 = vpop.f32.mrf.mxu1  ;;  %v11643_v31 = vpop.f32.mrf.mxu0 }
 0x690   : > { %v5361_v33 = vadd.f32 %v11639_v0, %v5265_v45 }
 0x691   : > { %v8681_v26 = vpop.f32.mrf.mxu1  ;;  %v11653_v17 = vpop.f32.mrf.mxu0 }
 0x692   : > { %v5532_v60 = vadd.f32 %v8681_v26, %v5446_v2  ;;  %v5363_v2 = vadd.f32 %v11633_v4, %v5273_v46  ;;  %v5448_v4 = vadd.f32 %v11625_v53, %v5360_v34  ;;  %v13018_v53 = vshrl.u32 %v11721_v38, 16 }
 0x693   : > { %v5499_v3 = vpop.f32.mrf.mxu1  ;;  %v11661_v12 = vpop.f32.mrf.mxu0 }
 0x694   : > { %v5530_v36 = vadd.f32 %v5499_v3, %v5444_v62  ;;  %v5445_v3 = vadd.f32 %v11621_v6, %v5357_v41  ;;  %v5614_v58 = vadd.f32 %v11643_v31, %v5532_v60  ;;  %v5859_v62 = vshll.u32 %v11687_v9, 16 }
 0x695   : > { %v8682_v14 = vpop.f32.mrf.mxu1  ;;  %v5584_v44 = vpop.f32.mrf.mxu0  ;;  %v5451_v24 = vadd.f32 %v11629_v55, %v5363_v2 }
 0x696   : > { %v5533_v20 = vadd.f32 %v8682_v14, %v5447_v37  ;;  %v11716_v14 = vld [vmem:[#allocation2 + $0x48] sm:$0xf]  ;;  %v5612_v41 = vadd.f32 %v11653_v17, %v5530_v36  ;;  %v11727_v37 = vrot.slane %v5856_v32, 6 }
 0x697   : > { %v5502_v63 = vpop.f32.mrf.mxu1  ;;  %v8695_v26 = vpop.f32.mrf.mxu0  ;;  %v13017_v17 = vshrl.u32 %v11716_v14, 16  ;;  %v5877_v0 = vshll.u32 %v11716_v14, 16 }
 0x698   : > { %v5531_v6 = vadd.f32 %v5502_v63, %v5445_v3  ;;  %v5615_v3 = vadd.f32 %v11661_v12, %v5533_v20  ;;  %v5449_v12 = vadd.f32 %v11635_v23, %v5361_v33 }
 0x699   : > { %v8685_v56 = vpop.f32.mrf.mxu1  ;;  %v5597_v60 = vpop.f32.mrf.mxu0 }
 0x69a   : > { %v5536_v1 = vadd.f32 %v8685_v56, %v5450_v35 }
 0x69b   : > { %v5515_v61 = vpop.f32.mrf.mxu1  ;;  %v8696_v56 = vpop.f32.mrf.mxu0 }
 0x69c   : > { %v5534_v36 = vadd.f32 %v5515_v61, %v5448_v4  ;;  %v5895_v61 = vshll.u32 %v11721_v38, 16 }
 0x69d   : > { %v8686_v19 = vpop.f32.mrf.mxu1 }
 0x69e   : > { %v5616_v10 = vadd.f32 %v5597_v60, %v5534_v36  ;;  %v5894_v60 = vrot.slane %v13018_v53, 6  ;;  %v11858_v53 = vrot.slane %v5838_v43, 11 }
 0x69f   : > { %v5518_v25 = vpop.f32.mrf.mxu1 }
 0x6a0   : > { %v5535_v28 = vadd.f32 %v5518_v25, %v5449_v12  ;;  %v5897_v25 = vrot.slane %v5895_v61, 7  ;;  %13327 = vst [vmem:[#allocation63_spill] sm:$0xff] %v11858_v53 }
 0x6a1   : > { %v8701_v16 = vpop.f32.mrf.mxu1 }
 0x6a2   : > { %v5696_v31 = vadd.f32 %v8701_v16, %v5614_v58  ;;  %v5613_v16 = vadd.f32 %v5584_v44, %v5531_v6  ;;  %v5600_v44 = vpop.f32.mrf.mxu0 }
 0x6a3   : > { %v5663_v22 = vpop.f32.mrf.mxu1 }
 0x6a4   : > { %v5711_v63 = vadd.f32 %v11710_v42, %v5696_v31  ;;  %v5694_v46 = vadd.f32 %v5663_v22, %v5612_v41  ;;  %v5618_v31 = vadd.f32 %v8695_v26, %v5536_v1  ;;  %v5537_v41 = vadd.f32 %v8686_v19, %v5451_v24 }
 0x6a5   : > { %v8702_v58 = vpop.f32.mrf.mxu1 }
 0x6a6   : > { %v5719_v34 = vmax.f32 %v5711_v63, 0.0  ;;  %v5709_v45 = vadd.f32 %v11710_v42, %v5694_v46  ;;  %v5697_v35 = vadd.f32 %v8702_v58, %v5615_v3  ;;  %v5861_v63 = vrot.slane %v5859_v62, 7 }
 0x6a7   : > { %v5666_v20 = vpop.f32.mrf.mxu1  ;;  %v5876_v46 = vrot.slane %v13017_v17, 6  ;;  %v5619_v33 = vadd.f32 %v8696_v56, %v5537_v41  ;;  %v5879_v3 = vrot.slane %v5877_v0, 7  ;;  %v8921_v17 = vld [vmem:[#allocation18 + $0x44] ss:$8 sps:$4 sm:$0xff]  }
 0x6a8   : > { %v5727_v4 = vpack.c.bf16 %v5719_v34, %v5719_v34  ;;  %v5717_v55 = vmax.f32 %v5709_v45, 0.0  ;;  %v5712_v2 = vadd.f32 %v11710_v42, %v5697_v35  ;;  %v5695_v22 = vadd.f32 %v5666_v20, %v5613_v16 }
 0x6a9   : > { %v8705_v11 = vpop.f32.mrf.mxu1  ;;  %v5617_v34 = vadd.f32 %v5600_v44, %v5535_v28  ;;  %v5862_v0 = vor.u32 %v5861_v63, %v11727_v37  ;;  %v11756_v28 = vrot.slane %v5808_v39, 4  ;;  %v11777_v63 = vld [vmem:[#allocation2 + $0x8] sm:$0xf] }
 0x6aa   : > { %5735 = vst.msk [vmem:[#allocation2 + $0x1c] sm:$0xf] %vm711_vm1, %v5727_v4  ;;  %v5725_v19 = vpack.c.bf16 %v5717_v55, %v5717_v55  ;;  %v5720_v23 = vmax.f32 %v5712_v2, 0.0  ;;  %v5710_v26 = vadd.f32 %v11710_v42, %v5695_v22  ;;  %v5700_v6 = vadd.f32 %v8705_v11, %v5618_v31 }
 0x6ab   : > { %v5679_v1 = vpop.f32.mrf.mxu1  ;;  %v5844_v11 = vor.u32 %v11719_v59, %v11714_v52  ;;  %v5880_v52 = vor.u32 %v5879_v3, %v5876_v46  ;;  %v5898_v59 = vor.u32 %v5897_v25, %v5894_v60  ;;  %v11767_v2 = vrot.slane %v5862_v0, 4  ;;  %v11779_v46 = vld [vmem:[#allocation2 + $0x20] sm:$0xf] }
 0x6ac   : > { %5733 = vst.msk [vmem:[#allocation2 + $0x4] sm:$0xf] %vm711_vm1, %v5725_v19  ;;  %v5728_v62 = vpack.c.bf16 %v5720_v23, %v5720_v23  ;;  %v5718_v36 = vmax.f32 %v5710_v26, 0.0  ;;  %v5715_v24 = vadd.f32 %v11710_v42, %v5700_v6  ;;  %v5698_v58 = vadd.f32 %v5679_v1, %v5616_v10 }
 0x6ad   : > { %v8706_v45 = vpop.f32.mrf.mxu1  ;;  %v11761_v10 = vrot.slane %v5826_v30, 4  ;;  %v11765_v55 = vrot.slane %v5844_v11, 4  ;;  %v13322_v30 = vshrl.u32 %v11631_v49, 16  ;;  %v11783_v19 = vrot.slane %v5880_v52, 4 }
 0x6ae   : > { %5736 = vst.msk [vmem:[#allocation2 + $0x28] sm:$0xf] %vm711_vm1, %v5728_v62  ;;  %v5726_v56 = vpack.c.bf16 %v5718_v36, %v5718_v36  ;;  %v5723_v16 = vmax.f32 %v5715_v24, 0.0  ;;  %v5713_v31 = vadd.f32 %v11710_v42, %v5698_v58  ;;  %v5701_v41 = vadd.f32 %v8706_v45, %v5619_v33 }
 0x6af   : > { %v5682_v12 = vpop.f32.mrf.mxu1  ;;  %v11775_v22 = vrot.slane %v13322_v30, 11  ;;  %v11785_v23 = vrot.slane %v5898_v59, 4  ;;  %v13323_v26 = vshrl.u32 %v11637_v7, 16  ;;  %v11801_v60 = vrot.slane %v5820_v47, 11  ;;  %v11815_v47 = vld [vmem:[#allocation2 + $0x2c] sm:$0xf] }
 0x6b0   : > { %5734 = vst.msk [vmem:[#allocation2 + $0x10] sm:$0xf] %vm711_vm1, %v5726_v56  ;;  %v5731_v37 = vpack.c.bf16 %v5723_v16, %v5723_v16  ;;  %v5721_v20 = vmax.f32 %v5713_v31, 0.0  ;;  %v5716_v61 = vadd.f32 %v11710_v42, %v5701_v41  ;;  %v5699_v4 = vadd.f32 %v5682_v12, %v5617_v34  ;;  %v8910_v30 = vld [vmem:[#allocation18 + $0x20] ss:$8 sps:$4 sm:$0xff]  }
 0x6b1   : > { %v11789_v6 = vrot.slane %v13323_v26, 11  ;;  %v11813_v45 = vld [vmem:[#allocation2 + $0x1c] sm:$0xf]  ;;  %v13019_v11 = vshll.u32 %v11779_v46, 16  ;;  %v13020_v31 = vshll.u32 %v11777_v63, 16  ;;  %v6856_v41 = vshrl.u32 %v11779_v46, 16 }
 0x6b2   : > { %5739 = vst.msk [vmem:[#allocation2 + $0x4c] sm:$0xf] %vm711_vm1, %v5731_v37  ;;  %v5729_v27 = vpack.c.bf16 %v5721_v20, %v5721_v20  ;;  %v5724_v5 = vmax.f32 %v5716_v61, 0.0  ;;  %v5714_v39 = vadd.f32 %v11710_v42, %v5699_v4  ;;  %v11793_v42 = vrot.slane %v5802_v48, 11 }
 0x6b3   : > { %v11781_v44 = vld [vmem:[#allocation2 + $0x4] sm:$0xf]  ;;  %v13324_v20 = vrot.slane %v11631_v49, 11  ;;  %v13326_v26 = vrot.slane %v11637_v7, 11  ;;  %v11861_v24 = vrot.slane %v6856_v41, 5  ;;  %v11875_v41 = vrot.slane %v13019_v11, 6 }
 0x6b4   : > { %5737 = vst.msk [vmem:[#allocation2 + $0x34] sm:$0xf] %vm711_vm1, %v5729_v27  ;;  %v5732_v33 = vpack.c.bf16 %v5724_v5, %v5724_v5  ;;  %v5722_v1 = vmax.f32 %v5714_v39, 0.0  ;;  %v11797_v3 = vshrl.u32 %v11781_v44, 16  ;;  %v5929_v25 = vrot.slane %v11781_v44, 7 }
 0x6b5   : > { %v11805_v62 = vshll.u32 %v11781_v44, 16  ;;  %v11807_v36 = vld [vmem:[#allocation2 + $0x28] sm:$0xf]  ;;  %v11842_v27 = vshrl.u32 %v11813_v45, 16  ;;  %v11845_v5 = vshll.u32 %v11813_v45, 16  ;;  %v6836_v39 = vshrl.u32 %v11777_v63, 16 }
 0x6b6   : > { %5740 = vst.msk [vmem:[#allocation2 + $0x58] sm:$0xf] %vm711_vm1, %v5732_v33  ;;  %v5730_v58 = vpack.c.bf16 %v5722_v1, %v5722_v1  ;;  %v5777_v34 = vrot.slane %v11797_v3, 6  ;;  %v11822_v16 = vshrl.u32 %v11807_v36, 16  ;;  %v11835_v37 = vshll.u32 %v11807_v36, 16  ;;  %13328 = vst [vmem:[#allocation39_spill] sm:$0xff] %v11861_v24 }
 0x6b7   : > { %v11818_v0 = vld [vmem:[#allocation2 + $0x10] sm:$0xf]  ;;  %v5780_v56 = vrot.slane %v11805_v62, 7  ;;  %v5930_v4 = vsel %vm9870_vm6, %v13324_v20, %v5929_v25  ;;  %v11854_v25 = vld [vmem:[#allocation2 + $0x14] sm:$0xf]  ;;  %13330 = vst [vmem:[#allocation46_spill] sm:$0xff] %v11875_v41 }
 0x6b8   : > { %5738 = vst.msk [vmem:[#allocation2 + $0x40] sm:$0xf] %vm711_vm1, %v5730_v58  ;;  %v5933_v12 = vrot.slane %v11818_v0, 7  ;;  %v11829_v52 = vshrl.u32 %v11818_v0, 16  ;;  %v11832_v59 = vshll.u32 %v11818_v0, 16  ;;  %v13392_v13 = vshll.u32 %v11777_v63, 16 }
 0x6b9   : > { %v5781_v1 = vor.u32 %v5780_v56, %v5777_v34  ;;  %v5831_v34 = vrot.slane %v11822_v16, 6  ;;  %v5834_v56 = vrot.slane %v11835_v37, 7  ;;  %v11951_v53 = vld [vmem:[#allocation2 + $0x4c] sm:$0xf]  ;;  %vm7266_vm1 = vcmask 1045504  }
 0x6ba   : > { %v5934_v33 = vsel %vm9870_vm6, %v13326_v26, %v5933_v12  ;;  %v5795_v49 = vrot.slane %v11829_v52, 6  ;;  %v5798_v58 = vrot.slane %v11832_v59, 7  ;;  %v5941_v12 = vrot.slane %v11807_v36, 7 }
 0x6bb   : > { %v8171_v20 = vcombine.low %v5930_v4, %v5934_v33  ;;  %v5937_v4 = vrot.slane %v11813_v45, 7  ;;  %v11870_v26 = vrot.slane %v5856_v32, 11  ;;  %v5782_v33 = vsel %vm9898_vm7, %v11681_v57, %v5781_v1  ;;  %v11886_v43 = vld [vmem:[#allocation2 + $0x34] sm:$0xf] }
 0x6bc   : > { %v5799_v7 = vor.u32 %v5798_v58, %v5795_v49  ;;  %v5813_v32 = vrot.slane %v11842_v27, 6  ;;  %v5816_v58 = vrot.slane %v11845_v5, 7  ;;  %v13331_v57 = vrot.slane %v11649_v54, 11 }
 0x6bd   : > { %8177 = vmatmul.mubr.msk.bf16.vlgmr.msra.gmra.mxu0 %vm736_vm0, %v8171_v20  ;;  %13329 = vst [vmem:[#allocation58_spill] sm:$0xff] %v11870_v26  ;;  %v8916_v20 = vld [vmem:[#allocation18 + $0x30] ss:$8 sps:$4 sm:$0xff]   ;;  %v11908_v54 = vrot.slane %v13020_v31, 6  ;;  %v13341_v26 = vshll.u32 %v11854_v25, 16 }
 0x6be   : > { %6268 = vmatpush1.bf16.msra.mxu0 %v8910_v30  ;;  %v5800_v49 = vsel %vm9898_vm7, %v11685_v29, %v5799_v7  ;;  %6038 = vmatprep.mubr.bf16.mxu0 %v13321_v21  ;;  %v8928_v30 = vld [vmem:[#allocation18 + $0x54] ss:$8 sps:$4 sm:$0xff]   ;;  %v5942_v1 = vsel %vm9870_vm6, %v13331_v57, %v5941_v12  ;;  %v5835_v29 = vor.u32 %v5834_v56, %v5831_v34  ;;  %v6866_v12 = vshrl.u32 %v11815_v47, 16 }
 0x6bf   : > { %v8181_v15 = vcombine.low %v5782_v33, %v5800_v49  ;;  %v11888_v11 = vld [vmem:[#allocation2 + $0x40] sm:$0xf]  ;;  %6591 = vmatprep.subr.bf16.mxu0 %v8921_v17  ;;  %v13021_v33 = vshll.u32 %v11815_v47, 16  ;;  %v11904_v17 = vrot.slane %v6836_v39, 5  ;;  %13335 = vst [vmem:[#allocation50_spill] sm:$0xff] %v11908_v54  ;;  %v13336_v34 = vrot.slane %v11647_v8, 11 }
 0x6c0   : > { %v11895_v7 = vshrl.u32 %v11888_v11, 16  ;;  %v11898_v48 = vshll.u32 %v11888_v11, 16  ;;  %v5817_v49 = vor.u32 %v5816_v58, %v5813_v32  ;;  %v11920_v39 = vshll.u32 %v11886_v43, 16 }
 0x6c1   : > { %8187 = vmatmul.mubr.msk.bf16.vlgmr.msra.gmra.mxu1 %vm736_vm0, %v8181_v15  ;;  %13334 = vst [vmem:[#allocation49_spill] sm:$0xff] %v11904_v17  ;;  %v5938_v56 = vsel %vm9870_vm6, %v13336_v34, %v5937_v4  ;;  %v11917_v15 = vshrl.u32 %v11886_v43, 16  ;;  %v6846_v8 = vshrl.u32 %v11854_v25, 16  ;;  %v5836_v4 = vsel %vm9898_vm7, %v11761_v10, %v5835_v29 }
 0x6c2   : > { %13332 = vst [vmem:[#allocation42_spill] sm:$0xff] %v11898_v48  ;;  %6145 = vmatprep.mubr.bf16.mxu1 %v13321_v21  ;;  %13337 = vst [vmem:[#allocation57_spill] sm:$0xff] %v11920_v39  ;;  %6394 = vmatpush1.bf16.msra.mxu1 %v8916_v20  ;;  %v8172_v57 = vcombine.low %v5938_v56, %v5942_v1  ;;  %v5949_v32 = vrot.slane %v11888_v11, 7  ;;  %v5867_v58 = vrot.slane %v11895_v7, 6  ;;  %v5870_v34 = vrot.slane %v11898_v48, 7 }
 0x6c3   : > { %6757 = vmatprep.subr.bf16.mxu1 %v8928_v30  ;;  %v11932_v20 = vld [vmem:[#allocation2 + $0x58] sm:$0xf]  ;;  %v11938_v56 = vrot.slane %v6866_v12, 5  ;;  %v11942_v10 = vrot.slane %v13021_v33, 6  ;;  %v5818_v29 = vsel %vm9898_vm7, %v11756_v28, %v5817_v49  ;;  %v5849_v35 = vrot.slane %v11917_v15, 6 }
 0x6c4   : > { %v11934_v30 = vld [vmem:[#allocation2 + $0x38] sm:$0xf]  ;;  %v5852_v31 = vrot.slane %v11920_v39, 7  ;;  %v8182_v12 = vcombine.low %v5818_v29, %v5836_v4  ;;  %v11955_v33 = vrot.slane %v6846_v8, 5  ;;  %v11959_v24 = vrot.slane %v13341_v26, 6 }
 0x6c5   : > { %8178 = vmatmul.mubr.msk.bf16.gmra.mxu0 %vm736_vm0, %v8172_v57  ;;  %13338 = vst [vmem:[#allocation47_spill] sm:$0xff] %v11934_v30  ;;  %13339 = vst [vmem:[#allocation40_spill] sm:$0xff] %v11938_v56  ;;  %v5945_v57 = vrot.slane %v11886_v43, 7  ;;  %v13342_v28 = vrot.slane %v11687_v9, 11  ;;  %v5871_v41 = vor.u32 %v5870_v34, %v5867_v58  ;;  %v11966_v48 = vshrl.u32 %v11932_v20, 16 }
 0x6c6   : > { %13340 = vst [vmem:[#allocation54_spill] sm:$0xff] %v11942_v10  ;;  %6048 = vmatprep.mubr.bf16.mxu0 %v13321_v21  ;;  %v11969_v4 = vshll.u32 %v11932_v20, 16  ;;  %v11971_v29 = vld [vmem:[#allocation2 + $0x5c] sm:$0xf]  ;;  %v11975_v8 = vshrl.u32 %v11951_v53, 16  ;;  %v11978_v26 = vshll.u32 %v11951_v53, 16 }
 0x6c7   : > { %v5950_v49 = vsel %vm9870_vm6, %v13342_v28, %v5949_v32  ;;  %13343 = vst [vmem:[#allocation51_spill] sm:$0xff] %v11966_v48  ;;  %13345 = vst [vmem:[#allocation44_spill] sm:$0xff] %v11971_v29  ;;  %v13347_v58 = vrot.slane %v11677_v40, 11  ;;  %v5853_v28 = vor.u32 %v5852_v31, %v5849_v35  ;;  %v6896_v1 = vshrl.u32 %v11900_v18, 16  ;;  %v11991_v39 = vld [vmem:[#allocation2 + $0x44] sm:$0xf] }
 0x6c8   : > { %13344 = vst [vmem:[#allocation36_spill] sm:$0xff] %v11969_v4  ;;  %13346 = vst [vmem:[#allocation45_spill] sm:$0xff] %v11978_v26  ;;  %v5957_v54 = vrot.slane %v11932_v20, 7  ;;  %v5903_v35 = vrot.slane %v11966_v48, 6  ;;  %v5906_v31 = vrot.slane %v11969_v4, 7  ;;  %v6876_v40 = vshrl.u32 %v11934_v30, 16 }
 0x6c9   : > { %8188 = vmatmul.mubr.msk.bf16.gmra.mxu1 %vm736_vm0, %v8182_v12  ;;  %v5946_v34 = vsel %vm9870_vm6, %v13347_v58, %v5945_v57  ;;  %13348 = vst [vmem:[#allocation32_spill] sm:$0xff] %v11991_v39  ;;  %v5872_v57 = vsel %vm9898_vm7, %v11767_v2, %v5871_v41  ;;  %v8229_v12 = vrot.slane %v11781_v44, 9  ;;  %v5854_v2 = vsel %vm9898_vm7, %v11765_v55, %v5853_v28  ;;  %v13369_v51 = vld [vmem:[#allocation42_spill] sm:$0xff] }
 0x6ca   : > { %6155 = vmatprep.mubr.bf16.mxu1 %v13321_v21  ;;  %v8173_v17 = vcombine.low %v5946_v34, %v5950_v49  ;;  %v5885_v49 = vrot.slane %v11975_v8, 6  ;;  %v5888_v34 = vrot.slane %v11978_v26, 7  ;;  %v5953_v41 = vrot.slane %v11951_v53, 7 }
 0x6cb   : > { %v8230_v58 = vrot.slane %v11818_v0, 9  ;;  %v8183_v32 = vcombine.low %v5854_v2, %v5872_v57  ;;  %v13349_v9 = vrot.slane %v11721_v38, 11  ;;  %v8231_v48 = vrot.slane %v11813_v45, 9 }
 0x6cc   : > { %v5907_v10 = vor.u32 %v5906_v31, %v5903_v35  ;;  %v6183_v55 = vrot.slane %v11829_v52, 7  ;;  %v13350_v28 = vrot.slane %v11777_v63, 5  ;;  %v13351_v57 = vrot.slane %v11854_v25, 5 }
 0x6cd   : > { %8179 = vmatmul.mubr.msk.bf16.gmra.mxu0 %vm736_vm0, %v8173_v17  ;;  %v6696_v17 = vrot.slane %v11991_v39, 5  ;;  %v5958_v4 = vsel %vm9870_vm6, %v13349_v9, %v5957_v54  ;;  %v5889_v54 = vor.u32 %v5888_v34, %v5885_v49  ;;  %v6886_v31 = vshrl.u32 %v11991_v39, 16 }
 0x6ce   : > { %6058 = vmatprep.mubr.bf16.mxu0 %v13321_v21  ;;  %v12025_v26 = vsel %vm10201_vm2, %v8229_v12, %v13350_v28  ;;  %v12031_v2 = vsel %vm10201_vm2, %v8230_v58, %v13351_v57  ;;  %v13352_v56 = vrot.slane %v11716_v14, 11  ;;  %v6178_v58 = vrot.slane %v11797_v3, 7 }
 0x6cf   : > { %v8232_v28 = vrot.slane %v11807_v36, 9  ;;  %v6193_v34 = vrot.slane %v11822_v16, 7  ;;  %v13353_v57 = vshll.u32 %v11934_v30, 16  ;;  %v6906_v35 = vshrl.u32 %v11971_v29, 16 }
 0x6d0   : > { %v5954_v12 = vsel %vm9870_vm6, %v13352_v56, %v5953_v41  ;;  %v5908_v61 = vsel %vm9898_vm7, %v11785_v23, %v5907_v10  ;;  %v6184_v56 = vor.u32 %v6183_v55, %v11832_v59  ;;  %v13354_v41 = vrot.slane %v11779_v46, 5 }
 0x6d1   : > { %8189 = vmatmul.mubr.msk.bf16.gmra.mxu1 %vm736_vm0, %v8183_v32  ;;  %v12045_v32 = vrot.slane %v6876_v40, 5  ;;  %v8174_v49 = vcombine.low %v5954_v12, %v5958_v4  ;;  %v12050_v9 = vrot.slane %v13353_v57, 6  ;;  %v13356_v4 = vrot.slane %v11815_v47, 5 }
 0x6d2   : > { %6165 = vmatprep.mubr.bf16.mxu1 %v13321_v21  ;;  %v12061_v40 = vsel %vm10201_vm2, %v8231_v48, %v13354_v41  ;;  %v5890_v23 = vsel %vm9898_vm7, %v11783_v19, %v5889_v54  ;;  %v12075_v55 = vrot.slane %v6886_v31, 5  ;;  %v13358_v48 = vshll.u32 %v11991_v39, 16 }
 0x6d3   : > { %13355 = vst [vmem:[#allocation59_spill] sm:$0xff] %v12061_v40  ;;  %v12067_v12 = vsel %vm10201_vm2, %v8232_v28, %v13356_v4  ;;  %v6179_v28 = vor.u32 %v6178_v58, %v11805_v62  ;;  %v6188_v41 = vrot.slane %v11842_v27, 7  ;;  %v8234_v50 = vrot.slane %v11888_v11, 9 }
 0x6d4   : > { %13357 = vst [vmem:[#allocation41_spill] sm:$0xff] %v12067_v12  ;;  %v12079_v57 = vrot.slane %v13358_v48, 6  ;;  %v8184_v19 = vcombine.low %v5890_v23, %v5908_v61  ;;  %v12088_v31 = vrot.slane %v6896_v1, 5  ;;  %v13359_v4 = vshll.u32 %v11900_v18, 16 }
 0x6d5   : > { %8180 = vmatmul.mubr.msk.bf16.gmra.mxu0 %vm736_vm0, %v8174_v49  ;;  %v8233_v49 = vrot.slane %v11886_v43, 9  ;;  %v6185_v58 = vsel %vm10072_vm10, %v11789_v6, %v6184_v56  ;;  %v6194_v10 = vor.u32 %v6193_v34, %v11835_v37  ;;  %v13360_v12 = vrot.slane %v11934_v30, 5 }
 0x6d6   : > { %6285 = vmatprep.mubr.bf16.mxu0 %v13321_v21  ;;  %v12092_v48 = vrot.slane %v13359_v4, 6  ;;  %v12106_v1 = vsel %vm10201_vm2, %v8234_v50, %v6696_v17  ;;  %v12113_v56 = vrot.slane %v6906_v35, 5  ;;  %v13363_v34 = vshll.u32 %v11971_v29, 16  ;;  %v8931_v35 = vld [vmem:[#allocation18 + $0x64] ss:$8 sps:$4 sm:$0xff]  }
 0x6d7   : > { %v12102_v61 = vsel %vm10201_vm2, %v8233_v49, %v13360_v12  ;;  %13362 = vst [vmem:[#allocation53_spill] sm:$0xff] %v12106_v1  ;;  %v8919_v12 = vld [vmem:[#allocation18 + $0x40] ss:$8 sps:$4 sm:$0xff]   ;;  %v6180_v17 = vsel %vm10072_vm10, %v11775_v22, %v6179_v28  ;;  %v6189_v49 = vor.u32 %v6188_v41, %v11845_v5  ;;  %v8235_v50 = vrot.slane %v11951_v53, 9 }
 0x6d8   : > { %13361 = vst [vmem:[#allocation60_spill] sm:$0xff] %v12102_v61  ;;  %v12117_v4 = vrot.slane %v13363_v34, 6  ;;  %v8199_v23 = vcombine.low %v6180_v17, %v6185_v58  ;;  %v6832_v6 = vrot.slane %v11797_v3, 5  ;;  %v6833_v34 = vrot.slane %v11805_v62, 6 }
 0x6d9   : > { %8190 = vmatmul.mubr.msk.bf16.gmra.mxu1 %vm736_vm0, %v8184_v19  ;;  %v8236_v19 = vrot.slane %v11932_v20, 9  ;;  %v6842_v54 = vrot.slane %v11829_v52, 5  ;;  %v8209_v1 = vcombine.low %v11781_v44, %v11818_v0  ;;  %v6195_v22 = vsel %vm10072_vm10, %v11801_v60, %v6194_v10 }
 0x6da   : > { %6411 = vmatprep.mubr.bf16.mxu1 %v13321_v21  ;;  %v6203_v28 = vrot.slane %v11895_v7, 7  ;;  %v13364_v41 = vrot.slane %v11900_v18, 5  ;;  %v13366_v17 = vrot.slane %v11971_v29, 5  ;;  %v6834_v44 = vor.u32 %v6833_v34, %v6832_v6  ;;  %v13368_v29 = vld [vmem:[#allocation57_spill] sm:$0xff] }
 0x6db   : > { %v6843_v0 = vrot.slane %v11832_v59, 6  ;;  %v6852_v60 = vrot.slane %v11842_v27, 5  ;;  %v6190_v10 = vsel %vm10072_vm10, %v11793_v42, %v6189_v49  ;;  %v6872_v18 = vrot.slane %v11917_v15, 5 }
 0x6dc   : > { %v12139_v58 = vsel %vm10201_vm2, %v8235_v50, %v13364_v41  ;;  %v12146_v61 = vsel %vm10201_vm2, %v8236_v19, %v13366_v17  ;;  %v8926_v50 = vld [vmem:[#allocation18 + $0x50] ss:$8 sps:$4 sm:$0xff]   ;;  %v6853_v19 = vrot.slane %v11845_v5, 6  ;;  %v6835_v6 = vrot.slane %v6834_v44, 4 }
 0x6dd   : > { %13365 = vst [vmem:[#allocation38_spill] sm:$0xff] %v12139_v58  ;;  %8205 = vmatmul.mubr.msk.bf16.vlgmr.msra.gmra.mxu0 %vm736_vm0, %v8199_v23  ;;  %13367 = vst [vmem:[#allocation55_spill] sm:$0xff] %v12146_v61  ;;  %v6198_v23 = vrot.slane %v11917_v15, 7  ;;  %v6844_v34 = vor.u32 %v6843_v0, %v6842_v54  ;;  %v6862_v41 = vrot.slane %v11822_v16, 5  ;;  %v6863_v17 = vrot.slane %v11835_v37, 6  ;;  %v13370_v44 = vld [vmem:[#allocation50_spill] sm:$0xff] }
 0x6de   : > { %6592 = vmatpush1.bf16.msra.mxu0 %v8919_v12  ;;  %6295 = vmatprep.mubr.bf16.mxu0 %v13321_v21  ;;  %v8934_v12 = vld [vmem:[%s12946_s15 + $0x4] ss:$8 sps:$4 sm:$0xff]   ;;  %v8200_v42 = vcombine.low %v6190_v10, %v6195_v22  ;;  %v6854_v49 = vor.u32 %v6853_v19, %v6852_v60  ;;  %v6873_v40 = vrot.slane %v13368_v29, 6  ;;  %v6882_v10 = vrot.slane %v11895_v7, 5 }
 0x6df   : > { %6963 = vmatprep.subr.bf16.mxu0 %v8931_v35  ;;  %v6204_v35 = vor.u32 %v6203_v28, %v13369_v51  ;;  %v13371_v54 = vld [vmem:[#allocation49_spill] sm:$0xff]  ;;  %v6845_v30 = vrot.slane %v6844_v34, 4  ;;  %v6864_v39 = vor.u32 %v6863_v17, %v6862_v41  ;;  %v13374_v28 = vor.u32 %v11959_v24, %v11955_v33 }
 0x6e0   : > { %v13372_v0 = vor.u32 %v13370_v44, %v13371_v54  ;;  %v6855_v22 = vrot.slane %v6854_v49, 4  ;;  %v6874_v60 = vor.u32 %v6873_v40, %v6872_v18  ;;  %v6892_v34 = vrot.slane %v11975_v8, 5  ;;  %v13376_v41 = vld [vmem:[#allocation45_spill] sm:$0xff]  ;;  %v13377_v40 = vld [vmem:[#allocation46_spill] sm:$0xff] }
 0x6e1   : > { %8215 = vmatmul.mubr.msk.bf16.vlgmr.msra.gmra.mxu1 %vm736_vm0, %v8209_v1  ;;  %v6883_v1 = vrot.slane %v13369_v51, 6  ;;  %v12182_v19 = vsel %vm10297_vm8, %v6845_v30, %v13374_v28  ;;  %v6893_v17 = vrot.slane %v13376_v41, 6  ;;  %v13380_v30 = vld [vmem:[#allocation54_spill] sm:$0xff]  ;;  %v13383_v28 = vld [vmem:[#allocation51_spill] sm:$0xff] }
 0x6e2   : > { %v12172_v58 = vsel %vm10297_vm8, %v6835_v6, %v13372_v0  ;;  %6421 = vmatprep.mubr.bf16.mxu1 %v13321_v21  ;;  %6758 = vmatpush1.bf16.msra.mxu1 %v8926_v50  ;;  %13375 = vst [vmem:[#allocation52_spill] sm:$0xff] %v12182_v19  ;;  %v6865_v6 = vrot.slane %v6864_v39, 4  ;;  %v13378_v50 = vld [vmem:[#allocation39_spill] sm:$0xff]  ;;  %v6875_v24 = vrot.slane %v6874_v60, 4  ;;  %v13381_v39 = vld [vmem:[#allocation40_spill] sm:$0xff]  ;;  %v6902_v18 = vrot.slane %v13383_v28, 5 }
 0x6e3   : > { %7442 = vmatprep.subr.bf16.mxu1 %v8934_v12  ;;  %v13379_v49 = vor.u32 %v13377_v40, %v13378_v50  ;;  %v6884_v33 = vor.u32 %v6883_v1, %v6882_v10  ;;  %v13382_v12 = vor.u32 %v13380_v30, %v13381_v39  ;;  %v6894_v0 = vor.u32 %v6893_v17, %v6892_v34  ;;  %v13384_v19 = vld [vmem:[#allocation36_spill] sm:$0xff]  ;;  %v13385_v50 = vld [vmem:[#allocation58_spill] sm:$0xff] }
 0x6e4   : > { %v6903_v40 = vrot.slane %v13384_v19, 6  ;;  %v6900_v10 = vor.u32 %v12092_v48, %v12088_v31  ;;  %v8210_v1 = vcombine.low %v11813_v45, %v11807_v36  ;;  %v6910_v17 = vor.u32 %v12117_v4, %v12113_v56  ;;  %v13388_v4 = vld [vmem:[#allocation63_spill] sm:$0xff] }
 0x6e5   : > { %v12193_v44 = vsel %vm10297_vm8, %v6855_v22, %v13379_v49  ;;  %8206 = vmatmul.mubr.msk.bf16.gmra.mxu0 %vm736_vm0, %v8200_v42  ;;  %v12201_v54 = vsel %vm10297_vm8, %v6865_v6, %v13382_v12  ;;  %v6199_v22 = vor.u32 %v6198_v23, %v13368_v29  ;;  %v6885_v42 = vrot.slane %v6884_v33, 4 }
 0x6e6   : > { %6305 = vmatprep.mubr.bf16.mxu0 %v13321_v21  ;;  %v8248_v60 = vcombine.low %v12193_v44, %v12201_v54  ;;  %v6895_v6 = vrot.slane %v6894_v0, 4  ;;  %v6904_v34 = vor.u32 %v6903_v40, %v6902_v18  ;;  %v6205_v49 = vsel %vm10072_vm10, %v13385_v50, %v6204_v35 }
 0x6e7   : > { %v6213_v23 = vrot.slane %v13383_v28, 7  ;;  %v13386_v33 = vor.u32 %v12050_v9, %v12045_v32  ;;  %v13387_v36 = vor.u32 %v12079_v57, %v12075_v55  ;;  %v6200_v9 = vsel %vm10072_vm10, %v13388_v4, %v6199_v22 }
 0x6e8   : > { %v6905_v56 = vrot.slane %v6904_v34, 4  ;;  %v6208_v32 = vrot.slane %v11975_v8, 7  ;;  %v8201_v35 = vcombine.low %v6200_v9, %v6205_v49  ;;  %v13389_v55 = vshrl.u32 %v11721_v38, 16 }
 0x6e9   : > { %v12224_v31 = vsel %vm10297_vm8, %v6875_v24, %v13386_v33  ;;  %v12231_v45 = vsel %vm10297_vm8, %v6885_v42, %v13387_v36  ;;  %8216 = vmatmul.mubr.msk.bf16.gmra.mxu1 %vm736_vm0, %v8210_v1  ;;  %v12245_v18 = vsel %vm10297_vm8, %v6895_v6, %v6900_v10  ;;  %v6214_v30 = vor.u32 %v6213_v23, %v13384_v19 }
 0x6ea   : > { %v8249_v48 = vcombine.low %v12224_v31, %v12231_v45  ;;  %6431 = vmatprep.mubr.bf16.mxu1 %v13321_v21  ;;  %v8198_v57 = vrot.slane %v13389_v55, 11  ;;  %v12249_v24 = vsel %vm10297_vm8, %v6905_v56, %v6910_v17  ;;  %v6477_v39 = vrot.slane %v11829_v52, 4 }
 0x6eb   : > { %v6478_v12 = vrot.slane %v11832_v59, 5  ;;  %v8250_v0 = vcombine.low %v12245_v18, %v12249_v24  ;;  %v13390_v38 = vshrl.u32 %v11716_v14, 16  ;;  %v6209_v61 = vor.u32 %v6208_v32, %v13376_v41 }
 0x6ec   : > { %v6468_v22 = vrot.slane %v11797_v3, 4  ;;  %v6469_v42 = vrot.slane %v11805_v62, 5  ;;  %v8211_v52 = vcombine.low %v11886_v43, %v11888_v11  ;;  %v6215_v59 = vsel %vm10072_vm10, %v8198_v57, %v6214_v30 }
 0x6ed   : > { %8207 = vmatmul.mubr.msk.bf16.gmra.mxu0 %vm736_vm0, %v8201_v35  ;;  %v8197_v40 = vrot.slane %v13390_v38, 11  ;;  %v6479_v10 = vor.u32 %v6478_v12, %v6477_v39  ;;  %v13391_v3 = vshll.u32 %v11854_v25, 16  ;;  %v6495_v17 = vrot.slane %v11822_v16, 4 }
 0x6ee   : > { %6315 = vmatprep.mubr.bf16.mxu0 %v13321_v21  ;;  %v6470_v14 = vor.u32 %v6469_v42, %v6468_v22  ;;  %v6496_v11 = vrot.slane %v11835_v37, 5  ;;  %v6475_v50 = vrot.slane %v13392_v13, 5  ;;  %v6486_v49 = vrot.slane %v11842_v27, 4  ;;  %v8929_v37 = vld [vmem:[#allocation18 + $0x60] ss:$8 sps:$4 sm:$0xff]  }
 0x6ef   : > { %v6210_v1 = vsel %vm10072_vm10, %v8197_v40, %v6209_v61  ;;  %v6480_v34 = vrot.slane %v6479_v10, 4  ;;  %v6484_v62 = vrot.slane %v13391_v3, 5  ;;  %v6487_v23 = vrot.slane %v11845_v5, 5  ;;  %v13397_v40 = vld [vmem:[#allocation32_spill] sm:$0xff] }
 0x6f0   : > { %v8202_v6 = vcombine.low %v6210_v1, %v6215_v59  ;;  %v6471_v43 = vrot.slane %v6470_v14, 4  ;;  %v8212_v25 = vcombine.low %v11951_v53, %v11932_v20  ;;  %v6497_v36 = vor.u32 %v6496_v11, %v6495_v17  ;;  %v13399_v1 = vld [vmem:[#allocation47_spill] sm:$0xff]  ;;  %v7197_v17 = vld [vmem:[#allocation3 + $0x18] sm:$0xff] }
 0x6f1   : > { %8217 = vmatmul.mubr.msk.bf16.gmra.mxu1 %vm736_vm0, %v8211_v52  ;;  %v6485_v16 = vsel %vm10188_vm15, %v6480_v34, %v6484_v62  ;;  %v6488_v63 = vor.u32 %v6487_v23, %v6486_v49  ;;  %v13394_v5 = vshll.u32 %v11815_v47, 16  ;;  %v6513_v53 = vrot.slane %v11895_v7, 4  ;;  %v8932_v47 = vld [vmem:[%s12946_s15] ss:$8 sps:$4 sm:$0xff]   ;;  %v7196_v62 = vld [vmem:[#allocation3 + $0x10] sm:$0xff] }
 0x6f2   : > { %6441 = vmatprep.mubr.bf16.mxu1 %v13321_v21  ;;  %v6476_v56 = vsel %vm10188_vm15, %v6471_v43, %v6475_v50  ;;  %v6498_v27 = vrot.slane %v6497_v36, 4  ;;  %v6514_v20 = vrot.slane %v13369_v51, 5  ;;  %v13395_v35 = vshll.u32 %v11779_v46, 16  ;;  %v13401_v50 = vld [vmem:[#allocation59_spill] sm:$0xff]  ;;  %v13402_v49 = vld [vmem:[#allocation41_spill] sm:$0xff] }
 0x6f3   : > { %v8219_v4 = vcombine.low %v6476_v56, %v6485_v16  ;;  %v6502_v9 = vrot.slane %v13394_v5, 5  ;;  %v6489_v32 = vrot.slane %v6488_v63, 4  ;;  %v6504_v57 = vrot.slane %v11917_v15, 4  ;;  %v13404_v5 = vld [vmem:[#allocation44_spill] sm:$0xff] }
 0x6f4   : > { %v6493_v55 = vrot.slane %v13395_v35, 5  ;;  %v6505_v30 = vrot.slane %v13368_v29, 5  ;;  %v6515_v51 = vor.u32 %v6514_v20, %v6513_v53  ;;  %v13396_v39 = vcombine.low %v12025_v26, %v12031_v2  ;;  %v7198_v29 = vld [vmem:[#allocation3 + $0x20] sm:$0xff]  ;;  %v7199_v26 = vld [vmem:[#allocation3 + $0x28] sm:$0xff]  ;;  %v7204_v35 = vld [vmem:[#allocation3 + $0x50] sm:$0xff] }
 0x6f5   : > { %8208 = vmatmul.mubr.msk.bf16.gmra.mxu0 %vm736_vm0, %v8202_v6  ;;  %v6503_v7 = vsel %vm10188_vm15, %v6498_v27, %v6502_v9  ;;  %v13398_v61 = vshll.u32 %v13397_v40, 16  ;;  %v6531_v42 = vrot.slane %v13383_v28, 4  ;;  %v6532_v52 = vrot.slane %v13384_v19, 5  ;;  %v7195_v2 = vld [vmem:[#allocation3 + $0x8] sm:$0xff] }
 0x6f6   : > { %6609 = vmatprep.mubr.bf16.mxu0 %v13321_v21  ;;  %v6494_v46 = vsel %vm10188_vm15, %v6489_v32, %v6493_v55  ;;  %v6506_v15 = vor.u32 %v6505_v30, %v6504_v57  ;;  %v6516_v38 = vrot.slane %v6515_v51, 4  ;;  %v7227_v59 = vrot.slane %v7198_v29, 1  ;;  %v7205_v55 = vld [vmem:[#allocation3 + $0x58] sm:$0xff] }
 0x6f7   : > { %v8220_v12 = vcombine.low %v6494_v46, %v6503_v7  ;;  %v6520_v22 = vrot.slane %v13398_v61, 5  ;;  %v13400_v14 = vshll.u32 %v13399_v1, 16  ;;  %v6522_v34 = vrot.slane %v11975_v8, 4 }
 0x6f8   : > { %v6507_v10 = vrot.slane %v6506_v15, 4  ;;  %v6523_v3 = vrot.slane %v13376_v41, 5  ;;  %v7270_v28 = vrot.slane %v7198_v29, 2  ;;  %v7271_v11 = vrot.slane %v7199_v26, 2  ;;  %v7201_v15 = vld [vmem:[#allocation3 + $0x38] sm:$0xff] }
 0x6f9   : > { %8218 = vmatmul.mubr.msk.bf16.gmra.mxu1 %vm736_vm0, %v8212_v25  ;;  %v6511_v6 = vrot.slane %v13400_v14, 5  ;;  %v6521_v19 = vsel %vm10188_vm15, %v6516_v38, %v6520_v22  ;;  %v6533_v43 = vor.u32 %v6532_v52, %v6531_v42  ;;  %v7226_v13 = vrot.slane %v7195_v2, 1  ;;  %v7194_v25 = vld [vmem:[#allocation3] sm:$0xff]  ;;  %v7203_v42 = vld [vmem:[#allocation3 + $0x48] sm:$0xff]  ;;  %v13408_v26 = vld [vmem:[#allocation60_spill] sm:$0xff] }
 0x6fa   : > { %6775 = vmatprep.mubr.bf16.mxu1 %v13321_v21  ;;  %v13403_v23 = vcombine.low %v13401_v50, %v13402_v49  ;;  %v7267_v16 = vrot.slane %v7195_v2, 2  ;;  %v7268_v8 = vrot.slane %v7196_v62, 2  ;;  %v6524_v36 = vor.u32 %v6523_v3, %v6522_v34  ;;  %v7200_v34 = vld [vmem:[#allocation3 + $0x30] sm:$0xff]  ;;  %v7210_v50 = vld [vmem:[#allocation3 + $0x80] sm:$0xff] }
 0x6fb   : > { %v6512_v41 = vsel %vm10188_vm15, %v6507_v10, %v6511_v6  ;;  %v7245_v56 = vadd.f32 %v7227_v59, %v7198_v29  ;;  %v6534_v27 = vrot.slane %v6533_v43, 4  ;;  %v13405_v9 = vshll.u32 %v13404_v5, 16  ;;  %v7202_v29 = vld [vmem:[#allocation3 + $0x40] sm:$0xff]  ;;  %v7209_v5 = vld [vmem:[#allocation3 + $0x78] sm:$0xff] }
 0x6fc   : > { %v8221_v63 = vcombine.low %v6512_v41, %v6521_v19  ;;  %v7242_v20 = vadd.f32 %v7226_v13, %v7194_v25  ;;  %v7243_v32 = vadd.f32 %v7226_v13, %v7195_v2  ;;  %v7269_v57 = vsel %vm7266_vm1, %v7267_v16, %v7268_v8  ;;  %v13409_v2 = vld [vmem:[#allocation53_spill] sm:$0xff]  ;;  %v7211_v8 = vld [vmem:[#allocation3 + $0x88] sm:$0xff] }
 0x6fd   : > { %8225 = vmatmul.mubr.msk.bf16.vlgmr.msra.gmra.mxu0 %vm736_vm0, %v8219_v4  ;;  %v7272_v4 = vsel %vm7266_vm1, %v7270_v28, %v7271_v11  ;;  %v6538_v53 = vrot.slane %v13405_v9, 5  ;;  %v6525_v30 = vrot.slane %v6524_v36, 4  ;;  %v7277_v38 = vrot.slane %v7205_v55, 2  ;;  %v13411_v9 = vld [vmem:[#allocation38_spill] sm:$0xff] }
 0x6fe   : > { %6964 = vmatpush1.bf16.msra.mxu0 %v8929_v37  ;;  %6619 = vmatprep.mubr.bf16.mxu0 %v13321_v21  ;;  %v7244_v37 = vadd.f32 %v7227_v59, %v7197_v17  ;;  %v7310_v46 = vadd.f32 %v7272_v4, %v7245_v56  ;;  %v7307_v61 = vadd.f32 %v7267_v16, %v7242_v20  ;;  %v7276_v52 = vrot.slane %v7204_v35, 2  ;;  %v7208_v16 = vld [vmem:[#allocation3 + $0x70] sm:$0xff]  ;;  %v7207_v56 = vld [vmem:[#allocation3 + $0x68] sm:$0xff] }
 0x6ff   : > { %v6539_v40 = vsel %vm10188_vm15, %v6534_v27, %v6538_v53  ;;  %v7308_v22 = vadd.f32 %v7269_v57, %v7243_v32  ;;  %v13410_v59 = vcombine.low %v13408_v26, %v13409_v2  ;;  %v7228_v10 = vrot.slane %v7201_v15, 1  ;;  %v13412_v53 = vld [vmem:[#allocation55_spill] sm:$0xff] }
 0x700   : > { %v7326_v6 = vmul.f32 0.11111111, %v7310_v46  ;;  %v7274_v3 = vrot.slane %v7202_v29, 2  ;;  %v7273_v11 = vrot.slane %v7201_v15, 2  ;;  %v7323_v19 = vmul.f32 0.11111111, %v7307_v61 }
 0x701   : > { %8243 = vmatmul.mubr.msk.bf16.vlgmr.msra.gmra.mxu1 %vm736_vm0, %v13396_v39  ;;  %v7309_v39 = vadd.f32 %v7270_v28, %v7244_v37  ;;  %v7324_v43 = vmul.f32 0.11111111, %v7308_v22  ;;  %v7278_v13 = vsel %vm7266_vm1, %v7276_v52, %v7277_v38  ;;  %v7246_v49 = vadd.f32 %v7228_v10, %v7200_v34  ;;  %v13414_v61 = vld [vmem:[#allocation52_spill] sm:$0xff]  ;;  %v7216_v2 = vld [vmem:[#allocation3 + $0xb0] sm:$0xff] }
 0x702   : > { %6785 = vmatprep.mubr.bf16.mxu1 %v13321_v21  ;;  %7443 = vmatpush1.bf16.msra.mxu1 %v8932_v47  ;;  %v13406_v47 = vld [vmem:[#allocation35_spill] sm:$0xff]  ;;  %v7247_v25 = vadd.f32 %v7228_v10, %v7201_v15  ;;  %v7275_v41 = vsel %vm7266_vm1, %v7273_v11, %v7274_v3  ;;  %v7356_v4 = vrot.slane %v7323_v19, 7  ;;  %v13413_v20 = vcombine.low %v13411_v9, %v13412_v53  ;;  %v7206_v15 = vld [vmem:[#allocation3 + $0x60] sm:$0xff]  ;;  %v7217_v34 = vld [vmem:[#allocation3 + $0xb8] sm:$0xff] }
 0x703   : > { %v13407_v7 = vshll.u32 %v13406_v47, 16  ;;  %v7325_v14 = vmul.f32 0.11111111, %v7309_v39  ;;  %v7357_v27 = vrot.slane %v7324_v43, 7  ;;  %v7311_v32 = vadd.f32 %v7273_v11, %v7246_v49  ;;  %v7212_v11 = vld [vmem:[#allocation3 + $0x90] sm:$0xff]  ;;  %v7215_v43 = vld [vmem:[#allocation3 + $0xa8] sm:$0xff] }
 0x704   : > { %v7282_v55 = vrot.slane %v7210_v50, 2  ;;  %v7283_v57 = vrot.slane %v7211_v8, 2  ;;  %v7312_v47 = vadd.f32 %v7275_v41, %v7247_v25  ;;  %v13415_v22 = vcombine.low %v12172_v58, %v13414_v61 }
 0x705   : > { %8226 = vmatmul.mubr.msk.bf16.gmra.mxu0 %vm736_vm0, %v8220_v12  ;;  %v6529_v51 = vrot.slane %v13407_v7, 5  ;;  %v7229_v12 = vrot.slane %v7204_v35, 1  ;;  %v7359_v33 = vrot.slane %v7325_v14, 7  ;;  %v7230_v7 = vrot.slane %v7207_v56, 1 }
 0x706   : > { %6629 = vmatprep.mubr.bf16.mxu0 %v13321_v21  ;;  %v7284_v26 = vsel %vm7266_vm1, %v7282_v55, %v7283_v57  ;;  %v7233_v19 = vrot.slane %v7216_v2, 1  ;;  %v7288_v49 = vrot.slane %v7216_v2, 2 }
 0x707   : > { %v6530_v1 = vsel %vm10188_vm15, %v6525_v30, %v6529_v51  ;;  %v7248_v17 = vadd.f32 %v7229_v12, %v7203_v42  ;;  %v7249_v28 = vadd.f32 %v7229_v12, %v7204_v35  ;;  %v7280_v35 = vrot.slane %v7208_v16, 2 }
 0x708   : > { %v8222_v62 = vcombine.low %v6530_v1, %v6539_v40  ;;  %v7279_v51 = vrot.slane %v7207_v56, 2  ;;  %v7358_v12 = vsel %vm1329_vm3, %v7356_v4, %v7357_v27  ;;  %v7213_v40 = vld [vmem:[#allocation3 + $0x98] sm:$0xff]  ;;  %v7250_v10 = vadd.f32 %v7230_v7, %v7206_v15 }
 0x709   : > { %8244 = vmatmul.mubr.msk.bf16.gmra.mxu1 %vm736_vm0, %v13403_v23  ;;  %v7360_v23 = vrot.slane %v7326_v6, 7  ;;  %v7313_v36 = vadd.f32 %v7276_v52, %v7248_v17  ;;  %v7314_v37 = vadd.f32 %v7278_v13, %v7249_v28  ;;  %v7327_v52 = vmul.f32 0.11111111, %v7311_v32  ;;  %v7214_v6 = vld [vmem:[#allocation3 + $0xa0] sm:$0xff] }
 0x70a   : > { %6795 = vmatprep.mubr.bf16.mxu1 %v13321_v21  ;;  %v7251_v1 = vadd.f32 %v7230_v7, %v7207_v56  ;;  %v7281_v14 = vsel %vm7266_vm1, %v7279_v51, %v7280_v35  ;;  %v7232_v58 = vrot.slane %v7213_v40, 1  ;;  %v7285_v13 = vrot.slane %v7213_v40, 2 }
 0x70b   : > { %v7361_v30 = vsel %vm1329_vm3, %v7359_v33, %v7360_v23  ;;  %v7329_v39 = vmul.f32 0.11111111, %v7313_v36  ;;  %v7330_v46 = vmul.f32 0.11111111, %v7314_v37  ;;  %v7289_v33 = vrot.slane %v7217_v34, 2 }
 0x70c   : > { %v7388_v42 = vpack.c.bf16 %v7361_v30, %v7358_v12  ;;  %v7362_v23 = vrot.slane %v7327_v52, 7  ;;  %v7315_v16 = vadd.f32 %v7279_v51, %v7250_v10  ;;  %v7316_v8 = vadd.f32 %v7281_v14, %v7251_v1 }
 0x70d   : > { %8227 = vmatmul.mubr.msk.bf16.gmra.mxu0 %vm736_vm0, %v8221_v63  ;;  %v7231_v63 = vrot.slane %v7210_v50, 1  ;;  %v7365_v3 = vrot.slane %v7329_v39, 7  ;;  %v7254_v37 = vadd.f32 %v7232_v58, %v7212_v11  ;;  %v7256_v4 = vadd.f32 %v7233_v19, %v7215_v43 }
 0x70e   : > { %6639 = vmatprep.mubr.bf16.mxu0 %v13321_v21  ;;  %v7257_v27 = vadd.f32 %v7233_v19, %v7216_v2  ;;  %v7290_v9 = vsel %vm7266_vm1, %v7288_v49, %v7289_v33  ;;  %v7332_v32 = vmul.f32 0.11111111, %v7316_v8 }
 0x70f   : > { %v7252_v29 = vadd.f32 %v7231_v63, %v7209_v5  ;;  %v7253_v38 = vadd.f32 %v7231_v63, %v7210_v50  ;;  %v7286_v50 = vrot.slane %v7214_v6, 2  ;;  %v7255_v63 = vadd.f32 %v7232_v58, %v7213_v40 }
 0x710   : > { %v7319_v57 = vadd.f32 %v7285_v13, %v7254_v37  ;;  %v7321_v7 = vadd.f32 %v7288_v49, %v7256_v4  ;;  %v7322_v51 = vadd.f32 %v7290_v9, %v7257_v27  ;;  %v7369_v54 = vrot.slane %v7332_v32, 7  ;;  %v1083_v4 = vpop.trf.xlu0  ;;  %v1051_v27 = vpop.trf.xlu1 }
 0x711   : > { %8245 = vmatmul.mubr.msk.bf16.gmra.mxu1 %vm736_vm0, %v13410_v59  ;;  %v7328_v59 = vmul.f32 0.11111111, %v7312_v47  ;;  %v7317_v17 = vadd.f32 %v7282_v55, %v7252_v29  ;;  %v7318_v28 = vadd.f32 %v7284_v26, %v7253_v38  ;;  %v7287_v5 = vsel %vm7266_vm1, %v7285_v13, %v7286_v50 }
 0x712   : > { %6805 = vmatprep.mubr.bf16.mxu1 %v13321_v21  ;;  %v7320_v47 = vadd.f32 %v7287_v5, %v7255_v63  ;;  %v7337_v15 = vmul.f32 0.11111111, %v7321_v7  ;;  %v7338_v29 = vmul.f32 0.11111111, %v7322_v51 }
 0x713   : > { %v7363_v25 = vrot.slane %v7328_v59, 7  ;;  %v7333_v36 = vmul.f32 0.11111111, %v7317_v17  ;;  %v7334_v56 = vmul.f32 0.11111111, %v7318_v28 }
 0x714   : > { %v1084_v32 = vpop.trf.xlu0 }
 0x715   : > { %8228 = vmatmul.mubr.msk.bf16.gmra.mxu0 %vm736_vm0, %v8222_v62  ;;  %v7366_v62 = vrot.slane %v7330_v46, 7  ;;  %v7364_v53 = vsel %vm1329_vm3, %v7362_v23, %v7363_v25  ;;  %v7371_v55 = vrot.slane %v7333_v36, 7  ;;  %v7372_v30 = vrot.slane %v7334_v56, 7 }
 0x716   : > { %6981 = vmatprep.mubr.bf16.mxu0 %v13321_v21  ;;  %v7336_v46 = vmul.f32 0.11111111, %v7320_v47 }
 0x717   : > { %v7367_v41 = vsel %vm1329_vm3, %v7365_v3, %v7366_v62  ;;  %v7373_v39 = vsel %vm1329_vm3, %v7371_v55, %v7372_v30 }
 0x718   : > { %v7389_v35 = vpack.c.bf16 %v7367_v41, %v7364_v53  ;;  %v7375_v61 = vrot.slane %v7336_v46, 7  ;;  %v1085_v7 = vpop.trf.xlu0 }
 0x719   : > { %8246 = vmatmul.mubr.msk.bf16.gmra.mxu1 %vm736_vm0, %v13413_v20  ;;  %v7331_v20 = vmul.f32 0.11111111, %v7315_v16 }
 0x71a   : > { %7460 = vmatprep.mubr.bf16.mxu1 %v13321_v21 }
 0x71b   : > { %v7368_v44 = vrot.slane %v7331_v20, 7 }
 0x71c   : > { %v1086_v46 = vpop.trf.xlu0 }
 0x71d   : > { %8253 = vmatmul.mubr.msk.bf16.vlgmr.msra.gmra.mxu0 %vm736_vm0, %v13415_v22  ;;  %v7370_v12 = vsel %vm1329_vm3, %v7368_v44, %v7369_v54  ;;  %v7377_v22 = vrot.slane %v7337_v15, 7 }
 0x71e   : > { %6991 = vmatprep.mubr.bf16.mxu0 %v13321_v21  ;;  %v7390_v38 = vpack.c.bf16 %v7373_v39, %v7370_v12 }
 0x721   : > { %8259 = vmatmul.mubr.msk.bf16.vlgmr.msra.gmra.mxu1 %vm736_vm0, %v7388_v42  ;;  %v7378_v42 = vrot.slane %v7338_v29, 7 }
 0x722   : > { %7470 = vmatprep.mubr.bf16.mxu1 %v13321_v21 }
 0x723   : > { %v7379_v26 = vsel %vm1329_vm3, %v7377_v22, %v7378_v42 }
 0x725   : > { %8254 = vmatmul.mubr.msk.bf16.gmra.mxu0 %vm736_vm0, %v8248_v60  ;;  %v7335_v60 = vmul.f32 0.11111111, %v7319_v57 }
 0x726   : > { %7001 = vmatprep.mubr.bf16.mxu0 %v13321_v21 }
 0x727   : > { %v7374_v40 = vrot.slane %v7335_v60, 7 }
 0x729   : > { %8260 = vmatmul.mubr.msk.bf16.gmra.mxu1 %vm736_vm0, %v7389_v35  ;;  %v7376_v52 = vsel %vm1329_vm3, %v7374_v40, %v7375_v61  ;;  %v1052_v35 = vpop.trf.xlu1  ;;  %v1087_v61 = vpop.trf.xlu0 }
 0x72a   : > { %7480 = vmatprep.mubr.bf16.mxu1 %v13321_v21  ;;  %v7391_v31 = vpack.c.bf16 %v7379_v26, %v7376_v52 }
 0x72d   : > { %8255 = vmatmul.mubr.msk.bf16.gmra.mxu0 %vm736_vm0, %v8249_v48  ;;  %v1053_v51 = vpop.trf.xlu1 }
 0x72e   : > { %7011 = vmatprep.mubr.bf16.mxu0 %v13321_v21 }
 0x731   : > { %8261 = vmatmul.mubr.msk.bf16.gmra.mxu1 %vm736_vm0, %v7390_v38  ;;  %v1054_v15 = vpop.trf.xlu1 }
 0x732   : > { %7490 = vmatprep.mubr.bf16.mxu1 %v13321_v21 }
 0x735   : > { %8256 = vmatmul.mubr.msk.bf16.gmra.mxu0 %vm736_vm0, %v8250_v0  ;;  %v1055_v22 = vpop.trf.xlu1 }
 0x739   : > { %8262 = vmatmul.mubr.msk.bf16.gmra.mxu1 %vm736_vm0, %v7391_v31  ;;  %vm1099_vm0 = vcmask 523264  }
 0x73a   : > { %1116 = vst.msk [vmem:[%s12462_s2 + $0x80] sm:$0xff] %vm1099_vm0, %v1083_v4  ;;  %1100 = vst.msk [vmem:[%s12462_s2] sm:$0xff] %vm1099_vm0, %v1051_v27  ;;  %v1088_v4 = vpop.trf.xlu0  ;;  %v1056_v27 = vpop.trf.xlu1 }
 0x73b   : > { %1117 = vst.msk [vmem:[%s12462_s2 + $0x88] sm:$0xff] %vm1099_vm0, %v1084_v32  ;;  %1101 = vst.msk [vmem:[%s12462_s2 + $0x8] sm:$0xff] %vm1099_vm0, %v1052_v35 }
 0x73c   : > { %1118 = vst.msk [vmem:[%s12462_s2 + $0x90] sm:$0xff] %vm1099_vm0, %v1085_v7  ;;  %1102 = vst.msk [vmem:[%s12462_s2 + $0x10] sm:$0xff] %vm1099_vm0, %v1053_v51 }
 0x73d   : > { %1119 = vst.msk [vmem:[%s12462_s2 + $0x98] sm:$0xff] %vm1099_vm0, %v1086_v46  ;;  %1103 = vst.msk [vmem:[%s12462_s2 + $0x18] sm:$0xff] %vm1099_vm0, %v1054_v15 }
 0x73e   : > { %1120 = vst.msk [vmem:[%s12462_s2 + $0xa0] sm:$0xff] %vm1099_vm0, %v1087_v61  ;;  %1104 = vst.msk [vmem:[%s12462_s2 + $0x20] sm:$0xff] %vm1099_vm0, %v1055_v22  ;;  %v1089_v46 = vpop.trf.xlu0  ;;  %v1057_v15 = vpop.trf.xlu1 }
 0x73f   : > { %1121 = vst.msk [vmem:[%s12462_s2 + $0xa8] sm:$0xff] %vm1099_vm0, %v1088_v4  ;;  %1105 = vst.msk [vmem:[%s12462_s2 + $0x28] sm:$0xff] %vm1099_vm0, %v1056_v27 }
 0x740   : > { %1122 = vst.msk [vmem:[%s12462_s2 + $0xb0] sm:$0xff] %vm1099_vm0, %v1089_v46  ;;  %1106 = vst.msk [vmem:[%s12462_s2 + $0x30] sm:$0xff] %vm1099_vm0, %v1057_v15 }
 0x77d   : > { %v12394_v45 = vpop.f32.mrf.mxu0 }
 0x77f   : > { %v12396_v48 = vpop.f32.mrf.mxu0 }
 0x781   : > { %v12398_v2 = vpop.f32.mrf.mxu0  ;;  %v12400_v59 = vpop.f32.mrf.mxu1 }
 0x783   : > { %v12402_v21 = vpop.f32.mrf.mxu0  ;;  %v12404_v10 = vpop.f32.mrf.mxu1 }
 0x785   : > { %v12406_v1 = vpop.f32.mrf.mxu0  ;;  %v12408_v18 = vpop.f32.mrf.mxu1 }
 0x787   : > { %v12410_v24 = vpop.f32.mrf.mxu0  ;;  %v12412_v0 = vpop.f32.mrf.mxu1 }
 0x789   : > { %v12414_v14 = vpop.f32.mrf.mxu0  ;;  %v12416_v6 = vpop.f32.mrf.mxu1 }
 0x78b   : > { %v12418_v34 = vpop.f32.mrf.mxu0  ;;  %v12420_v3 = vpop.f32.mrf.mxu1 }
 0x78d   : > { %v12422_v62 = vpop.f32.mrf.mxu0  ;;  %v12424_v17 = vpop.f32.mrf.mxu1 }
 0x78f   : > { %v12426_v58 = vpop.f32.mrf.mxu0  ;;  %v12428_v28 = vpop.f32.mrf.mxu1 }
 0x791   : > { %v12430_v11 = vpop.f32.mrf.mxu0  ;;  %v12432_v19 = vpop.f32.mrf.mxu1 }
 0x793   : > { %v12434_v43 = vpop.f32.mrf.mxu0  ;;  %v12436_v13 = vpop.f32.mrf.mxu1 }
 0x794   : > { %13416 = vst [vmem:[#allocation61_spill] sm:$0xff] %v12434_v43 }
 0x795   : > { %v12438_v50 = vpop.f32.mrf.mxu0  ;;  %v12440_v49 = vpop.f32.mrf.mxu1 }
 0x796   : > { %13417 = vst [vmem:[#allocation62_spill] sm:$0xff] %v12438_v50 }
 0x797   : > { %v12442_v33 = vpop.f32.mrf.mxu0  ;;  %v12444_v23 = vpop.f32.mrf.mxu1 }
 0x798   : > { %13418 = vst [vmem:[#allocation43_spill] sm:$0xff] %v12442_v33  ;;  %13419 = vst [vmem:[#allocation56_spill] sm:$0xff] %v12444_v23 }
 0x799   : > { %v12446_v25 = vpop.f32.mrf.mxu0  ;;  %v12448_v16 = vpop.f32.mrf.mxu1 }
 0x79a   : > { %13420 = vst [vmem:[#allocation33_spill] sm:$0xff] %v12446_v25  ;;  %13421 = vst [vmem:[#allocation48_spill] sm:$0xff] %v12448_v16 }
 0x79b   : > { %v12451_v8 = vpop.f32.mrf.mxu0  ;;  %v12453_v41 = vpop.f32.mrf.mxu1 }
 0x79c   : > { %13422 = vst [vmem:[#allocation57_spill] sm:$0xff] %v12451_v8  ;;  %13423 = vst [vmem:[#allocation42_spill] sm:$0xff] %v12453_v41  ;;  %v1058_v8 = vpop.trf.xlu1 }
 0x79d   : > { %v12455_v36 = vpop.f32.mrf.mxu1  ;;  %v12457_v37 = vpop.f32.mrf.mxu0  ;;  %1107 = vst.msk [vmem:[%s12462_s2 + $0x38] sm:$0xff] %vm1099_vm0, %v1058_v8 }
 0x79e   : > { %13424 = vst [vmem:[#allocation50_spill] sm:$0xff] %v12455_v36 }
 0x79f   : > { %v12464_v56 = vpop.f32.mrf.mxu1  ;;  %v12466_v63 = vpop.f32.mrf.mxu0 }
 0x7a0   : > { %13425 = vst [vmem:[#allocation49_spill] sm:$0xff] %v12464_v56  ;;  %v1090_v56 = vpop.trf.xlu0 }
 0x7a1   : > { %v12468_v5 = vpop.f32.mrf.mxu0  ;;  %v12470_v9 = vpop.f32.mrf.mxu1  ;;  %1123 = vst.msk [vmem:[%s12462_s2 + $0xb8] sm:$0xff] %vm1099_vm0, %v1090_v56 }
 0x7a3   : > { %v12476_v53 = vpop.f32.mrf.mxu0  ;;  %v12478_v20 = vpop.f32.mrf.mxu1 }
 0x7a5   : > { %v12480_v55 = vpop.f32.mrf.mxu0  ;;  %v12482_v57 = vpop.f32.mrf.mxu1 }
 0x7a7   : > { %v12488_v30 = vpop.f32.mrf.mxu0  ;;  %v12490_v47 = vpop.f32.mrf.mxu1 }
 0x7a9   : > { %v12492_v44 = vpop.f32.mrf.mxu0  ;;  %v12494_v54 = vpop.f32.mrf.mxu1 }
 0x7ab   : > { %v12500_v60 = vpop.f32.mrf.mxu0  ;;  %v12502_v39 = vpop.f32.mrf.mxu1 }
 0x7ad   : > { %v12504_v29 = vpop.f32.mrf.mxu0  ;;  %v12506_v12 = vpop.f32.mrf.mxu1 }
 0x7af   : > { %v12512_v38 = vpop.f32.mrf.mxu0  ;;  %v12514_v40 = vpop.f32.mrf.mxu1 }
 0x7b1   : > { %v12516_v42 = vpop.f32.mrf.mxu0  ;;  %v12518_v52 = vpop.f32.mrf.mxu1 }
 0x7b2   : > { %13426 = vst [vmem:[#allocation34_spill] sm:$0xff] %v12516_v42  ;;  %13427 = vst [vmem:[#allocation45_spill] sm:$0xff] %v12518_v52 }
 0x7b3   : > { %v12524_v26 = vpop.f32.mrf.mxu0  ;;  %v12526_v31 = vpop.f32.mrf.mxu1 }
 0x7b4   : > { %13428 = vst [vmem:[#allocation46_spill] sm:$0xff] %v12524_v26  ;;  %13429 = vst [vmem:[#allocation39_spill] sm:$0xff] %v12526_v31 }
 0x7b5   : > { %v12528_v32 = vpop.f32.mrf.mxu0  ;;  %v12530_v35 = vpop.f32.mrf.mxu1 }
 0x7b6   : > { %13430 = vst [vmem:[#allocation54_spill] sm:$0xff] %v12528_v32  ;;  %13431 = vst [vmem:[#allocation40_spill] sm:$0xff] %v12530_v35 }
 0x7b7   : > { %v12536_v7 = vpop.f32.mrf.mxu0  ;;  %v12538_v51 = vpop.f32.mrf.mxu1 }
 0x7b8   : > { %13432 = vst [vmem:[#allocation51_spill] sm:$0xff] %v12536_v7  ;;  %13433 = vst [vmem:[#allocation36_spill] sm:$0xff] %v12538_v51 }
 0x7b9   : > { %v12540_v61 = vpop.f32.mrf.mxu0  ;;  %v12542_v22 = vpop.f32.mrf.mxu1 }
 0x7ba   : > { %13434 = vst [vmem:[#allocation58_spill] sm:$0xff] %v12540_v61  ;;  %13435 = vst [vmem:[#allocation63_spill] sm:$0xff] %v12542_v22  ;;  %v1059_v61 = vpop.trf.xlu1 }
 0x7bb   : > { %v12548_v4 = vpop.f32.mrf.mxu0  ;;  %v12550_v27 = vpop.f32.mrf.mxu1  ;;  %1108 = vst.msk [vmem:[%s12462_s2 + $0x40] sm:$0xff] %vm1099_vm0, %v1059_v61 }
 0x7bc   : > { %13436 = vst [vmem:[#allocation37_spill] sm:$0xff] %v12548_v4  ;;  %13437 = vst [vmem:[#allocation32_spill] sm:$0xff] %v12550_v27  ;;  %v3193_v4 = vpop.trf.xlu0 }
 0x7bd   : > { %v12552_v7 = vpop.f32.mrf.mxu1  ;;  %v12554_v36 = vpop.f32.mrf.mxu0  ;;  %3225 = vst.msk [vmem:[%s12462_s2 + $0x140] sm:$0xff] %vm1099_vm0, %v3193_v4 }
 0x7be   : > { %13438 = vst [vmem:[#allocation47_spill] sm:$0xff] %v12552_v7  ;;  %v1060_v7 = vpop.trf.xlu1 }
 0x7bf   : > { %v12560_v46 = vpop.f32.mrf.mxu1  ;;  %v12562_v15 = vpop.f32.mrf.mxu0  ;;  %1109 = vst.msk [vmem:[%s12462_s2 + $0x48] sm:$0xff] %vm1099_vm0, %v1060_v7 }
 0x7c0   : > { %13439 = vst [vmem:[#allocation59_spill] sm:$0xff] %v12560_v46  ;;  %v3194_v46 = vpop.trf.xlu0 }
 0x7c1   : > { %v12564_v22 = vpop.f32.mrf.mxu0  ;;  %v12566_v27 = vpop.f32.mrf.mxu1  ;;  %3226 = vst.msk [vmem:[%s12462_s2 + $0x148] sm:$0xff] %vm1099_vm0, %v3194_v46 }
 0x7c2   : > { %v1061_v32 = vpop.trf.xlu1 }
 0x7c3   : > { %v12572_v56 = vpop.f32.mrf.mxu0  ;;  %v12574_v8 = vpop.f32.mrf.mxu1  ;;  %1110 = vst.msk [vmem:[%s12462_s2 + $0x50] sm:$0xff] %vm1099_vm0, %v1061_v32 }
 0x7c4   : > { %v3195_v41 = vpop.trf.xlu0 }
 0x7c5   : > { %v12576_v25 = vpop.f32.mrf.mxu0  ;;  %v12578_v51 = vpop.f32.mrf.mxu1  ;;  %3227 = vst.msk [vmem:[%s12462_s2 + $0x150] sm:$0xff] %vm1099_vm0, %v3195_v41 }
 0x7c6   : > { %v1062_v26 = vpop.trf.xlu1 }
 0x7c7   : > { %v12584_v61 = vpop.f32.mrf.mxu0  ;;  %v12586_v4 = vpop.f32.mrf.mxu1  ;;  %1111 = vst.msk [vmem:[%s12462_s2 + $0x58] sm:$0xff] %vm1099_vm0, %v1062_v26 }
 0x7c8   : > { %v3196_v16 = vpop.trf.xlu0 }
 0x7c9   : > { %v12588_v33 = vpop.f32.mrf.mxu0  ;;  %v12590_v35 = vpop.f32.mrf.mxu1  ;;  %3228 = vst.msk [vmem:[%s12462_s2 + $0x158] sm:$0xff] %vm1099_vm0, %v3196_v16  ;;  %v6138_v16 = vadd.f32 %v12400_v59, %v12394_v45  ;;  %v6142_v59 = vadd.f32 %v12408_v18, %v12398_v2 }
 0x7ca   : > { %v1063_v42 = vpop.trf.xlu1 }
 0x7cb   : > { %v12596_v7 = vpop.f32.mrf.mxu0  ;;  %v12598_v46 = vpop.f32.mrf.mxu1  ;;  %1112 = vst.msk [vmem:[%s12462_s2 + $0x60] sm:$0xff] %vm1099_vm0, %v1063_v42  ;;  %v6326_v42 = vadd.f32 %v12457_v37, %v6138_v16  ;;  %v6328_v2 = vadd.f32 %v12468_v5, %v6142_v59  ;;  %v6148_v37 = vadd.f32 %v12416_v6, %v12406_v1  ;;  %v13451_v16 = vld [vmem:[#allocation30_spill] sm:$0xff]  ;;  %v6150_v1 = vadd.f32 %v12420_v3, %v12410_v24 }
 0x7cc   : > { %13440 = vst [vmem:[#allocation41_spill] sm:$0xff] %v12596_v7  ;;  %v3197_v23 = vpop.trf.xlu0  ;;  %v6152_v24 = vadd.f32 %v12424_v17, %v12414_v14 }
 0x7cd   : > { %v12600_v50 = vpop.f32.mrf.mxu0  ;;  %v12602_v31 = vpop.f32.mrf.mxu1  ;;  %3229 = vst.msk [vmem:[%s12462_s2 + $0x160] sm:$0xff] %vm1099_vm0, %v3197_v23  ;;  %v6140_v23 = vadd.f32 %v12404_v10, %v12396_v48  ;;  %v6144_v48 = vadd.f32 %v12412_v0, %v12402_v21  ;;  %v6454_v0 = vadd.f32 %v12482_v57, %v6328_v2  ;;  %v6330_v6 = vadd.f32 %v12480_v55, %v6148_v37 }
 0x7ce   : > { %13441 = vst [vmem:[#allocation44_spill] sm:$0xff] %v12600_v50  ;;  %13442 = vst [vmem:[#allocation35_spill] sm:$0xff] %v12602_v31  ;;  %v6331_v3 = vadd.f32 %v12488_v30, %v6150_v1 }
 0x7cf   : > { %v12608_v32 = vpop.f32.mrf.mxu0  ;;  %v12610_v41 = vpop.f32.mrf.mxu1  ;;  %v6329_v21 = vadd.f32 %v12476_v53, %v6144_v48  ;;  %v6652_v57 = vadd.f32 %v12564_v22, %v6454_v0  ;;  %v6456_v55 = vadd.f32 %v12494_v54, %v6330_v6 }
 0x7d0   : > { %13443 = vst [vmem:[#allocation60_spill] sm:$0xff] %v12608_v32  ;;  %13444 = vst [vmem:[#allocation53_spill] sm:$0xff] %v12610_v41  ;;  %v1064_v32 = vpop.trf.xlu1  ;;  %v3198_v31 = vpop.trf.xlu0  ;;  %v6457_v14 = vadd.f32 %v12502_v39, %v6331_v3 }
 0x7d1   : > { %v12612_v43 = vpop.f32.mrf.mxu0  ;;  %v12614_v7 = vpop.f32.mrf.mxu1  ;;  %1113 = vst.msk [vmem:[%s12462_s2 + $0x68] sm:$0xff] %vm1099_vm0, %v1064_v32  ;;  %3230 = vst.msk [vmem:[%s12462_s2 + $0x168] sm:$0xff] %vm1099_vm0, %v3198_v31  ;;  %v6455_v53 = vadd.f32 %v12490_v47, %v6329_v21  ;;  %v6818_v2 = vadd.f32 %v12578_v51, %v6652_v57  ;;  %v6654_v17 = vadd.f32 %v12576_v25, %v6456_v55 }
 0x7d2   : > { %13445 = vst [vmem:[#allocation38_spill] sm:$0xff] %v12612_v43  ;;  %13446 = vst [vmem:[#allocation55_spill] sm:$0xff] %v12614_v7 }
 0x7d3   : > { %v12620_v50 = vpop.f32.mrf.mxu0  ;;  %v12622_v26 = vpop.f32.mrf.mxu1  ;;  %v6653_v48 = vadd.f32 %v12572_v56, %v6455_v53  ;;  %v13454_v57 = vld [vmem:[#allocation41_spill] sm:$0xff] }
 0x7d4   : > { %13447 = vst [vmem:[#allocation52_spill] sm:$0xff] %v12620_v50  ;;  %13448 = vst [vmem:[#allocation64_spill] sm:$0xff] %v12622_v26  ;;  %v7038_v26 = vld [vmem:[#allocation20] sm:$0x3]  ;;  %v1065_v32 = vpop.trf.xlu1  ;;  %v3199_v43 = vpop.trf.xlu0 }
 0x7d5   : > { %v12626_v41 = vpop.f32.mrf.mxu0  ;;  %v12628_v52 = vpop.f32.mrf.mxu1  ;;  %1114 = vst.msk [vmem:[%s12462_s2 + $0x70] sm:$0xff] %vm1099_vm0, %v1065_v32  ;;  %3231 = vst.msk [vmem:[%s12462_s2 + $0x170] sm:$0xff] %vm1099_vm0, %v3199_v43  ;;  %v12665_v43 = vrot.slane %v7038_v26, %v13451_v16  ;;  %v6819_v56 = vadd.f32 %v12586_v4, %v6653_v48  ;;  %v6655_v4 = vadd.f32 %v12584_v61, %v6457_v14  ;;  %v13457_v48 = vld [vmem:[#allocation56_spill] sm:$0xff] }
 0x7d6   : > { %13449 = vst [vmem:[#allocation65_spill] sm:$0xff] %v12626_v41  ;;  %13450 = vst [vmem:[#allocation66_spill] sm:$0xff] %v12628_v52  ;;  %v6327_v41 = vadd.f32 %v12466_v63, %v6140_v23  ;;  %v6452_v52 = vadd.f32 %v12470_v9, %v6326_v42  ;;  %v13452_v42 = vld [vmem:[#allocation31_spill] sm:$0xff] }
 0x7d7   : > { %v12637_v50 = vpop.f32.mrf.mxu0  ;;  %v12639_v45 = vpop.f32.mrf.mxu1  ;;  %v12677_v59 = vrot.slane %v7038_v26, %v13452_v42  ;;  %v13461_v14 = vld [vmem:[#allocation53_spill] sm:$0xff] }
 0x7d8   : > { %v6453_v10 = vadd.f32 %v12478_v20, %v6327_v41  ;;  %v6650_v18 = vadd.f32 %v12554_v36, %v6452_v52  ;;  %v1066_v20 = vpop.trf.xlu1  ;;  %v3200_v52 = vpop.trf.xlu0 }
 0x7d9   : > { %v12645_v31 = vpop.f32.mrf.mxu0  ;;  %v12647_v7 = vpop.f32.mrf.mxu1  ;;  %1115 = vst.msk [vmem:[%s12462_s2 + $0x78] sm:$0xff] %vm1099_vm0, %v1066_v20  ;;  %3232 = vst.msk [vmem:[%s12462_s2 + $0x178] sm:$0xff] %vm1099_vm0, %v3200_v52 }
 0x7da   : > { %v6651_v5 = vadd.f32 %v12562_v15, %v6453_v10  ;;  %v6816_v36 = vadd.f32 %v12566_v27, %v6650_v18  ;;  %v6332_v10 = vadd.f32 %v12492_v44, %v6152_v24 }
 0x7db   : > { %v12660_v63 = vpop.f32.mrf.mxu0  ;;  %v12662_v9 = vpop.f32.mrf.mxu1 }
 0x7dc   : > { %v6817_v27 = vadd.f32 %v12574_v8, %v6651_v5  ;;  %v6154_v8 = vadd.f32 %v12428_v28, %v12418_v34  ;;  %v3161_v21 = vpop.trf.xlu1  ;;  %v6158_v34 = vadd.f32 %v12432_v19, %v12422_v62  ;;  %v6160_v28 = vadd.f32 %v12436_v13, %v12426_v58 }
 0x7dd   : > { %v12674_v41 = vpop.f32.mrf.mxu1  ;;  %v6983_v23 = vpop.f32.mrf.mxu0  ;;  %v6458_v25 = vadd.f32 %v12506_v12, %v6332_v10  ;;  %3209 = vst.msk [vmem:[%s12462_s2 + $0xc0] sm:$0xff] %vm1099_vm0, %v3161_v21  ;;  %v6820_v5 = vadd.f32 %v12590_v35, %v6654_v17  ;;  %v6821_v12 = vadd.f32 %v12598_v46, %v6655_v4  ;;  %v13455_v46 = vld [vmem:[#allocation35_spill] sm:$0xff]  ;;  %v13462_v21 = vld [vmem:[#allocation62_spill] sm:$0xff] }
 0x7de   : > { %v7022_v15 = vadd.f32 %v6983_v23, %v6816_v36  ;;  %v6333_v44 = vadd.f32 %v12500_v60, %v6154_v8  ;;  %v6334_v62 = vadd.f32 %v12504_v29, %v6158_v34  ;;  %v6162_v23 = vadd.f32 %v12440_v49, %v12430_v11  ;;  %v13458_v49 = vld [vmem:[#allocation34_spill] sm:$0xff]  ;;  %v13463_v34 = vld [vmem:[#allocation48_spill] sm:$0xff] }
 0x7df   : > { %v12690_v26 = vpop.f32.mrf.mxu1  ;;  %v6985_v32 = vpop.f32.mrf.mxu0  ;;  %v6656_v19 = vadd.f32 %v12588_v33, %v6458_v25  ;;  %v6335_v29 = vadd.f32 %v12512_v38, %v6160_v28  ;;  %v6168_v28 = vadd.f32 %v13463_v34, %v13462_v21  ;;  %v13481_v21 = vld [vmem:[#allocation49_spill] sm:$0xff] }
 0x7e0   : > { %v7023_v47 = vadd.f32 %v6985_v32, %v6817_v27  ;;  %v7050_v22 = vadd.f32 %v12665_v43, %v7022_v15  ;;  %v6459_v58 = vadd.f32 %v12514_v40, %v6333_v44  ;;  %v3162_v6 = vpop.trf.xlu1  ;;  %v13453_v40 = vld [vmem:[#allocation45_spill] sm:$0xff]  ;;  %v6336_v38 = vadd.f32 %v13458_v49, %v6162_v23  ;;  %v13464_v44 = vld [vmem:[#allocation46_spill] sm:$0xff]  ;;  %v13471_v23 = vld [vmem:[#allocation36_spill] sm:$0xff] }
 0x7e1   : > { %v6987_v30 = vpop.f32.mrf.mxu0  ;;  %v12700_v54 = vpop.f32.mrf.mxu1  ;;  %v6460_v53 = vadd.f32 %v13453_v40, %v6334_v62  ;;  %3210 = vst.msk [vmem:[%s12462_s2 + $0xc8] sm:$0xff] %vm1099_vm0, %v3162_v6  ;;  %v6822_v15 = vadd.f32 %v13455_v46, %v6656_v19  ;;  %v13456_v32 = vld [vmem:[#allocation61_spill] sm:$0xff]  ;;  %v13467_v62 = vld [vmem:[#allocation55_spill] sm:$0xff]  ;;  %v13472_v40 = vld [vmem:[#allocation38_spill] sm:$0xff] }
 0x7e2   : > { %v7024_v18 = vadd.f32 %v6987_v30, %v6818_v2  ;;  %v7066_v51 = vmax.f32 %v7050_v22, 0.0  ;;  %v7051_v37 = vadd.f32 %v12677_v59, %v7023_v47  ;;  %v6657_v33 = vadd.f32 %v13454_v57, %v6459_v58  ;;  %v13459_v2 = vld [vmem:[#allocation39_spill] sm:$0xff]  ;;  %v13460_v22 = vld [vmem:[#allocation44_spill] sm:$0xff] }
 0x7e3   : > { %v6989_v39 = vpop.f32.mrf.mxu0  ;;  %v12710_v0 = vpop.f32.mrf.mxu1  ;;  %v6164_v11 = vadd.f32 %v13457_v48, %v13456_v32  ;;  %v6461_v47 = vadd.f32 %v13459_v2, %v6335_v29  ;;  %v6658_v8 = vadd.f32 %v13460_v22, %v6460_v53  ;;  %v13474_v32 = vld [vmem:[#allocation33_spill] sm:$0xff]  ;;  %v13475_v48 = vld [vmem:[#allocation50_spill] sm:$0xff]  ;;  %v13476_v49 = vld [vmem:[#allocation51_spill] sm:$0xff] }
 0x7e4   : > { %v7052_v36 = vadd.f32 %v12665_v43, %v7024_v18  ;;  %v7025_v20 = vadd.f32 %v6989_v39, %v6819_v56  ;;  %7082 = vxpose.xlu0.b32.start [1/8] (short) %v7066_v51, 128  ;;  %v7067_v60 = vmax.f32 %v7051_v37, 0.0  ;;  %v6823_v17 = vadd.f32 %v13461_v14, %v6657_v33  ;;  %v3163_v37 = vpop.trf.xlu1  ;;  %v13465_v39 = vld [vmem:[#allocation40_spill] sm:$0xff]  ;;  %v13477_v2 = vld [vmem:[#allocation63_spill] sm:$0xff]  ;;  %v13479_v14 = vld [vmem:[#allocation66_spill] sm:$0xff] }
 0x7e5   : > { %v6993_v13 = vpop.f32.mrf.mxu0  ;;  %v12722_v35 = vpop.f32.mrf.mxu1  ;;  %v6337_v25 = vadd.f32 %v13464_v44, %v6164_v11  ;;  %v6462_v4 = vadd.f32 %v13465_v39, %v6336_v38  ;;  %3211 = vst.msk [vmem:[%s12462_s2 + $0xd0] sm:$0xff] %vm1099_vm0, %v3163_v37  ;;  %v6824_v58 = vadd.f32 %v13467_v62, %v6658_v8  ;;  %v13473_v33 = vld [vmem:[#allocation64_spill] sm:$0xff]  ;;  %v6172_v11 = vadd.f32 %v13475_v48, %v13474_v32  ;;  %v13480_v37 = vld [vmem:[#allocation57_spill] sm:$0xff] }
 0x7e6   : > { %v7068_v52 = vmax.f32 %v7052_v36, 0.0  ;;  %v7053_v61 = vadd.f32 %v12677_v59, %v7025_v20  ;;  %v7026_v1 = vadd.f32 %v6993_v13, %v6820_v5  ;;  %7114 = vxpose.xlu1.b32.start [1/8] (short) (narrow) %v7067_v60, 64  ;;  %v13466_v5 = vld [vmem:[#allocation60_spill] sm:$0xff]  ;;  %v6174_v34 = vadd.f32 %v13481_v21, %v13480_v37 }
 0x7e7   : > { %v6995_v27 = vpop.f32.mrf.mxu0  ;;  %v12740_v18 = vpop.f32.mrf.mxu1  ;;  %v6659_v36 = vadd.f32 %v13466_v5, %v6461_v47  ;;  %v6463_v29 = vadd.f32 %v13471_v23, %v6337_v25  ;;  %v6660_v53 = vadd.f32 %v13472_v40, %v6462_v4  ;;  %v13478_v22 = vld [vmem:[#allocation52_spill] sm:$0xff]  ;;  %v13484_v4 = vld [vmem:[#allocation65_spill] sm:$0xff] }
 0x7e8   : > { %v7069_v24 = vmax.f32 %v7053_v61, 0.0  ;;  %v7054_v3 = vadd.f32 %v12665_v43, %v7026_v1  ;;  %v7027_v55 = vadd.f32 %v6995_v27, %v6821_v12  ;;  %7083 = vxpose.xlu0.b32.cont [2/8] (short) %v7068_v52, 128  ;;  %v13468_v12 = vld [vmem:[#allocation43_spill] sm:$0xff]  ;;  %v13469_v52 = vld [vmem:[#allocation42_spill] sm:$0xff]  ;;  %v13483_v25 = vld [vmem:[#allocation32_spill] sm:$0xff] }
 0x7e9   : > { %v6997_v10 = vpop.f32.mrf.mxu0  ;;  %v6170_v61 = vadd.f32 %v13469_v52, %v13468_v12  ;;  %v13470_v1 = vld [vmem:[#allocation54_spill] sm:$0xff]  ;;  %v6825_v27 = vadd.f32 %v13473_v33, %v6659_v36  ;;  %v6661_v8 = vadd.f32 %v13478_v22, %v6463_v29  ;;  %v13485_v12 = vld [vmem:[#allocation37_spill] sm:$0xff] }
 0x7ea   : > { %v7070_v30 = vmax.f32 %v7054_v3, 0.0  ;;  %v7055_v56 = vadd.f32 %v12677_v59, %v7027_v55  ;;  %v7028_v51 = vadd.f32 %v6997_v10, %v6822_v15  ;;  %7115 = vxpose.xlu1.b32.cont [2/8] (short) (narrow) %v7069_v24, 64  ;;  %v6338_v6 = vadd.f32 %v13470_v1, %v6168_v28  ;;  %v12757_v15 = vpop.f32.mrf.mxu1  ;;  %v3164_v55 = vpop.trf.xlu1  ;;  %v13482_v28 = vld [vmem:[#allocation58_spill] sm:$0xff] }
 0x7eb   : > { %v6999_v20 = vpop.f32.mrf.mxu0  ;;  %v6339_v38 = vadd.f32 %v13476_v49, %v6170_v61  ;;  %3212 = vst.msk [vmem:[%s12462_s2 + $0xd8] sm:$0xff] %vm1099_vm0, %v3164_v55  ;;  %v6340_v44 = vadd.f32 %v13482_v28, %v6172_v11  ;;  %v6341_v52 = vadd.f32 %v13485_v12, %v6174_v34  ;;  %v13486_v61 = vld [vmem:[#allocation47_spill] sm:$0xff] }
 0x7ec   : > { %v7071_v19 = vmax.f32 %v7055_v56, 0.0  ;;  %v7056_v13 = vadd.f32 %v12665_v43, %v7028_v51  ;;  %v7029_v60 = vadd.f32 %v6999_v20, %v6823_v17  ;;  %7084 = vxpose.xlu0.b32.cont [3/8] (short) %v7070_v30, 128  ;;  %v6464_v47 = vadd.f32 %v13477_v2, %v6338_v6  ;;  %v12775_v62 = vpop.f32.mrf.mxu1 }
 0x7ed   : > { %v7003_v57 = vpop.f32.mrf.mxu0  ;;  %v6826_v17 = vadd.f32 %v13479_v14, %v6660_v53  ;;  %v6465_v39 = vadd.f32 %v13483_v25, %v6339_v38  ;;  %v6827_v20 = vadd.f32 %v12639_v45, %v6661_v8  ;;  %v6466_v1 = vadd.f32 %v13486_v61, %v6340_v44 }
 0x7ee   : > { %v7072_v46 = vmax.f32 %v7056_v13, 0.0  ;;  %v7057_v24 = vadd.f32 %v12677_v59, %v7029_v60  ;;  %v7030_v3 = vadd.f32 %v7003_v57, %v6824_v58  ;;  %7116 = vxpose.xlu1.b32.cont [3/8] (short) (narrow) %v7071_v19, 64  ;;  %v6662_v5 = vadd.f32 %v13484_v4, %v6464_v47  ;;  %v3165_v60 = vpop.trf.xlu1  ;;  %v13487_v57 = vld [vmem:[#allocation59_spill] sm:$0xff] }
 0x7ef   : > { %v7005_v10 = vpop.f32.mrf.mxu0  ;;  %v6663_v6 = vadd.f32 %v12637_v50, %v6465_v39  ;;  %3213 = vst.msk [vmem:[%s12462_s2 + $0xe0] sm:$0xff] %vm1099_vm0, %v3165_v60  ;;  %v6467_v33 = vadd.f32 %v13487_v57, %v6341_v52  ;;  %v12788_v50 = vpop.f32.mrf.mxu1 }
 0x7f0   : > { %v7073_v30 = vmax.f32 %v7057_v24, 0.0  ;;  %v7058_v56 = vadd.f32 %v12665_v43, %v7030_v3  ;;  %v7031_v51 = vadd.f32 %v7005_v10, %v6825_v27  ;;  %7085 = vxpose.xlu0.b32.cont [4/8] (short) %v7072_v46, 128  ;;  %v6828_v29 = vadd.f32 %v12647_v7, %v6662_v5 }
 0x7f1   : > { %v7007_v36 = vpop.f32.mrf.mxu0  ;;  %v6664_v27 = vadd.f32 %v12645_v31, %v6466_v1  ;;  %v6829_v24 = vadd.f32 %v12662_v9, %v6663_v6  ;;  %v6665_v48 = vadd.f32 %v12660_v63, %v6467_v33  ;;  %v7478_v22 = vpop.f32.mrf.mxu1 }
 0x7f2   : > { %v7074_v58 = vmax.f32 %v7058_v56, 0.0  ;;  %v7059_v19 = vadd.f32 %v12677_v59, %v7031_v51  ;;  %v7032_v13 = vadd.f32 %v7007_v36, %v6826_v17  ;;  %7117 = vxpose.xlu1.b32.cont [4/8] (short) (narrow) %v7073_v30, 64  ;;  %v3166_v7 = vpop.trf.xlu1 }
 0x7f3   : > { %v7009_v23 = vpop.f32.mrf.mxu0  ;;  %3214 = vst.msk [vmem:[%s12462_s2 + $0xe8] sm:$0xff] %vm1099_vm0, %v3166_v7  ;;  %v6830_v49 = vadd.f32 %v12674_v41, %v6664_v27  ;;  %v6831_v47 = vadd.f32 %v12690_v26, %v6665_v48  ;;  %v7394_v41 = vld [vmem:[#allocation21] sm:$0x3]  ;;  %v12802_v37 = vpop.f32.mrf.mxu1 }
 0x7f4   : > { %v7075_v45 = vmax.f32 %v7059_v19, 0.0  ;;  %v7060_v40 = vadd.f32 %v12665_v43, %v7032_v13  ;;  %v7033_v53 = vadd.f32 %v7009_v23, %v6827_v20  ;;  %7086 = vxpose.xlu0.b32.cont [5/8] (short) %v7074_v58, 128  ;;  %v7403_v26 = vrot.slane %v7394_v41, %v13452_v42 }
 0x7f5   : > { %v7013_v46 = vpop.f32.mrf.mxu0 }
 0x7f6   : > { %v7076_v3 = vmax.f32 %v7060_v40, 0.0  ;;  %v7061_v55 = vadd.f32 %v12677_v59, %v7033_v53  ;;  %v7034_v32 = vadd.f32 %v7013_v46, %v6828_v29  ;;  %7118 = vxpose.xlu1.b32.cont [5/8] (short) (narrow) %v7075_v45, 64  ;;  %v3167_v14 = vpop.trf.xlu1  ;;  %v7465_v25 = vadd.f32 %v12710_v0, %v7403_v26 }
 0x7f7   : > { %v7015_v11 = vpop.f32.mrf.mxu0  ;;  %3215 = vst.msk [vmem:[%s12462_s2 + $0xf0] sm:$0xff] %vm1099_vm0, %v3167_v14  ;;  %v7469_v4 = vadd.f32 %v12740_v18, %v7403_v26  ;;  %v7475_v20 = vadd.f32 %v12775_v62, %v7403_v26  ;;  %v7479_v13 = vadd.f32 %v7478_v22, %v7403_v26  ;;  %v7399_v45 = vrot.slane %v7394_v41, %v13451_v16 }
 0x7f8   : > { %v7077_v31 = vmax.f32 %v7061_v55, 0.0  ;;  %v7062_v38 = vadd.f32 %v12665_v43, %v7034_v32  ;;  %v7035_v9 = vadd.f32 %v7015_v11, %v6829_v24  ;;  %7087 = vxpose.xlu0.b32.cont [6/8] (short) %v7076_v3, 128  ;;  %v7502_v42 = vmax.f32 %v7465_v25, 0.0 }
 0x7f9   : > { %v7017_v2 = vpop.f32.mrf.mxu0  ;;  %v7504_v36 = vmax.f32 %v7469_v4, 0.0  ;;  %v7506_v19 = vmax.f32 %v7475_v20, 0.0  ;;  %v7508_v12 = vmax.f32 %v7479_v13, 0.0  ;;  %v7463_v27 = vadd.f32 %v12700_v54, %v7399_v45 }
 0x7fa   : > { %v7078_v8 = vmax.f32 %v7062_v38, 0.0  ;;  %v7063_v10 = vadd.f32 %v12677_v59, %v7035_v9  ;;  %v7036_v63 = vadd.f32 %v7017_v2, %v6830_v49  ;;  %7119 = vxpose.xlu1.b32.cont [6/8] (short) (narrow) %v7077_v31, 64  ;;  %v3168_v28 = vpop.trf.xlu1  ;;  %v7467_v32 = vadd.f32 %v12722_v35, %v7399_v45 }
 0x7fb   : > { %v7019_v17 = vpop.f32.mrf.mxu0  ;;  %3216 = vst.msk [vmem:[%s12462_s2 + $0xf8] sm:$0xff] %vm1099_vm0, %v3168_v28  ;;  %v7501_v55 = vmax.f32 %v7463_v27, 0.0  ;;  %v7473_v48 = vadd.f32 %v12757_v15, %v7399_v45  ;;  %v7477_v11 = vadd.f32 %v12788_v50, %v7399_v45  ;;  %v7483_v31 = vadd.f32 %v12802_v37, %v7399_v45 }
 0x7fc   : > { %v7079_v30 = vmax.f32 %v7063_v10, 0.0  ;;  %v7064_v56 = vadd.f32 %v12665_v43, %v7036_v63  ;;  %v7037_v51 = vadd.f32 %v7019_v17, %v6831_v47  ;;  %7088 = vxpose.xlu0.b32.cont [7/8] (short) %v7078_v8, 128  ;;  %v7484_v43 = vpop.f32.mrf.mxu1  ;;  %v7503_v7 = vmax.f32 %v7467_v32, 0.0 }
 0x7fd   : > { %v7485_v52 = vadd.f32 %v7484_v43, %v7403_v26  ;;  %v7505_v54 = vmax.f32 %v7473_v48, 0.0  ;;  %v7507_v49 = vmax.f32 %v7477_v11, 0.0  ;;  %v7509_v35 = vmax.f32 %v7483_v31, 0.0 }
 0x7fe   : > { %v7080_v21 = vmax.f32 %v7064_v56, 0.0  ;;  %v7065_v34 = vadd.f32 %v12677_v59, %v7037_v51  ;;  %7120 = vxpose.xlu1.b32.cont [7/8] (short) (narrow) %v7079_v30, 64  ;;  %v3169_v39 = vpop.trf.xlu1  ;;  %v7486_v59 = vpop.f32.mrf.mxu1 }
 0x7ff   : > { %3217 = vst.msk [vmem:[%s12462_s2 + $0x100] sm:$0xff] %vm1099_vm0, %v3169_v39  ;;  %v7510_v62 = vmax.f32 %v7485_v52, 0.0  ;;  %v7487_v38 = vadd.f32 %v7486_v59, %v7399_v45 }
 0x800   : > { %v7081_v44 = vmax.f32 %v7065_v34, 0.0  ;;  %7089 = vxpose.xlu0.b32.end [8/8] (short) %v7080_v21, 128  ;;  %v7488_v0 = vpop.f32.mrf.mxu1 }
 0x801   : > { %v7489_v6 = vadd.f32 %v7488_v0, %v7403_v26  ;;  %v7511_v9 = vmax.f32 %v7487_v38, 0.0 }
 0x802   : > { %7121 = vxpose.xlu1.b32.end [8/8] (short) (narrow) %v7081_v44, 64  ;;  %v3170_v5 = vpop.trf.xlu1  ;;  %v7492_v60 = vpop.f32.mrf.mxu1 }
 0x803   : > { %3218 = vst.msk [vmem:[%s12462_s2 + $0x108] sm:$0xff] %vm1099_vm0, %v3170_v5  ;;  %v7512_v40 = vmax.f32 %v7489_v6, 0.0  ;;  %v7493_v2 = vadd.f32 %v7492_v60, %v7399_v45 }
 0x804   : > { %v7494_v61 = vpop.f32.mrf.mxu1 }
 0x805   : > { %v7495_v53 = vadd.f32 %v7494_v61, %v7403_v26  ;;  %v7513_v15 = vmax.f32 %v7493_v2, 0.0 }
 0x806   : > { %7549 = vxpose.xlu1.b32.start [1/8] (short) (narrow) %v7502_v42, 64  ;;  %v3171_v58 = vpop.trf.xlu1  ;;  %v7496_v23 = vpop.f32.mrf.mxu1 }
 0x807   : > { %3219 = vst.msk [vmem:[%s12462_s2 + $0x110] sm:$0xff] %vm1099_vm0, %v3171_v58  ;;  %v7514_v46 = vmax.f32 %v7495_v53, 0.0  ;;  %v7497_v47 = vadd.f32 %v7496_v23, %v7399_v45 }
 0x808   : > { %v7498_v57 = vpop.f32.mrf.mxu1 }
 0x809   : > { %v7499_v24 = vadd.f32 %v7498_v57, %v7403_v26  ;;  %v7515_v50 = vmax.f32 %v7497_v47, 0.0 }
 0x80a   : > { %7550 = vxpose.xlu1.b32.cont [2/8] (short) (narrow) %v7504_v36, 64  ;;  %v3172_v18 = vpop.trf.xlu1 }
 0x80b   : > { %3220 = vst.msk [vmem:[%s12462_s2 + $0x118] sm:$0xff] %vm1099_vm0, %v3172_v18  ;;  %v7516_v16 = vmax.f32 %v7499_v24, 0.0 }
 0x80e   : > { %7551 = vxpose.xlu1.b32.cont [3/8] (short) (narrow) %v7506_v19, 64  ;;  %v3173_v1 = vpop.trf.xlu1 }
 0x80f   : > { %3221 = vst.msk [vmem:[%s12462_s2 + $0x120] sm:$0xff] %vm1099_vm0, %v3173_v1 }
 0x812   : > { %7552 = vxpose.xlu1.b32.cont [4/8] (short) (narrow) %v7508_v12, 64  ;;  %v3174_v29 = vpop.trf.xlu1 }
 0x813   : > { %3222 = vst.msk [vmem:[%s12462_s2 + $0x128] sm:$0xff] %vm1099_vm0, %v3174_v29 }
 0x816   : > { %7553 = vxpose.xlu1.b32.cont [5/8] (short) (narrow) %v7510_v62, 64  ;;  %v3175_v33 = vpop.trf.xlu1 }
 0x817   : > { %3223 = vst.msk [vmem:[%s12462_s2 + $0x130] sm:$0xff] %vm1099_vm0, %v3175_v33 }
 0x81a   : > { %7554 = vxpose.xlu1.b32.cont [6/8] (short) (narrow) %v7512_v40, 64  ;;  %v3176_v3 = vpop.trf.xlu1 }
 0x81b   : > { %3224 = vst.msk [vmem:[%s12462_s2 + $0x138] sm:$0xff] %vm1099_vm0, %v3176_v3 }
 0x81e   : > { %7555 = vxpose.xlu1.b32.cont [7/8] (short) (narrow) %v7514_v46, 64 }
 0x821   : > { %7517 = vxpose.xlu0.b32.start [1/8] (short) %v7501_v55, 128 }
 0x822   : > { %7556 = vxpose.xlu1.b32.end [8/8] (short) (narrow) %v7516_v16, 64 }
 0x825   : > { %7518 = vxpose.xlu0.b32.cont [2/8] (short) %v7503_v7, 128 }
 0x829   : > { %7519 = vxpose.xlu0.b32.cont [3/8] (short) %v7505_v54, 128 }
 0x82d   : > { %7520 = vxpose.xlu0.b32.cont [4/8] (short) %v7507_v49, 128 }
 0x831   : > { %7521 = vxpose.xlu0.b32.cont [5/8] (short) %v7509_v35, 128 }
 0x835   : > { %7522 = vxpose.xlu0.b32.cont [6/8] (short) %v7511_v9, 128 }
 0x839   : > { %7523 = vxpose.xlu0.b32.cont [7/8] (short) %v7513_v15, 128 }
 0x83d   : > { %7524 = vxpose.xlu0.b32.end [8/8] (short) %v7515_v50, 128 }
 0x860   : > { %v7098_v22 = vpop.trf.xlu0 }
 0x861   : > { %7146 = vst.msk [vmem:[%s12462_s2 + $0x180] sm:$0xff] %vm1099_vm0, %v7098_v22 }
 0x862   : > { %v7130_v8 = vpop.trf.xlu1 }
 0x863   : > { %7162 = vst.msk [vmem:[%s12462_s2 + $0x200] sm:$0xff] %vm1099_vm0, %v7130_v8 }
 0x864   : > { %v7099_v10 = vpop.trf.xlu0 }
 0x865   : > { %7147 = vst.msk [vmem:[%s12462_s2 + $0x188] sm:$0xff] %vm1099_vm0, %v7099_v10 }
 0x866   : > { %v7131_v63 = vpop.trf.xlu1 }
 0x867   : > { %7163 = vst.msk [vmem:[%s12462_s2 + $0x208] sm:$0xff] %vm1099_vm0, %v7131_v63 }
 0x868   : > { %v7100_v14 = vpop.trf.xlu0 }
 0x869   : > { %7148 = vst.msk [vmem:[%s12462_s2 + $0x190] sm:$0xff] %vm1099_vm0, %v7100_v14 }
 0x86a   : > { %v7132_v17 = vpop.trf.xlu1 }
 0x86b   : > { %7164 = vst.msk [vmem:[%s12462_s2 + $0x210] sm:$0xff] %vm1099_vm0, %v7132_v17 }
 0x86c   : > { %v7101_v41 = vpop.trf.xlu0 }
 0x86d   : > { %7149 = vst.msk [vmem:[%s12462_s2 + $0x198] sm:$0xff] %vm1099_vm0, %v7101_v41 }
 0x86e   : > { %v7133_v30 = vpop.trf.xlu1 }
 0x86f   : > { %7165 = vst.msk [vmem:[%s12462_s2 + $0x218] sm:$0xff] %vm1099_vm0, %v7133_v30 }
 0x870   : > { %v7102_v56 = vpop.trf.xlu0 }
 0x871   : > { %7150 = vst.msk [vmem:[%s12462_s2 + $0x1a0] sm:$0xff] %vm1099_vm0, %v7102_v56 }
 0x872   : > { %v7134_v51 = vpop.trf.xlu1 }
 0x873   : > { %7166 = vst.msk [vmem:[%s12462_s2 + $0x220] sm:$0xff] %vm1099_vm0, %v7134_v51 }
 0x874   : > { %v7103_v26 = vpop.trf.xlu0 }
 0x875   : > { %7151 = vst.msk [vmem:[%s12462_s2 + $0x1a8] sm:$0xff] %vm1099_vm0, %v7103_v26 }
 0x876   : > { %v7135_v37 = vpop.trf.xlu1 }
 0x877   : > { %7167 = vst.msk [vmem:[%s12462_s2 + $0x228] sm:$0xff] %vm1099_vm0, %v7135_v37 }
 0x878   : > { %v7104_v21 = vpop.trf.xlu0 }
 0x879   : > { %7152 = vst.msk [vmem:[%s12462_s2 + $0x1b0] sm:$0xff] %vm1099_vm0, %v7104_v21 }
 0x87a   : > { %v7136_v34 = vpop.trf.xlu1 }
 0x87b   : > { %7168 = vst.msk [vmem:[%s12462_s2 + $0x230] sm:$0xff] %vm1099_vm0, %v7136_v34 }
 0x87c   : > { %v7105_v28 = vpop.trf.xlu0 }
 0x87d   : > { %7153 = vst.msk [vmem:[%s12462_s2 + $0x1b8] sm:$0xff] %vm1099_vm0, %v7105_v28 }
 0x87e   : > { %v7137_v44 = vpop.trf.xlu1 }
 0x87f   : > { %7169 = vst.msk [vmem:[%s12462_s2 + $0x238] sm:$0xff] %vm1099_vm0, %v7137_v44 }
 0x880   : > { %v7106_v25 = vpop.trf.xlu0 }
 0x881   : > { %7154 = vst.msk [vmem:[%s12462_s2 + $0x1c0] sm:$0xff] %vm1099_vm0, %v7106_v25 }
 0x882   : > { %v7565_v43 = vpop.trf.xlu1 }
 0x883   : > { %7597 = vst.msk [vmem:[%s12462_s2 + $0x2c0] sm:$0xff] %vm1099_vm0, %v7565_v43 }
 0x884   : > { %v7107_v39 = vpop.trf.xlu0 }
 0x885   : > { %7155 = vst.msk [vmem:[%s12462_s2 + $0x1c8] sm:$0xff] %vm1099_vm0, %v7107_v39 }
 0x886   : > { %v7566_v42 = vpop.trf.xlu1 }
 0x887   : > { %7598 = vst.msk [vmem:[%s12462_s2 + $0x2c8] sm:$0xff] %vm1099_vm0, %v7566_v42 }
 0x888   : > { %v7108_v4 = vpop.trf.xlu0 }
 0x889   : > { %7156 = vst.msk [vmem:[%s12462_s2 + $0x1d0] sm:$0xff] %vm1099_vm0, %v7108_v4 }
 0x88a   : > { %v7567_v59 = vpop.trf.xlu1 }
 0x88b   : > { %7599 = vst.msk [vmem:[%s12462_s2 + $0x2d0] sm:$0xff] %vm1099_vm0, %v7567_v59 }
 0x88c   : > { %v7109_v5 = vpop.trf.xlu0 }
 0x88d   : > { %7157 = vst.msk [vmem:[%s12462_s2 + $0x1d8] sm:$0xff] %vm1099_vm0, %v7109_v5 }
 0x88e   : > { %v7568_v36 = vpop.trf.xlu1 }
 0x88f   : > { %7600 = vst.msk [vmem:[%s12462_s2 + $0x2d8] sm:$0xff] %vm1099_vm0, %v7568_v36 }
 0x890   : > { %v7110_v20 = vpop.trf.xlu0 }
 0x891   : > { %7158 = vst.msk [vmem:[%s12462_s2 + $0x1e0] sm:$0xff] %vm1099_vm0, %v7110_v20 }
 0x892   : > { %v7569_v0 = vpop.trf.xlu1 }
 0x893   : > { %7601 = vst.msk [vmem:[%s12462_s2 + $0x2e0] sm:$0xff] %vm1099_vm0, %v7569_v0 }
 0x894   : > { %v7111_v58 = vpop.trf.xlu0 }
 0x895   : > { %7159 = vst.msk [vmem:[%s12462_s2 + $0x1e8] sm:$0xff] %vm1099_vm0, %v7111_v58 }
 0x896   : > { %v7570_v19 = vpop.trf.xlu1 }
 0x897   : > { %7602 = vst.msk [vmem:[%s12462_s2 + $0x2e8] sm:$0xff] %vm1099_vm0, %v7570_v19 }
 0x898   : > { %v7112_v13 = vpop.trf.xlu0 }
 0x899   : > { %7160 = vst.msk [vmem:[%s12462_s2 + $0x1f0] sm:$0xff] %vm1099_vm0, %v7112_v13 }
 0x89a   : > { %v7571_v60 = vpop.trf.xlu1 }
 0x89b   : > { %7603 = vst.msk [vmem:[%s12462_s2 + $0x2f0] sm:$0xff] %vm1099_vm0, %v7571_v60 }
 0x89c   : > { %v7113_v18 = vpop.trf.xlu0 }
 0x89d   : > { %7161 = vst.msk [vmem:[%s12462_s2 + $0x1f8] sm:$0xff] %vm1099_vm0, %v7113_v18 }
 0x89e   : > { %v7572_v12 = vpop.trf.xlu1 }
 0x89f   : > { %7604 = vst.msk [vmem:[%s12462_s2 + $0x2f8] sm:$0xff] %vm1099_vm0, %v7572_v12 }
 0x8a0   : > { %v7533_v52 = vpop.trf.xlu0 }
 0x8a1   : > { %7581 = vst.msk [vmem:[%s12462_s2 + $0x240] sm:$0xff] %vm1099_vm0, %v7533_v52 }
 0x8a4   : > { %v7534_v61 = vpop.trf.xlu0 }
 0x8a5   : > { %7582 = vst.msk [vmem:[%s12462_s2 + $0x248] sm:$0xff] %vm1099_vm0, %v7534_v61 }
 0x8a8   : > { %v7535_v1 = vpop.trf.xlu0 }
 0x8a9   : > { %7583 = vst.msk [vmem:[%s12462_s2 + $0x250] sm:$0xff] %vm1099_vm0, %v7535_v1 }
 0x8ac   : > { %v7536_v62 = vpop.trf.xlu0 }
 0x8ad   : > { %7584 = vst.msk [vmem:[%s12462_s2 + $0x258] sm:$0xff] %vm1099_vm0, %v7536_v62 }
 0x8b0   : > { %v7537_v6 = vpop.trf.xlu0 }
 0x8b1   : > { %7585 = vst.msk [vmem:[%s12462_s2 + $0x260] sm:$0xff] %vm1099_vm0, %v7537_v6 }
 0x8b4   : > { %v7538_v23 = vpop.trf.xlu0 }
 0x8b5   : > { %7586 = vst.msk [vmem:[%s12462_s2 + $0x268] sm:$0xff] %vm1099_vm0, %v7538_v23 }
 0x8b8   : > { %v7539_v29 = vpop.trf.xlu0 }
 0x8b9   : > { %7587 = vst.msk [vmem:[%s12462_s2 + $0x270] sm:$0xff] %vm1099_vm0, %v7539_v29 }
 0x8bc   : > { %v7540_v45 = vpop.trf.xlu0 }
 0x8bd   : > { %7588 = vst.msk [vmem:[%s12462_s2 + $0x278] sm:$0xff] %vm1099_vm0, %v7540_v45 }
 0x8c0   : > { %v7541_v40 = vpop.trf.xlu0 }
 0x8c1   : > { %7589 = vst.msk [vmem:[%s12462_s2 + $0x280] sm:$0xff] %vm1099_vm0, %v7541_v40 }
 0x8c4   : > { %v7542_v53 = vpop.trf.xlu0 }
 0x8c5   : > { %7590 = vst.msk [vmem:[%s12462_s2 + $0x288] sm:$0xff] %vm1099_vm0, %v7542_v53 }
 0x8c8   : > { %v7543_v57 = vpop.trf.xlu0 }
 0x8c9   : > { %7591 = vst.msk [vmem:[%s12462_s2 + $0x290] sm:$0xff] %vm1099_vm0, %v7543_v57 }
 0x8cc   : > { %v7544_v33 = vpop.trf.xlu0 }
 0x8cd   : > { %7592 = vst.msk [vmem:[%s12462_s2 + $0x298] sm:$0xff] %vm1099_vm0, %v7544_v33 }
 0x8d0   : > { %v7545_v27 = vpop.trf.xlu0 }
 0x8d1   : > { %7593 = vst.msk [vmem:[%s12462_s2 + $0x2a0] sm:$0xff] %vm1099_vm0, %v7545_v27 }
 0x8d4   : > { %v7546_v46 = vpop.trf.xlu0 }
 0x8d5   : > { %7594 = vst.msk [vmem:[%s12462_s2 + $0x2a8] sm:$0xff] %vm1099_vm0, %v7546_v46 }
 0x8d8   : > { %v7547_v24 = vpop.trf.xlu0 }
 0x8d9   : > { %7595 = vst.msk [vmem:[%s12462_s2 + $0x2b0] sm:$0xff] %vm1099_vm0, %v7547_v24 }
 0x8dc   : > { %v7548_v3 = vpop.trf.xlu0 }
 0x8dd   : > { %7596 = vst.msk [vmem:[%s12462_s2 + $0x2b8] sm:$0xff] %vm1099_vm0, %v7548_v3 }
 0x8de PF: > { %s34_s24 = sadd.s32 1, %s9281_s24  }
 0x8df   : > { %p31_p6 = scmp.ge.s32.totalorder %s34_s24, 4  }
 0x8e1   :  { %33 = sbr.rel (!%p31_p6) target bundleno = 12 (0xc), region = 203 }
 0x8e6   :  { %7626 = vsyncpa [#allocation5], 1 }
 0x8e7   :  { %7628 = vsyncpa [#allocation5 + $0x1], 1 }
 0x8e8   :  { %7629 = vsyncpa [#allocation7], 1 }
 0x8e9   :  { %7630 = vsyncpa [#allocation10], 1 }
 0x8ea   :  { %7631 = vsyncpa [#allocation13], 1 }
 0x8eb   :  { %7632 = vsyncpa [#allocation16], 1 }
 0x8ec   :  { %7633 = vsyncpa [#allocation19], 1 }
 0x8ed   :  { %7634 = vsyncpa [#allocation22], 1 }

</bundles_post_ra>
